<compile_context>
chip_gen: v7x
topology: tpu7x:2x2x1
jax: 0.10.0
libtpu: 0.0.40
codegen_flags: <defaults>
</compile_context>

<pallas_src>
import functools
import math

import jax
import jax.numpy as jnp
import numpy as np
from jax import lax
from jax.experimental import pallas as pl
from jax.experimental.pallas import tpu as pltpu

NEG_INF = -1e30     # max-pool halo value (never selected: every window holds a real pixel)
PADH = 6            # >= 6-row halo needed by the 13x13 (= 5 o 5 o 5) pool
PADW = 8            # >= 6 and 8-aligned so content column slices start on sublane boundaries
PADL = 8            # PHDE scratch: left zero columns (8-aligned content offset)
PADR = 8            # PHDE scratch: right zero columns

# static safety: the roll-wrap correctness silently depends on the halo covering
# the cumulative +/-6 shift of the 13x13 pool (review correctness note).
assert PADH >= 6 and PADW >= 6, "halo must cover the cumulative +/-6 pool shift"
assert PADW % 8 == 0 and PADL % 8 == 0, "content column offsets must be 8-aligned"


def _vmem_limit_bytes(H, W, c1, c_, c2, cr, hid, T):
    """Re-derive the scoped-VMEM cap from actual usage (+ margin), per review."""
    HW = H * W
    io_blocks = 2 * 4 * HW * (c1 + c2)                       # double-buffered in/out blocks
    weights = 4 * (c1 * c_ + c_ + 4 * c2 * c_ + c2 + c2 * cr
                   + cr * hid + hid * T + 4 * (T - 1))
    scratch = 4 * ((H + 2 * PADH) * (W + 2 * PADW) * c_
                   + (H + 4) * (W + PADL + PADR) * cr)
    need = io_blocks + 2 * weights + scratch + (8 << 20)     # compiler-internal margin
    return int(min(max(need, 16 << 20), 40 << 20))           # headroom vs v7x 64 MiB VMEM


# ---------------------------------------------------------------------------
# Fused kernel: cv1 + SPPF pools + cv2 + PHDE, one image per grid step
# ---------------------------------------------------------------------------
def _phdesppf_kernel(x_ref, w1_ref, b1_ref, w2t0_ref, w2t1_ref, w2t2_ref,
                     w2t3_ref, b2_ref, rw_ref, wp1_ref, wp2_ref, dta_ref,
                     dtb_ref, o_ref, pad_ref, zpad_ref, *, H, W):
    HW = x_ref.shape[2]
    c_ = w1_ref.shape[1]
    cr = rw_ref.shape[1]
    Tm1 = dta_ref.shape[1]
    f32 = jnp.float32
    Hp, Wp = H + 2 * PADH, W + 2 * PADW
    Hz, Wz = H + 4, W + PADL + PADR

    def wroll(a, s):
        # cyclic shift along the padded-W (sublane) axis of a (*, Wpad, C) value (XLU slot)
        return pltpu.roll(a, s % a.shape[1], axis=1)

    # ---- cv1: 1x1 conv (+folded BN) + SiLU --------------------------------
    # x arrives channels-major (c1, HW); the layout flip into spatial-major is
    # absorbed into the MXU operand transpose (A^T @ B), not an XLA transpose.
    x_t = x_ref[0]                                                 # (c1, HW)
    a1 = lax.dot_general(x_t, w1_ref[...], (((0,), (0,)), ((), ())),
                         preferred_element_type=f32) + b1_ref[...]
    h1 = a1 * jax.nn.sigmoid(a1)                                   # (HW, c_)

    # ---- SPPF pools: -inf halo ring refilled per step, interior overwritten -
    pad_ref[0:PADH, :, :] = jnp.full((PADH, Wp, c_), NEG_INF, f32)
    pad_ref[PADH + H:Hp, :, :] = jnp.full((Hp - PADH - H, Wp, c_), NEG_INF, f32)
    pad_ref[PADH:PADH + H, 0:PADW, :] = jnp.full((H, PADW, c_), NEG_INF, f32)
    pad_ref[PADH:PADH + H, PADW + W:Wp, :] = jnp.full((H, Wp - PADW - W, c_), NEG_INF, f32)
    pad_ref[PADH:PADH + H, PADW:PADW + W, :] = h1.reshape(H, W, c_)
    P = pad_ref[...]                                               # (Hp, Wp, c_)

    # separable row maxima; 5 -> 9 -> 13 by window doubling (wrap meets only -inf halo)
    r5 = jnp.maximum(P, jnp.maximum(wroll(P, 1), wroll(P, -1)))
    r5 = jnp.maximum(r5, jnp.maximum(wroll(P, 2), wroll(P, -2)))
    r9 = jnp.maximum(wroll(r5, 2), wroll(r5, -2))
    r13 = jnp.maximum(wroll(r9, 2), wroll(r9, -2))
    r5 = r5[:, PADW:PADW + W, :]
    r9 = r9[:, PADW:PADW + W, :]
    r13 = r13[:, PADW:PADW + W, :]

    def colmax5(a, row0, nrows):
        m = a[row0 - 2:row0 - 2 + nrows]
        for d in (-1, 0, 1, 2):
            m = jnp.maximum(m, a[row0 + d:row0 + d + nrows])
        return m

    y1 = colmax5(r5, PADH, H)                                      # 5x5
    c9 = colmax5(r9, PADH - 2, H + 4)
    y2 = jnp.maximum(c9[0:H], c9[4:4 + H])                         # 9x9  == 5 o 5
    c13 = colmax5(r13, PADH - 4, H + 8)
    y3 = jnp.maximum(jnp.maximum(c13[0:H], c13[4:4 + H]), c13[8:8 + H])   # 13x13

    # ---- cv2: four accumulated matmuls + SiLU, kept channels-major ---------
    # w2 chunks arrive pre-transposed (c2, c_); A @ B^T keeps h2 as (c2, HW),
    # so the final store is lane-dense and no output transpose is needed.
    dn = (((1,), (1,)), ((), ()))
    acc = lax.dot_general(w2t0_ref[...], h1, dn, preferred_element_type=f32)
    acc = acc + lax.dot_general(w2t1_ref[...], y1.reshape(HW, c_), dn,
                                preferred_element_type=f32)
    acc = acc + lax.dot_general(w2t2_ref[...], y2.reshape(HW, c_), dn,
                                preferred_element_type=f32)
    acc = acc + lax.dot_general(w2t3_ref[...], y3.reshape(HW, c_), dn,
                                preferred_element_type=f32)
    acc = acc + b2_ref[...]                                        # (c2, 1) bcast
    h2_t = acc * jax.nn.sigmoid(acc)                               # (c2, HW)

    # ---- PHDE: reduce conv + global-context MLP, fully in-kernel ------------
    yred = lax.dot_general(h2_t, rw_ref[...], (((0,), (0,)), ((), ())),
                           preferred_element_type=f32)             # (HW, cr)
    inv_hw = jnp.full((1, HW), 1.0 / HW, f32)
    ctx = jnp.dot(inv_hw, yred, preferred_element_type=f32)        # (1, cr): GAP via MXU
    hid = jnp.maximum(jnp.dot(ctx, wp1_ref[...], preferred_element_type=f32), 0.0)
    logits = jnp.dot(hid, wp2_ref[...], preferred_element_type=f32)   # (1, T)
    logits = logits - jnp.max(logits, axis=-1, keepdims=True)
    e = jnp.exp(logits)
    wsm = e / jnp.sum(e, axis=-1, keepdims=True)
    wk = wsm[:, :Tm1]                                              # (1, T-1)
    # t_scale and the fuse weight are algebraically folded (outside) into
    # dta/dtb so the persistence-weighted sum collapses to two scalars:
    alpha = jnp.sum(wk * dta_ref[...], axis=-1, keepdims=True)     # (1, 1)
    beta = jnp.sum(wk * dtb_ref[...], axis=-1, keepdims=True)      # (1, 1)

    # ---- two chained zero-padded 3x3 Laplacians (ring-only zero refill) -----
    zpad_ref[0:2, :, :] = jnp.zeros((2, Wz, cr), f32)
    zpad_ref[2 + H:Hz, :, :] = jnp.zeros((Hz - 2 - H, Wz, cr), f32)
    zpad_ref[2:2 + H, 0:PADL, :] = jnp.zeros((H, PADL, cr), f32)
    zpad_ref[2:2 + H, PADL + W:Wz, :] = jnp.zeros((H, Wz - PADL - W, cr), f32)
    zpad_ref[2:2 + H, PADL:PADL + W, :] = yred.reshape(H, W, cr)

    def lap_content(v):
        # 3x3 cross Laplacian on the H content rows: H neighbours via free
        # leading-axis offsets, W neighbours via XLU rolls (wrap meets only the
        # zero ring).  Only content columns of the result are valid.
        ctr = v[2:2 + H]
        ud = v[1:1 + H] + v[3:3 + H]
        lr = wroll(ctr, 1) + wroll(ctr, -1)
        return ud + lr - 4.0 * ctr                                 # (H, Wz, cr)

    l1 = lap_content(zpad_ref[...])[:, PADL:PADL + W, :]           # (H, W, cr)
    # write L(y) back into the same scratch (ring still zero) instead of a
    # full-tile iota keep-mask, then apply the Laplacian again.
    zpad_ref[2:2 + H, PADL:PADL + W, :] = l1
    l2 = lap_content(zpad_ref[...])[:, PADL:PADL + W, :]           # (H, W, cr)

    # attn = sigmoid(alpha*mean_c(Ly) + beta*mean_c(L^2 y)); channel mean on MXU
    comb = alpha * l1.reshape(HW, cr) + beta * l2.reshape(HW, cr)  # (HW, cr)
    inv_cr = jnp.full((1, cr), 1.0 / cr, f32)
    m_t = lax.dot_general(inv_cr, comb, (((1,), (1,)), ((), ())),
                          preferred_element_type=f32)              # (1, HW)
    attn_t = jax.nn.sigmoid(m_t)

    o_ref[0] = (h2_t * (1.0 + attn_t)).astype(o_ref.dtype)         # (c2, HW): lane-dense


def _phdesppf_call(x_flat, w1, b1, w2t, b2t, rw, wp1, wp2, dta, dtb, *, H, W):
    B, c1, HW = x_flat.shape
    c_ = w1.shape[1]
    c2 = rw.shape[0]
    cr = rw.shape[1]
    hid = wp1.shape[1]
    T = wp2.shape[1]

    vmem_spec = pl.BlockSpec(memory_space=pltpu.MemorySpace.VMEM)
    kernel = functools.partial(_phdesppf_kernel, H=H, W=W)

    return pl.pallas_call(
        kernel,
        grid=(B,),
        out_shape=jax.ShapeDtypeStruct((B, c2, HW), jnp.float32),
        in_specs=[pl.BlockSpec((1, c1, HW), lambda b: (b, 0, 0))] + [vmem_spec] * 12,
        out_specs=pl.BlockSpec((1, c2, HW), lambda b: (b, 0, 0)),
        scratch_shapes=[
            pltpu.VMEM((H + 2 * PADH, W + 2 * PADW, c_), jnp.float32),   # -inf pool halo
            pltpu.VMEM((H + 4, W + PADL + PADR, cr), jnp.float32),       # zero Laplacian halo
        ],
        compiler_params=pltpu.CompilerParams(
            dimension_semantics=("parallel",),
            vmem_limit_bytes=_vmem_limit_bytes(H, W, c1, c_, c2, cr, hid, T)),
        cost_estimate=pl.CostEstimate(
            flops=2 * B * HW * (c1 * c_ + 4 * c_ * c2 + c2 * cr + cr)
                  + 30 * B * HW * c_ + 24 * B * HW * cr,
            transcendentals=B * HW * (c_ + c2 + 1),
            bytes_accessed=4 * B * HW * (c1 + c2)),
    )(x_flat, w1, b1, w2t[0], w2t[1], w2t[2], w2t[3], b2t, rw, wp1, wp2, dta, dtb)


# ---------------------------------------------------------------------------
# Parameter construction (synthetic, deterministic).  Conv+BN are folded.
# ---------------------------------------------------------------------------
def make_params(key, c1, c2, r=4, times=(0.5, 1.0, 2.0)):
    c_ = c1 // 2
    cr = max(8, c2 // r)
    hid = max(8, cr // 2)
    T = len(times)
    ks = jax.random.split(key, 14)
    eps = 1e-3

    def u(k_, shape, fan_in):
        bnd = 1.0 / math.sqrt(fan_in)
        return jax.random.uniform(k_, shape, jnp.float32, -bnd, bnd)

    def fold_bn(w, kg, kb, km, kv, cout):
        gamma = 1.0 + 0.1 * jax.random.normal(kg, (cout,), jnp.float32)
        beta = 0.1 * jax.random.normal(kb, (cout,), jnp.float32)
        mean = 0.1 * jax.random.normal(km, (cout,), jnp.float32)
        var = 0.5 + 0.5 * jax.random.uniform(kv, (cout,), jnp.float32)
        s = gamma / jnp.sqrt(var + eps)
        return w * s[None, :], beta - mean * s

    cv1_w, cv1_b = fold_bn(u(ks[0], (c1, c_), c1), ks[1], ks[2], ks[3], ks[4], c_)
    cv2_w, cv2_b = fold_bn(u(ks[5], (4 * c_, c2), 4 * c_), ks[6], ks[7], ks[8], ks[9], c2)
    return dict(
        cv1_w=cv1_w, cv1_b=cv1_b, cv2_w=cv2_w, cv2_b=cv2_b,
        reduce_w=u(ks[10], (c2, cr), c2),
        wpred_w1=u(ks[11], (cr, hid), cr),
        wpred_w2=u(ks[12], (hid, T), hid),
        fuse_w=u(ks[13], (1,), 1),
        t_scale=jnp.asarray(times, jnp.float32),
    )


# ---------------------------------------------------------------------------
# Full forward: one fused Pallas kernel, only free reshapes outside
# ---------------------------------------------------------------------------
@jax.jit
def phde_sppf_forward(params, x_nchw):
    B, c1, H, W = x_nchw.shape
    c_ = params["cv1_w"].shape[1]
    c2 = params["cv2_w"].shape[1]
    T = params["t_scale"].shape[0]
    HW = H * W

    # free reshape of NCHW (no transpose): the kernel works channels-major at
    # the boundaries and absorbs the layout flips into MXU operand transposes.
    x_flat = x_nchw.reshape(B, c1, HW).astype(jnp.float32)

    w1 = params["cv1_w"]
    b1 = params["cv1_b"].reshape(1, c_)
    w2_chunks = jnp.split(params["cv2_w"], 4, axis=0)             # each (c_, c2)
    w2t = [jnp.transpose(w) for w in w2_chunks]                   # (c2, c_)
    b2t = params["cv2_b"].reshape(c2, 1)

    # fold t_scale + fuse weight into the per-time coefficients consumed in-kernel
    t = params["t_scale"]
    fuse = params["fuse_w"][0]
    dta = (-fuse * (t[1:] - t[:-1])).reshape(1, T - 1)
    dtb = (0.5 * fuse * (t[1:] ** 2 - t[:-1] ** 2)).reshape(1, T - 1)

    out_flat = _phdesppf_call(x_flat, w1, b1, w2t, b2t, params["reduce_w"],
                              params["wpred_w1"], params["wpred_w2"], dta, dtb,
                              H=H, W=W)
    return out_flat.reshape(B, c2, H, W)                          # free reshape to NCHW


# ---------------------------------------------------------------------------
# Pure-JAX reference (same folded params) for validation
# ---------------------------------------------------------------------------
def reference_forward(params, x_nchw):
    x = jnp.transpose(x_nchw, (0, 2, 3, 1)).astype(jnp.float32)

    def pw(v, w, b, act):
        y = jnp.einsum("bhwc,cd->bhwd", v, w)
        if b is not None:
            y = y + b
        return y * jax.nn.sigmoid(y) if act else y

    def maxpool5(v):
        return jax.lax.reduce_window(v, -jnp.inf, jax.lax.max,
                                     (1, 5, 5, 1), (1, 1, 1, 1),
                                     [(0, 0), (2, 2), (2, 2), (0, 0)])

    def lap(v):
        vp = jnp.pad(v, ((0, 0), (1, 1), (1, 1), (0, 0)))
        return (vp[:, :-2, 1:-1] + vp[:, 2:, 1:-1] +
                vp[:, 1:-1, :-2] + vp[:, 1:-1, 2:] - 4.0 * v)

    h1 = pw(x, params["cv1_w"], params["cv1_b"], True)
    p1 = maxpool5(h1); p2 = maxpool5(p1); p3 = maxpool5(p2)
    h2 = pw(jnp.concatenate([h1, p1, p2, p3], -1), params["cv2_w"], params["cv2_b"], True)
    y = pw(h2, params["reduce_w"], None, False)
    l1 = lap(y); l2 = lap(l1)
    ts = params["t_scale"]
    feats = [y - t * l1 + 0.5 * t * t * l2 for t in ts]
    P = jnp.stack([feats[i + 1] - feats[i] for i in range(len(feats) - 1)], 1)
    Pm = jnp.mean(P, axis=-1)                                      # (B, T-1, H, W)
    ctx = jnp.mean(y, axis=(1, 2))                                 # (B, cr)
    hid = jnp.maximum(ctx @ params["wpred_w1"], 0.0)
    wsm = jax.nn.softmax(hid @ params["wpred_w2"], axis=-1)[:, :-1]
    wps = jnp.sum(Pm * wsm[:, :, None, None], axis=1)              # (B, H, W)
    a = jax.nn.sigmoid(params["fuse_w"][0] * wps)
    out = h2 * (1.0 + a)[..., None]
    return jnp.transpose(out, (0, 3, 1, 2))


if __name__ == "__main__":
    key = jax.random.PRNGKey(0)
    k_x, k_p = jax.random.split(key)

    B, C1, C2, H, W = 2, 8, 8, 16, 16
    x = jax.random.normal(k_x, (B, C1, H, W), jnp.float32)   # NCHW like PyTorch
    params = make_params(k_p, C1, C2)

    out = jax.block_until_ready(phde_sppf_forward(params, x))
    ref = jax.block_until_ready(reference_forward(params, x))

    assert out.shape == (B, C2, H, W), out.shape
    # tolerance covers default-precision (bf16-pass) MXU matmuls on either path,
    # amplified by the two chained Laplacians; structural bugs give O(0.1+) errors.
    np.testing.assert_allclose(np.asarray(out), np.asarray(ref), rtol=2e-2, atol=2e-2)
    print("KERNEL_OK")
</pallas_src>

<mosaic_0001>
module attributes {stable_mosaic.version = 11 : i64} {
  func.func @_phdesppf_kernel(%arg0: i32, %arg1: memref<1x8x256xf32, #tpu.memory_space<vmem>>, %arg2: memref<8x4xf32, #tpu.memory_space<vmem>>, %arg3: memref<1x4xf32, #tpu.memory_space<vmem>>, %arg4: memref<8x4xf32, #tpu.memory_space<vmem>>, %arg5: memref<8x4xf32, #tpu.memory_space<vmem>>, %arg6: memref<8x4xf32, #tpu.memory_space<vmem>>, %arg7: memref<8x4xf32, #tpu.memory_space<vmem>>, %arg8: memref<8x1xf32, #tpu.memory_space<vmem>>, %arg9: memref<8x8xf32, #tpu.memory_space<vmem>>, %arg10: memref<8x8xf32, #tpu.memory_space<vmem>>, %arg11: memref<8x3xf32, #tpu.memory_space<vmem>>, %arg12: memref<1x2xf32, #tpu.memory_space<vmem>>, %arg13: memref<1x2xf32, #tpu.memory_space<vmem>>, %arg14: memref<1x8x256xf32, #tpu.memory_space<vmem>>, %arg15: memref<28x32x4xf32, #tpu.memory_space<vmem>>, %arg16: memref<20x32x8xf32, #tpu.memory_space<vmem>>) attributes {dimension_semantics = [#tpu.dimension_semantics<parallel>], iteration_bounds = array<i64: 2>, scalar_prefetch = 0 : i64, scratch_operands = 2 : i64, tpu.core_type = #tpu.core_type<tc>, window_params = [{transform_indices = @transform_0, window_bounds = array<i64: 1, 8, 256>}, {pipeline_mode = #tpu.pipeline_mode<synchronous>, transform_indices = @transform_1, window_bounds = array<i64: 8, 4>}, {pipeline_mode = #tpu.pipeline_mode<synchronous>, transform_indices = @transform_2, window_bounds = array<i64: 1, 4>}, {pipeline_mode = #tpu.pipeline_mode<synchronous>, transform_indices = @transform_3, window_bounds = array<i64: 8, 4>}, {pipeline_mode = #tpu.pipeline_mode<synchronous>, transform_indices = @transform_4, window_bounds = array<i64: 8, 4>}, {pipeline_mode = #tpu.pipeline_mode<synchronous>, transform_indices = @transform_5, window_bounds = array<i64: 8, 4>}, {pipeline_mode = #tpu.pipeline_mode<synchronous>, transform_indices = @transform_6, window_bounds = array<i64: 8, 4>}, {pipeline_mode = #tpu.pipeline_mode<synchronous>, transform_indices = @transform_7, window_bounds = array<i64: 8, 1>}, {pipeline_mode = #tpu.pipeline_mode<synchronous>, transform_indices = @transform_8, window_bounds = array<i64: 8, 8>}, {pipeline_mode = #tpu.pipeline_mode<synchronous>, transform_indices = @transform_9, window_bounds = array<i64: 8, 8>}, {pipeline_mode = #tpu.pipeline_mode<synchronous>, transform_indices = @transform_10, window_bounds = array<i64: 8, 3>}, {pipeline_mode = #tpu.pipeline_mode<synchronous>, transform_indices = @transform_11, window_bounds = array<i64: 1, 2>}, {pipeline_mode = #tpu.pipeline_mode<synchronous>, transform_indices = @transform_12, window_bounds = array<i64: 1, 2>}, {transform_indices = @transform_13, window_bounds = array<i64: 1, 8, 256>}]} {
    %c0 = arith.constant 0 : index
    %c0_0 = arith.constant 0 : index
    %c0_1 = arith.constant 0 : index
    %0 = vector.load %arg1[%c0, %c0_0, %c0_1] : memref<1x8x256xf32, #tpu.memory_space<vmem>>, vector<1x8x256xf32>
    %1 = vector.shape_cast %0 : vector<1x8x256xf32> to vector<8x256xf32>
    %c0_2 = arith.constant 0 : index
    %c0_3 = arith.constant 0 : index
    %2 = vector.load %arg2[%c0_2, %c0_3] : memref<8x4xf32, #tpu.memory_space<vmem>>, vector<8x4xf32>
    %cst = arith.constant dense<0.000000e+00> : vector<256x4xf32>
    %3 = tpu.matmul %1, %2, %cst {dimension_numbers = #tpu.dot_dimension_numbers<[0], [0], [1], [1], [0, 1, 1, 1], [], []>} : vector<8x256xf32>, vector<8x4xf32>, vector<256x4xf32> -> vector<256x4xf32>
    %c0_4 = arith.constant 0 : index
    %c0_5 = arith.constant 0 : index
    %4 = vector.load %arg3[%c0_4, %c0_5] : memref<1x4xf32, #tpu.memory_space<vmem>>, vector<1x4xf32>
    %5 = vector.broadcast %4 : vector<1x4xf32> to vector<256x4xf32>
    %6 = arith.addf %3, %5 : vector<256x4xf32>
    %7 = arith.negf %6 : vector<256x4xf32>
    %8 = math.exp %7 : vector<256x4xf32>
    %cst_6 = arith.constant 1.000000e+00 : f32
    %9 = vector.broadcast %cst_6 : f32 to vector<256x4xf32>
    %10 = arith.addf %9, %8 : vector<256x4xf32>
    %11 = arith.divf %9, %10 : vector<256x4xf32>
    %12 = arith.mulf %6, %11 : vector<256x4xf32>
    %cst_7 = arith.constant -1.000000e+30 : f32
    %13 = vector.broadcast %cst_7 : f32 to vector<6x32x4xf32>
    %c0_8 = arith.constant 0 : index
    %c0_9 = arith.constant 0 : index
    %c0_10 = arith.constant 0 : index
    %14 = vector.load %arg15[%c0_8, %c0_9, %c0_10] : memref<28x32x4xf32, #tpu.memory_space<vmem>>, vector<6x32x4xf32>
    tpu.vector_store %arg15[%c0_8, %c0_9, %c0_10], %13 {strides = array<i32>} : memref<28x32x4xf32, #tpu.memory_space<vmem>>, vector<6x32x4xf32>,
    %cst_11 = arith.constant -1.000000e+30 : f32
    %15 = vector.broadcast %cst_11 : f32 to vector<6x32x4xf32>
    %c22 = arith.constant 22 : index
    %c0_12 = arith.constant 0 : index
    %c0_13 = arith.constant 0 : index
    %16 = vector.load %arg15[%c22, %c0_12, %c0_13] : memref<28x32x4xf32, #tpu.memory_space<vmem>>, vector<6x32x4xf32>
    tpu.vector_store %arg15[%c22, %c0_12, %c0_13], %15 {strides = array<i32>} : memref<28x32x4xf32, #tpu.memory_space<vmem>>, vector<6x32x4xf32>,
    %cst_14 = arith.constant -1.000000e+30 : f32
    %17 = vector.broadcast %cst_14 : f32 to vector<16x8x4xf32>
    %c6 = arith.constant 6 : index
    %c0_15 = arith.constant 0 : index
    %c0_16 = arith.constant 0 : index
    %18 = vector.load %arg15[%c6, %c0_15, %c0_16] : memref<28x32x4xf32, #tpu.memory_space<vmem>>, vector<16x8x4xf32>
    tpu.vector_store %arg15[%c6, %c0_15, %c0_16], %17 {strides = array<i32>} : memref<28x32x4xf32, #tpu.memory_space<vmem>>, vector<16x8x4xf32>,
    %cst_17 = arith.constant -1.000000e+30 : f32
    %19 = vector.broadcast %cst_17 : f32 to vector<16x8x4xf32>
    %c6_18 = arith.constant 6 : index
    %c24 = arith.constant 24 : index
    %c0_19 = arith.constant 0 : index
    %20 = vector.load %arg15[%c6_18, %c24, %c0_19] : memref<28x32x4xf32, #tpu.memory_space<vmem>>, vector<16x8x4xf32>
    tpu.vector_store %arg15[%c6_18, %c24, %c0_19], %19 {strides = array<i32>} : memref<28x32x4xf32, #tpu.memory_space<vmem>>, vector<16x8x4xf32>,
    %21 = vector.shape_cast %12 : vector<256x4xf32> to vector<16x16x4xf32>
    %c6_20 = arith.constant 6 : index
    %c8 = arith.constant 8 : index
    %c0_21 = arith.constant 0 : index
    %22 = vector.load %arg15[%c6_20, %c8, %c0_21] : memref<28x32x4xf32, #tpu.memory_space<vmem>>, vector<16x16x4xf32>
    tpu.vector_store %arg15[%c6_20, %c8, %c0_21], %21 {strides = array<i32>} : memref<28x32x4xf32, #tpu.memory_space<vmem>>, vector<16x16x4xf32>,
    %c0_22 = arith.constant 0 : index
    %c0_23 = arith.constant 0 : index
    %c0_24 = arith.constant 0 : index
    %23 = vector.load %arg15[%c0_22, %c0_23, %c0_24] : memref<28x32x4xf32, #tpu.memory_space<vmem>>, vector<28x32x4xf32>
    %c1_i32 = arith.constant 1 : i32
    %24 = tpu.dynamic_rotate %23 by %c1_i32 dim 1 : vector<28x32x4xf32>, i32 -> vector<28x32x4xf32>
    %c31_i32 = arith.constant 31 : i32
    %25 = tpu.dynamic_rotate %23 by %c31_i32 dim 1 : vector<28x32x4xf32>, i32 -> vector<28x32x4xf32>
    %26 = arith.maximumf %24, %25 : vector<28x32x4xf32>
    %27 = arith.maximumf %23, %26 : vector<28x32x4xf32>
    %c2_i32 = arith.constant 2 : i32
    %28 = tpu.dynamic_rotate %23 by %c2_i32 dim 1 : vector<28x32x4xf32>, i32 -> vector<28x32x4xf32>
    %c30_i32 = arith.constant 30 : i32
    %29 = tpu.dynamic_rotate %23 by %c30_i32 dim 1 : vector<28x32x4xf32>, i32 -> vector<28x32x4xf32>
    %30 = arith.maximumf %28, %29 : vector<28x32x4xf32>
    %31 = arith.maximumf %27, %30 : vector<28x32x4xf32>
    %c2_i32_25 = arith.constant 2 : i32
    %32 = tpu.dynamic_rotate %31 by %c2_i32_25 dim 1 : vector<28x32x4xf32>, i32 -> vector<28x32x4xf32>
    %c30_i32_26 = arith.constant 30 : i32
    %33 = tpu.dynamic_rotate %31 by %c30_i32_26 dim 1 : vector<28x32x4xf32>, i32 -> vector<28x32x4xf32>
    %34 = arith.maximumf %32, %33 : vector<28x32x4xf32>
    %c2_i32_27 = arith.constant 2 : i32
    %35 = tpu.dynamic_rotate %34 by %c2_i32_27 dim 1 : vector<28x32x4xf32>, i32 -> vector<28x32x4xf32>
    %c30_i32_28 = arith.constant 30 : i32
    %36 = tpu.dynamic_rotate %34 by %c30_i32_28 dim 1 : vector<28x32x4xf32>, i32 -> vector<28x32x4xf32>
    %37 = arith.maximumf %35, %36 : vector<28x32x4xf32>
    %38 = vector.extract_strided_slice %31 {offsets = [0, 8, 0], sizes = [28, 16, 4], strides = [1, 1, 1]} : vector<28x32x4xf32> to vector<28x16x4xf32>
    %39 = vector.extract_strided_slice %34 {offsets = [0, 8, 0], sizes = [28, 16, 4], strides = [1, 1, 1]} : vector<28x32x4xf32> to vector<28x16x4xf32>
    %40 = vector.extract_strided_slice %37 {offsets = [0, 8, 0], sizes = [28, 16, 4], strides = [1, 1, 1]} : vector<28x32x4xf32> to vector<28x16x4xf32>
    %41 = vector.extract_strided_slice %38 {offsets = [4, 0, 0], sizes = [16, 16, 4], strides = [1, 1, 1]} : vector<28x16x4xf32> to vector<16x16x4xf32>
    %42 = vector.extract_strided_slice %38 {offsets = [5, 0, 0], sizes = [16, 16, 4], strides = [1, 1, 1]} : vector<28x16x4xf32> to vector<16x16x4xf32>
    %43 = arith.maximumf %41, %42 : vector<16x16x4xf32>
    %44 = vector.extract_strided_slice %38 {offsets = [6, 0, 0], sizes = [16, 16, 4], strides = [1, 1, 1]} : vector<28x16x4xf32> to vector<16x16x4xf32>
    %45 = arith.maximumf %43, %44 : vector<16x16x4xf32>
    %46 = vector.extract_strided_slice %38 {offsets = [7, 0, 0], sizes = [16, 16, 4], strides = [1, 1, 1]} : vector<28x16x4xf32> to vector<16x16x4xf32>
    %47 = arith.maximumf %45, %46 : vector<16x16x4xf32>
    %48 = vector.extract_strided_slice %38 {offsets = [8, 0, 0], sizes = [16, 16, 4], strides = [1, 1, 1]} : vector<28x16x4xf32> to vector<16x16x4xf32>
    %49 = arith.maximumf %47, %48 : vector<16x16x4xf32>
    %50 = vector.extract_strided_slice %39 {offsets = [2, 0, 0], sizes = [20, 16, 4], strides = [1, 1, 1]} : vector<28x16x4xf32> to vector<20x16x4xf32>
    %51 = vector.extract_strided_slice %39 {offsets = [3, 0, 0], sizes = [20, 16, 4], strides = [1, 1, 1]} : vector<28x16x4xf32> to vector<20x16x4xf32>
    %52 = arith.maximumf %50, %51 : vector<20x16x4xf32>
    %53 = vector.extract_strided_slice %39 {offsets = [4, 0, 0], sizes = [20, 16, 4], strides = [1, 1, 1]} : vector<28x16x4xf32> to vector<20x16x4xf32>
    %54 = arith.maximumf %52, %53 : vector<20x16x4xf32>
    %55 = vector.extract_strided_slice %39 {offsets = [5, 0, 0], sizes = [20, 16, 4], strides = [1, 1, 1]} : vector<28x16x4xf32> to vector<20x16x4xf32>
    %56 = arith.maximumf %54, %55 : vector<20x16x4xf32>
    %57 = vector.extract_strided_slice %39 {offsets = [6, 0, 0], sizes = [20, 16, 4], strides = [1, 1, 1]} : vector<28x16x4xf32> to vector<20x16x4xf32>
    %58 = arith.maximumf %56, %57 : vector<20x16x4xf32>
    %59 = vector.extract_strided_slice %58 {offsets = [0, 0, 0], sizes = [16, 16, 4], strides = [1, 1, 1]} : vector<20x16x4xf32> to vector<16x16x4xf32>
    %60 = vector.extract_strided_slice %58 {offsets = [4, 0, 0], sizes = [16, 16, 4], strides = [1, 1, 1]} : vector<20x16x4xf32> to vector<16x16x4xf32>
    %61 = arith.maximumf %59, %60 : vector<16x16x4xf32>
    %62 = vector.extract_strided_slice %40 {offsets = [0, 0, 0], sizes = [24, 16, 4], strides = [1, 1, 1]} : vector<28x16x4xf32> to vector<24x16x4xf32>
    %63 = vector.extract_strided_slice %40 {offsets = [1, 0, 0], sizes = [24, 16, 4], strides = [1, 1, 1]} : vector<28x16x4xf32> to vector<24x16x4xf32>
    %64 = arith.maximumf %62, %63 : vector<24x16x4xf32>
    %65 = vector.extract_strided_slice %40 {offsets = [2, 0, 0], sizes = [24, 16, 4], strides = [1, 1, 1]} : vector<28x16x4xf32> to vector<24x16x4xf32>
    %66 = arith.maximumf %64, %65 : vector<24x16x4xf32>
    %67 = vector.extract_strided_slice %40 {offsets = [3, 0, 0], sizes = [24, 16, 4], strides = [1, 1, 1]} : vector<28x16x4xf32> to vector<24x16x4xf32>
    %68 = arith.maximumf %66, %67 : vector<24x16x4xf32>
    %69 = vector.extract_strided_slice %40 {offsets = [4, 0, 0], sizes = [24, 16, 4], strides = [1, 1, 1]} : vector<28x16x4xf32> to vector<24x16x4xf32>
    %70 = arith.maximumf %68, %69 : vector<24x16x4xf32>
    %71 = vector.extract_strided_slice %70 {offsets = [0, 0, 0], sizes = [16, 16, 4], strides = [1, 1, 1]} : vector<24x16x4xf32> to vector<16x16x4xf32>
    %72 = vector.extract_strided_slice %70 {offsets = [4, 0, 0], sizes = [16, 16, 4], strides = [1, 1, 1]} : vector<24x16x4xf32> to vector<16x16x4xf32>
    %73 = arith.maximumf %71, %72 : vector<16x16x4xf32>
    %74 = vector.extract_strided_slice %70 {offsets = [8, 0, 0], sizes = [16, 16, 4], strides = [1, 1, 1]} : vector<24x16x4xf32> to vector<16x16x4xf32>
    %75 = arith.maximumf %73, %74 : vector<16x16x4xf32>
    %c0_29 = arith.constant 0 : index
    %c0_30 = arith.constant 0 : index
    %76 = vector.load %arg4[%c0_29, %c0_30] : memref<8x4xf32, #tpu.memory_space<vmem>>, vector<8x4xf32>
    %cst_31 = arith.constant dense<0.000000e+00> : vector<8x256xf32>
    %77 = tpu.matmul %76, %12, %cst_31 {dimension_numbers = #tpu.dot_dimension_numbers<[1], [1], [0], [0], [0, 0, 1, 0], [], []>} : vector<8x4xf32>, vector<256x4xf32>, vector<8x256xf32> -> vector<8x256xf32>
    %c0_32 = arith.constant 0 : index
    %c0_33 = arith.constant 0 : index
    %78 = vector.load %arg5[%c0_32, %c0_33] : memref<8x4xf32, #tpu.memory_space<vmem>>, vector<8x4xf32>
    %79 = vector.shape_cast %49 : vector<16x16x4xf32> to vector<256x4xf32>
    %cst_34 = arith.constant dense<0.000000e+00> : vector<8x256xf32>
    %80 = tpu.matmul %78, %79, %cst_34 {dimension_numbers = #tpu.dot_dimension_numbers<[1], [1], [0], [0], [0, 0, 1, 0], [], []>} : vector<8x4xf32>, vector<256x4xf32>, vector<8x256xf32> -> vector<8x256xf32>
    %81 = arith.addf %77, %80 : vector<8x256xf32>
    %c0_35 = arith.constant 0 : index
    %c0_36 = arith.constant 0 : index
    %82 = vector.load %arg6[%c0_35, %c0_36] : memref<8x4xf32, #tpu.memory_space<vmem>>, vector<8x4xf32>
    %83 = vector.shape_cast %61 : vector<16x16x4xf32> to vector<256x4xf32>
    %cst_37 = arith.constant dense<0.000000e+00> : vector<8x256xf32>
    %84 = tpu.matmul %82, %83, %cst_37 {dimension_numbers = #tpu.dot_dimension_numbers<[1], [1], [0], [0], [0, 0, 1, 0], [], []>} : vector<8x4xf32>, vector<256x4xf32>, vector<8x256xf32> -> vector<8x256xf32>
    %85 = arith.addf %81, %84 : vector<8x256xf32>
    %c0_38 = arith.constant 0 : index
    %c0_39 = arith.constant 0 : index
    %86 = vector.load %arg7[%c0_38, %c0_39] : memref<8x4xf32, #tpu.memory_space<vmem>>, vector<8x4xf32>
    %87 = vector.shape_cast %75 : vector<16x16x4xf32> to vector<256x4xf32>
    %cst_40 = arith.constant dense<0.000000e+00> : vector<8x256xf32>
    %88 = tpu.matmul %86, %87, %cst_40 {dimension_numbers = #tpu.dot_dimension_numbers<[1], [1], [0], [0], [0, 0, 1, 0], [], []>} : vector<8x4xf32>, vector<256x4xf32>, vector<8x256xf32> -> vector<8x256xf32>
    %89 = arith.addf %85, %88 : vector<8x256xf32>
    %c0_41 = arith.constant 0 : index
    %c0_42 = arith.constant 0 : index
    %90 = vector.load %arg8[%c0_41, %c0_42] : memref<8x1xf32, #tpu.memory_space<vmem>>, vector<8x1xf32>
    %91 = vector.broadcast %90 : vector<8x1xf32> to vector<8x256xf32>
    %92 = arith.addf %89, %91 : vector<8x256xf32>
    %93 = arith.negf %92 : vector<8x256xf32>
    %94 = math.exp %93 : vector<8x256xf32>
    %cst_43 = arith.constant 1.000000e+00 : f32
    %95 = vector.broadcast %cst_43 : f32 to vector<8x256xf32>
    %96 = arith.addf %95, %94 : vector<8x256xf32>
    %97 = arith.divf %95, %96 : vector<8x256xf32>
    %98 = arith.mulf %92, %97 : vector<8x256xf32>
    %c0_44 = arith.constant 0 : index
    %c0_45 = arith.constant 0 : index
    %99 = vector.load %arg9[%c0_44, %c0_45] : memref<8x8xf32, #tpu.memory_space<vmem>>, vector<8x8xf32>
    %cst_46 = arith.constant dense<0.000000e+00> : vector<256x8xf32>
    %100 = tpu.matmul %98, %99, %cst_46 {dimension_numbers = #tpu.dot_dimension_numbers<[0], [0], [1], [1], [0, 1, 1, 1], [], []>} : vector<8x256xf32>, vector<8x8xf32>, vector<256x8xf32> -> vector<256x8xf32>
    %cst_47 = arith.constant 3.906250e-03 : f32
    %101 = vector.broadcast %cst_47 : f32 to vector<1x256xf32>
    %cst_48 = arith.constant dense<0.000000e+00> : vector<1x8xf32>
    %102 = tpu.matmul %101, %100, %cst_48 {dimension_numbers = #tpu.dot_dimension_numbers<[1], [0], [0], [1], [0, 0, 1, 1], [], []>} : vector<1x256xf32>, vector<256x8xf32>, vector<1x8xf32> -> vector<1x8xf32>
    %c0_49 = arith.constant 0 : index
    %c0_50 = arith.constant 0 : index
    %103 = vector.load %arg10[%c0_49, %c0_50] : memref<8x8xf32, #tpu.memory_space<vmem>>, vector<8x8xf32>
    %cst_51 = arith.constant dense<0.000000e+00> : vector<1x8xf32>
    %104 = tpu.matmul %102, %103, %cst_51 {dimension_numbers = #tpu.dot_dimension_numbers<[1], [0], [0], [1], [0, 0, 1, 1], [], []>} : vector<1x8xf32>, vector<8x8xf32>, vector<1x8xf32> -> vector<1x8xf32>
    %cst_52 = arith.constant 0.000000e+00 : f32
    %105 = vector.broadcast %cst_52 : f32 to vector<1x8xf32>
    %106 = arith.maximumf %104, %105 : vector<1x8xf32>
    %c0_53 = arith.constant 0 : index
    %c0_54 = arith.constant 0 : index
    %107 = vector.load %arg11[%c0_53, %c0_54] : memref<8x3xf32, #tpu.memory_space<vmem>>, vector<8x3xf32>
    %cst_55 = arith.constant dense<0.000000e+00> : vector<1x3xf32>
    %108 = tpu.matmul %106, %107, %cst_55 {dimension_numbers = #tpu.dot_dimension_numbers<[1], [0], [0], [1], [0, 0, 1, 1], [], []>} : vector<1x8xf32>, vector<8x3xf32>, vector<1x3xf32> -> vector<1x3xf32>
    %cst_56 = arith.constant dense<0xFF800000> : vector<1xf32>
    %109 = vector.multi_reduction <maximumf>, %108, %cst_56 [1] : vector<1x3xf32> to vector<1xf32>
    %110 = vector.shape_cast %109 : vector<1xf32> to vector<1x1xf32>
    %111 = vector.broadcast %110 : vector<1x1xf32> to vector<1x3xf32>
    %112 = arith.subf %108, %111 : vector<1x3xf32>
    %113 = math.exp %112 : vector<1x3xf32>
    %cst_57 = arith.constant dense<0.000000e+00> : vector<1xf32>
    %114 = vector.multi_reduction <add>, %113, %cst_57 [1] : vector<1x3xf32> to vector<1xf32>
    %115 = vector.shape_cast %114 : vector<1xf32> to vector<1x1xf32>
    %116 = vector.broadcast %115 : vector<1x1xf32> to vector<1x3xf32>
    %117 = arith.divf %113, %116 : vector<1x3xf32>
    %118 = vector.extract_strided_slice %117 {offsets = [0, 0], sizes = [1, 2], strides = [1, 1]} : vector<1x3xf32> to vector<1x2xf32>
    %c0_58 = arith.constant 0 : index
    %c0_59 = arith.constant 0 : index
    %119 = vector.load %arg12[%c0_58, %c0_59] : memref<1x2xf32, #tpu.memory_space<vmem>>, vector<1x2xf32>
    %120 = arith.mulf %118, %119 : vector<1x2xf32>
    %cst_60 = arith.constant dense<0.000000e+00> : vector<1xf32>
    %121 = vector.multi_reduction <add>, %120, %cst_60 [1] : vector<1x2xf32> to vector<1xf32>
    %122 = vector.shape_cast %121 : vector<1xf32> to vector<1x1xf32>
    %c0_61 = arith.constant 0 : index
    %c0_62 = arith.constant 0 : index
    %123 = vector.load %arg13[%c0_61, %c0_62] : memref<1x2xf32, #tpu.memory_space<vmem>>, vector<1x2xf32>
    %124 = arith.mulf %118, %123 : vector<1x2xf32>
    %cst_63 = arith.constant dense<0.000000e+00> : vector<1xf32>
    %125 = vector.multi_reduction <add>, %124, %cst_63 [1] : vector<1x2xf32> to vector<1xf32>
    %126 = vector.shape_cast %125 : vector<1xf32> to vector<1x1xf32>
    %cst_64 = arith.constant 0.000000e+00 : f32
    %127 = vector.broadcast %cst_64 : f32 to vector<2x32x8xf32>
    %c0_65 = arith.constant 0 : index
    %c0_66 = arith.constant 0 : index
    %c0_67 = arith.constant 0 : index
    %128 = vector.load %arg16[%c0_65, %c0_66, %c0_67] : memref<20x32x8xf32, #tpu.memory_space<vmem>>, vector<2x32x8xf32>
    tpu.vector_store %arg16[%c0_65, %c0_66, %c0_67], %127 {strides = array<i32>} : memref<20x32x8xf32, #tpu.memory_space<vmem>>, vector<2x32x8xf32>,
    %cst_68 = arith.constant 0.000000e+00 : f32
    %129 = vector.broadcast %cst_68 : f32 to vector<2x32x8xf32>
    %c18 = arith.constant 18 : index
    %c0_69 = arith.constant 0 : index
    %c0_70 = arith.constant 0 : index
    %130 = vector.load %arg16[%c18, %c0_69, %c0_70] : memref<20x32x8xf32, #tpu.memory_space<vmem>>, vector<2x32x8xf32>
    tpu.vector_store %arg16[%c18, %c0_69, %c0_70], %129 {strides = array<i32>} : memref<20x32x8xf32, #tpu.memory_space<vmem>>, vector<2x32x8xf32>,
    %cst_71 = arith.constant 0.000000e+00 : f32
    %131 = vector.broadcast %cst_71 : f32 to vector<16x8x8xf32>
    %c2 = arith.constant 2 : index
    %c0_72 = arith.constant 0 : index
    %c0_73 = arith.constant 0 : index
    %132 = vector.load %arg16[%c2, %c0_72, %c0_73] : memref<20x32x8xf32, #tpu.memory_space<vmem>>, vector<16x8x8xf32>
    tpu.vector_store %arg16[%c2, %c0_72, %c0_73], %131 {strides = array<i32>} : memref<20x32x8xf32, #tpu.memory_space<vmem>>, vector<16x8x8xf32>,
    %cst_74 = arith.constant 0.000000e+00 : f32
    %133 = vector.broadcast %cst_74 : f32 to vector<16x8x8xf32>
    %c2_75 = arith.constant 2 : index
    %c24_76 = arith.constant 24 : index
    %c0_77 = arith.constant 0 : index
    %134 = vector.load %arg16[%c2_75, %c24_76, %c0_77] : memref<20x32x8xf32, #tpu.memory_space<vmem>>, vector<16x8x8xf32>
    tpu.vector_store %arg16[%c2_75, %c24_76, %c0_77], %133 {strides = array<i32>} : memref<20x32x8xf32, #tpu.memory_space<vmem>>, vector<16x8x8xf32>,
    %135 = vector.shape_cast %100 : vector<256x8xf32> to vector<16x16x8xf32>
    %c2_78 = arith.constant 2 : index
    %c8_79 = arith.constant 8 : index
    %c0_80 = arith.constant 0 : index
    %136 = vector.load %arg16[%c2_78, %c8_79, %c0_80] : memref<20x32x8xf32, #tpu.memory_space<vmem>>, vector<16x16x8xf32>
    tpu.vector_store %arg16[%c2_78, %c8_79, %c0_80], %135 {strides = array<i32>} : memref<20x32x8xf32, #tpu.memory_space<vmem>>, vector<16x16x8xf32>,
    %c0_81 = arith.constant 0 : index
    %c0_82 = arith.constant 0 : index
    %c0_83 = arith.constant 0 : index
    %137 = vector.load %arg16[%c0_81, %c0_82, %c0_83] : memref<20x32x8xf32, #tpu.memory_space<vmem>>, vector<20x32x8xf32>
    %138 = vector.extract_strided_slice %137 {offsets = [2, 0, 0], sizes = [16, 32, 8], strides = [1, 1, 1]} : vector<20x32x8xf32> to vector<16x32x8xf32>
    %139 = vector.extract_strided_slice %137 {offsets = [1, 0, 0], sizes = [16, 32, 8], strides = [1, 1, 1]} : vector<20x32x8xf32> to vector<16x32x8xf32>
    %140 = vector.extract_strided_slice %137 {offsets = [3, 0, 0], sizes = [16, 32, 8], strides = [1, 1, 1]} : vector<20x32x8xf32> to vector<16x32x8xf32>
    %141 = arith.addf %139, %140 : vector<16x32x8xf32>
    %c1_i32_84 = arith.constant 1 : i32
    %142 = tpu.dynamic_rotate %138 by %c1_i32_84 dim 1 : vector<16x32x8xf32>, i32 -> vector<16x32x8xf32>
    %c31_i32_85 = arith.constant 31 : i32
    %143 = tpu.dynamic_rotate %138 by %c31_i32_85 dim 1 : vector<16x32x8xf32>, i32 -> vector<16x32x8xf32>
    %144 = arith.addf %142, %143 : vector<16x32x8xf32>
    %145 = arith.addf %141, %144 : vector<16x32x8xf32>
    %cst_86 = arith.constant 4.000000e+00 : f32
    %146 = vector.broadcast %cst_86 : f32 to vector<16x32x8xf32>
    %147 = arith.mulf %146, %138 : vector<16x32x8xf32>
    %148 = arith.subf %145, %147 : vector<16x32x8xf32>
    %149 = vector.extract_strided_slice %148 {offsets = [0, 8, 0], sizes = [16, 16, 8], strides = [1, 1, 1]} : vector<16x32x8xf32> to vector<16x16x8xf32>
    %c2_87 = arith.constant 2 : index
    %c8_88 = arith.constant 8 : index
    %c0_89 = arith.constant 0 : index
    %150 = vector.load %arg16[%c2_87, %c8_88, %c0_89] : memref<20x32x8xf32, #tpu.memory_space<vmem>>, vector<16x16x8xf32>
    tpu.vector_store %arg16[%c2_87, %c8_88, %c0_89], %149 {strides = array<i32>} : memref<20x32x8xf32, #tpu.memory_space<vmem>>, vector<16x16x8xf32>,
    %c0_90 = arith.constant 0 : index
    %c0_91 = arith.constant 0 : index
    %c0_92 = arith.constant 0 : index
    %151 = vector.load %arg16[%c0_90, %c0_91, %c0_92] : memref<20x32x8xf32, #tpu.memory_space<vmem>>, vector<20x32x8xf32>
    %152 = vector.extract_strided_slice %151 {offsets = [2, 0, 0], sizes = [16, 32, 8], strides = [1, 1, 1]} : vector<20x32x8xf32> to vector<16x32x8xf32>
    %153 = vector.extract_strided_slice %151 {offsets = [1, 0, 0], sizes = [16, 32, 8], strides = [1, 1, 1]} : vector<20x32x8xf32> to vector<16x32x8xf32>
    %154 = vector.extract_strided_slice %151 {offsets = [3, 0, 0], sizes = [16, 32, 8], strides = [1, 1, 1]} : vector<20x32x8xf32> to vector<16x32x8xf32>
    %155 = arith.addf %153, %154 : vector<16x32x8xf32>
    %c1_i32_93 = arith.constant 1 : i32
    %156 = tpu.dynamic_rotate %152 by %c1_i32_93 dim 1 : vector<16x32x8xf32>, i32 -> vector<16x32x8xf32>
    %c31_i32_94 = arith.constant 31 : i32
    %157 = tpu.dynamic_rotate %152 by %c31_i32_94 dim 1 : vector<16x32x8xf32>, i32 -> vector<16x32x8xf32>
    %158 = arith.addf %156, %157 : vector<16x32x8xf32>
    %159 = arith.addf %155, %158 : vector<16x32x8xf32>
    %cst_95 = arith.constant 4.000000e+00 : f32
    %160 = vector.broadcast %cst_95 : f32 to vector<16x32x8xf32>
    %161 = arith.mulf %160, %152 : vector<16x32x8xf32>
    %162 = arith.subf %159, %161 : vector<16x32x8xf32>
    %163 = vector.extract_strided_slice %162 {offsets = [0, 8, 0], sizes = [16, 16, 8], strides = [1, 1, 1]} : vector<16x32x8xf32> to vector<16x16x8xf32>
    %164 = vector.shape_cast %149 : vector<16x16x8xf32> to vector<256x8xf32>
    %165 = vector.broadcast %122 : vector<1x1xf32> to vector<256x8xf32>
    %166 = arith.mulf %165, %164 : vector<256x8xf32>
    %167 = vector.shape_cast %163 : vector<16x16x8xf32> to vector<256x8xf32>
    %168 = vector.broadcast %126 : vector<1x1xf32> to vector<256x8xf32>
    %169 = arith.mulf %168, %167 : vector<256x8xf32>
    %170 = arith.addf %166, %169 : vector<256x8xf32>
    %cst_96 = arith.constant 1.250000e-01 : f32
    %171 = vector.broadcast %cst_96 : f32 to vector<1x8xf32>
    %cst_97 = arith.constant dense<0.000000e+00> : vector<1x256xf32>
    %172 = tpu.matmul %171, %170, %cst_97 {dimension_numbers = #tpu.dot_dimension_numbers<[1], [1], [0], [0], [0, 0, 1, 0], [], []>} : vector<1x8xf32>, vector<256x8xf32>, vector<1x256xf32> -> vector<1x256xf32>
    %173 = arith.negf %172 : vector<1x256xf32>
    %174 = math.exp %173 : vector<1x256xf32>
    %cst_98 = arith.constant 1.000000e+00 : f32
    %175 = vector.broadcast %cst_98 : f32 to vector<1x256xf32>
    %176 = arith.addf %175, %174 : vector<1x256xf32>
    %177 = arith.divf %175, %176 : vector<1x256xf32>
    %cst_99 = arith.constant 1.000000e+00 : f32
    %178 = vector.broadcast %cst_99 : f32 to vector<1x256xf32>
    %179 = arith.addf %178, %177 : vector<1x256xf32>
    %180 = vector.broadcast %179 : vector<1x256xf32> to vector<8x256xf32>
    %181 = arith.mulf %98, %180 : vector<8x256xf32>
    %c0_100 = arith.constant 0 : index
    %c0_101 = arith.constant 0 : index
    %c0_102 = arith.constant 0 : index
    %182 = vector.load %arg14[%c0_100, %c0_101, %c0_102] : memref<1x8x256xf32, #tpu.memory_space<vmem>>, vector<1x8x256xf32>
    %183 = vector.shape_cast %182 : vector<1x8x256xf32> to vector<8x256xf32>
    %184 = vector.shape_cast %181 : vector<8x256xf32> to vector<1x8x256xf32>
    tpu.vector_store %arg14[%c0_100, %c0_101, %c0_102], %184 {strides = array<i32>} : memref<1x8x256xf32, #tpu.memory_space<vmem>>, vector<1x8x256xf32>,
    return
  }
  func.func @transform_0(%arg0: i32) -> (i32, i32, i32) {
    %c0_i32 = arith.constant 0 : i32
    %c0_i32_0 = arith.constant 0 : i32
    %c0_i32_1 = arith.constant 0 : i32
    return %arg0, %c0_i32, %c0_i32_0 : i32, i32, i32
  }
  func.func @transform_1(%arg0: i32) -> (i32, i32) {
    %c0_i32 = arith.constant 0 : i32
    %c0_i32_0 = arith.constant 0 : i32
    %c0_i32_1 = arith.constant 0 : i32
    return %c0_i32, %c0_i32_0 : i32, i32
  }
  func.func @transform_2(%arg0: i32) -> (i32, i32) {
    %c0_i32 = arith.constant 0 : i32
    %c0_i32_0 = arith.constant 0 : i32
    %c0_i32_1 = arith.constant 0 : i32
    return %c0_i32, %c0_i32_0 : i32, i32
  }
  func.func @transform_3(%arg0: i32) -> (i32, i32) {
    %c0_i32 = arith.constant 0 : i32
    %c0_i32_0 = arith.constant 0 : i32
    %c0_i32_1 = arith.constant 0 : i32
    return %c0_i32, %c0_i32_0 : i32, i32
  }
  func.func @transform_4(%arg0: i32) -> (i32, i32) {
    %c0_i32 = arith.constant 0 : i32
    %c0_i32_0 = arith.constant 0 : i32
    %c0_i32_1 = arith.constant 0 : i32
    return %c0_i32, %c0_i32_0 : i32, i32
  }
  func.func @transform_5(%arg0: i32) -> (i32, i32) {
    %c0_i32 = arith.constant 0 : i32
    %c0_i32_0 = arith.constant 0 : i32
    %c0_i32_1 = arith.constant 0 : i32
    return %c0_i32, %c0_i32_0 : i32, i32
  }
  func.func @transform_6(%arg0: i32) -> (i32, i32) {
    %c0_i32 = arith.constant 0 : i32
    %c0_i32_0 = arith.constant 0 : i32
    %c0_i32_1 = arith.constant 0 : i32
    return %c0_i32, %c0_i32_0 : i32, i32
  }
  func.func @transform_7(%arg0: i32) -> (i32, i32) {
    %c0_i32 = arith.constant 0 : i32
    %c0_i32_0 = arith.constant 0 : i32
    %c0_i32_1 = arith.constant 0 : i32
    return %c0_i32, %c0_i32_0 : i32, i32
  }
  func.func @transform_8(%arg0: i32) -> (i32, i32) {
    %c0_i32 = arith.constant 0 : i32
    %c0_i32_0 = arith.constant 0 : i32
    %c0_i32_1 = arith.constant 0 : i32
    return %c0_i32, %c0_i32_0 : i32, i32
  }
  func.func @transform_9(%arg0: i32) -> (i32, i32) {
    %c0_i32 = arith.constant 0 : i32
    %c0_i32_0 = arith.constant 0 : i32
    %c0_i32_1 = arith.constant 0 : i32
    return %c0_i32, %c0_i32_0 : i32, i32
  }
  func.func @transform_10(%arg0: i32) -> (i32, i32) {
    %c0_i32 = arith.constant 0 : i32
    %c0_i32_0 = arith.constant 0 : i32
    %c0_i32_1 = arith.constant 0 : i32
    return %c0_i32, %c0_i32_0 : i32, i32
  }
  func.func @transform_11(%arg0: i32) -> (i32, i32) {
    %c0_i32 = arith.constant 0 : i32
    %c0_i32_0 = arith.constant 0 : i32
    %c0_i32_1 = arith.constant 0 : i32
    return %c0_i32, %c0_i32_0 : i32, i32
  }
  func.func @transform_12(%arg0: i32) -> (i32, i32) {
    %c0_i32 = arith.constant 0 : i32
    %c0_i32_0 = arith.constant 0 : i32
    %c0_i32_1 = arith.constant 0 : i32
    return %c0_i32, %c0_i32_0 : i32, i32
  }
  func.func @transform_13(%arg0: i32) -> (i32, i32, i32) {
    %c0_i32 = arith.constant 0 : i32
    %c0_i32_0 = arith.constant 0 : i32
    %c0_i32_1 = arith.constant 0 : i32
    return %arg0, %c0_i32, %c0_i32_0 : i32, i32, i32
  }
}

</mosaic_0001>

<bundles_post_ra>
// kernel: phde_sppf_forward.1
= control target key start
LH: loop header
LB: loop body
LE: loop exit
PB: predicated region body
PF: predicated region fallthrough
CT: control target
= control target key end

     0   :  { %s7916_s25 = smov 0   ;;  %s15939_s0 = inlined_call_operand.vmem [shape: f32[2,8,256], index: 0, kind: input, shape index: {}]   ;;  %s15940_s1 = inlined_call_operand.vmem [shape: f32[8,4], index: 1, kind: input, shape index: {}]   ;;  %s15941_s2 = inlined_call_operand.vmem [shape: f32[1,4], index: 2, kind: input, shape index: {}]   ;;  %s15942_s3 = inlined_call_operand.vmem [shape: f32[8,4], index: 3, kind: input, shape index: {}]   ;;  %s15943_s4 = inlined_call_operand.vmem [shape: f32[8,4], index: 4, kind: input, shape index: {}]   ;;  %s15944_s5 = inlined_call_operand.vmem [shape: f32[8,4], index: 5, kind: input, shape index: {}]   ;;  %s15945_s6 = inlined_call_operand.vmem [shape: f32[8,4], index: 6, kind: input, shape index: {}]   ;;  %s15946_s7 = inlined_call_operand.vmem [shape: f32[8,1], index: 7, kind: input, shape index: {}]   ;;  %s15947_s8 = inlined_call_operand.vmem [shape: f32[8,8], index: 8, kind: input, shape index: {}]   ;;  %s15948_s9 = inlined_call_operand.vmem [shape: f32[8,8], index: 9, kind: input, shape index: {}]   ;;  %s15949_s10 = inlined_call_operand.vmem [shape: f32[8,3], index: 10, kind: input, shape index: {}]   ;;  %s15950_s11 = inlined_call_operand.vmem [shape: f32[1,2], index: 11, kind: input, shape index: {}]   ;;  %s15951_s12 = inlined_call_operand.vmem [shape: f32[1,2], index: 12, kind: input, shape index: {}]   ;;  %s15952_s13 = inlined_call_operand.vmem [shape: f32[2,8,256], index: 13, kind: output, shape index: {}]  }
   0x1 LB: > { %s6693_s26 = sadd.s32 4294967295, %s7838_s25   ;;  %p6697_p0 = scmp.ge.s32.totalorder %s7838_s25, 1  ;;  %s7838_s25 = sphi %s7916_s25, %s23_s25  }
   0x2   : > { %p387_p1 = scmp.lt.s32.totalorder %s7838_s25, 3 }
   0x4   : > { %p388_p2 = pnand %p6697_p0, %p387_p1 }
   0x6   : > { %391 = sbr.rel (%p388_p2) target bundleno = 3341 (0xd0d), region = 72 }
   0xd   : > { %p431_p3 = scmp.lt.s32.totalorder %s6693_s26, 1  ;;  %v443_v1 = vld [vmem:[%s15940_s1] sm:$0xff]  ;;  %vm515_vm0 = vcmask 64512   ;;  %vm1061_vm1 = vcmask 31744   ;;  %v7840_v32 = vmov -1e+30   ;;  %v1400_v36 = vlaneseq }
   0xe   : > { %7249 = vmatprep.subr.mxu1 %v443_v1  ;;  %1131 = vst.msk [vmem:[#allocation2 + $0x138] sm:$0xff] %vm1061_vm1, %v7840_v32  ;;  %1062 = vst.msk [vmem:[#allocation2] sm:$0xff] %vm1061_vm1, %v7840_v32  ;;  %vm7844_vm7 = vmmov 0   ;;  %vm5425_vm8 = vcmask 16384   ;;  %vm5439_vm9 = vcmask 8192  }
   0xf   : > { %s18082_s26 = smov (!%p431_p3, %s6693_s26), 1  ;;  %7250 = vmatpush3.msra.mxu1 %v443_v1  ;;  %1063 = vst.msk [vmem:[#allocation2 + $0x8] sm:$0xff] %vm1061_vm1, %v7840_v32  ;;  %1064 = vst.msk [vmem:[#allocation2 + $0x10] sm:$0xff] %vm1061_vm1, %v7840_v32  ;;  %v8127_v37 = vshrl.u32 %v1400_v36, 7 }
  0x10   : > { %s6972_s27 = sshll.u32 %s18082_s26, 4  ;;  %1065 = vst.msk [vmem:[#allocation2 + $0x18] sm:$0xff] %vm1061_vm1, %v7840_v32  ;;  %1066 = vst.msk [vmem:[#allocation2 + $0x20] sm:$0xff] %vm1061_vm1, %v7840_v32 }
  0x11   : > { %s435_s30 = scalar_lea.vmem %s15939_s0, %s6972_s27  ;;  %1067 = vst.msk [vmem:[#allocation2 + $0x28] sm:$0xff] %vm1061_vm1, %v7840_v32  ;;  %1068 = vst.msk [vmem:[#allocation2 + $0x30] sm:$0xff] %vm1061_vm1, %v7840_v32  ;;  %vm1402_vm2 = vcmp.lt.s32.totalorder %v8127_v37, 1  ;;  %vm1627_vm3 = vcmp.lt.s32.totalorder %v8127_v37, 7  ;;  %vm2076_vm4 = vcmp.lt.s32.totalorder %v8127_v37, 2  ;;  %vm2301_vm5 = vcmp.lt.s32.totalorder %v8127_v37, 6  ;;  %s440_s14 = scalar_lea.vmem %s15952_s13, %s6972_s27 }
  0x12   : > { %v441_v0 = vld [vmem:[%s435_s30] sm:$0xff]  ;;  %v442_v2 = vld [vmem:[%s435_s30 + $0x8] sm:$0xff]  ;;  %1069 = vst.msk [vmem:[#allocation2 + $0x38] sm:$0xff] %vm1061_vm1, %v7840_v32  ;;  %1070 = vst.msk [vmem:[#allocation2 + $0x40] sm:$0xff] %vm1061_vm1, %v7840_v32 }
  0x13   : > { %451 = vxpose.xlu0.b32.start.end [1/1] (short) %v441_v0, 128  ;;  %1071 = vst.msk [vmem:[#allocation2 + $0x48] sm:$0xff] %vm1061_vm1, %v7840_v32  ;;  %1072 = vst.msk [vmem:[#allocation2 + $0x50] sm:$0xff] %vm1061_vm1, %v7840_v32 }
  0x14   : > { %1073 = vst.msk [vmem:[#allocation2 + $0x58] sm:$0xff] %vm1061_vm1, %v7840_v32  ;;  %1074 = vst.msk [vmem:[#allocation2 + $0x60] sm:$0xff] %vm1061_vm1, %v7840_v32 }
  0x15   : > { %1075 = vst.msk [vmem:[#allocation2 + $0x68] sm:$0xff] %vm1061_vm1, %v7840_v32  ;;  %1076 = vst.msk [vmem:[#allocation2 + $0x70] sm:$0xff] %vm1061_vm1, %v7840_v32  ;;  %v8170_v58 = vld [vmem:[#allocation2 + $0x138] sm:$0xff] }
  0x16   : > { %1077 = vst.msk [vmem:[#allocation2 + $0x78] sm:$0xff] %vm1061_vm1, %v7840_v32  ;;  %1078 = vst.msk [vmem:[#allocation2 + $0x80] sm:$0xff] %vm1061_vm1, %v7840_v32 }
  0x17   : > { %1079 = vst.msk [vmem:[#allocation2 + $0x88] sm:$0xff] %vm1061_vm1, %v7840_v32  ;;  %1080 = vst.msk [vmem:[#allocation2 + $0x90] sm:$0xff] %vm1061_vm1, %v7840_v32 }
  0x18   : > { %1081 = vst.msk [vmem:[#allocation2 + $0x98] sm:$0xff] %vm1061_vm1, %v7840_v32  ;;  %1082 = vst.msk [vmem:[#allocation2 + $0xa0] sm:$0xff] %vm1061_vm1, %v7840_v32 }
  0x19   : > { %1083 = vst.msk [vmem:[#allocation2 + $0xa8] sm:$0xff] %vm1061_vm1, %v7840_v32  ;;  %1084 = vst.msk [vmem:[#allocation2 + $0xb0] sm:$0xff] %vm1061_vm1, %v7840_v32 }
  0x1a   : > { %1085 = vst.msk [vmem:[#allocation2 + $0xb8] sm:$0xff] %vm1061_vm1, %v7840_v32  ;;  %1087 = vst.msk [vmem:[#allocation2 + $0x2c0] sm:$0xff] %vm1061_vm1, %v7840_v32 }
  0x1b   : > { %1088 = vst.msk [vmem:[#allocation2 + $0x2c8] sm:$0xff] %vm1061_vm1, %v7840_v32  ;;  %1089 = vst.msk [vmem:[#allocation2 + $0x2d0] sm:$0xff] %vm1061_vm1, %v7840_v32 }
  0x1c   : > { %1090 = vst.msk [vmem:[#allocation2 + $0x2d8] sm:$0xff] %vm1061_vm1, %v7840_v32  ;;  %1091 = vst.msk [vmem:[#allocation2 + $0x2e0] sm:$0xff] %vm1061_vm1, %v7840_v32 }
  0x1d   : > { %1092 = vst.msk [vmem:[#allocation2 + $0x2e8] sm:$0xff] %vm1061_vm1, %v7840_v32  ;;  %1093 = vst.msk [vmem:[#allocation2 + $0x2f0] sm:$0xff] %vm1061_vm1, %v7840_v32  ;;  %v8129_v38 = vld [vmem:[#allocation2 + $0x80] sm:$0xff] }
  0x1e   : > { %1094 = vst.msk [vmem:[#allocation2 + $0x2f8] sm:$0xff] %vm1061_vm1, %v7840_v32  ;;  %1095 = vst.msk [vmem:[#allocation2 + $0x300] sm:$0xff] %vm1061_vm1, %v7840_v32  ;;  %v8131_v39 = vld [vmem:[#allocation2 + $0x90] sm:$0xff]  ;;  %v8142_v45 = vld [vmem:[#allocation2 + $0x88] sm:$0xff]  ;;  %v1292_v47 = vrot.slane %v8129_v38, 7  ;;  %v1519_v54 = vrot.slane %v8129_v38, 1 }
  0x1f   : > { %1096 = vst.msk [vmem:[#allocation2 + $0x308] sm:$0xff] %vm1061_vm1, %v7840_v32  ;;  %1097 = vst.msk [vmem:[#allocation2 + $0x310] sm:$0xff] %vm1061_vm1, %v7840_v32  ;;  %v8133_v40 = vld [vmem:[#allocation2 + $0x98] sm:$0xff]  ;;  %v1348_v41 = vrot.slane %v8131_v39, 7  ;;  %v8136_v42 = vld [vmem:[#allocation2 + $0xa0] sm:$0xff]  ;;  %v1547_v55 = vrot.slane %v8142_v45, 1 }
  0x20   : > { %1098 = vst.msk [vmem:[#allocation2 + $0x318] sm:$0xff] %vm1061_vm1, %v7840_v32  ;;  %1099 = vst.msk [vmem:[#allocation2 + $0x320] sm:$0xff] %vm1061_vm1, %v7840_v32  ;;  %v8138_v43 = vld [vmem:[#allocation2 + $0xb0] sm:$0xff]  ;;  %v1376_v44 = vrot.slane %v8133_v40, 7  ;;  %v1293_v48 = vrot.slane %v8136_v42, 7  ;;  %v8154_v52 = vld [vmem:[#allocation2 + $0xa8] sm:$0xff] }
  0x21   : > { %1100 = vst.msk [vmem:[#allocation2 + $0x328] sm:$0xff] %vm1061_vm1, %v7840_v32  ;;  %1101 = vst.msk [vmem:[#allocation2 + $0x330] sm:$0xff] %vm1061_vm1, %v7840_v32  ;;  %v8144_v46 = vld [vmem:[#allocation2 + $0xb8] sm:$0xff]  ;;  %v1349_v49 = vrot.slane %v8138_v43, 7  ;;  %v1520_v59 = vrot.slane %v8136_v42, 1  ;;  %v1548_v60 = vrot.slane %v8154_v52, 1 }
  0x22   : > { %1102 = vst.msk [vmem:[#allocation2 + $0x338] sm:$0xff] %vm1061_vm1, %v7840_v32  ;;  %1103 = vst.msk [vmem:[#allocation2 + $0x340] sm:$0xff] %vm1061_vm1, %v7840_v32  ;;  %v1377_v50 = vrot.slane %v8144_v46, 7  ;;  %v1407_v51 = vsel %vm1402_vm2, %v1348_v41, %v1376_v44  ;;  %v1491_v56 = vsel %vm1402_vm2, %v1376_v44, %v1292_v47  ;;  %v1603_v63 = vrot.slane %v8133_v40, 1 }
  0x23   : > { %1104 = vst.msk [vmem:[#allocation2 + $0x348] sm:$0xff] %vm1061_vm1, %v7840_v32  ;;  %1105 = vst.msk [vmem:[#allocation2 + $0x350] sm:$0xff] %vm1061_vm1, %v7840_v32  ;;  %v1604_v0 = vrot.slane %v8144_v46, 1 }
  0x24   : > { %1106 = vst.msk [vmem:[#allocation2 + $0x358] sm:$0xff] %vm1061_vm1, %v7840_v32  ;;  %1107 = vst.msk [vmem:[#allocation2 + $0x360] sm:$0xff] %vm1061_vm1, %v7840_v32  ;;  %v1408_v53 = vsel %vm1402_vm2, %v1349_v49, %v1377_v50  ;;  %v1492_v57 = vsel %vm1402_vm2, %v1377_v50, %v1293_v48 }
  0x25   : > { %1108 = vst.msk [vmem:[#allocation2 + $0x368] sm:$0xff] %vm1061_vm1, %v7840_v32  ;;  %1109 = vst.msk [vmem:[#allocation2 + $0x370] sm:$0xff] %vm1061_vm1, %v7840_v32 }
  0x26   : > { %1110 = vst.msk [vmem:[#allocation2 + $0x378] sm:$0xff] %vm1061_vm1, %v7840_v32  ;;  %1112 = vst.msk [vmem:[#allocation2 + $0xc0] sm:$0xff] %vm1061_vm1, %v7840_v32 }
  0x27   : > { %1113 = vst.msk [vmem:[#allocation2 + $0xe0] sm:$0xff] %vm1061_vm1, %v7840_v32  ;;  %1114 = vst.msk [vmem:[#allocation2 + $0x100] sm:$0xff] %vm1061_vm1, %v7840_v32 }
  0x28   : > { %1115 = vst.msk [vmem:[#allocation2 + $0x120] sm:$0xff] %vm1061_vm1, %v7840_v32  ;;  %1116 = vst.msk [vmem:[#allocation2 + $0x140] sm:$0xff] %vm1061_vm1, %v7840_v32 }
  0x29   : > { %1117 = vst.msk [vmem:[#allocation2 + $0x160] sm:$0xff] %vm1061_vm1, %v7840_v32  ;;  %1118 = vst.msk [vmem:[#allocation2 + $0x180] sm:$0xff] %vm1061_vm1, %v7840_v32 }
  0x2a   : > { %1119 = vst.msk [vmem:[#allocation2 + $0x1a0] sm:$0xff] %vm1061_vm1, %v7840_v32  ;;  %1120 = vst.msk [vmem:[#allocation2 + $0x1c0] sm:$0xff] %vm1061_vm1, %v7840_v32 }
  0x2b   : > { %1121 = vst.msk [vmem:[#allocation2 + $0x1e0] sm:$0xff] %vm1061_vm1, %v7840_v32  ;;  %1122 = vst.msk [vmem:[#allocation2 + $0x200] sm:$0xff] %vm1061_vm1, %v7840_v32 }
  0x2c   : > { %1123 = vst.msk [vmem:[#allocation2 + $0x220] sm:$0xff] %vm1061_vm1, %v7840_v32  ;;  %1124 = vst.msk [vmem:[#allocation2 + $0x240] sm:$0xff] %vm1061_vm1, %v7840_v32 }
  0x2d   : > { %1125 = vst.msk [vmem:[#allocation2 + $0x260] sm:$0xff] %vm1061_vm1, %v7840_v32  ;;  %1126 = vst.msk [vmem:[#allocation2 + $0x280] sm:$0xff] %vm1061_vm1, %v7840_v32 }
  0x2e   : > { %1127 = vst.msk [vmem:[#allocation2 + $0x2a0] sm:$0xff] %vm1061_vm1, %v7840_v32  ;;  %1128 = vst.msk [vmem:[#allocation2 + $0xd8] sm:$0xff] %vm1061_vm1, %v7840_v32 }
  0x2f   : > { %1129 = vst.msk [vmem:[#allocation2 + $0xf8] sm:$0xff] %vm1061_vm1, %v7840_v32  ;;  %1130 = vst.msk [vmem:[#allocation2 + $0x118] sm:$0xff] %vm1061_vm1, %v7840_v32  ;;  %v8181_v1 = vld [vmem:[#allocation2 + $0x120] sm:$0xff] }
  0x30   : > { %1132 = vst.msk [vmem:[#allocation2 + $0x158] sm:$0xff] %vm1061_vm1, %v7840_v32  ;;  %1133 = vst.msk [vmem:[#allocation2 + $0x178] sm:$0xff] %vm1061_vm1, %v7840_v32  ;;  %v8175_v61 = vld [vmem:[#allocation2 + $0x160] sm:$0xff] }
  0x31   : > { %1134 = vst.msk [vmem:[#allocation2 + $0x198] sm:$0xff] %vm1061_vm1, %v7840_v32  ;;  %1135 = vst.msk [vmem:[#allocation2 + $0x1b8] sm:$0xff] %vm1061_vm1, %v7840_v32 }
  0x32   : > { %1136 = vst.msk [vmem:[#allocation2 + $0x1d8] sm:$0xff] %vm1061_vm1, %v7840_v32  ;;  %1137 = vst.msk [vmem:[#allocation2 + $0x1f8] sm:$0xff] %vm1061_vm1, %v7840_v32 }
  0x33   : > { %1138 = vst.msk [vmem:[#allocation2 + $0x218] sm:$0xff] %vm1061_vm1, %v7840_v32  ;;  %1139 = vst.msk [vmem:[#allocation2 + $0x238] sm:$0xff] %vm1061_vm1, %v7840_v32 }
  0x34   : > { %1140 = vst.msk [vmem:[#allocation2 + $0x258] sm:$0xff] %vm1061_vm1, %v7840_v32  ;;  %1141 = vst.msk [vmem:[#allocation2 + $0x278] sm:$0xff] %vm1061_vm1, %v7840_v32 }
  0x35   : > { %1142 = vst.msk [vmem:[#allocation2 + $0x298] sm:$0xff] %vm1061_vm1, %v7840_v32  ;;  %1143 = vst.msk [vmem:[#allocation2 + $0x2b8] sm:$0xff] %vm1061_vm1, %v7840_v32  ;;  %v8242_v32 = vld [vmem:[#allocation2 + $0xc0] sm:$0xff] }
  0x36   : > { %16564 = vst [vmem:[#allocation4_spill] sm:$0xff] %v8170_v58  ;;  %16565 = vst [vmem:[#allocation5_spill] sm:$0xff] %v8175_v61 }
  0x37   : > { %v8177_v62 = vld [vmem:[#allocation2 + $0x178] sm:$0xff]  ;;  %16567 = vst [vmem:[#allocation7_spill] sm:$0xff] %v8181_v1  ;;  %vm9487_vm6 = vmpackc.low %vm1061_vm1, %vm1061_vm1 }
  0x38   : > { %16566 = vst [vmem:[#allocation6_spill] sm:$0xff] %v8177_v62  ;;  %vm15599_vm10 = vmpackc.low %vm515_vm0, %vm515_vm0 }
  0x50   : > { %483 = vxpose.xlu0.b32.start.end [1/1] (short) %v442_v2, 128  ;;  %v8183_v2 = vld [vmem:[#allocation2 + $0x158] sm:$0xff] }
  0x51   : > { %16568 = vst [vmem:[#allocation8_spill] sm:$0xff] %v8183_v2 }
  0x93   : > { %v467_v3 = vpop.trf.xlu0 }
  0x94   : > { %7251 = vmatprep.mubr.msk.f32.mxu1 %vm515_vm0, %v467_v3  ;;  %v1688_v3 = vsel %vm1627_vm3, %v1519_v54, %v1547_v55 }
  0x97   : > { %v468_v4 = vpop.trf.xlu0 }
  0x98   : > { %7252 = vmatmul.mubr.msk.f32.vlgmr.msra.gmra.mrb[0].mxu1 %vm515_vm0, %v468_v4  ;;  %v1689_v4 = vsel %vm1627_vm3, %v1520_v59, %v1548_v60 }
  0x9b   : > { %v469_v5 = vpop.trf.xlu0 }
  0x9c   : > { %7254 = vmatprep.mubr.msk.f32.mxu1 %vm515_vm0, %v469_v5 }
  0x9f   : > { %v470_v6 = vpop.trf.xlu0 }
  0xa0   : > { %7255 = vmatmul.mubr.msk.f32.gmra.mrb[2].mxu1 %vm515_vm0, %v470_v6  ;;  %v1716_v6 = vsel %vm1627_vm3, %v1603_v63, %v1519_v54 }
  0xa3   : > { %v471_v7 = vpop.trf.xlu0 }
  0xa4   : > { %7257 = vmatprep.mubr.msk.f32.mxu1 %vm515_vm0, %v471_v7  ;;  %v8200_v7 = vld [vmem:[#allocation2 + $0x140] sm:$0xff] }
  0xa5   : > { %16569 = vst [vmem:[#allocation9_spill] sm:$0xff] %v8200_v7  ;;  %v16595_v7 = vrot.slane %v8154_v52, 2 }
  0xa7   : > { %v472_v8 = vpop.trf.xlu0 }
  0xa8   : > { %7258 = vmatmul.mubr.msk.f32.gmra.mrb[4].mxu1 %vm515_vm0, %v472_v8  ;;  %v15957_v8 = vrot.slane %v8175_v61, 1 }
  0xab   : > { %v473_v9 = vpop.trf.xlu0 }
  0xac   : > { %7260 = vmatprep.mubr.msk.f32.mxu1 %vm515_vm0, %v473_v9  ;;  %v15961_v9 = vrot.slane %v8177_v62, 1 }
  0xaf   : > { %v474_v10 = vpop.trf.xlu0 }
  0xb0   : > { %7261 = vmatmul.mubr.msk.f32.gmra.mrb[6].mxu1 %vm515_vm0, %v474_v10  ;;  %v15953_v10 = vrot.slane %v8175_v61, 2 }
  0xb3   : > { %v475_v11 = vpop.trf.xlu0 }
  0xb4   : > { %7263 = vmatprep.mubr.msk.f32.mxu1 %vm515_vm0, %v475_v11  ;;  %v15959_v11 = vrot.slane %v8177_v62, 2 }
  0xb7   : > { %v476_v12 = vpop.trf.xlu0 }
  0xb8   : > { %7264 = vmatmul.mubr.msk.f32.gmra.mrb[8].mxu1 %vm515_vm0, %v476_v12 }
  0xbb   : > { %v477_v13 = vpop.trf.xlu0 }
  0xbc   : > { %7266 = vmatprep.mubr.msk.f32.mxu1 %vm515_vm0, %v477_v13  ;;  %v8349_v13 = vld [vmem:[#allocation2 + $0x1c0] sm:$0xff] }
  0xbf   : > { %v478_v14 = vpop.trf.xlu0 }
  0xc0   : > { %7267 = vmatmul.mubr.msk.f32.gmra.mrb[10].mxu1 %vm515_vm0, %v478_v14  ;;  %v15962_v14 = vrot.slane %v8177_v62, 7 }
  0xc3   : > { %v479_v15 = vpop.trf.xlu0 }
  0xc4   : > { %7269 = vmatprep.mubr.msk.f32.mxu1 %vm515_vm0, %v479_v15  ;;  %v8209_v15 = vld [vmem:[#allocation2 + $0x198] sm:$0xff] }
  0xc5   : > { %v16607_v2 = vrot.slane %v8209_v15, 6 }
  0xc7   : > { %v480_v16 = vpop.trf.xlu0 }
  0xc8   : > { %7270 = vmatmul.mubr.msk.f32.gmra.mrb[12].mxu1 %vm515_vm0, %v480_v16  ;;  %v1717_v16 = vsel %vm1627_vm3, %v1604_v0, %v1520_v59  ;;  %v1576_v59 = vrot.slane %v8138_v43, 1 }
  0xcb   : > { %v481_v17 = vpop.trf.xlu0 }
  0xcc   : > { %7272 = vmatprep.mubr.msk.f32.mxu1 %vm515_vm0, %v481_v17  ;;  %v15960_v17 = vrot.slane %v8177_v62, 6 }
  0xcf   : > { %v482_v18 = vpop.trf.xlu0 }
  0xd0   : > { %7273 = vmatmul.mubr.msk.f32.gmra.mrb[14].mxu1 %vm515_vm0, %v482_v18  ;;  %v15958_v18 = vrot.slane %v8175_v61, 7 }
  0xd2   : > { %v8259_v44 = vsel %vm1402_vm2, %v15962_v14, %v15958_v18 }
  0xd3   : > { %v499_v19 = vpop.trf.xlu0  ;;  %16572 = vst [vmem:[#allocation12_spill] sm:$0xff] %v8259_v44  ;;  %v16596_v44 = vrot.slane %v8131_v39, 6 }
  0xd4   : > { %7275 = vmatprep.mubr.msk.f32.mxu1 %vm515_vm0, %v499_v19  ;;  %v15956_v19 = vrot.slane %v8175_v61, 6 }
  0xd6   : > { %v8267_v50 = vsel %vm2076_vm4, %v15960_v17, %v15956_v19  ;;  %v15973_v19 = vrot.slane %v8242_v32, 1  ;;  %v2052_v17 = vrot.slane %v8133_v40, 6 }
  0xd7   : > { %v500_v20 = vpop.trf.xlu0  ;;  %16573 = vst [vmem:[#allocation13_spill] sm:$0xff] %v8267_v50 }
  0xd8   : > { %7276 = vmatmul.mubr.msk.f32.gmra.mrb[16].mxu1 %vm515_vm0, %v500_v20  ;;  %v8218_v20 = vld [vmem:[#allocation2 + $0x180] sm:$0xff] }
  0xd9   : > { %v15965_v54 = vrot.slane %v8218_v20, 1 }
  0xdb   : > { %v501_v21 = vpop.trf.xlu0 }
  0xdc   : > { %7278 = vmatprep.mubr.msk.f32.mxu1 %vm515_vm0, %v501_v21  ;;  %v1756_v21 = vmax.f32 %v1491_v56, %v1688_v3  ;;  %v8274_v56 = vld [vmem:[#allocation2 + $0x1a0] sm:$0xff] }
  0xdf   : > { %v502_v22 = vpop.trf.xlu0 }
  0xe0   : > { %7279 = vmatmul.mubr.msk.f32.gmra.mrb[18].mxu1 %vm515_vm0, %v502_v22 }
  0xe3   : > { %v503_v23 = vpop.trf.xlu0 }
  0xe4   : > { %7281 = vmatprep.mubr.msk.f32.mxu1 %vm515_vm0, %v503_v23  ;;  %v1320_v23 = vrot.slane %v8142_v45, 7 }
  0xe7   : > { %v504_v24 = vpop.trf.xlu0 }
  0xe8   : > { %7282 = vmatmul.mubr.msk.f32.gmra.mrb[20].mxu1 %vm515_vm0, %v504_v24  ;;  %v1759_v24 = vmax.f32 %v1407_v51, %v1716_v6  ;;  %v1575_v51 = vrot.slane %v8131_v39, 1  ;;  %v15964_v6 = vrot.slane %v8209_v15, 1 }
  0xea   : > { %v8251_v36 = vmax.f32 %v8133_v40, %v1759_v24  ;;  %v8296_v24 = vld [vmem:[#allocation2 + $0xf8] sm:$0xff]  ;;  %v8357_v12 = vsel %vm1627_vm3, %v15964_v6, %v15965_v54  ;;  %v8384_v54 = vld [vmem:[#allocation2 + $0x100] sm:$0xff] }
  0xeb   : > { %v505_v25 = vpop.trf.xlu0  ;;  %16575 = vst [vmem:[#allocation15_spill] sm:$0xff] %v8357_v12  ;;  %16577 = vst [vmem:[#allocation17_spill] sm:$0xff] %v8384_v54  ;;  %v1997_v12 = vrot.slane %v8154_v52, 6 }
  0xec   : > { %7284 = vmatprep.mubr.msk.f32.mxu1 %vm515_vm0, %v505_v25  ;;  %v1760_v25 = vmax.f32 %v1492_v57, %v1689_v4  ;;  %v1435_v57 = vsel %vm1402_vm2, %v1320_v23, %v1348_v41 }
  0xef   : > { %v506_v26 = vpop.trf.xlu0 }
  0xf0   : > { %7285 = vmatmul.mubr.msk.f32.gmra.mrb[22].mxu1 %vm515_vm0, %v506_v26  ;;  %v8228_v26 = vsel %vm1627_vm3, %v15961_v9, %v15957_v8  ;;  %v15975_v9 = vrot.slane %v8136_v42, 6 }
  0xf1   : > { %16570 = vst [vmem:[#allocation10_spill] sm:$0xff] %v8228_v26 }
  0xf3   : > { %v507_v27 = vpop.trf.xlu0 }
  0xf4   : > { %7287 = vmatprep.mubr.msk.f32.mxu1 %vm515_vm0, %v507_v27  ;;  %v8236_v27 = vsel %vm2301_vm5, %v15959_v11, %v15953_v10  ;;  %v15968_v11 = vrot.slane %v8138_v43, 6 }
  0xf5   : > { %16571 = vst [vmem:[#allocation11_spill] sm:$0xff] %v8236_v27 }
  0xf7   : > { %v508_v28 = vpop.trf.xlu0 }
  0xf8   : > { %7288 = vmatmul.mubr.msk.f32.gmra.mrb[24].mxu1 %vm515_vm0, %v508_v28  ;;  %v15955_v28 = vrot.slane %v8209_v15, 7 }
  0xfb   : > { %v509_v29 = vpop.trf.xlu0 }
  0xfc   : > { %7290 = vmatprep.mubr.msk.f32.mxu1 %vm515_vm0, %v509_v29  ;;  %v1763_v29 = vmax.f32 %v1408_v53, %v1717_v16  ;;  %v8271_v53 = vmax.f32 %v8136_v42, %v1760_v25  ;;  %v15966_v16 = vrot.slane %v8242_v32, 7 }
  0xfe   : > { %v8282_v3 = vmax.f32 %v8144_v46, %v1763_v29  ;;  %v1463_v29 = vsel %vm1402_vm2, %v1292_v47, %v1320_v23  ;;  %v15969_v47 = vrot.slane %v8274_v56, 7  ;;  %v1633_v23 = vsel %vm1627_vm3, %v1576_v59, %v1604_v0 }
  0xff   : > { %v510_v30 = vpop.trf.xlu0  ;;  %v2053_v0 = vrot.slane %v8144_v46, 6 }
 0x100   : > { %7291 = vmatmul.mubr.msk.f32.gmra.mrb[26].mxu1 %vm515_vm0, %v510_v30  ;;  %v8239_v30 = vld [vmem:[#allocation2 + $0x1b8] sm:$0xff] }
 0x101   : > { %v15970_v4 = vrot.slane %v8239_v30, 7  ;;  %v15972_v14 = vrot.slane %v8239_v30, 1 }
 0x103   : > { %v511_v31 = vpop.trf.xlu0  ;;  %v8382_v6 = vsel %vm1402_vm2, %v15970_v4, %v15969_v47  ;;  %v8406_v4 = vsel %vm2076_vm4, %v2053_v0, %v15975_v9 }
 0x104   : > { %7293 = vmatprep.mubr.msk.f32.mxu1 %vm515_vm0, %v511_v31  ;;  %v15954_v31 = vrot.slane %v8218_v20, 7  ;;  %16576 = vst [vmem:[#allocation16_spill] sm:$0xff] %v8382_v6 }
 0x106   : > { %v8294_v41 = vsel %vm1402_vm2, %v15955_v28, %v15954_v31  ;;  %v15971_v31 = vrot.slane %v8274_v56, 1  ;;  %v8311_v28 = vld [vmem:[#allocation2 + $0xe0] sm:$0xff] }
 0x107   : > { %v512_v33 = vpop.trf.xlu0  ;;  %16574 = vst [vmem:[#allocation14_spill] sm:$0xff] %v8294_v41  ;;  %v16592_v41 = vrot.slane %v8349_v13, 1 }
 0x108   : > { %7294 = vmatmul.mubr.msk.f32.gmra.mrb[28].mxu1 %vm515_vm0, %v512_v33  ;;  %v8244_v33 = vld [vmem:[#allocation2 + $0xd8] sm:$0xff] }
 0x109   : > { %v15974_v8 = vrot.slane %v8244_v33, 1 }
 0x10b   : > { %v513_v34 = vpop.trf.xlu0 }
 0x10c   : > { %7296 = vmatprep.mubr.msk.f32.mxu1 %vm515_vm0, %v513_v34  ;;  %v1321_v34 = vrot.slane %v8154_v52, 7 }
 0x10e   : > { %v1436_v25 = vsel %vm1402_vm2, %v1321_v34, %v1349_v49  ;;  %v1464_v10 = vsel %vm1402_vm2, %v1293_v48, %v1321_v34  ;;  %v1660_v49 = vsel %vm1627_vm3, %v1547_v55, %v1575_v51  ;;  %v1632_v48 = vsel %vm1627_vm3, %v1575_v51, %v1603_v63  ;;  %v8374_v63 = vld [vmem:[#allocation2 + $0x1d8] sm:$0xff] }
 0x10f   : > { %v514_v35 = vpop.trf.xlu0  ;;  %v1661_v34 = vsel %vm1627_vm3, %v1548_v60, %v1576_v59  ;;  %v15963_v55 = vrot.slane %v8131_v39, 6  ;;  %v15976_v51 = vrot.slane %v8129_v38, 6  ;;  %v8372_v59 = vsel %vm2076_vm4, %v15968_v11, %v2053_v0 }
 0x110   : > { %7297 = vmatmul.mubr.msk.f32.gmra.mrb[30].mxu1 %vm515_vm0, %v514_v35  ;;  %v8248_v35 = vmax.f32 %v8129_v38, %v1756_v21  ;;  %v15967_v21 = vrot.slane %v8244_v33, 7  ;;  %v1757_v5 = vmax.f32 %v1463_v29, %v1660_v49  ;;  %v1758_v11 = vmax.f32 %v1435_v57, %v1632_v48 }
 0x111   : > { %v8347_v22 = vsel %vm2076_vm4, %v15963_v55, %v2052_v17  ;;  %v1761_v18 = vmax.f32 %v1464_v10, %v1661_v34  ;;  %v1762_v60 = vmax.f32 %v1436_v25, %v1633_v23  ;;  %v8400_v47 = vsel %vm2076_vm4, %v2052_v17, %v15976_v51 }
 0x112   : > { %v8366_v55 = vsel %vm1402_vm2, %v15967_v21, %v15966_v16  ;;  %v8386_v16 = vld [vmem:[#allocation2 + $0x118] sm:$0xff]  ;;  %v8394_v21 = vsel %vm1627_vm3, %v15974_v8, %v15973_v19  ;;  %v8414_v10 = vsel %vm1627_vm3, %v15972_v14, %v15971_v31  ;;  %v16579_v57 = vrot.slane %v8311_v28, 7  ;;  %v8492_v8 = vld [vmem:[#allocation2 + $0x1e0] sm:$0xff] }
 0x113   : > { %16578 = vst [vmem:[#allocation18_spill] sm:$0xff] %v8414_v10  ;;  %v16580_v25 = vrot.slane %v8296_v24, 7  ;;  %v16582_v29 = vrot.slane %v8311_v28, 1  ;;  %v16583_v49 = vrot.slane %v8296_v24, 1  ;;  %v15978_v23 = vrot.slane %v8129_v38, 2  ;;  %v8494_v10 = vld [vmem:[#allocation2 + $0x1f8] sm:$0xff] }
 0x114   : > { %v15980_v34 = vrot.slane %v8349_v13, 7  ;;  %v15981_v0 = vrot.slane %v8374_v63, 7  ;;  %v15977_v19 = vrot.slane %v8142_v45, 2  ;;  %v8453_v51 = vmax.f32 %v8154_v52, %v1761_v18 }
 0x115   : > { %v8422_v17 = vsel %vm1402_vm2, %v16580_v25, %v16579_v57  ;;  %v8430_v48 = vsel %vm1627_vm3, %v16583_v49, %v16582_v29  ;;  %v8440_v57 = vld [vmem:[%s15941_s2] ss:$0 sm:$0xff]  ;;  %v8444_v29 = vmax.f32 %v8142_v45, %v1757_v5  ;;  %v8447_v49 = vmax.f32 %v8131_v39, %v1758_v11 }
 0x116   : > { %16581 = vst [vmem:[#allocation19_spill] sm:$0xff] %v8422_v17  ;;  %16584 = vst [vmem:[#allocation20_spill] sm:$0xff] %v8430_v48  ;;  %v8456_v14 = vmax.f32 %v8138_v43, %v1762_v60  ;;  %v8467_v9 = vsel %vm2301_vm5, %v15978_v23, %v15977_v19  ;;  %v8478_v5 = vsel %vm1402_vm2, %v15981_v0, %v15980_v34  ;;  %v16586_v11 = vrot.slane %v8384_v54, 1 }
 0x117   : > { %16585 = vst [vmem:[#allocation21_spill] sm:$0xff] %v8478_v5  ;;  %v16587_v25 = vrot.slane %v8386_v16, 1  ;;  %v2194_v0 = vrot.slane %v8136_v42, 2  ;;  %v16593_v5 = vrot.slane %v8374_v63, 1  ;;  %v16601_v61 = vrot.slane %v8494_v10, 7 }
 0x118   : > { %v16616_v58 = vrot.slane %v8494_v10, 1  ;;  %v16626_v17 = vrot.slane %v8274_v56, 6 }
 0x119   : > { %v8486_v19 = vsel %vm1627_vm3, %v16587_v25, %v16586_v11  ;;  %v16589_v25 = vrot.slane %v8384_v54, 7  ;;  %v16590_v11 = vrot.slane %v8386_v16, 7  ;;  %v8517_v50 = vsel %vm1627_vm3, %v16593_v5, %v16592_v41 }
 0x11a   : > { %16588 = vst [vmem:[#allocation22_spill] sm:$0xff] %v8486_v19  ;;  %16594 = vst [vmem:[#allocation24_spill] sm:$0xff] %v8517_v50  ;;  %v8530_v41 = vsel %vm2301_vm5, %v2194_v0, %v16595_v7  ;;  %v16598_v5 = vrot.slane %v8129_v38, 6  ;;  %v16600_v7 = vrot.slane %v8492_v8, 7 }
 0x11c   : > { %v8569_v50 = vsel %vm1402_vm2, %v16601_v61, %v16600_v7  ;;  %v16609_v7 = vrot.slane %v8311_v28, 6 }
 0x11d   : > { %16602 = vst [vmem:[#allocation25_spill] sm:$0xff] %v8569_v50  ;;  %v16610_v50 = vrot.slane %v8296_v24, 6 }
 0x16b   : > { %v7253_v31 = vpop.f32.mrb[0].mxu1 }
 0x16c   : > { %v8470_v18 = vadd.f32 %v7253_v31, %v8440_v57  ;;  %v678_v60 = vpop.f32.mrb[1].mxu1  ;;  %v1996_v31 = vrot.slane %v8142_v45, 6 }
 0x16d   : > { %v8490_v23 = vadd.f32 %v8440_v57, %v678_v60  ;;  %v8506_v60 = vsel %vm1402_vm2, %v16590_v11, %v16589_v25 }
 0x16e   : > { %v6736_v6 = vmul.f32 -1.442695, %v8470_v18  ;;  %16591 = vst [vmem:[#allocation23_spill] sm:$0xff] %v8506_v60  ;;  %v8538_v27 = vsel %vm2076_vm4, %v1996_v31, %v16596_v44  ;;  %v16599_v44 = vrot.slane %v8136_v42, 6  ;;  %v16604_v42 = vrot.slane %v8244_v33, 6 }
 0x16f   : > { %v6735_v34 = vmul.f32 -1.442695, %v8490_v23 }
 0x170   : > { %7655 = vpow2.f32 %v6736_v6  ;;  %v8552_v6 = vsel %vm2076_vm4, %v16598_v5, %v1996_v31  ;;  %v8558_v11 = vsel %vm2076_vm4, %v16599_v44, %v1997_v12  ;;  %v16603_v31 = vrot.slane %v8242_v32, 6 }
 0x171   : > { %7657 = vpow2.f32 %v6735_v34  ;;  %v16597_v34 = vrot.slane %v8138_v43, 6  ;;  %v16606_v44 = vrot.slane %v8218_v20, 6 }
 0x173   : > { %v8544_v26 = vsel %vm2076_vm4, %v1997_v12, %v16597_v34  ;;  %v7256_v62 = vpop.f32.mrb[2].mxu1  ;;  %v8577_v12 = vsel %vm2076_vm4, %v16604_v42, %v16603_v31  ;;  %v8589_v61 = vsel %vm2076_vm4, %v16607_v2, %v16606_v44  ;;  %v8597_v31 = vsel %vm2076_vm4, %v16610_v50, %v16609_v7  ;;  %v8612_v50 = vld [vmem:[#allocation2 + $0x200] sm:$0xff]  ;;  %v8614_v7 = vld [vmem:[#allocation2 + $0x218] sm:$0xff] }
 0x174   : > { %v8561_v34 = vadd.f32 %v7256_v62, %v8440_v57  ;;  %v688_v25 = vpop.f32.mrb[3].mxu1  ;;  %16605 = vst [vmem:[#allocation26_spill] sm:$0xff] %v8577_v12  ;;  %v2277_v62 = vrot.slane %v8133_v40, 2  ;;  %16608 = vst [vmem:[#allocation27_spill] sm:$0xff] %v8589_v61  ;;  %v16612_v40 = vrot.slane %v8384_v54, 6  ;;  %v2278_v61 = vrot.slane %v8144_v46, 2 }
 0x175   : > { %v8581_v5 = vadd.f32 %v8440_v57, %v688_v25  ;;  %16611 = vst [vmem:[#allocation28_spill] sm:$0xff] %v8597_v31  ;;  %v16613_v25 = vrot.slane %v8386_v16, 6  ;;  %v16615_v31 = vrot.slane %v8492_v8, 1  ;;  %v2249_v46 = vrot.slane %v8131_v39, 2 }
 0x176   : > { %v6738_v12 = vmul.f32 -1.442695, %v8561_v34  ;;  %v2250_v2 = vrot.slane %v8138_v43, 2 }
 0x177   : > { %v8605_v42 = vsel %vm2076_vm4, %v16613_v25, %v16612_v40  ;;  %v6737_v1 = vmul.f32 -1.442695, %v8581_v5  ;;  %v8622_v40 = vsel %vm1627_vm3, %v16616_v58, %v16615_v31  ;;  %v8683_v31 = vsel %vm2301_vm5, %v2249_v46, %v2277_v62 }
 0x178   : > { %16614 = vst [vmem:[#allocation29_spill] sm:$0xff] %v8605_v42  ;;  %16617 = vst [vmem:[#allocation30_spill] sm:$0xff] %v8622_v40  ;;  %7659 = vpow2.f32 %v6738_v12  ;;  %v16618_v42 = vrot.slane %v8129_v38, 2  ;;  %v8638_v12 = vld [vmem:[#allocation2 + $0x238] sm:$0xff]  ;;  %v8644_v38 = vsel %vm2301_vm5, %v2278_v61, %v2194_v0  ;;  %v16624_v0 = vrot.slane %v8614_v7, 7 }
 0x179   : > { %7661 = vpow2.f32 %v6737_v1  ;;  %16619 = vst [vmem:[#allocation31_spill] sm:$0xff] %v8638_v12  ;;  %v16623_v1 = vrot.slane %v8612_v50, 7  ;;  %v8687_v58 = vsel %vm2301_vm5, %v2250_v2, %v2278_v61  ;;  %v16627_v12 = vrot.slane %v8239_v30, 6 }
 0x17a   : > { %v8632_v19 = vsel %vm2301_vm5, %v2277_v62, %v16618_v42  ;;  %v7656_v44 = vpop.eup %7655  ;;  %v16630_v62 = vrot.slane %v8154_v52, 2  ;;  %v16637_v52 = vrot.slane %v8242_v32, 2 }
 0x17b   : > { %v7658_v42 = vpop.eup %7657  ;;  %v934_v60 = vadd.f32 1.0, %v7656_v44  ;;  %v7259_v25 = vpop.f32.mrb[4].mxu1 }
 0x17c   : > { %v933_v39 = vadd.f32 1.0, %v7658_v42  ;;  %v8653_v43 = vadd.f32 %v7259_v25, %v8440_v57  ;;  %v698_v48 = vpop.f32.mrb[5].mxu1  ;;  %v8663_v42 = vld [vmem:[#allocation2 + $0x220] sm:$0xff]  ;;  %v8665_v25 = vld [vmem:[#allocation2 + $0x258] sm:$0xff]  ;;  %v8707_v61 = vsel %vm2301_vm5, %v16630_v62, %v2250_v2 }
 0x17d   : > { %7663 = vrcp.f32 %v934_v60  ;;  %v8658_v44 = vadd.f32 %v8440_v57, %v698_v48  ;;  %16621 = vst [vmem:[#allocation33_spill] sm:$0xff] %v8665_v25  ;;  %v8671_v48 = vld [vmem:[#allocation2 + $0x240] sm:$0xff]  ;;  %v16635_v25 = vrot.slane %v8374_v63, 6 }
 0x17e   : > { %7665 = vrcp.f32 %v933_v39  ;;  %v6740_v40 = vmul.f32 -1.442695, %v8653_v43  ;;  %16622 = vst [vmem:[#allocation34_spill] sm:$0xff] %v8671_v48  ;;  %v8679_v39 = vsel %vm1402_vm2, %v16624_v0, %v16623_v1  ;;  %v16629_v1 = vrot.slane %v8142_v45, 2 }
 0x17f   : > { %16620 = vst [vmem:[#allocation32_spill] sm:$0xff] %v8658_v44  ;;  %v6739_v60 = vmul.f32 -1.442695, %v8658_v44  ;;  %16625 = vst [vmem:[#allocation35_spill] sm:$0xff] %v8679_v39  ;;  %v8695_v44 = vsel %vm2076_vm4, %v16627_v12, %v16626_v17  ;;  %v16631_v17 = vrot.slane %v8612_v50, 1  ;;  %v16632_v12 = vrot.slane %v8614_v7, 1 }
 0x180   : > { %7667 = vpow2.f32 %v6740_v40  ;;  %16628 = vst [vmem:[#allocation36_spill] sm:$0xff] %v8695_v44  ;;  %v8701_v0 = vsel %vm2301_vm5, %v16629_v1, %v2249_v46  ;;  %v16634_v44 = vrot.slane %v8349_v13, 6  ;;  %v16638_v1 = vrot.slane %v8244_v33, 2 }
 0x181   : > { %7669 = vpow2.f32 %v6739_v60  ;;  %v8717_v45 = vsel %vm1627_vm3, %v16632_v12, %v16631_v17  ;;  %v16640_v12 = vrot.slane %v8218_v20, 2 }
 0x182   : > { %16633 = vst [vmem:[#allocation37_spill] sm:$0xff] %v8717_v45  ;;  %v7660_v46 = vpop.eup %7659  ;;  %v8729_v17 = vsel %vm2076_vm4, %v16635_v25, %v16634_v44  ;;  %v8738_v60 = vsel %vm2301_vm5, %v16638_v1, %v16637_v52  ;;  %v2431_v44 = vmax.f32 %v8552_v6, %v8701_v0  ;;  %v8762_v6 = vld [vmem:[#allocation2 + $0x260] sm:$0xff]  ;;  %v2435_v0 = vmax.f32 %v8558_v11, %v8707_v61 }
 0x183   : > { %v7662_v62 = vpop.eup %7661  ;;  %v936_v40 = vadd.f32 1.0, %v7660_v46  ;;  %v7262_v39 = vpop.f32.mrb[6].mxu1  ;;  %16636 = vst [vmem:[#allocation38_spill] sm:$0xff] %v8729_v17  ;;  %16639 = vst [vmem:[#allocation39_spill] sm:$0xff] %v8738_v60  ;;  %v16641_v17 = vrot.slane %v8209_v15, 2  ;;  %v16654_v61 = vrot.slane %v8311_v28, 2 }
 0x184   : > { %v935_v46 = vadd.f32 1.0, %v7662_v62  ;;  %v8741_v2 = vadd.f32 %v7262_v39, %v8440_v57  ;;  %v708_v48 = vpop.f32.mrb[7].mxu1  ;;  %v2432_v39 = vmax.f32 %v8538_v27, %v8683_v31  ;;  %v8760_v62 = vld [vmem:[#allocation2 + $0x278] sm:$0xff]  ;;  %16644 = vst [vmem:[#allocation42_spill] sm:$0xff] %v8762_v6  ;;  %v2436_v27 = vmax.f32 %v8544_v26, %v8687_v58 }
 0x185   : > { %7671 = vrcp.f32 %v936_v40  ;;  %v8747_v25 = vadd.f32 %v8440_v57, %v708_v48  ;;  %v8755_v52 = vsel %vm2301_vm5, %v16641_v17, %v16640_v12  ;;  %16643 = vst [vmem:[#allocation41_spill] sm:$0xff] %v8760_v62  ;;  %v16645_v26 = vrot.slane %v8492_v8, 6 }
 0x186   : > { %16642 = vst [vmem:[#allocation40_spill] sm:$0xff] %v8755_v52  ;;  %7673 = vrcp.f32 %v935_v46  ;;  %v6742_v1 = vmul.f32 -1.442695, %v8741_v2  ;;  %v16663_v6 = vrot.slane %v8612_v50, 2  ;;  %v16664_v62 = vrot.slane %v8614_v7, 2 }
 0x187   : > { %v7664_v40 = vpop.eup %7663  ;;  %v6741_v45 = vmul.f32 -1.442695, %v8747_v25  ;;  %v16833_v52 = vrot.slane %v8494_v10, 7 }
 0x188   : > { %v7666_v31 = vpop.eup %7665  ;;  %v8773_v46 = vmul.f32 %v7664_v40, %v8470_v18  ;;  %7675 = vpow2.f32 %v6742_v1  ;;  %v16646_v18 = vrot.slane %v8494_v10, 6  ;;  %v16651_v40 = vrot.slane %v8274_v56, 2 }
 0x189   : > { %v8778_v11 = vmul.f32 %v7666_v31, %v8490_v23  ;;  %7677 = vpow2.f32 %v6741_v45  ;;  %v16648_v23 = vrot.slane %v8612_v50, 6  ;;  %v16649_v45 = vrot.slane %v8614_v7, 6 }
 0x18a   : > { %v7668_v17 = vpop.eup %7667  ;;  %1145 = vst.msk [vmem:[#allocation2 + $0xd0] sm:$0xff] %vm1061_vm1, %v8773_v46  ;;  %v8790_v58 = vsel %vm2076_vm4, %v16646_v18, %v16645_v26  ;;  %v16652_v31 = vrot.slane %v8239_v30, 2  ;;  %v16655_v26 = vrot.slane %v8296_v24, 2 }
 0x18b   : > { %16647 = vst [vmem:[#allocation43_spill] sm:$0xff] %v8790_v58  ;;  %v8798_v1 = vsel %vm2076_vm4, %v16649_v45, %v16648_v23  ;;  %v7670_v60 = vpop.eup %7669  ;;  %1144 = vst.msk [vmem:[#allocation2 + $0xc8] sm:$0xff] %vm1061_vm1, %v8778_v11  ;;  %v938_v45 = vadd.f32 1.0, %v7668_v17  ;;  %v7265_v48 = vpop.f32.mrb[8].mxu1 }
 0x18c   : > { %16650 = vst [vmem:[#allocation44_spill] sm:$0xff] %v8798_v1  ;;  %v8806_v12 = vsel %vm2301_vm5, %v16652_v31, %v16651_v40  ;;  %v8814_v18 = vsel %vm2301_vm5, %v16655_v26, %v16654_v61  ;;  %v16657_v40 = vrot.slane %v8349_v13, 2  ;;  %v16658_v31 = vrot.slane %v8374_v63, 2  ;;  %v718_v23 = vpop.f32.mrb[9].mxu1 }
 0x18d   : > { %16653 = vst [vmem:[#allocation45_spill] sm:$0xff] %v8806_v12  ;;  %16656 = vst [vmem:[#allocation46_spill] sm:$0xff] %v8814_v18  ;;  %v16660_v61 = vrot.slane %v8492_v8, 2  ;;  %v16661_v26 = vrot.slane %v8494_v10, 2  ;;  %v937_v58 = vadd.f32 1.0, %v7670_v60  ;;  %v8837_v17 = vadd.f32 %v7265_v48, %v8440_v57 }
 0x18e   : > { %v8826_v1 = vsel %vm2301_vm5, %v16658_v31, %v16657_v40  ;;  %v8845_v40 = vsel %vm2301_vm5, %v16664_v62, %v16663_v6  ;;  %v16666_v31 = vrot.slane %v8384_v54, 2  ;;  %7679 = vrcp.f32 %v938_v45 }
 0x18f   : > { %16659 = vst [vmem:[#allocation47_spill] sm:$0xff] %v8826_v1  ;;  %v8834_v18 = vsel %vm2301_vm5, %v16661_v26, %v16660_v61  ;;  %16665 = vst [vmem:[#allocation49_spill] sm:$0xff] %v8845_v40  ;;  %v16667_v1 = vrot.slane %v8386_v16, 2  ;;  %v8856_v60 = vadd.f32 %v8440_v57, %v718_v23  ;;  %v16669_v48 = vmax.f32 %v8400_v47, %v8467_v9  ;;  %v7672_v45 = vpop.eup %7671 }
 0x190   : > { %16662 = vst [vmem:[#allocation48_spill] sm:$0xff] %v8834_v18  ;;  %v8865_v62 = vmax.f32 %v8444_v29, %v2431_v44  ;;  %7681 = vrcp.f32 %v937_v58  ;;  %v6744_v6 = vmul.f32 -1.442695, %v8837_v17  ;;  %v8869_v40 = vmax.f32 %v8447_v49, %v2432_v39  ;;  %v7674_v44 = vpop.eup %7673 }
 0x191   : > { %v8853_v61 = vsel %vm2301_vm5, %v16667_v1, %v16666_v31  ;;  %v8862_v26 = vmax.f32 %v8248_v35, %v16669_v48  ;;  %v16673_v1 = vmax.f32 %v8347_v22, %v8632_v19  ;;  %v6743_v9 = vmul.f32 -1.442695, %v8856_v60 }
 0x192   : > { %16668 = vst [vmem:[#allocation50_spill] sm:$0xff] %v8853_v61  ;;  %16671 = vst [vmem:[#allocation52_spill] sm:$0xff] %v8865_v62  ;;  %v16675_v35 = vmax.f32 %v8406_v4, %v8530_v41  ;;  %v8885_v29 = vmax.f32 %v8453_v51, %v2435_v0  ;;  %v8888_v49 = vmax.f32 %v8456_v14, %v2436_v27  ;;  %7683 = vpow2.f32 %v6744_v6  ;;  %v8903_v51 = vld [vmem:[#allocation2 + $0xd0] sm:$0xff] }
 0x193   : > { %16670 = vst [vmem:[#allocation51_spill] sm:$0xff] %v8862_v26  ;;  %16672 = vst [vmem:[#allocation53_spill] sm:$0xff] %v8869_v40  ;;  %v8875_v23 = vmax.f32 %v8251_v36, %v16673_v1  ;;  %v8891_v19 = vmul.f32 %v7672_v45, %v8561_v34  ;;  %v16679_v22 = vmax.f32 %v8372_v59, %v8644_v38  ;;  %7685 = vpow2.f32 %v6743_v9  ;;  %v7676_v34 = vpop.eup %7675  ;;  %v8909_v59 = vld [vmem:[#allocation2 + $0xc8] sm:$0xff]  ;;  %v7268_v31 = vpop.f32.mrb[10].mxu1 }
 0x194   : > { %v8882_v47 = vmax.f32 %v8271_v53, %v16675_v35  ;;  %16677 = vst [vmem:[#allocation56_spill] sm:$0xff] %v8885_v29  ;;  %16678 = vst [vmem:[#allocation57_spill] sm:$0xff] %v8888_v49  ;;  %v8901_v4 = vmul.f32 %v7674_v44, %v8581_v5  ;;  %v1577_v38 = vrot.slane %v8903_v51, 1  ;;  %v7678_v0 = vpop.eup %7677  ;;  %v940_v58 = vadd.f32 1.0, %v7676_v34  ;;  %v728_v9 = vpop.f32.mrb[11].mxu1 }
 0x195   : > { %16674 = vst [vmem:[#allocation54_spill] sm:$0xff] %v8875_v23  ;;  %v8897_v36 = vmax.f32 %v8282_v3, %v16679_v22  ;;  %1147 = vst.msk [vmem:[#allocation2 + $0xf0] sm:$0xff] %vm1061_vm1, %v8891_v19  ;;  %v1350_v3 = vrot.slane %v8903_v51, 7  ;;  %v1322_v48 = vrot.slane %v8909_v59, 7  ;;  %v1549_v6 = vrot.slane %v8909_v59, 1 }
 0x196   : > { %16676 = vst [vmem:[#allocation55_spill] sm:$0xff] %v8882_v47  ;;  %1146 = vst.msk [vmem:[#allocation2 + $0xe8] sm:$0xff] %vm1061_vm1, %v8901_v4  ;;  %v939_v1 = vadd.f32 1.0, %v7678_v0  ;;  %v8922_v45 = vadd.f32 %v7268_v31, %v8440_v57  ;;  %v16681_v35 = vrot.slane %v8244_v33, 7  ;;  %v16682_v22 = vrot.slane %v8244_v33, 1 }
 0x197   : > { %16680 = vst [vmem:[#allocation58_spill] sm:$0xff] %v8897_v36  ;;  %7687 = vrcp.f32 %v940_v58  ;;  %v8933_v14 = vadd.f32 %v8440_v57, %v728_v9  ;;  %v1437_v0 = vsel %vm1402_vm2, %v1322_v48, %v1350_v3  ;;  %v16683_v31 = vrot.slane %v8242_v32, 7 }
 0x198   : > { %v1409_v44 = vsel %vm1402_vm2, %v1350_v3, %v16681_v35  ;;  %v1634_v34 = vsel %vm1627_vm3, %v1577_v38, %v16682_v22  ;;  %7689 = vrcp.f32 %v939_v1  ;;  %v6746_v35 = vmul.f32 -1.442695, %v8922_v45  ;;  %v7680_v9 = vpop.eup %7679 }
 0x199   : > { %v1465_v53 = vsel %vm1402_vm2, %v16683_v31, %v1322_v48  ;;  %v1662_v41 = vsel %vm1627_vm3, %v1549_v6, %v1577_v38  ;;  %v16684_v22 = vrot.slane %v8242_v32, 1  ;;  %v6745_v27 = vmul.f32 -1.442695, %v8933_v14  ;;  %v16685_v31 = vld [vmem:[#allocation32_spill] sm:$0xff] }
 0x19a   : > { %v1765_v39 = vmax.f32 %v1465_v53, %v1662_v41  ;;  %v1766_v5 = vmax.f32 %v1437_v0, %v1634_v34  ;;  %v7682_v47 = vpop.eup %7681  ;;  %v8951_v48 = vmul.f32 %v7680_v9, %v8653_v43  ;;  %7691 = vpow2.f32 %v6746_v35 }
 0x19b   : > { %v1690_v58 = vsel %vm1627_vm3, %v16684_v22, %v1549_v6  ;;  %v1767_v1 = vmax.f32 %v1409_v44, %v8394_v21  ;;  %v8956_v26 = vmul.f32 %v7682_v47, %v16685_v31  ;;  %7693 = vpow2.f32 %v6745_v27  ;;  %v7271_v0 = vpop.f32.mrb[12].mxu1 }
 0x19c   : > { %v1764_v3 = vmax.f32 %v8366_v55, %v1690_v58  ;;  %v8958_v6 = vld [vmem:[#allocation2 + $0xf0] sm:$0xff]  ;;  %v8964_v55 = vmax.f32 %v8909_v59, %v1765_v39  ;;  %v7684_v53 = vpop.eup %7683  ;;  %1149 = vst.msk [vmem:[#allocation2 + $0x110] sm:$0xff] %vm1061_vm1, %v8951_v48  ;;  %v8973_v41 = vmax.f32 %v8903_v51, %v1766_v5  ;;  %v8985_v5 = vadd.f32 %v7271_v0, %v8440_v57 }
 0x19d   : > { %v8968_v43 = vld [vmem:[#allocation2 + $0xe8] sm:$0xff]  ;;  %v1351_v21 = vrot.slane %v8958_v6, 7  ;;  %v1578_v47 = vrot.slane %v8958_v6, 1  ;;  %v8976_v27 = vmax.f32 %v8244_v33, %v1767_v1  ;;  %v7686_v44 = vpop.eup %7685  ;;  %1148 = vst.msk [vmem:[#allocation2 + $0x108] sm:$0xff] %vm1061_vm1, %v8956_v26  ;;  %v942_v34 = vadd.f32 1.0, %v7684_v53 }
 0x19e   : > { %v8961_v22 = vmax.f32 %v8242_v32, %v1764_v3  ;;  %16687 = vst [vmem:[#allocation59_spill] sm:$0xff] %v8964_v55  ;;  %16688 = vst [vmem:[#allocation60_spill] sm:$0xff] %v8973_v41  ;;  %v1323_v35 = vrot.slane %v8968_v43, 7  ;;  %v1550_v58 = vrot.slane %v8968_v43, 1  ;;  %v941_v9 = vadd.f32 1.0, %v7686_v44  ;;  %v738_v3 = vpop.f32.mrb[13].mxu1 }
 0x19f   : > { %16689 = vst [vmem:[#allocation61_spill] sm:$0xff] %v8976_v27  ;;  %v16690_v1 = vrot.slane %v8296_v24, 7  ;;  %v16691_v38 = vrot.slane %v8296_v24, 1  ;;  %7695 = vrcp.f32 %v942_v34  ;;  %v8996_v39 = vadd.f32 %v8440_v57, %v738_v3 }
 0x1a0   : > { %16686 = vst [vmem:[#allocation32_spill] sm:$0xff] %v8961_v22  ;;  %v1438_v44 = vsel %vm1402_vm2, %v1323_v35, %v1351_v21  ;;  %v16692_v0 = vrot.slane %v8311_v28, 7  ;;  %7697 = vrcp.f32 %v941_v9  ;;  %v1663_v36 = vsel %vm1627_vm3, %v1550_v58, %v1578_v47  ;;  %v16695_v9 = vld [vmem:[#allocation20_spill] sm:$0xff] }
 0x1a1   : > { %v1410_v31 = vsel %vm1402_vm2, %v1351_v21, %v16690_v1  ;;  %v1635_v53 = vsel %vm1627_vm3, %v1578_v47, %v16691_v38  ;;  %v6748_v1 = vmul.f32 -1.442695, %v8985_v5  ;;  %v16693_v38 = vrot.slane %v8311_v28, 1  ;;  %v7688_v3 = vpop.eup %7687  ;;  %v16694_v21 = vld [vmem:[#allocation19_spill] sm:$0xff] }
 0x1a2   : > { %v1466_v62 = vsel %vm1402_vm2, %v16692_v0, %v1323_v35  ;;  %v6747_v23 = vmul.f32 -1.442695, %v8996_v39  ;;  %v1770_v29 = vmax.f32 %v1438_v44, %v1635_v53  ;;  %v7690_v27 = vpop.eup %7689  ;;  %v9014_v35 = vmul.f32 %v7688_v3, %v8741_v2 }
 0x1a3   : > { %v1691_v34 = vsel %vm1627_vm3, %v16693_v38, %v1550_v58  ;;  %v1769_v40 = vmax.f32 %v1466_v62, %v1663_v36  ;;  %7699 = vpow2.f32 %v6748_v1  ;;  %v1771_v0 = vmax.f32 %v1410_v31, %v16695_v9  ;;  %v9018_v41 = vld [vmem:[#allocation2 + $0x110] sm:$0xff]  ;;  %v7274_v44 = vpop.f32.mrb[14].mxu1 }
 0x1a4   : > { %v1768_v49 = vmax.f32 %v16694_v21, %v1691_v34  ;;  %v9021_v58 = vmul.f32 %v7690_v27, %v8747_v25  ;;  %7701 = vpow2.f32 %v6747_v23  ;;  %v7692_v36 = vpop.eup %7691  ;;  %v9029_v2 = vld [vmem:[#allocation2 + $0x108] sm:$0xff]  ;;  %1151 = vst.msk [vmem:[#allocation2 + $0x130] sm:$0xff] %vm1061_vm1, %v9014_v35  ;;  %v1352_v31 = vrot.slane %v9018_v41, 7  ;;  %v748_v21 = vpop.f32.mrb[15].mxu1 }
 0x1a5   : > { %v9027_v62 = vmax.f32 %v8968_v43, %v1769_v40  ;;  %16698 = vst [vmem:[#allocation62_spill] sm:$0xff] %v9029_v2  ;;  %v1579_v53 = vrot.slane %v9018_v41, 1  ;;  %v9036_v25 = vmax.f32 %v8958_v6, %v1770_v29  ;;  %v9039_v23 = vmax.f32 %v8296_v24, %v1771_v0 }
 0x1a6   : > { %v9024_v38 = vmax.f32 %v8311_v28, %v1768_v49  ;;  %v7694_v49 = vpop.eup %7693  ;;  %1150 = vst.msk [vmem:[#allocation2 + $0x128] sm:$0xff] %vm1061_vm1, %v9021_v58  ;;  %v944_v27 = vadd.f32 1.0, %v7692_v36  ;;  %v1324_v1 = vrot.slane %v9029_v2, 7  ;;  %v1551_v34 = vrot.slane %v9029_v2, 1 }
 0x1a7   : > { %16697 = vst [vmem:[#allocation20_spill] sm:$0xff] %v9027_v62  ;;  %16699 = vst [vmem:[#allocation63_spill] sm:$0xff] %v9036_v25  ;;  %v943_v3 = vadd.f32 1.0, %v7694_v49  ;;  %v9048_v29 = vadd.f32 %v7274_v44, %v8440_v57  ;;  %v16701_v9 = vrot.slane %v8386_v16, 7  ;;  %v16702_v47 = vrot.slane %v8386_v16, 1 }
 0x1a8   : > { %16696 = vst [vmem:[#allocation19_spill] sm:$0xff] %v9024_v38  ;;  %16700 = vst [vmem:[#allocation64_spill] sm:$0xff] %v9039_v23  ;;  %7703 = vrcp.f32 %v944_v27  ;;  %v9059_v40 = vadd.f32 %v8440_v57, %v748_v21  ;;  %v1439_v49 = vsel %vm1402_vm2, %v1324_v1, %v1352_v31  ;;  %v16703_v44 = vrot.slane %v8384_v54, 7 }
 0x1a9   : > { %v1411_v0 = vsel %vm1402_vm2, %v1352_v31, %v16701_v9  ;;  %v1636_v36 = vsel %vm1627_vm3, %v1579_v53, %v16702_v47  ;;  %7705 = vrcp.f32 %v943_v3  ;;  %v6750_v9 = vmul.f32 -1.442695, %v9048_v29  ;;  %v7696_v21 = vpop.eup %7695  ;;  %v16705_v31 = vld [vmem:[#allocation23_spill] sm:$0xff]  ;;  %v16706_v3 = vld [vmem:[#allocation22_spill] sm:$0xff] }
 0x1aa   : > { %v1467_v23 = vsel %vm1402_vm2, %v16703_v44, %v1324_v1  ;;  %v1664_v25 = vsel %vm1627_vm3, %v1551_v34, %v1579_v53  ;;  %v16704_v47 = vrot.slane %v8384_v54, 1  ;;  %v6749_v62 = vmul.f32 -1.442695, %v9059_v40  ;;  %v7698_v61 = vpop.eup %7697 }
 0x1ab   : > { %v1773_v55 = vmax.f32 %v1467_v23, %v1664_v25  ;;  %v1774_v22 = vmax.f32 %v1439_v49, %v1636_v36  ;;  %v9077_v1 = vmul.f32 %v7696_v21, %v8837_v17  ;;  %7707 = vpow2.f32 %v6750_v9  ;;  %v9081_v18 = vld [vmem:[#allocation2 + $0x130] sm:$0xff]  ;;  %v16714_v21 = vld [vmem:[#allocation4_spill] sm:$0xff]  ;;  %v16717_v49 = vld [vmem:[#allocation7_spill] sm:$0xff] }
 0x1ac   : > { %v1692_v27 = vsel %vm1627_vm3, %v16704_v47, %v1551_v34  ;;  %v1775_v44 = vmax.f32 %v1411_v0, %v16706_v3  ;;  %v2000_v53 = vrot.slane %v9029_v2, 6  ;;  %16707 = vst [vmem:[#allocation23_spill] sm:$0xff] %v9081_v18  ;;  %v9084_v34 = vmul.f32 %v7698_v61, %v8856_v60 }
 0x1ad   : > { %v1772_v38 = vmax.f32 %v16705_v31, %v1692_v27  ;;  %7709 = vpow2.f32 %v6749_v62  ;;  %v9090_v25 = vmax.f32 %v9029_v2, %v1773_v55  ;;  %v7700_v23 = vpop.eup %7699  ;;  %v16029_v17 = vrot.slane %v9081_v18, 7  ;;  %v9094_v0 = vld [vmem:[#allocation2 + $0x128] sm:$0xff]  ;;  %1153 = vst.msk [vmem:[#allocation2 + $0x150] sm:$0xff] %vm1061_vm1, %v9077_v1  ;;  %v7277_v27 = vpop.f32.mrb[16].mxu1 }
 0x1ae   : > { %16708 = vst [vmem:[#allocation22_spill] sm:$0xff] %v9084_v34  ;;  %16711 = vst [vmem:[#allocation67_spill] sm:$0xff] %v9094_v0  ;;  %v9099_v61 = vmax.f32 %v9018_v41, %v1774_v22  ;;  %v9102_v60 = vmax.f32 %v8386_v16, %v1775_v44  ;;  %v16030_v62 = vrot.slane %v9094_v0, 1  ;;  %v946_v9 = vadd.f32 1.0, %v7700_v23  ;;  %v758_v36 = vpop.f32.mrb[17].mxu1 }
 0x1af   : > { %v9087_v47 = vmax.f32 %v8384_v54, %v1772_v38  ;;  %16710 = vst [vmem:[#allocation66_spill] sm:$0xff] %v9090_v25  ;;  %v7702_v38 = vpop.eup %7701  ;;  %1152 = vst.msk [vmem:[#allocation2 + $0x148] sm:$0xff] %vm1061_vm1, %v9084_v34  ;;  %v16715_v31 = vrot.slane %v16714_v21, 7  ;;  %v9119_v44 = vadd.f32 %v7277_v27, %v8440_v57  ;;  %v2027_v55 = vrot.slane %v8958_v6, 6 }
 0x1b0   : > { %16712 = vst [vmem:[#allocation68_spill] sm:$0xff] %v9099_v61  ;;  %16713 = vst [vmem:[#allocation69_spill] sm:$0xff] %v9102_v60  ;;  %v945_v3 = vadd.f32 1.0, %v7702_v38  ;;  %v16718_v23 = vrot.slane %v16717_v49, 1  ;;  %7711 = vrcp.f32 %v946_v9  ;;  %v9131_v18 = vadd.f32 %v8440_v57, %v758_v36 }
 0x1b1   : > { %16709 = vst [vmem:[#allocation65_spill] sm:$0xff] %v9087_v47  ;;  %v9116_v22 = vsel %vm1402_vm2, %v16029_v17, %v16715_v31  ;;  %v2028_v38 = vrot.slane %v9018_v41, 6  ;;  %v6752_v27 = vmul.f32 -1.442695, %v9119_v44  ;;  %v16720_v31 = vrot.slane %v8244_v33, 6 }
 0x1b2   : > { %16716 = vst [vmem:[#allocation70_spill] sm:$0xff] %v9116_v22  ;;  %v9128_v21 = vsel %vm1627_vm3, %v16718_v23, %v16030_v62  ;;  %7713 = vrcp.f32 %v945_v3  ;;  %v16721_v17 = vrot.slane %v8903_v51, 6  ;;  %v16723_v23 = vrot.slane %v8296_v24, 6  ;;  %v7704_v36 = vpop.eup %7703 }
 0x1b3   : > { %16719 = vst [vmem:[#allocation71_spill] sm:$0xff] %v9128_v21  ;;  %v6751_v62 = vmul.f32 -1.442695, %v9131_v18  ;;  %v16725_v3 = vrot.slane %v8386_v16, 6  ;;  %v7706_v60 = vpop.eup %7705  ;;  %v9171_v61 = vmul.f32 %v7704_v36, %v8922_v45  ;;  %7715 = vpow2.f32 %v6752_v27 }
 0x1b4   : > { %v9141_v22 = vsel %vm2076_vm4, %v16721_v17, %v16720_v31  ;;  %v9147_v9 = vsel %vm2076_vm4, %v2027_v55, %v16723_v23  ;;  %v16727_v21 = vmov %v16721_v17  ;;  %v16728_v17 = vrot.slane %v8909_v59, 6  ;;  %v9185_v47 = vld [vmem:[#allocation2 + $0x150] sm:$0xff] }
 0x1b5   : > { %16722 = vst [vmem:[#allocation72_spill] sm:$0xff] %v9141_v22  ;;  %16724 = vst [vmem:[#allocation73_spill] sm:$0xff] %v9147_v9  ;;  %v9154_v49 = vsel %vm2076_vm4, %v2028_v38, %v16725_v3  ;;  %v16730_v23 = vrot.slane %v8968_v43, 6  ;;  %v9175_v3 = vsel %vm2076_vm4, %v2000_v53, %v2028_v38  ;;  %7717 = vpow2.f32 %v6751_v62 }
 0x1b6   : > { %16726 = vst [vmem:[#allocation74_spill] sm:$0xff] %v9154_v49  ;;  %v9162_v31 = vsel %vm2076_vm4, %v16728_v17, %v16727_v21  ;;  %16732 = vst [vmem:[#allocation77_spill] sm:$0xff] %v9171_v61  ;;  %v16734_v25 = vmov %v16728_v17  ;;  %v16735_v21 = vrot.slane %v8242_v32, 6  ;;  %v16740_v27 = vrot.slane %v8311_v28, 6 }
 0x1b7   : > { %16729 = vst [vmem:[#allocation75_spill] sm:$0xff] %v9162_v31  ;;  %v9168_v0 = vsel %vm2076_vm4, %v16730_v23, %v2027_v55  ;;  %16733 = vst [vmem:[#allocation78_spill] sm:$0xff] %v9175_v3  ;;  %v9188_v55 = vmul.f32 %v7706_v60, %v8933_v14  ;;  %v16739_v45 = vmov %v16730_v23  ;;  %v16742_v36 = vrot.slane %v8384_v54, 6  ;;  %v7708_v23 = vpop.eup %7707  ;;  %v9206_v60 = vld [vmem:[#allocation2 + $0x148] sm:$0xff]  ;;  %v16745_v3 = vld [vmem:[#allocation8_spill] sm:$0xff] }
 0x1b8   : > { %16731 = vst [vmem:[#allocation76_spill] sm:$0xff] %v9168_v0  ;;  %v9183_v17 = vsel %vm2076_vm4, %v16735_v21, %v16734_v25  ;;  %16737 = vst [vmem:[#allocation80_spill] sm:$0xff] %v9185_v47  ;;  %v9196_v38 = vsel %vm2076_vm4, %v16740_v27, %v16739_v45  ;;  %v2223_v62 = vrot.slane %v8909_v59, 2  ;;  %v2224_v45 = vrot.slane %v8968_v43, 2  ;;  %v7710_v27 = vpop.eup %7709  ;;  %v7280_v21 = vpop.f32.mrb[18].mxu1 }
 0x1b9   : > { %16736 = vst [vmem:[#allocation79_spill] sm:$0xff] %v9183_v17  ;;  %16738 = vst [vmem:[#allocation81_spill] sm:$0xff] %v9188_v55  ;;  %v9202_v25 = vsel %vm2076_vm4, %v16742_v36, %v2000_v53  ;;  %v948_v14 = vadd.f32 1.0, %v7708_v23  ;;  %v16747_v9 = vrot.slane %v9185_v47, 7  ;;  %v947_v43 = vadd.f32 1.0, %v7710_v27  ;;  %v768_v53 = vpop.f32.mrb[19].mxu1 }
 0x1ba   : > { %16741 = vst [vmem:[#allocation82_spill] sm:$0xff] %v9196_v38  ;;  %16743 = vst [vmem:[#allocation83_spill] sm:$0xff] %v9202_v25  ;;  %v16746_v25 = vrot.slane %v16745_v3, 7  ;;  %v9227_v49 = vadd.f32 %v7280_v21, %v8440_v57  ;;  %v16749_v38 = vrot.slane %v9206_v60, 1  ;;  %v16750_v36 = vld [vmem:[#allocation9_spill] sm:$0xff]  ;;  %v9239_v47 = vadd.f32 %v8440_v57, %v768_v53 }
 0x1bb   : > { %16744 = vst [vmem:[#allocation84_spill] sm:$0xff] %v9206_v60  ;;  %1155 = vst.msk [vmem:[#allocation2 + $0x170] sm:$0xff] %vm1061_vm1, %v9171_v61  ;;  %v16751_v23 = vrot.slane %v16750_v36, 1  ;;  %7719 = vrcp.f32 %v948_v14  ;;  %v2253_v21 = vrot.slane %v9018_v41, 2  ;;  %v16753_v27 = vrot.slane %v8244_v33, 2 }
 0x1bc   : > { %1154 = vst.msk [vmem:[#allocation2 + $0x168] sm:$0xff] %vm1061_vm1, %v9188_v55  ;;  %v9224_v59 = vsel %vm1402_vm2, %v16747_v9, %v16746_v25  ;;  %v2252_v9 = vrot.slane %v8958_v6, 2  ;;  %7721 = vrcp.f32 %v947_v43  ;;  %v6754_v25 = vmul.f32 -1.442695, %v9227_v49 }
 0x1bd   : > { %16748 = vst [vmem:[#allocation85_spill] sm:$0xff] %v9224_v59  ;;  %v9236_v3 = vsel %vm1627_vm3, %v16751_v23, %v16749_v38  ;;  %v16754_v0 = vrot.slane %v8903_v51, 2  ;;  %v7712_v38 = vpop.eup %7711  ;;  %v6753_v14 = vmul.f32 -1.442695, %v9239_v47  ;;  %v16756_v53 = vrot.slane %v8296_v24, 2 }
 0x1be   : > { %16752 = vst [vmem:[#allocation86_spill] sm:$0xff] %v9236_v3  ;;  %v9267_v41 = vsel %vm2301_vm5, %v2224_v45, %v2252_v9  ;;  %v9270_v23 = vmul.f32 %v7712_v38, %v8985_v5  ;;  %7723 = vpow2.f32 %v6754_v25  ;;  %v16762_v24 = vrot.slane %v8386_v16, 2 }
 0x1bf   : > { %v9250_v59 = vsel %vm2301_vm5, %v16754_v0, %v16753_v27  ;;  %v9257_v6 = vsel %vm2301_vm5, %v2252_v9, %v16756_v53  ;;  %v16758_v43 = vmov %v16754_v0  ;;  %16760 = vst [vmem:[#allocation90_spill] sm:$0xff] %v9267_v41  ;;  %v7714_v0 = vpop.eup %7713  ;;  %v16764_v51 = vrot.slane %v9029_v2, 2 }
 0x1c0   : > { %16755 = vst [vmem:[#allocation87_spill] sm:$0xff] %v9250_v59  ;;  %16757 = vst [vmem:[#allocation88_spill] sm:$0xff] %v9257_v6  ;;  %v9263_v33 = vsel %vm2301_vm5, %v2223_v62, %v16758_v43  ;;  %v9276_v27 = vsel %vm2301_vm5, %v2253_v21, %v16762_v24  ;;  %v9285_v9 = vmul.f32 %v7714_v0, %v8996_v39  ;;  %7725 = vpow2.f32 %v6753_v14  ;;  %v7716_v24 = vpop.eup %7715  ;;  %v16777_v59 = vld [vmem:[#allocation10_spill] sm:$0xff] }
 0x1c1   : > { %16759 = vst [vmem:[#allocation89_spill] sm:$0xff] %v9263_v33  ;;  %16761 = vst [vmem:[#allocation91_spill] sm:$0xff] %v9270_v23  ;;  %v9282_v53 = vsel %vm2301_vm5, %v16764_v51, %v2253_v21  ;;  %v16767_v5 = vrot.slane %v8242_v32, 2  ;;  %v16769_v25 = vrot.slane %v8311_v28, 2  ;;  %v7718_v32 = vpop.eup %7717  ;;  %v7283_v28 = vpop.f32.mrb[20].mxu1  ;;  %v16830_v12 = vrot.slane %v8374_v63, 7 }
 0x1c2   : > { %16763 = vst [vmem:[#allocation92_spill] sm:$0xff] %v9276_v27  ;;  %16765 = vst [vmem:[#allocation93_spill] sm:$0xff] %v9282_v53  ;;  %v1222_v43 = vld [vmem:[#allocation2 + $0x170] sm:$0xff]  ;;  %v778_v31 = vpop.f32.mrb[21].mxu1 }
 0x1c3   : > { %16766 = vst [vmem:[#allocation94_spill] sm:$0xff] %v9285_v9  ;;  %v9291_v16 = vsel %vm2301_vm5, %v16767_v5, %v2223_v62  ;;  %v9297_v38 = vsel %vm2301_vm5, %v16769_v25, %v2224_v45  ;;  %v1355_v21 = vrot.slane %v1222_v43, 7  ;;  %v1582_v51 = vrot.slane %v1222_v43, 1  ;;  %v1221_v39 = vld [vmem:[#allocation2 + $0x168] sm:$0xff]  ;;  %1157 = vst.msk [vmem:[#allocation2 + $0x190] sm:$0xff] %vm1061_vm1, %v9270_v23  ;;  %v16771_v45 = vld [vmem:[#allocation6_spill] sm:$0xff] }
 0x1c4   : > { %16768 = vst [vmem:[#allocation95_spill] sm:$0xff] %v9291_v16  ;;  %16770 = vst [vmem:[#allocation96_spill] sm:$0xff] %v9297_v38  ;;  %v2031_v3 = vrot.slane %v1222_v43, 6  ;;  %v2256_v36 = vrot.slane %v1222_v43, 2  ;;  %v1327_v14 = vrot.slane %v1221_v39, 7  ;;  %v1554_v0 = vrot.slane %v1221_v39, 1 }
 0x1c5   : > { %v2003_v62 = vrot.slane %v1221_v39, 6  ;;  %v2228_v5 = vrot.slane %v1221_v39, 2  ;;  %1156 = vst.msk [vmem:[#allocation2 + $0x188] sm:$0xff] %vm1061_vm1, %v9285_v9  ;;  %v16772_v25 = vrot.slane %v16771_v45, 7  ;;  %v16773_v27 = vrot.slane %v16771_v45, 1  ;;  %v16779_v16 = vld [vmem:[#allocation5_spill] sm:$0xff]  ;;  %v7720_v33 = vpop.eup %7719 }
 0x1c6   : > { %v16774_v6 = vrot.slane %v16771_v45, 6  ;;  %v16776_v38 = vrot.slane %v16771_v45, 2  ;;  %v16780_v54 = vrot.slane %v16779_v16, 7  ;;  %v1667_v45 = vsel %vm1627_vm3, %v1554_v0, %v1582_v51 }
 0x1c7   : > { %v1414_v60 = vsel %vm1402_vm2, %v1355_v21, %v16772_v25  ;;  %v1639_v53 = vsel %vm1627_vm3, %v1582_v51, %v16773_v27  ;;  %v1442_v27 = vsel %vm1402_vm2, %v1327_v14, %v1355_v21  ;;  %v16781_v2 = vrot.slane %v16779_v16, 1  ;;  %v7803_v25 = vld [vmem:[#allocation2 + $0x178] sm:$0xff] }
 0x1c8   : > { %v9315_v41 = vsel %vm2076_vm4, %v2031_v3, %v16774_v6  ;;  %v2313_v22 = vsel %vm2301_vm5, %v2256_v36, %v16776_v38  ;;  %v1787_v17 = vmax.f32 %v1414_v60, %v16777_v59  ;;  %v1470_v6 = vsel %vm1402_vm2, %v16780_v54, %v1327_v14  ;;  %v7722_v14 = vpop.eup %7721 }
 0x1c9   : > { %16775 = vst [vmem:[#allocation6_spill] sm:$0xff] %v9315_v41  ;;  %v1695_v38 = vsel %vm1627_vm3, %v16781_v2, %v1554_v0  ;;  %v1786_v60 = vmax.f32 %v1442_v27, %v1639_v53  ;;  %v2116_v59 = vsel %vm2076_vm4, %v2003_v62, %v2031_v3  ;;  %v16783_v41 = vld [vmem:[#allocation12_spill] sm:$0xff]  ;;  %v1785_v61 = vmax.f32 %v1470_v6, %v1667_v45 }
 0x1ca   : > { %v9338_v21 = vmax.f32 %v7803_v25, %v1787_v17  ;;  %v1784_v55 = vmax.f32 %v16783_v41, %v1695_v38  ;;  %v16784_v54 = vrot.slane %v16779_v16, 6  ;;  %v2341_v2 = vsel %vm2301_vm5, %v2228_v5, %v2256_v36  ;;  %v7804_v0 = vld [vmem:[#allocation2 + $0x160] sm:$0xff]  ;;  %v9357_v45 = vld [vmem:[#allocation2 + $0x190] sm:$0xff] }
 0x1cb   : > { %v1898_v34 = vmax.f32 %v1222_v43, %v1786_v60  ;;  %v16785_v53 = vrot.slane %v16779_v16, 2  ;;  %v2460_v17 = vmax.f32 %v2116_v59, %v2313_v22  ;;  %v1897_v25 = vmax.f32 %v1221_v39, %v1785_v61  ;;  %v7724_v43 = vpop.eup %7723 }
 0x1cc   : > { %16782 = vst [vmem:[#allocation10_spill] sm:$0xff] %v9338_v21  ;;  %v2144_v51 = vsel %vm2076_vm4, %v16784_v54, %v2003_v62  ;;  %v9353_v41 = vmax.f32 %v7804_v0, %v1784_v55  ;;  %v1356_v36 = vrot.slane %v9357_v45, 7  ;;  %v1583_v16 = vrot.slane %v9357_v45, 1  ;;  %v7726_v55 = vpop.eup %7725 }
 0x1cd   : > { %v9351_v3 = vsel %vm2301_vm5, %v16785_v53, %v2228_v5  ;;  %v2459_v62 = vmax.f32 %v2144_v51, %v2341_v2  ;;  %v9359_v38 = vmax.f32 %v1898_v34, %v2460_v17  ;;  %v9363_v5 = vld [vmem:[#allocation2 + $0x188] sm:$0xff]  ;;  %v9372_v59 = vmul.f32 %v7720_v33, %v9048_v29  ;;  %v7286_v34 = vpop.f32.mrb[22].mxu1 }
 0x1ce   : > { %16786 = vst [vmem:[#allocation5_spill] sm:$0xff] %v9351_v3  ;;  %16787 = vst [vmem:[#allocation12_spill] sm:$0xff] %v9353_v41  ;;  %v1328_v39 = vrot.slane %v9363_v5, 7  ;;  %v1555_v60 = vrot.slane %v9363_v5, 1  ;;  %v16792_v54 = vrot.slane %v8209_v15, 7  ;;  %v9381_v2 = vmul.f32 %v7722_v14, %v9059_v40  ;;  %v788_v0 = vpop.f32.mrb[23].mxu1 }
 0x1cf   : > { %16789 = vst [vmem:[#allocation97_spill] sm:$0xff] %v9359_v38  ;;  %v9367_v61 = vmax.f32 %v1897_v25, %v2459_v62  ;;  %16791 = vst [vmem:[#allocation99_spill] sm:$0xff] %v9372_v59  ;;  %v950_v53 = vadd.f32 1.0, %v7716_v24  ;;  %v949_v17 = vadd.f32 1.0, %v7718_v32  ;;  %v16795_v25 = vrot.slane %v8218_v20, 1  ;;  %v7289_v38 = vpop.f32.mrb[24].mxu1 }
 0x1d0   : > { %v9378_v51 = vsel %vm1402_vm2, %v1356_v36, %v16792_v54  ;;  %16794 = vst [vmem:[#allocation101_spill] sm:$0xff] %v9381_v2  ;;  %1159 = vst.msk [vmem:[#allocation2 + $0x1b0] sm:$0xff] %vm1061_vm1, %v9372_v59  ;;  %v952_v29 = vadd.f32 1.0, %v7724_v43  ;;  %v951_v33 = vadd.f32 1.0, %v7726_v55  ;;  %v9392_v54 = vadd.f32 %v7283_v28, %v8440_v57 }
 0x1d1   : > { %16790 = vst [vmem:[#allocation98_spill] sm:$0xff] %v9367_v61  ;;  %16793 = vst [vmem:[#allocation100_spill] sm:$0xff] %v9378_v51  ;;  %v9387_v62 = vsel %vm1627_vm3, %v16795_v25, %v1555_v60  ;;  %7727 = vrcp.f32 %v950_v53  ;;  %v9399_v24 = vadd.f32 %v8440_v57, %v778_v31  ;;  %v9402_v32 = vadd.f32 %v7286_v34, %v8440_v57 }
 0x1d2   : > { %16796 = vst [vmem:[#allocation102_spill] sm:$0xff] %v9387_v62  ;;  %1158 = vst.msk [vmem:[#allocation2 + $0x1a8] sm:$0xff] %vm1061_vm1, %v9381_v2  ;;  %7729 = vrcp.f32 %v949_v17  ;;  %v6756_v14 = vmul.f32 -1.442695, %v9392_v54  ;;  %v9406_v43 = vadd.f32 %v8440_v57, %v788_v0  ;;  %v1443_v28 = vsel %vm1402_vm2, %v1328_v39, %v1356_v36 }
 0x1d3   : > { %7731 = vrcp.f32 %v952_v29  ;;  %v6755_v55 = vmul.f32 -1.442695, %v9399_v24  ;;  %v6758_v53 = vmul.f32 -1.442695, %v9402_v32  ;;  %v16797_v31 = vrot.slane %v8218_v20, 7 }
 0x1d4   : > { %7733 = vrcp.f32 %v951_v33  ;;  %v6757_v17 = vmul.f32 -1.442695, %v9406_v43  ;;  %v16798_v25 = vrot.slane %v8209_v15, 1  ;;  %v1668_v36 = vsel %vm1627_vm3, %v1555_v60, %v1583_v16  ;;  %v798_v60 = vpop.f32.mrb[25].mxu1 }
 0x1d5   : > { %v1471_v34 = vsel %vm1402_vm2, %v16797_v31, %v1328_v39  ;;  %7735 = vpow2.f32 %v6756_v14  ;;  %v2032_v61 = vrot.slane %v9357_v45, 6  ;;  %v16806_v41 = vrot.slane %v8274_v56, 1 }
 0x1d6   : > { %v1640_v0 = vsel %vm1627_vm3, %v1583_v16, %v16798_v25  ;;  %v1789_v40 = vmax.f32 %v1471_v34, %v1668_v36  ;;  %7737 = vpow2.f32 %v6755_v55  ;;  %v9432_v16 = vadd.f32 %v7289_v38, %v8440_v57 }
 0x1d7   : > { %v1790_v22 = vmax.f32 %v1443_v28, %v1640_v0  ;;  %v9429_v21 = vld [vmem:[#allocation2 + $0x1b0] sm:$0xff]  ;;  %7739 = vpow2.f32 %v6758_v53  ;;  %v9445_v0 = vadd.f32 %v8440_v57, %v798_v60  ;;  %v16808_v27 = vrot.slane %v8274_v56, 7 }
 0x1d8   : > { %v9435_v14 = vmax.f32 %v9363_v5, %v1789_v40  ;;  %v1357_v55 = vrot.slane %v9429_v21, 7  ;;  %v1584_v34 = vrot.slane %v9429_v21, 1  ;;  %7741 = vpow2.f32 %v6757_v17 }
 0x1d9   : > { %v9438_v28 = vmax.f32 %v9357_v45, %v1790_v22  ;;  %v9442_v25 = vld [vmem:[#allocation2 + $0x1a8] sm:$0xff]  ;;  %v6760_v40 = vmul.f32 -1.442695, %v9432_v16  ;;  %v16803_v22 = vrot.slane %v8239_v30, 7  ;;  %v6759_v6 = vmul.f32 -1.442695, %v9445_v0 }
 0x1da   : > { %16801 = vst [vmem:[#allocation103_spill] sm:$0xff] %v9435_v14  ;;  %v1329_v38 = vrot.slane %v9442_v25, 7  ;;  %v1556_v53 = vrot.slane %v9442_v25, 1  ;;  %v2005_v36 = vrot.slane %v9442_v25, 6  ;;  %v16805_v17 = vrot.slane %v8239_v30, 1 }
 0x1db   : > { %16802 = vst [vmem:[#allocation104_spill] sm:$0xff] %v9438_v28  ;;  %v9455_v33 = vsel %vm1402_vm2, %v1357_v55, %v16803_v22  ;;  %v2033_v60 = vrot.slane %v9429_v21, 6  ;;  %v7728_v31 = vpop.eup %7727  ;;  %7743 = vpow2.f32 %v6760_v40  ;;  %v16837_v29 = vrot.slane %v8349_v13, 1 }
 0x1dc   : > { %16804 = vst [vmem:[#allocation105_spill] sm:$0xff] %v9455_v33  ;;  %v1641_v57 = vsel %vm1627_vm3, %v1584_v34, %v16805_v17  ;;  %v9467_v3 = vsel %vm1627_vm3, %v16806_v41, %v1556_v53  ;;  %v1444_v22 = vsel %vm1402_vm2, %v1329_v38, %v1357_v55  ;;  %v1472_v39 = vsel %vm1402_vm2, %v16808_v27, %v1329_v38  ;;  %v7730_v51 = vpop.eup %7729 }
 0x1dd   : > { %16807 = vst [vmem:[#allocation106_spill] sm:$0xff] %v9467_v3  ;;  %v1046_v17 = vmul.f32 %v7728_v31, %v9119_v44  ;;  %7745 = vpow2.f32 %v6759_v6  ;;  %v1669_v62 = vsel %vm1627_vm3, %v1556_v53, %v1584_v34  ;;  %v7732_v2 = vpop.eup %7731  ;;  %v1045_v40 = vmul.f32 %v7730_v51, %v9131_v18  ;;  %v7292_v6 = vpop.f32.mrb[26].mxu1  ;;  %v9514_v53 = vld [vmem:[%s15941_s2] ss:$0 sm:$0xff] }
 0x1de   : > { %v1793_v59 = vmax.f32 %v1472_v39, %v1669_v62  ;;  %v1794_v55 = vmax.f32 %v1444_v22, %v1641_v57  ;;  %v7734_v28 = vpop.eup %7733  ;;  %v1048_v44 = vmul.f32 %v7732_v2, %v9227_v49  ;;  %v16811_v27 = vmov 0  ;;  %v808_v22 = vpop.f32.mrb[27].mxu1 }
 0x1df   : > { %1161 = vst.msk [vmem:[#allocation2 + $0x1d0] sm:$0xff] %vm1061_vm1, %v1046_v17  ;;  %v16812_v27 = vsel %vm9487_vm6, 4294967295, %v16811_v27  ;;  %v16814_v31 = vrot.slane %v8209_v15, 6  ;;  %v16816_v51 = vrot.slane %v8239_v30, 6  ;;  %v16818_v49 = vrot.slane %v9363_v5, 6  ;;  %v7736_v39 = vpop.eup %7735  ;;  %1160 = vst.msk [vmem:[#allocation2 + $0x1c8] sm:$0xff] %vm1061_vm1, %v1045_v40 }
 0x1e0   : > { %16813 = vst [vmem:[#allocation107_spill] sm:$0xff] %v16812_v27  ;;  %v7407_v34 = vpack.c.bf16 %v1046_v17, %v1045_v40  ;;  %v1047_v38 = vmul.f32 %v7734_v28, %v9239_v47  ;;  %v9517_v57 = vadd.f32 %v9514_v53, %v7292_v6  ;;  %1163 = vst.msk [vmem:[#allocation2 + $0x1f0] sm:$0xff] %vm1061_vm1, %v1048_v44  ;;  %v16836_v3 = vrot.slane %v8374_v63, 1 }
 0x1e1   : > { %v9495_v18 = vsel %vm2076_vm4, %v2032_v61, %v16814_v31  ;;  %v9501_v62 = vsel %vm2076_vm4, %v2033_v60, %v16816_v51  ;;  %v9507_v2 = vsel %vm2076_vm4, %v16818_v49, %v2032_v61  ;;  %v9520_v31 = vmax.f32 %v9442_v25, %v1793_v59  ;;  %v7738_v61 = vpop.eup %7737 }
 0x1e2   : > { %16815 = vst [vmem:[#allocation108_spill] sm:$0xff] %v9495_v18  ;;  %16817 = vst [vmem:[#allocation109_spill] sm:$0xff] %v9501_v62  ;;  %v954_v51 = vadd.f32 1.0, %v7736_v39  ;;  %v9524_v17 = vadd.f32 %v9514_v53, %v808_v22  ;;  %v9527_v47 = vmax.f32 %v9429_v21, %v1794_v55  ;;  %v9531_v28 = vsel %vm2076_vm4, %v2005_v36, %v2033_v60  ;;  %v7740_v40 = vpop.eup %7739 }
 0x1e3   : > { %16819 = vst [vmem:[#allocation110_spill] sm:$0xff] %v9520_v31  ;;  %16821 = vst [vmem:[#allocation112_spill] sm:$0xff] %v9531_v28  ;;  %v7413_v6 = vpack.c.bf16 %v1048_v44, %v1047_v38  ;;  %v953_v59 = vadd.f32 1.0, %v7738_v61  ;;  %7409 = vmatprep.subr.msk.bf16.mxu1 %vm9487_vm6, %v7407_v34  ;;  %v6762_v49 = vmul.f32 -1.442695, %v9517_v57  ;;  %v16822_v39 = vrot.slane %v9363_v5, 6  ;;  %v7742_v60 = vpop.eup %7741 }
 0x1e4   : > { %16820 = vst [vmem:[#allocation111_spill] sm:$0xff] %v9527_v47  ;;  %1162 = vst.msk [vmem:[#allocation2 + $0x1e8] sm:$0xff] %vm1061_vm1, %v1047_v38  ;;  %v16823_v22 = vrot.slane %v8218_v20, 6  ;;  %7747 = vrcp.f32 %v954_v51  ;;  %v956_v23 = vadd.f32 1.0, %v7740_v40  ;;  %v16824_v44 = vpack.c.bf16 %v8773_v46, %v8778_v11 }
 0x1e5   : > { %v6761_v34 = vmul.f32 -1.442695, %v9524_v17  ;;  %v16825_v38 = vrot.slane %v8274_v56, 6  ;;  %7749 = vrcp.f32 %v953_v59  ;;  %v16052_v51 = vrot.slane %v9363_v5, 2 }
 0x1e6   : > { %v9543_v55 = vsel %vm2076_vm4, %v16823_v22, %v16822_v39  ;;  %7412 = vmatpush3.bf16.xpose.msk.msra.mxu1 %vm9487_vm6, %v16824_v44  ;;  %v955_v39 = vadd.f32 1.0, %v7742_v60  ;;  %v16053_v46 = vrot.slane %v9442_v25, 2  ;;  %7751 = vrcp.f32 %v956_v23  ;;  %v7744_v44 = vpop.eup %7743  ;;  %v9585_v22 = vld [vmem:[#allocation2 + $0x1c8] sm:$0xff] }
 0x1e7   : > { %v9555_v61 = vsel %vm2076_vm4, %v16825_v38, %v2005_v36  ;;  %7415 = vmatprep.subr.msk.bf16.mxu1 %vm9487_vm6, %v7413_v6  ;;  %v9565_v36 = vld [vmem:[#allocation2 + $0x1d0] sm:$0xff]  ;;  %v16827_v6 = vrot.slane %v8218_v20, 2  ;;  %v16828_v23 = vrot.slane %v8274_v56, 2  ;;  %v958_v41 = vadd.f32 1.0, %v7744_v44  ;;  %v7295_v20 = vpop.f32.mrb[28].mxu1 }
 0x1e8   : > { %16826 = vst [vmem:[#allocation113_spill] sm:$0xff] %v9555_v61  ;;  %7753 = vrcp.f32 %v955_v39  ;;  %v7746_v39 = vpop.eup %7745  ;;  %v9589_v40 = vld [vmem:[#allocation2 + $0x1f0] sm:$0xff]  ;;  %v1330_v38 = vrot.slane %v9585_v22, 7 }
 0x1e9   : > { %v9573_v59 = vsel %vm2301_vm5, %v16827_v6, %v16052_v51  ;;  %v9581_v60 = vsel %vm2301_vm5, %v16828_v23, %v16053_v46  ;;  %7755 = vpow2.f32 %v6762_v49  ;;  %v1358_v6 = vrot.slane %v9565_v36, 7  ;;  %v818_v46 = vpop.f32.mrb[29].mxu1 }
 0x1ea   : > { %16829 = vst [vmem:[#allocation114_spill] sm:$0xff] %v9581_v60  ;;  %v1585_v51 = vrot.slane %v9565_v36, 1  ;;  %v957_v56 = vadd.f32 1.0, %v7746_v39  ;;  %7757 = vpow2.f32 %v6761_v34  ;;  %v9592_v23 = vadd.f32 %v9514_v53, %v7295_v20  ;;  %v7298_v14 = vpop.f32.mrb[30].mxu1 }
 0x1eb   : > { %v9595_v11 = vld [vmem:[#allocation2 + $0x1e8] sm:$0xff]  ;;  %7759 = vrcp.f32 %v958_v41  ;;  %v9598_v49 = vadd.f32 %v9514_v53, %v818_v46  ;;  %v1359_v44 = vrot.slane %v9589_v40, 7  ;;  %v9605_v39 = vsel %vm1402_vm2, %v1358_v6, %v16830_v12 }
 0x1ec   : > { %16831 = vst [vmem:[#allocation115_spill] sm:$0xff] %v9605_v39  ;;  %7761 = vrcp.f32 %v957_v56  ;;  %v6764_v34 = vmul.f32 -1.442695, %v9592_v23  ;;  %v1331_v20 = vrot.slane %v9595_v11, 7  ;;  %v1445_v62 = vsel %vm1402_vm2, %v1330_v38, %v1358_v6 }
 0x1ed   : > { %v16832_v41 = vpack.c.bf16 %v8891_v19, %v8901_v4  ;;  %v6763_v46 = vmul.f32 -1.442695, %v9598_v49  ;;  %v9621_v12 = vsel %vm1402_vm2, %v1359_v44, %v16833_v52  ;;  %v16834_v56 = vrot.slane %v8349_v13, 7 }
 0x1ee   : > { %v1557_v6 = vrot.slane %v9585_v22, 1  ;;  %7763 = vpow2.f32 %v6764_v34  ;;  %v1446_v19 = vsel %vm1402_vm2, %v1331_v20, %v1359_v44  ;;  %v16835_v4 = vrot.slane %v8492_v8, 7  ;;  %v7748_v52 = vpop.eup %7747 }
 0x1ef   : > { %7418 = vmatpush3.bf16.xpose.msk.msra.mxu1 %vm9487_vm6, %v16832_v41  ;;  %v1473_v18 = vsel %vm1402_vm2, %v16834_v56, %v1330_v38  ;;  %v1558_v9 = vrot.slane %v9595_v11, 1  ;;  %7765 = vpow2.f32 %v6763_v46  ;;  %v1586_v33 = vrot.slane %v9589_v40, 1  ;;  %v7750_v44 = vpop.eup %7749 }
 0x1f0   : > { %v1474_v41 = vsel %vm1402_vm2, %v16835_v4, %v1331_v20  ;;  %v1642_v38 = vsel %vm1627_vm3, %v1585_v51, %v16836_v3  ;;  %v1670_v34 = vsel %vm1627_vm3, %v1557_v6, %v1585_v51  ;;  %v1050_v56 = vmul.f32 %v7748_v52, %v9392_v54  ;;  %v7752_v31 = vpop.eup %7751 }
 0x1f1   : > { %v9647_v20 = vsel %vm1627_vm3, %v16837_v29, %v1557_v6  ;;  %v16839_v46 = vrot.slane %v8492_v8, 1  ;;  %v1797_v47 = vmax.f32 %v1473_v18, %v1670_v34  ;;  %v1049_v3 = vmul.f32 %v7750_v44, %v9399_v24  ;;  %v828_v24 = vpop.f32.mrb[31].mxu1 }
 0x1f2   : > { %16838 = vst [vmem:[#allocation116_spill] sm:$0xff] %v9647_v20  ;;  %v16840_v51 = vrot.slane %v8494_v10, 1  ;;  %v1671_v52 = vsel %vm1627_vm3, %v1558_v9, %v1586_v33  ;;  %v7754_v28 = vpop.eup %7753  ;;  %1165 = vst.msk [vmem:[#allocation2 + $0x210] sm:$0xff] %vm1061_vm1, %v1050_v56  ;;  %v1052_v18 = vmul.f32 %v7752_v31, %v9402_v32  ;;  %v9665_v34 = vadd.f32 %v9514_v53, %v7298_v14  ;;  %v16843_v20 = vld [vmem:[#allocation25_spill] sm:$0xff] }
 0x1f3   : > { %v1699_v4 = vsel %vm1627_vm3, %v16839_v46, %v1558_v9  ;;  %v1798_v44 = vmax.f32 %v1445_v62, %v1642_v38  ;;  %1164 = vst.msk [vmem:[#allocation2 + $0x208] sm:$0xff] %vm1061_vm1, %v1049_v3  ;;  %v7419_v9 = vpack.c.bf16 %v1050_v56, %v1049_v3  ;;  %v9672_v6 = vadd.f32 %v9514_v53, %v828_v24  ;;  %v16844_v53 = vld [vmem:[#allocation30_spill] sm:$0xff] }
 0x1f4   : > { %v1643_v54 = vsel %vm1627_vm3, %v1586_v33, %v16840_v51  ;;  %v7756_v51 = vpop.eup %7755  ;;  %v1051_v33 = vmul.f32 %v7754_v28, %v9406_v43  ;;  %v1800_v29 = vmax.f32 %v16843_v20, %v1699_v4  ;;  %1167 = vst.msk [vmem:[#allocation2 + $0x230] sm:$0xff] %vm1061_vm1, %v1052_v18  ;;  %v6766_v62 = vmul.f32 -1.442695, %v9665_v34 }
 0x1f5   : > { %v7758_v32 = vpop.eup %7757  ;;  %v960_v14 = vadd.f32 1.0, %v7756_v51  ;;  %v1801_v31 = vmax.f32 %v1474_v41, %v1671_v52  ;;  %v1802_v38 = vmax.f32 %v1446_v19, %v1643_v54  ;;  %7421 = vmatprep.subr.msk.bf16.mxu1 %vm9487_vm6, %v7419_v9  ;;  %v6765_v43 = vmul.f32 -1.442695, %v9672_v6 }
 0x1f6   : > { %v7760_v61 = vpop.eup %7759  ;;  %1166 = vst.msk [vmem:[#allocation2 + $0x228] sm:$0xff] %vm1061_vm1, %v1051_v33  ;;  %v7425_v46 = vpack.c.bf16 %v1052_v18, %v1051_v33  ;;  %v959_v56 = vadd.f32 1.0, %v7758_v32  ;;  %v1803_v28 = vmax.f32 %v9621_v12, %v16844_v53  ;;  %v16845_v19 = vpack.c.bf16 %v8951_v48, %v8956_v26  ;;  %v7807_v12 = vld [vmem:[#allocation2 + $0x1f8] sm:$0xff] }
 0x1f7   : > { %v7762_v20 = vpop.eup %7761  ;;  %v1054_v4 = vmul.f32 %v7760_v61, %v9432_v16  ;;  %7767 = vrcp.f32 %v960_v14  ;;  %v9690_v41 = vmax.f32 %v9585_v22, %v1797_v47  ;;  %v9693_v3 = vmax.f32 %v9565_v36, %v1798_v44  ;;  %v7806_v16 = vld [vmem:[#allocation2 + $0x1e0] sm:$0xff] }
 0x1f8   : > { %7424 = vmatpush3.bf16.xpose.msk.msra.mxu1 %vm9487_vm6, %v16845_v19  ;;  %v1053_v54 = vmul.f32 %v7762_v20, %v9445_v0  ;;  %7769 = vrcp.f32 %v959_v56  ;;  %v9698_v61 = vmax.f32 %v7806_v16, %v1800_v29  ;;  %v9701_v26 = vmax.f32 %v9595_v11, %v1801_v31  ;;  %v7764_v48 = vpop.eup %7763  ;;  %v16856_v0 = vld [vmem:[#allocation37_spill] sm:$0xff] }
 0x1f9   : > { %7427 = vmatprep.subr.msk.bf16.mxu1 %vm9487_vm6, %v7425_v46  ;;  %1169 = vst.msk [vmem:[#allocation2 + $0x250] sm:$0xff] %vm1061_vm1, %v1054_v4  ;;  %7771 = vpow2.f32 %v6766_v62  ;;  %v9705_v47 = vmax.f32 %v9589_v40, %v1802_v38  ;;  %v9707_v52 = vmax.f32 %v7807_v12, %v1803_v28  ;;  %v7766_v18 = vpop.eup %7765  ;;  %v962_v24 = vadd.f32 1.0, %v7764_v48  ;;  %v9711_v44 = vld [vmem:[#allocation2 + $0x210] sm:$0xff] }
 0x1fa   : > { %1168 = vst.msk [vmem:[#allocation2 + $0x248] sm:$0xff] %vm1061_vm1, %v1053_v54  ;;  %v7431_v29 = vpack.c.bf16 %v1054_v4, %v1053_v54  ;;  %7773 = vpow2.f32 %v6765_v43  ;;  %v961_v51 = vadd.f32 1.0, %v7766_v18  ;;  %v9714_v9 = vld [vmem:[#allocation2 + $0x208] sm:$0xff]  ;;  %v1360_v33 = vrot.slane %v9711_v44, 7  ;;  %v16848_v18 = vld [vmem:[#allocation31_spill] sm:$0xff] }
 0x1fb   : > { %v1587_v32 = vrot.slane %v9711_v44, 1  ;;  %v2034_v14 = vrot.slane %v9565_v36, 6  ;;  %v9719_v62 = vld [vmem:[#allocation2 + $0x230] sm:$0xff]  ;;  %7775 = vrcp.f32 %v962_v24  ;;  %v1332_v31 = vrot.slane %v9714_v9, 7 }
 0x1fc   : > { %v1559_v38 = vrot.slane %v9714_v9, 1  ;;  %v16061_v43 = vrot.slane %v9719_v62, 7  ;;  %7777 = vrcp.f32 %v961_v51  ;;  %v16846_v20 = vrot.slane %v8614_v7, 7 }
 0x1fd   : > { %v9726_v28 = vld [vmem:[#allocation2 + $0x228] sm:$0xff]  ;;  %v1447_v16 = vsel %vm1402_vm2, %v1332_v31, %v1360_v33  ;;  %v16847_v48 = vrot.slane %v8612_v50, 7  ;;  %v16849_v24 = vrot.slane %v16848_v18, 7 }
 0x1fe   : > { %v1419_v4 = vsel %vm1402_vm2, %v1360_v33, %v16846_v20  ;;  %v16063_v54 = vrot.slane %v9726_v28, 1  ;;  %v16851_v20 = vpack.c.bf16 %v9014_v35, %v9021_v58  ;;  %v16852_v33 = vrot.slane %v8614_v7, 1 }
 0x1ff   : > { %v1475_v12 = vsel %vm1402_vm2, %v16847_v48, %v1332_v31  ;;  %v9746_v51 = vsel %vm1402_vm2, %v16061_v43, %v16849_v24  ;;  %v1672_v31 = vsel %vm1627_vm3, %v1559_v38, %v1587_v32  ;;  %v16853_v48 = vrot.slane %v8612_v50, 1 }
 0x200   : > { %16850 = vst [vmem:[#allocation25_spill] sm:$0xff] %v9746_v51  ;;  %7430 = vmatpush3.bf16.xpose.msk.msra.mxu1 %vm9487_vm6, %v16851_v20  ;;  %v1644_v53 = vsel %vm1627_vm3, %v1587_v32, %v16852_v33  ;;  %v16854_v35 = vrot.slane %v8663_v42, 1  ;;  %v9771_v20 = vld [vmem:[#allocation2 + $0x250] sm:$0xff]  ;;  %v16855_v33 = vld [vmem:[#allocation35_spill] sm:$0xff]  ;;  %v1805_v19 = vmax.f32 %v1475_v12, %v1672_v31  ;;  %v1807_v39 = vmax.f32 %v1419_v4, %v16856_v0  ;;  %v7808_v12 = vld [vmem:[#allocation2 + $0x200] sm:$0xff] }
 0x201   : > { %v1700_v24 = vsel %vm1627_vm3, %v16853_v48, %v1559_v38  ;;  %7433 = vmatprep.subr.msk.bf16.mxu1 %vm9487_vm6, %v7431_v29  ;;  %v1806_v43 = vmax.f32 %v1447_v16, %v1644_v53  ;;  %v7768_v56 = vpop.eup %7767  ;;  %v16065_v38 = vrot.slane %v9771_v20, 7  ;;  %v9778_v46 = vld [vmem:[#allocation2 + $0x248] sm:$0xff] }
 0x202   : > { %v9769_v58 = vsel %vm1627_vm3, %v16854_v35, %v16063_v54  ;;  %v1804_v32 = vmax.f32 %v16855_v33, %v1700_v24  ;;  %v2035_v35 = vrot.slane %v9589_v40, 6  ;;  %v7770_v54 = vpop.eup %7769  ;;  %v16066_v29 = vrot.slane %v9778_v46, 1  ;;  %v16857_v31 = vld [vmem:[#allocation33_spill] sm:$0xff] }
 0x203   : > { %v1056_v24 = vmul.f32 %v7768_v56, %v9517_v57  ;;  %v7772_v16 = vpop.eup %7771  ;;  %v16858_v33 = vrot.slane %v16857_v31, 7  ;;  %v1055_v4 = vmul.f32 %v7770_v54, %v9524_v17  ;;  %v9797_v48 = vmax.f32 %v9714_v9, %v1805_v19  ;;  %v16860_v56 = vld [vmem:[#allocation34_spill] sm:$0xff] }
 0x204   : > { %v9785_v53 = vmax.f32 %v7808_v12, %v1804_v32  ;;  %v9800_v51 = vmax.f32 %v9711_v44, %v1806_v43  ;;  %v7774_v57 = vpop.eup %7773  ;;  %v16861_v32 = vrot.slane %v16860_v56, 1  ;;  %v2036_v19 = vrot.slane %v9711_v44, 6 }
 0x205   : > { %v9793_v0 = vsel %vm1402_vm2, %v16065_v38, %v16858_v33  ;;  %1171 = vst.msk [vmem:[#allocation2 + $0x270] sm:$0xff] %vm1061_vm1, %v1056_v24  ;;  %v964_v33 = vadd.f32 1.0, %v7772_v16  ;;  %v7809_v38 = vld [vmem:[#allocation2 + $0x218] sm:$0xff]  ;;  %1170 = vst.msk [vmem:[#allocation2 + $0x268] sm:$0xff] %vm1061_vm1, %v1055_v4  ;;  %v7437_v43 = vpack.c.bf16 %v1056_v24, %v1055_v4  ;;  %v963_v54 = vadd.f32 1.0, %v7774_v57 }
 0x206   : > { %16859 = vst [vmem:[#allocation30_spill] sm:$0xff] %v9793_v0  ;;  %v9808_v12 = vsel %vm1627_vm3, %v16861_v32, %v16066_v29  ;;  %v9811_v17 = vmax.f32 %v7809_v38, %v1807_v39  ;;  %v16863_v0 = vrot.slane %v8374_v63, 6  ;;  %v16865_v32 = vrot.slane %v8494_v10, 6  ;;  %v7776_v39 = vpop.eup %7775 }
 0x207   : > { %16862 = vst [vmem:[#allocation31_spill] sm:$0xff] %v9808_v12  ;;  %7779 = vrcp.f32 %v964_v33  ;;  %v16866_v38 = vrot.slane %v8614_v7, 6  ;;  %v16867_v4 = vrot.slane %v9585_v22, 6  ;;  %v16868_v57 = vrot.slane %v9595_v11, 6  ;;  %v7778_v29 = vpop.eup %7777  ;;  %v16869_v12 = vld [vmem:[#allocation22_spill] sm:$0xff] }
 0x208   : > { %v9819_v56 = vsel %vm2076_vm4, %v2034_v14, %v16863_v0  ;;  %v9825_v16 = vsel %vm2076_vm4, %v2035_v35, %v16865_v32  ;;  %v1058_v33 = vmul.f32 %v7776_v39, %v9592_v23  ;;  %7781 = vrcp.f32 %v963_v54 }
 0x209   : > { %16864 = vst [vmem:[#allocation35_spill] sm:$0xff] %v9819_v56  ;;  %v9831_v24 = vsel %vm2076_vm4, %v2036_v19, %v16866_v38  ;;  %v9837_v0 = vsel %vm2076_vm4, %v16867_v4, %v2034_v14  ;;  %v9843_v32 = vsel %vm2076_vm4, %v16868_v57, %v2035_v35  ;;  %v16870_v38 = vpack.c.bf16 %v9077_v1, %v16869_v12 }
 0x20a   : > { %v16871_v31 = vrot.slane %v9714_v9, 6  ;;  %v16872_v35 = vrot.slane %v8349_v13, 6  ;;  %v1057_v54 = vmul.f32 %v7778_v29, %v9598_v49  ;;  %v16873_v1 = vmov %v16868_v57  ;;  %1173 = vst.msk [vmem:[#allocation2 + $0x290] sm:$0xff] %vm1061_vm1, %v1058_v33 }
 0x20b   : > { %7436 = vmatpush3.bf16.xpose.msk.msra.mxu1 %vm9487_vm6, %v16870_v38  ;;  %v16874_v12 = vrot.slane %v8492_v8, 6  ;;  %v2231_v38 = vrot.slane %v9585_v22, 2  ;;  %v2232_v49 = vrot.slane %v9595_v11, 2  ;;  %v2233_v29 = vrot.slane %v9714_v9, 2 }
 0x20c   : > { %v9855_v14 = vsel %vm2076_vm4, %v16871_v31, %v2036_v19  ;;  %v9863_v23 = vsel %vm2076_vm4, %v16872_v35, %v16867_v4  ;;  %v16875_v19 = vrot.slane %v8612_v50, 6  ;;  %7439 = vmatprep.subr.msk.bf16.mxu1 %vm9487_vm6, %v7437_v43  ;;  %v2259_v4 = vrot.slane %v9565_v36, 2  ;;  %1172 = vst.msk [vmem:[#allocation2 + $0x288] sm:$0xff] %vm1061_vm1, %v1057_v54 }
 0x20d   : > { %v9872_v39 = vsel %vm2076_vm4, %v16874_v12, %v16873_v1  ;;  %v2260_v35 = vrot.slane %v9589_v40, 2  ;;  %v7443_v1 = vpack.c.bf16 %v1058_v33, %v1057_v54  ;;  %v2261_v12 = vrot.slane %v9711_v44, 2  ;;  %v9904_v40 = vld [vmem:[#allocation2 + $0x270] sm:$0xff] }
 0x20e   : > { %v9880_v57 = vsel %vm2076_vm4, %v16875_v19, %v16871_v31  ;;  %v16876_v22 = vrot.slane %v8209_v15, 2  ;;  %v16877_v31 = vrot.slane %v9357_v45, 2  ;;  %v16878_v11 = vrot.slane %v8239_v30, 2  ;;  %16880 = vst [vmem:[#allocation37_spill] sm:$0xff] %v9904_v40 }
 0x20f   : > { %v16879_v9 = vrot.slane %v9429_v21, 2  ;;  %v16881_v33 = vrot.slane %v8374_v63, 2  ;;  %v16882_v15 = vrot.slane %v8494_v10, 2  ;;  %v16884_v30 = vrot.slane %v9363_v5, 2 }
 0x210   : > { %v2314_v43 = vsel %vm2301_vm5, %v16877_v31, %v16876_v22  ;;  %v16883_v19 = vmov %v16877_v31  ;;  %v16888_v45 = vrot.slane %v8614_v7, 2  ;;  %v16894_v10 = vrot.slane %v8492_v8, 2 }
 0x211   : > { %v2315_v36 = vsel %vm2301_vm5, %v16879_v9, %v16878_v11  ;;  %v2316_v44 = vsel %vm2301_vm5, %v2259_v4, %v16881_v33  ;;  %v2317_v54 = vsel %vm2301_vm5, %v2260_v35, %v16882_v15  ;;  %v2342_v22 = vsel %vm2301_vm5, %v16884_v30, %v16883_v19  ;;  %v9928_v33 = vld [vmem:[#allocation2 + $0x268] sm:$0xff] }
 0x212   : > { %v16885_v31 = vmov %v16879_v9  ;;  %v16886_v11 = vrot.slane %v9442_v25, 2  ;;  %v16067_v9 = vrot.slane %v9904_v40, 7  ;;  %16887 = vst [vmem:[#allocation22_spill] sm:$0xff] %v9928_v33  ;;  %v2318_v5 = vsel %vm2301_vm5, %v2261_v12, %v16888_v45 }
 0x213   : > { %v2344_v15 = vsel %vm2301_vm5, %v2231_v38, %v2259_v4  ;;  %v16068_v25 = vrot.slane %v9928_v33, 1  ;;  %v2345_v19 = vsel %vm2301_vm5, %v2232_v49, %v2260_v35  ;;  %v2346_v30 = vsel %vm2301_vm5, %v2233_v29, %v2261_v12 }
 0x214   : > { %v2343_v63 = vsel %vm2301_vm5, %v16886_v11, %v16885_v31  ;;  %v16889_v31 = vld [vmem:[#allocation41_spill] sm:$0xff]  ;;  %v16892_v4 = vrot.slane %v8349_v13, 2  ;;  %v2373_v35 = vsel %vm2301_vm5, %v16894_v10, %v2232_v49  ;;  %v16895_v12 = vrot.slane %v8612_v50, 2 }
 0x215   : > { %v16890_v11 = vrot.slane %v16889_v31, 7  ;;  %v2463_v8 = vmax.f32 %v9543_v55, %v2342_v22  ;;  %v2464_v49 = vmax.f32 %v9507_v2, %v2314_v43  ;;  %v16900_v10 = vld [vmem:[#allocation77_spill] sm:$0xff]  ;;  %v2471_v43 = vmax.f32 %v9863_v23, %v2344_v15 }
 0x216   : > { %v9954_v45 = vsel %vm2301_vm5, %v16892_v4, %v2231_v38  ;;  %v2374_v21 = vsel %vm2301_vm5, %v16895_v12, %v2233_v29  ;;  %v16899_v38 = vld [vmem:[#allocation27_spill] sm:$0xff]  ;;  %v16901_v50 = vld [vmem:[#allocation81_spill] sm:$0xff]  ;;  %v7780_v29 = vpop.eup %7779  ;;  %v2472_v22 = vmax.f32 %v9837_v0, %v2316_v44  ;;  %v2479_v0 = vmax.f32 %v9880_v57, %v2346_v30 }
 0x217   : > { %v9948_v7 = vsel %vm1402_vm2, %v16067_v9, %v16890_v11  ;;  %16893 = vst [vmem:[#allocation118_spill] sm:$0xff] %v9954_v45  ;;  %v16896_v11 = vld [vmem:[#allocation42_spill] sm:$0xff]  ;;  %v16904_v31 = vld [vmem:[#allocation113_spill] sm:$0xff]  ;;  %v7782_v2 = vpop.eup %7781  ;;  %v1060_v55 = vmul.f32 %v7780_v29, %v9665_v34  ;;  %v16910_v29 = vld [vmem:[#allocation44_spill] sm:$0xff]  ;;  %v2480_v44 = vmax.f32 %v9855_v14, %v2318_v5  ;;  %v10020_v14 = vmax.f32 %v9690_v41, %v2471_v43 }
 0x218   : > { %16891 = vst [vmem:[#allocation117_spill] sm:$0xff] %v9948_v7  ;;  %v16897_v9 = vrot.slane %v16896_v11, 1  ;;  %v16902_v7 = vpack.c.bf16 %v16900_v10, %v16901_v50  ;;  %v2476_v50 = vmax.f32 %v9843_v32, %v2317_v54  ;;  %v2478_v23 = vmax.f32 %v16910_v29, %v2374_v21  ;;  %v16911_v15 = vld [vmem:[#allocation49_spill] sm:$0xff]  ;;  %v16914_v32 = vld [vmem:[#allocation104_spill] sm:$0xff]  ;;  %v16918_v21 = vld [vmem:[#allocation111_spill] sm:$0xff] }
 0x219   : > { %1175 = vst.msk [vmem:[#allocation2 + $0x2b0] sm:$0xff] %vm1061_vm1, %v1060_v55  ;;  %v10011_v54 = vmax.f32 %v16914_v32, %v2464_v49  ;;  %v10023_v57 = vmax.f32 %v9693_v3, %v2472_v22  ;;  %v10041_v41 = vmax.f32 %v9797_v48, %v2479_v0  ;;  %v10044_v3 = vmax.f32 %v9800_v51, %v2480_v44  ;;  %v16931_v49 = vld [vmem:[#allocation94_spill] sm:$0xff]  ;;  %v16935_v22 = vld [vmem:[#allocation17_spill] sm:$0xff]  ;;  %v16940_v0 = vld [vmem:[#allocation79_spill] sm:$0xff] }
 0x21a   : > { %v9970_v13 = vsel %vm1627_vm3, %v16897_v9, %v16068_v25  ;;  %7442 = vmatpush3.bf16.xpose.msk.msra.mxu1 %vm9487_vm6, %v16902_v7  ;;  %v2467_v9 = vmax.f32 %v16904_v31, %v2343_v63  ;;  %v16905_v25 = vld [vmem:[#allocation112_spill] sm:$0xff]  ;;  %v1059_v63 = vmul.f32 %v7782_v2, %v9672_v6  ;;  %v16908_v31 = vld [vmem:[#allocation43_spill] sm:$0xff]  ;;  %v16916_v2 = vld [vmem:[#allocation110_spill] sm:$0xff]  ;;  %v10032_v30 = vmax.f32 %v9705_v47, %v2476_v50 }
 0x21b   : > { %16898 = vst [vmem:[#allocation119_spill] sm:$0xff] %v9970_v13  ;;  %v2468_v13 = vmax.f32 %v16905_v25, %v2315_v36  ;;  %7445 = vmatprep.subr.msk.bf16.mxu1 %vm9487_vm6, %v7443_v1  ;;  %v2474_v36 = vmax.f32 %v16908_v31, %v2373_v35  ;;  %v2475_v25 = vmax.f32 %v9872_v39, %v2345_v19  ;;  %v16909_v1 = vld [vmem:[#allocation48_spill] sm:$0xff]  ;;  %v16912_v39 = vld [vmem:[#allocation103_spill] sm:$0xff]  ;;  %16915 = vst [vmem:[#allocation77_spill] sm:$0xff] %v10011_v54 }
 0x21c   : > { %v2477_v34 = vmax.f32 %v9825_v16, %v16909_v1  ;;  %1174 = vst.msk [vmem:[#allocation2 + $0x2a8] sm:$0xff] %vm1061_vm1, %v1059_v63  ;;  %v7449_v6 = vpack.c.bf16 %v1060_v55, %v1059_v63  ;;  %v2481_v35 = vmax.f32 %v9831_v24, %v16911_v15  ;;  %v10008_v19 = vmax.f32 %v16912_v39, %v2463_v8  ;;  %v16933_v55 = vld [vmem:[#allocation62_spill] sm:$0xff]  ;;  %v16942_v15 = vld [vmem:[#allocation75_spill] sm:$0xff]  ;;  %v16944_v32 = vld [vmem:[#allocation72_spill] sm:$0xff] }
 0x21d   : > { %v10014_v16 = vmax.f32 %v16916_v2, %v2467_v9  ;;  %v10017_v31 = vmax.f32 %v16918_v21, %v2468_v13  ;;  %16920 = vst [vmem:[#allocation112_spill] sm:$0xff] %v10020_v14  ;;  %16921 = vst [vmem:[#allocation43_spill] sm:$0xff] %v10023_v57  ;;  %v10026_v24 = vmax.f32 %v9698_v61, %v2474_v36  ;;  %v16934_v43 = vrot.slane %v16933_v55, 2  ;;  %v16938_v50 = vld [vmem:[#allocation26_spill] sm:$0xff]  ;;  %v16943_v39 = vld [vmem:[#allocation39_spill] sm:$0xff] }
 0x21e   : > { %16913 = vst [vmem:[#allocation27_spill] sm:$0xff] %v10008_v19  ;;  %v10029_v5 = vmax.f32 %v9701_v26, %v2475_v25  ;;  %16924 = vst [vmem:[#allocation49_spill] sm:$0xff] %v10032_v30  ;;  %v10035_v8 = vmax.f32 %v9707_v52, %v2477_v34  ;;  %v10038_v13 = vmax.f32 %v9785_v53, %v2478_v23  ;;  %v16930_v26 = vld [vmem:[#allocation91_spill] sm:$0xff]  ;;  %v16936_v63 = vrot.slane %v16935_v22, 2  ;;  %v16939_v23 = vld [vmem:[#allocation89_spill] sm:$0xff] }
 0x21f   : > { %16917 = vst [vmem:[#allocation81_spill] sm:$0xff] %v10014_v16  ;;  %16919 = vst [vmem:[#allocation113_spill] sm:$0xff] %v10017_v31  ;;  %v10047_v61 = vmax.f32 %v9811_v17, %v2481_v35  ;;  %v16932_v9 = vpack.c.bf16 %v16930_v26, %v16931_v49  ;;  %v3550_v48 = vmax.f32 %v10008_v19, %v10014_v16  ;;  %v16937_v25 = vld [vmem:[#allocation95_spill] sm:$0xff]  ;;  %v16945_v21 = vld [vmem:[#allocation96_spill] sm:$0xff] }
 0x220   : > { %16922 = vst [vmem:[#allocation48_spill] sm:$0xff] %v10026_v24  ;;  %16923 = vst [vmem:[#allocation44_spill] sm:$0xff] %v10029_v5  ;;  %v3551_v51 = vmax.f32 %v10011_v54, %v10017_v31  ;;  %v2366_v36 = vsel %vm2301_vm5, %v16936_v63, %v16934_v43  ;;  %v2438_v1 = vmax.f32 %v16938_v50, %v16937_v25  ;;  %v16946_v26 = vld [vmem:[#allocation28_spill] sm:$0xff]  ;;  %v16948_v55 = vld [vmem:[#allocation82_spill] sm:$0xff] }
 0x221   : > { %16925 = vst [vmem:[#allocation103_spill] sm:$0xff] %v10035_v8  ;;  %16926 = vst [vmem:[#allocation104_spill] sm:$0xff] %v10038_v13  ;;  %v3582_v34 = vmax.f32 %v3550_v48, %v10020_v14  ;;  %v2439_v44 = vmax.f32 %v16940_v0, %v16939_v23  ;;  %v2441_v2 = vmax.f32 %v16944_v32, %v16943_v39  ;;  %v16949_v22 = vld [vmem:[#allocation88_spill] sm:$0xff]  ;;  %v16951_v50 = vld [vmem:[#allocation46_spill] sm:$0xff] }
 0x222   : > { %16927 = vst [vmem:[#allocation110_spill] sm:$0xff] %v10041_v41  ;;  %16928 = vst [vmem:[#allocation111_spill] sm:$0xff] %v10044_v3  ;;  %7448 = vmatpush3.bf16.xpose.msk.msra.mxu1 %vm9487_vm6, %v16932_v9  ;;  %v3583_v29 = vmax.f32 %v3551_v51, %v10023_v57  ;;  %v2442_v49 = vmax.f32 %v16946_v26, %v16945_v21  ;;  %v16947_v9 = vld [vmem:[#allocation90_spill] sm:$0xff]  ;;  %v16950_v63 = vld [vmem:[#allocation76_spill] sm:$0xff] }
 0x223   : > { %16929 = vst [vmem:[#allocation120_spill] sm:$0xff] %v10047_v61  ;;  %7451 = vmatprep.subr.msk.bf16.mxu1 %vm9487_vm6, %v7449_v6  ;;  %v16941_v6 = vld [vmem:[#allocation87_spill] sm:$0xff]  ;;  %v2443_v43 = vmax.f32 %v16948_v55, %v16947_v9  ;;  %v2444_v48 = vmax.f32 %v16950_v63, %v16949_v22  ;;  %v3614_v51 = vmax.f32 %v3582_v34, %v10029_v5  ;;  %v16952_v23 = vld [vmem:[#allocation73_spill] sm:$0xff]  ;;  %v16956_v52 = vld [vmem:[#allocation92_spill] sm:$0xff] }
 0x224   : > { %v2440_v35 = vmax.f32 %v16942_v15, %v16941_v6  ;;  %v3615_v25 = vmax.f32 %v3583_v29, %v10032_v30  ;;  %v2445_v0 = vmax.f32 %v16952_v23, %v16951_v50  ;;  %v16953_v6 = vld [vmem:[#allocation29_spill] sm:$0xff]  ;;  %v16955_v39 = vld [vmem:[#allocation83_spill] sm:$0xff]  ;;  %v16957_v21 = vld [vmem:[#allocation78_spill] sm:$0xff] }
 0x225   : > { %v2446_v15 = vmax.f32 %v16953_v6, %v2366_v36  ;;  %v16954_v17 = vld [vmem:[#allocation93_spill] sm:$0xff]  ;;  %v2448_v26 = vmax.f32 %v16957_v21, %v16956_v52  ;;  %v16958_v53 = vld [vmem:[#allocation50_spill] sm:$0xff]  ;;  %v16960_v47 = vld [vmem:[#allocation32_spill] sm:$0xff]  ;;  %v3646_v34 = vmax.f32 %v3614_v51, %v10041_v41 }
 0x226   : > { %v2447_v32 = vmax.f32 %v16955_v39, %v16954_v17  ;;  %v16959_v9 = vld [vmem:[#allocation74_spill] sm:$0xff]  ;;  %v10098_v22 = vmax.f32 %v16960_v47, %v2438_v1  ;;  %v3647_v29 = vmax.f32 %v3615_v25, %v10044_v3  ;;  %v16962_v63 = vld [vmem:[#allocation59_spill] sm:$0xff]  ;;  %v16963_v36 = vld [vmem:[#allocation60_spill] sm:$0xff] }
 0x227   : > { %v2449_v55 = vmax.f32 %v16959_v9, %v16958_v53  ;;  %v10103_v50 = vmax.f32 %v16962_v63, %v2439_v44  ;;  %v10106_v23 = vmax.f32 %v16963_v36, %v2440_v35  ;;  %v16964_v17 = vld [vmem:[#allocation61_spill] sm:$0xff]  ;;  %v16966_v52 = vld [vmem:[#allocation19_spill] sm:$0xff]  ;;  %v16968_v53 = vld [vmem:[#allocation20_spill] sm:$0xff] }
 0x228   : > { %16961 = vst [vmem:[#allocation91_spill] sm:$0xff] %v10098_v22  ;;  %v10109_v6 = vmax.f32 %v16964_v17, %v2441_v2  ;;  %v10112_v39 = vmax.f32 %v16966_v52, %v2442_v49  ;;  %v10115_v21 = vmax.f32 %v16968_v53, %v2443_v43  ;;  %v16970_v47 = vld [vmem:[#allocation63_spill] sm:$0xff]  ;;  %v16973_v25 = vld [vmem:[#allocation101_spill] sm:$0xff]  ;;  %v7359_v44 = vpack.c.bf16 %v3647_v29, %v3646_v34  ;;  %v16975_v35 = vld [vmem:[#allocation64_spill] sm:$0xff] }
 0x229   : > { %v10118_v1 = vmax.f32 %v16970_v47, %v2444_v48  ;;  %v16972_v51 = vld [vmem:[#allocation99_spill] sm:$0xff]  ;;  %v10126_v63 = vmax.f32 %v16975_v35, %v2445_v0  ;;  %v16977_v2 = vld [vmem:[#allocation65_spill] sm:$0xff]  ;;  %v16979_v49 = vld [vmem:[#allocation66_spill] sm:$0xff]  ;;  %v2700_v35 = vrot.slane %v10106_v23, 6  ;;  %v2896_v7 = vrot.slane %v10103_v50, 2 }
 0x22a   : > { %16965 = vst [vmem:[#allocation94_spill] sm:$0xff] %v10109_v6  ;;  %16967 = vst [vmem:[#allocation62_spill] sm:$0xff] %v10112_v39  ;;  %v16974_v9 = vpack.c.bf16 %v16972_v51, %v16973_v25  ;;  %v10129_v36 = vmax.f32 %v16977_v2, %v2446_v15  ;;  %v10132_v17 = vmax.f32 %v16979_v49, %v2447_v32  ;;  %v16981_v43 = vld [vmem:[#allocation68_spill] sm:$0xff]  ;;  %v16983_v48 = vld [vmem:[#allocation69_spill] sm:$0xff]  ;;  %7361 = vmatprep.subr.msk.bf16.mxu0 %vm9487_vm6, %v7359_v44 }
 0x22b   : > { %16969 = vst [vmem:[#allocation17_spill] sm:$0xff] %v10115_v21  ;;  %16971 = vst [vmem:[#allocation95_spill] sm:$0xff] %v10118_v1  ;;  %v10135_v52 = vmax.f32 %v16981_v43, %v2448_v26  ;;  %v10138_v53 = vmax.f32 %v16983_v48, %v2449_v55  ;;  %v16985_v15 = vld [vmem:[#allocation56_spill] sm:$0xff]  ;;  %v2672_v32 = vrot.slane %v10103_v50, 6  ;;  %v16986_v26 = vld [vmem:[#allocation53_spill] sm:$0xff]  ;;  %v17002_v39 = vrot.slane %v10098_v22, 2 }
 0x22c   : > { %7454 = vmatpush3.bf16.xpose.msk.msra.mxu1 %vm9487_vm6, %v16974_v9  ;;  %16976 = vst [vmem:[#allocation26_spill] sm:$0xff] %v10126_v63  ;;  %16978 = vst [vmem:[#allocation89_spill] sm:$0xff] %v10129_v36  ;;  %v2671_v34 = vrot.slane %v16985_v15, 6  ;;  %v2698_v25 = vrot.slane %v16986_v26, 6  ;;  %v16987_v9 = vld [vmem:[#allocation57_spill] sm:$0xff]  ;;  %v4110_v44 = vld [vmem:[%s15942_s3] sm:$0xff] }
 0x22d   : > { %16980 = vst [vmem:[#allocation79_spill] sm:$0xff] %v10132_v17  ;;  %16982 = vst [vmem:[#allocation87_spill] sm:$0xff] %v10135_v52  ;;  %v2699_v55 = vrot.slane %v16987_v9, 6  ;;  %v16988_v49 = vld [vmem:[#allocation54_spill] sm:$0xff]  ;;  %7073 = vmatprep.mubr.msk.f32.mxu1 %vm1061_vm1, %v4110_v44  ;;  %v16990_v10 = vld [vmem:[#allocation52_spill] sm:$0xff]  ;;  %v2784_v47 = vsel %vm2076_vm4, %v2672_v32, %v2700_v35 }
 0x22e   : > { %16984 = vst [vmem:[#allocation75_spill] sm:$0xff] %v10138_v53  ;;  %v2726_v43 = vrot.slane %v16988_v49, 6  ;;  %v16989_v48 = vld [vmem:[#allocation58_spill] sm:$0xff]  ;;  %v16991_v33 = vrot.slane %v16990_v10, 6  ;;  %v16993_v61 = vld [vmem:[#allocation51_spill] sm:$0xff]  ;;  %v10240_v53 = vsel %vm2301_vm5, %v17002_v39, %v2896_v7 }
 0x22f   : > { %v2727_v0 = vrot.slane %v16989_v48, 6  ;;  %v2783_v2 = vsel %vm2076_vm4, %v2671_v34, %v2699_v55  ;;  %v16994_v8 = vrot.slane %v16993_v61, 6  ;;  %v16997_v36 = vld [vmem:[#allocation55_spill] sm:$0xff]  ;;  %17003 = vst [vmem:[#allocation72_spill] sm:$0xff] %v10240_v53 }
 0x230   : > { %v2782_v11 = vsel %vm2076_vm4, %v16991_v33, %v2698_v25  ;;  %v16992_v40 = vmov %v16991_v33  ;;  %v2754_v51 = vsel %vm2076_vm4, %v2698_v25, %v2726_v43  ;;  %v16995_v33 = vrot.slane %v10109_v6, 6 }
 0x231   : > { %v2810_v29 = vsel %vm2076_vm4, %v16994_v8, %v16992_v40  ;;  %v2755_v13 = vsel %vm2076_vm4, %v2699_v55, %v2727_v0  ;;  %v16998_v54 = vrot.slane %v16997_v36, 6  ;;  %v16999_v40 = vrot.slane %v10098_v22, 6 }
 0x232   : > { %v10182_v24 = vsel %vm2076_vm4, %v2700_v35, %v16995_v33  ;;  %v17000_v25 = vrot.slane %v16993_v61, 6 }
 0x233   : > { %16996 = vst [vmem:[#allocation39_spill] sm:$0xff] %v10182_v24  ;;  %v2811_v19 = vsel %vm2076_vm4, %v16998_v54, %v2671_v34  ;;  %7074 = vmatmul.mubr.msk.f32.vlgmr.msra.gmra.mrb[32].mxu1 %vm1061_vm1, %v4110_v44  ;;  %v2812_v8 = vsel %vm2076_vm4, %v16999_v40, %v2672_v32  ;;  %v17001_v35 = vmov %v16998_v54  ;;  %v2866_v24 = vrot.slane %v16993_v61, 2 }
 0x234   : > { %v2838_v55 = vsel %vm2076_vm4, %v2726_v43, %v17000_v25  ;;  %v2839_v33 = vsel %vm2076_vm4, %v2727_v0, %v17001_v35  ;;  %v2867_v54 = vrot.slane %v16997_v36, 2  ;;  %v2894_v32 = vrot.slane %v16990_v10, 2 }
 0x235   : > { %v2895_v40 = vrot.slane %v16985_v15, 2  ;;  %v2922_v25 = vrot.slane %v16986_v26, 2  ;;  %v2923_v0 = vrot.slane %v16987_v9, 2  ;;  %v2924_v61 = vrot.slane %v10106_v23, 2 }
 0x236   : > { %v2950_v35 = vrot.slane %v16988_v49, 2  ;;  %v2951_v44 = vrot.slane %v16989_v48, 2  ;;  %v16097_v34 = vrot.slane %v10109_v6, 2  ;;  %v3034_v36 = vsel %vm2301_vm5, %v2866_v24, %v2894_v32 }
 0x237   : > { %v3006_v45 = vsel %vm2301_vm5, %v2894_v32, %v2922_v25  ;;  %v3007_v4 = vsel %vm2301_vm5, %v2895_v40, %v2923_v0  ;;  %v3008_v49 = vsel %vm2301_vm5, %v2896_v7, %v2924_v61  ;;  %v3102_v63 = vmax.f32 %v2838_v55, %v3034_v36 }
 0x238   : > { %v2978_v43 = vsel %vm2301_vm5, %v2922_v25, %v2950_v35  ;;  %v2979_v48 = vsel %vm2301_vm5, %v2923_v0, %v2951_v44  ;;  %v2980_v56 = vsel %vm2301_vm5, %v2924_v61, %v16097_v34  ;;  %v3035_v25 = vsel %vm2301_vm5, %v2867_v54, %v2895_v40 }
 0x239   : > { %v3062_v0 = vsel %vm2301_vm5, %v2950_v35, %v2866_v24  ;;  %v3063_v6 = vsel %vm2301_vm5, %v2951_v44, %v2867_v54  ;;  %v10246_v61 = vmax.f32 %v2810_v29, %v3006_v45  ;;  %v10248_v34 = vmax.f32 %v2782_v11, %v2978_v43 }
 0x23a   : > { %v3105_v32 = vmax.f32 %v2754_v51, %v3062_v0  ;;  %v3106_v60 = vmax.f32 %v2839_v33, %v3035_v25  ;;  %v10250_v40 = vmax.f32 %v2811_v19, %v3007_v4  ;;  %v10252_v22 = vmax.f32 %v2783_v2, %v2979_v48  ;;  %v10270_v19 = vld [vmem:[#allocation2 + $0x220] sm:$0xff] }
 0x23b   : > { %17004 = vst [vmem:[#allocation96_spill] sm:$0xff] %v10246_v61  ;;  %17005 = vst [vmem:[#allocation28_spill] sm:$0xff] %v10248_v34  ;;  %v3109_v12 = vmax.f32 %v2755_v13, %v3063_v6  ;;  %v10254_v7 = vmax.f32 %v2812_v8, %v3008_v49  ;;  %v10256_v39 = vmax.f32 %v2784_v47, %v2980_v56  ;;  %v10258_v24 = vrot.slane %v3102_v63, 6  ;;  %v10279_v63 = vld [vmem:[#allocation2 + $0x238] sm:$0xff] }
 0x23c   : > { %17006 = vst [vmem:[#allocation90_spill] sm:$0xff] %v10250_v40  ;;  %17007 = vst [vmem:[#allocation82_spill] sm:$0xff] %v10252_v22  ;;  %v10260_v35 = vrot.slane %v3106_v60, 6  ;;  %v10262_v55 = vrot.slane %v3105_v32, 2  ;;  %v3534_v11 = vmax.f32 %v16990_v10, %v16985_v15  ;;  %v3535_v4 = vmax.f32 %v16986_v26, %v16987_v9 }
 0x23d   : > { %17008 = vst [vmem:[#allocation88_spill] sm:$0xff] %v10254_v7  ;;  %17009 = vst [vmem:[#allocation76_spill] sm:$0xff] %v10256_v39  ;;  %v10264_v45 = vrot.slane %v3109_v12, 2  ;;  %v1305_v13 = vrot.slane %v10270_v19, 7  ;;  %v17014_v56 = vrot.slane %v9719_v62, 7  ;;  %v17015_v6 = vrot.slane %v9726_v28, 7 }
 0x23e   : > { %17010 = vst [vmem:[#allocation46_spill] sm:$0xff] %v10258_v24  ;;  %17011 = vst [vmem:[#allocation73_spill] sm:$0xff] %v10260_v35  ;;  %v1616_v12 = vrot.slane %v10279_v63, 1  ;;  %v17016_v10 = vrot.slane %v9719_v62, 1  ;;  %v17017_v47 = vrot.slane %v9726_v28, 1  ;;  %v1981_v29 = vrot.slane %v10270_v19, 6 }
 0x23f   : > { %17012 = vst [vmem:[#allocation29_spill] sm:$0xff] %v10262_v55  ;;  %17013 = vst [vmem:[#allocation93_spill] sm:$0xff] %v10264_v45  ;;  %v1448_v60 = vsel %vm1402_vm2, %v17015_v6, %v17014_v56  ;;  %v3566_v26 = vmax.f32 %v3534_v11, %v10103_v50  ;;  %v3567_v2 = vmax.f32 %v3535_v4, %v10106_v23  ;;  %v17018_v8 = vmov %v17015_v6  ;;  %v17022_v4 = vld [vmem:[#allocation25_spill] sm:$0xff]  ;;  %v17028_v35 = vld [vmem:[#allocation4_spill] sm:$0xff] }
 0x240   : > { %v1673_v51 = vsel %vm1627_vm3, %v17017_v47, %v17016_v10  ;;  %v1476_v33 = vsel %vm1402_vm2, %v1305_v13, %v17018_v8  ;;  %v17019_v54 = vrot.slane %v16848_v18, 7  ;;  %v17020_v43 = vmov %v17016_v10 }
 0x241   : > { %v1645_v36 = vsel %vm1627_vm3, %v17020_v43, %v1616_v12  ;;  %v17021_v49 = vrot.slane %v8663_v42, 1  ;;  %v1809_v0 = vmax.f32 %v1476_v33, %v1673_v51  ;;  %v3598_v18 = vmax.f32 %v3566_v26, %v10115_v21 }
 0x242   : > { %v10299_v44 = vsel %vm1402_vm2, %v17019_v54, %v1305_v13  ;;  %v3599_v32 = vmax.f32 %v3567_v2, %v10118_v1  ;;  %v1810_v11 = vmax.f32 %v1448_v60, %v1645_v36  ;;  %v2009_v42 = vrot.slane %v9726_v28, 6 }
 0x243   : > { %v10309_v48 = vsel %vm1627_vm3, %v1616_v12, %v17021_v49  ;;  %v1921_v56 = vmax.f32 %v9726_v28, %v1809_v0  ;;  %v2037_v6 = vrot.slane %v9719_v62, 6  ;;  %v2065_v12 = vrot.slane %v10279_v63, 6 }
 0x244   : > { %v3630_v10 = vmax.f32 %v3598_v18, %v10132_v17  ;;  %v3631_v47 = vmax.f32 %v3599_v32, %v10135_v52  ;;  %v1922_v51 = vmax.f32 %v9719_v62, %v1810_v11  ;;  %v2206_v26 = vrot.slane %v10270_v19, 2  ;;  %v10344_v32 = vld [vmem:[#allocation2 + $0x120] sm:$0xff] }
 0x245   : > { %v10327_v60 = vsel %vm2076_vm4, %v2037_v6, %v2065_v12  ;;  %v2122_v2 = vsel %vm2076_vm4, %v2009_v42, %v2037_v6  ;;  %v2150_v8 = vsel %vm2076_vm4, %v1981_v29, %v2009_v42  ;;  %v10335_v33 = vsel %vm2076_vm4, %v2065_v12, %v1981_v29  ;;  %v17023_v42 = vld [vmem:[#allocation23_spill] sm:$0xff] }
 0x246   : > { %v7362_v54 = vpack.c.bf16 %v3631_v47, %v3630_v10  ;;  %v2234_v43 = vrot.slane %v9726_v28, 2  ;;  %v2262_v36 = vrot.slane %v9719_v62, 2  ;;  %v2290_v49 = vrot.slane %v10279_v63, 2  ;;  %v17025_v6 = vld [vmem:[#allocation67_spill] sm:$0xff] }
 0x247   : > { %v3552_v0 = vmax.f32 %v10014_v16, %v10020_v14  ;;  %v3553_v18 = vmax.f32 %v10017_v31, %v10023_v57  ;;  %v1297_v11 = vrot.slane %v10344_v32, 7  ;;  %v17024_v29 = vrot.slane %v17023_v42, 7 }
 0x248   : > { %v17026_v12 = vrot.slane %v17025_v6, 7  ;;  %7364 = vmatpush3.bf16.xpose.msk.msra.mxu0 %vm9487_vm6, %v7362_v54  ;;  %v2319_v62 = vsel %vm2301_vm5, %v2262_v36, %v2290_v49  ;;  %v2347_v10 = vsel %vm2301_vm5, %v2234_v43, %v2262_v36  ;;  %v10361_v47 = vsel %vm2301_vm5, %v2206_v26, %v2234_v43  ;;  %v17034_v54 = vld [vmem:[#allocation71_spill] sm:$0xff] }
 0x249   : > { %v10365_v13 = vsel %vm2301_vm5, %v2290_v49, %v2206_v26  ;;  %v2484_v25 = vmax.f32 %v2122_v2, %v2319_v62  ;;  %v3584_v45 = vmax.f32 %v3552_v0, %v10029_v5  ;;  %v3585_v36 = vmax.f32 %v3553_v18, %v10032_v30 }
 0x24a   : > { %v1440_v28 = vsel %vm1402_vm2, %v17026_v12, %v17024_v29  ;;  %v2483_v12 = vmax.f32 %v2150_v8, %v2347_v10  ;;  %v17027_v55 = vrot.slane %v17025_v6, 7  ;;  %v17029_v26 = vrot.slane %v17028_v35, 7  ;;  %v7813_v8 = vld [vmem:[#allocation2 + $0x138] sm:$0xff] }
 0x24b   : > { %v10383_v2 = vmax.f32 %v1922_v51, %v2484_v25  ;;  %v1608_v62 = vrot.slane %v7813_v8, 1  ;;  %v17032_v0 = vrot.slane %v17023_v42, 1  ;;  %v17033_v18 = vrot.slane %v17025_v6, 1  ;;  %v17036_v51 = vld [vmem:[#allocation7_spill] sm:$0xff] }
 0x24c   : > { %v1468_v43 = vsel %vm1402_vm2, %v1297_v11, %v17027_v55  ;;  %v1496_v49 = vsel %vm1402_vm2, %v17029_v26, %v1297_v11  ;;  %v10381_v29 = vmax.f32 %v1921_v56, %v2483_v12  ;;  %v3616_v55 = vmax.f32 %v3584_v45, %v10041_v41 }
 0x24d   : > { %17031 = vst [vmem:[#allocation92_spill] sm:$0xff] %v10383_v2  ;;  %v1665_v10 = vsel %vm1627_vm3, %v17033_v18, %v17032_v0  ;;  %v3617_v35 = vmax.f32 %v3585_v36, %v10044_v3  ;;  %v1776_v24 = vmax.f32 %v1496_v49, %v17034_v54  ;;  %v17035_v56 = vmov %v17032_v0  ;;  %v7814_v0 = vld [vmem:[#allocation2 + $0x128] sm:$0xff] }
 0x24e   : > { %17030 = vst [vmem:[#allocation83_spill] sm:$0xff] %v10381_v29  ;;  %v1777_v11 = vmax.f32 %v1468_v43, %v1665_v10  ;;  %v1637_v25 = vsel %vm1627_vm3, %v17035_v56, %v1608_v62  ;;  %v17037_v12 = vrot.slane %v17036_v51, 1  ;;  %v1973_v26 = vrot.slane %v10344_v32, 6  ;;  %v17038_v43 = vld [vmem:[#allocation70_spill] sm:$0xff] }
 0x24f   : > { %v2001_v18 = vrot.slane %v7814_v0, 6  ;;  %v3648_v45 = vmax.f32 %v3616_v55, %v10381_v29  ;;  %v3649_v36 = vmax.f32 %v3617_v35, %v10383_v2  ;;  %v1778_v54 = vmax.f32 %v1440_v28, %v1637_v25  ;;  %v7815_v56 = vld [vmem:[#allocation2 + $0x130] sm:$0xff] }
 0x250   : > { %v1721_v6 = vsel %vm1627_vm3, %v1608_v62, %v17037_v12  ;;  %v1888_v42 = vmax.f32 %v10344_v32, %v1776_v24  ;;  %v1889_v10 = vmax.f32 %v7814_v0, %v1777_v11  ;;  %v2029_v53 = vrot.slane %v7815_v56, 6 }
 0x251   : > { %v1779_v49 = vmax.f32 %v17038_v43, %v1721_v6  ;;  %v2057_v51 = vrot.slane %v7813_v8, 6  ;;  %v7365_v22 = vpack.c.bf16 %v3649_v36, %v3648_v45  ;;  %v1890_v40 = vmax.f32 %v7815_v56, %v1778_v54  ;;  %v10422_v54 = vld [vmem:[#allocation2 + $0x240] sm:$0xff] }
 0x252   : > { %v2142_v12 = vsel %vm2076_vm4, %v1973_v26, %v2001_v18  ;;  %v2114_v28 = vsel %vm2076_vm4, %v2001_v18, %v2029_v53  ;;  %v2198_v24 = vrot.slane %v10344_v32, 2  ;;  %v2226_v11 = vrot.slane %v7814_v0, 2  ;;  %v10431_v0 = vld [vmem:[#allocation2 + $0x258] sm:$0xff] }
 0x253   : > { %v1891_v62 = vmax.f32 %v7813_v8, %v1779_v49  ;;  %v2086_v55 = vsel %vm2076_vm4, %v2029_v53, %v2057_v51  ;;  %v2170_v35 = vsel %vm2076_vm4, %v2057_v51, %v1973_v26  ;;  %7367 = vmatprep.subr.msk.bf16.mxu0 %vm9487_vm6, %v7365_v22  ;;  %v2254_v25 = vrot.slane %v7815_v56, 2 }
 0x254   : > { %v2282_v6 = vrot.slane %v7813_v8, 2  ;;  %v3536_v45 = vmax.f32 %v16985_v15, %v10103_v50  ;;  %v3537_v36 = vmax.f32 %v16987_v9, %v10106_v23  ;;  %v1306_v53 = vrot.slane %v10422_v54, 7 }
 0x255   : > { %v17039_v26 = vrot.slane %v9771_v20, 7  ;;  %v17040_v32 = vrot.slane %v9778_v46, 7  ;;  %v1617_v8 = vrot.slane %v10431_v0, 1  ;;  %v2339_v9 = vsel %vm2301_vm5, %v2226_v11, %v2254_v25 }
 0x256   : > { %v2311_v15 = vsel %vm2301_vm5, %v2254_v25, %v2282_v6  ;;  %v2367_v18 = vsel %vm2301_vm5, %v2198_v24, %v2226_v11  ;;  %v2395_v43 = vsel %vm2301_vm5, %v2282_v6, %v2198_v24  ;;  %v2451_v56 = vmax.f32 %v2142_v12, %v2339_v9  ;;  %v17042_v25 = vld [vmem:[#allocation33_spill] sm:$0xff] }
 0x257   : > { %v1449_v22 = vsel %vm1402_vm2, %v17040_v32, %v17039_v26  ;;  %v2450_v49 = vmax.f32 %v2170_v35, %v2367_v18  ;;  %v2452_v51 = vmax.f32 %v2114_v28, %v2311_v15  ;;  %v2453_v26 = vmax.f32 %v2086_v55, %v2395_v43 }
 0x258   : > { %v3568_v32 = vmax.f32 %v3536_v45, %v10115_v21  ;;  %v3569_v34 = vmax.f32 %v3537_v36, %v10118_v1  ;;  %v17041_v61 = vrot.slane %v9778_v46, 7  ;;  %v17043_v7 = vrot.slane %v17042_v25, 7 }
 0x259   : > { %v10454_v24 = vmax.f32 %v1888_v42, %v2450_v49  ;;  %v10456_v12 = vmax.f32 %v1889_v10, %v2451_v56  ;;  %v10458_v55 = vmax.f32 %v1890_v40, %v2452_v51  ;;  %v10460_v28 = vmax.f32 %v1891_v62, %v2453_v26  ;;  %v17051_v40 = vld [vmem:[#allocation34_spill] sm:$0xff] }
 0x25a   : > { %v1477_v39 = vsel %vm1402_vm2, %v1306_v53, %v17041_v61  ;;  %v10452_v11 = vsel %vm1402_vm2, %v17043_v7, %v1306_v53  ;;  %v3600_v35 = vmax.f32 %v3568_v32, %v10132_v17  ;;  %v3601_v6 = vmax.f32 %v3569_v34, %v10135_v52 }
 0x25b   : > { %17044 = vst [vmem:[#allocation78_spill] sm:$0xff] %v10454_v24  ;;  %17045 = vst [vmem:[#allocation50_spill] sm:$0xff] %v10456_v12  ;;  %v17048_v61 = vrot.slane %v9771_v20, 1  ;;  %v17050_v42 = vrot.slane %v9778_v46, 1  ;;  %v17052_v36 = vrot.slane %v17051_v40, 1  ;;  %v1982_v15 = vrot.slane %v10422_v54, 6 }
 0x25c   : > { %17046 = vst [vmem:[#allocation74_spill] sm:$0xff] %v10458_v55  ;;  %17047 = vst [vmem:[#allocation32_spill] sm:$0xff] %v10460_v28  ;;  %v3632_v9 = vmax.f32 %v3600_v35, %v10456_v12  ;;  %v3633_v18 = vmax.f32 %v3601_v6, %v10458_v55  ;;  %v2010_v43 = vrot.slane %v9778_v46, 6  ;;  %v2038_v49 = vrot.slane %v9771_v20, 6 }
 0x25d   : > { %v1646_v45 = vsel %vm1627_vm3, %v17048_v61, %v1617_v8  ;;  %v17049_v7 = vmov %v17048_v61  ;;  %v10478_v62 = vsel %vm1627_vm3, %v1617_v8, %v17052_v36  ;;  %v2066_v26 = vrot.slane %v10431_v0, 6 }
 0x25e   : > { %v1674_v10 = vsel %vm1627_vm3, %v17050_v42, %v17049_v7  ;;  %v1814_v34 = vmax.f32 %v1449_v22, %v1646_v45  ;;  %v2207_v8 = vrot.slane %v10422_v54, 2  ;;  %v2123_v22 = vsel %vm2076_vm4, %v2010_v43, %v2038_v49 }
 0x25f   : > { %v1813_v53 = vmax.f32 %v1477_v39, %v1674_v10  ;;  %v7368_v39 = vpack.c.bf16 %v3633_v18, %v3632_v9  ;;  %v2151_v32 = vsel %vm2076_vm4, %v1982_v15, %v2010_v43  ;;  %v2235_v25 = vrot.slane %v9778_v46, 2  ;;  %v7818_v10 = vld [vmem:[#allocation2 + $0x140] sm:$0xff] }
 0x260   : > { %v1926_v51 = vmax.f32 %v9771_v20, %v1814_v34  ;;  %v10496_v35 = vsel %vm2076_vm4, %v2038_v49, %v2066_v26  ;;  %v10500_v6 = vsel %vm2076_vm4, %v2066_v26, %v1982_v15  ;;  %v2263_v61 = vrot.slane %v9771_v20, 2  ;;  %v17053_v34 = vld [vmem:[#allocation80_spill] sm:$0xff] }
 0x261   : > { %v1925_v56 = vmax.f32 %v9778_v46, %v1813_v53  ;;  %v2291_v45 = vrot.slane %v10431_v0, 2  ;;  %7370 = vmatpush3.bf16.xpose.msk.msra.mxu0 %vm9487_vm6, %v7368_v39  ;;  %v10508_v7 = vsel %vm2301_vm5, %v2207_v8, %v2235_v25  ;;  %v3554_v46 = vmax.f32 %v10020_v14, %v10029_v5  ;;  %v17055_v9 = vld [vmem:[#allocation84_spill] sm:$0xff] }
 0x262   : > { %v3555_v42 = vmax.f32 %v10023_v57, %v10032_v30  ;;  %v1298_v40 = vrot.slane %v7818_v10, 7  ;;  %v2348_v36 = vsel %vm2301_vm5, %v2235_v25, %v2263_v61  ;;  %v17054_v15 = vrot.slane %v17053_v34, 7  ;;  %v7819_v57 = vld [vmem:[#allocation2 + $0x158] sm:$0xff] }
 0x263   : > { %v2320_v20 = vsel %vm2301_vm5, %v2263_v61, %v2291_v45  ;;  %v10520_v53 = vsel %vm2301_vm5, %v2291_v45, %v2207_v8  ;;  %v17056_v18 = vrot.slane %v17055_v9, 7  ;;  %v2487_v49 = vmax.f32 %v2151_v32, %v2348_v36  ;;  %v17058_v8 = vld [vmem:[#allocation8_spill] sm:$0xff] }
 0x264   : > { %v2488_v26 = vmax.f32 %v2123_v22, %v2320_v20  ;;  %v3586_v39 = vmax.f32 %v3554_v46, %v10041_v41  ;;  %v3587_v28 = vmax.f32 %v3555_v42, %v10044_v3  ;;  %v17059_v61 = vrot.slane %v17058_v8, 7 }
 0x265   : > { %v1441_v43 = vsel %vm1402_vm2, %v17056_v18, %v17054_v15  ;;  %v17057_v30 = vmov %v17056_v18  ;;  %v1609_v31 = vrot.slane %v7819_v57, 1  ;;  %v17060_v15 = vrot.slane %v17053_v34, 1  ;;  %v17065_v18 = vld [vmem:[#allocation9_spill] sm:$0xff] }
 0x266   : > { %v1469_v25 = vsel %vm1402_vm2, %v1298_v40, %v17057_v30  ;;  %v1497_v45 = vsel %vm1402_vm2, %v17059_v61, %v1298_v40  ;;  %v17061_v22 = vrot.slane %v17055_v9, 1  ;;  %v10544_v46 = vmax.f32 %v1925_v56, %v2487_v49  ;;  %v17067_v61 = vld [vmem:[#allocation86_spill] sm:$0xff] }
 0x267   : > { %v10546_v42 = vmax.f32 %v1926_v51, %v2488_v26  ;;  %v3618_v30 = vmax.f32 %v3586_v39, %v10381_v29  ;;  %v3619_v20 = vmax.f32 %v3587_v28, %v10383_v2  ;;  %v17064_v36 = vmov %v17060_v15  ;;  %v17068_v39 = vld [vmem:[#allocation85_spill] sm:$0xff] }
 0x268   : > { %v1666_v32 = vsel %vm1627_vm3, %v17061_v22, %v17060_v15  ;;  %17062 = vst [vmem:[#allocation59_spill] sm:$0xff] %v10544_v46  ;;  %v1638_v40 = vsel %vm1627_vm3, %v17064_v36, %v1609_v31  ;;  %v17066_v8 = vrot.slane %v17065_v18, 1  ;;  %v1780_v15 = vmax.f32 %v1497_v45, %v17067_v61  ;;  %v7820_v22 = vld [vmem:[#allocation2 + $0x148] sm:$0xff]  ;;  %v7821_v36 = vld [vmem:[#allocation2 + $0x150] sm:$0xff] }
 0x269   : > { %17063 = vst [vmem:[#allocation60_spill] sm:$0xff] %v10546_v42  ;;  %v1781_v56 = vmax.f32 %v1469_v25, %v1666_v32  ;;  %v3650_v51 = vmax.f32 %v3618_v30, %v10544_v46  ;;  %v3651_v49 = vmax.f32 %v3619_v20, %v10546_v42  ;;  %v1782_v26 = vmax.f32 %v1441_v43, %v1638_v40 }
 0x26a   : > { %v1722_v9 = vsel %vm1627_vm3, %v1609_v31, %v17066_v8  ;;  %v1974_v2 = vrot.slane %v7818_v10, 6  ;;  %v2002_v3 = vrot.slane %v7820_v22, 6  ;;  %v2030_v29 = vrot.slane %v7821_v36, 6 }
 0x26b   : > { %v1783_v28 = vmax.f32 %v17068_v39, %v1722_v9  ;;  %v1893_v34 = vmax.f32 %v7820_v22, %v1781_v56  ;;  %v7371_v18 = vpack.c.bf16 %v3651_v49, %v3650_v51  ;;  %v1894_v41 = vmax.f32 %v7821_v36, %v1782_v26  ;;  %v17069_v56 = vld [vmem:[#allocation31_spill] sm:$0xff] }
 0x26c   : > { %v2058_v5 = vrot.slane %v7819_v57, 6  ;;  %v2199_v31 = vrot.slane %v7818_v10, 2  ;;  %v2115_v25 = vsel %vm2076_vm4, %v2002_v3, %v2030_v29  ;;  %v2143_v45 = vsel %vm2076_vm4, %v1974_v2, %v2002_v3 }
 0x26d   : > { %v2227_v32 = vrot.slane %v7820_v22, 2  ;;  %v2255_v43 = vrot.slane %v7821_v36, 2  ;;  %7373 = vmatprep.subr.msk.bf16.mxu0 %vm9487_vm6, %v7371_v18  ;;  %v2283_v40 = vrot.slane %v7819_v57, 2  ;;  %v3538_v8 = vmax.f32 %v10103_v50, %v10115_v21 }
 0x26e   : > { %v2087_v30 = vsel %vm2076_vm4, %v2030_v29, %v2058_v5  ;;  %v2171_v20 = vsel %vm2076_vm4, %v2058_v5, %v1974_v2  ;;  %v3539_v61 = vmax.f32 %v10106_v23, %v10118_v1  ;;  %v1812_v51 = vmax.f32 %v10452_v11, %v17069_v56  ;;  %v17071_v23 = vld [vmem:[#allocation30_spill] sm:$0xff] }
 0x26f   : > { %v2340_v9 = vsel %vm2301_vm5, %v2227_v32, %v2255_v43  ;;  %v2368_v3 = vsel %vm2301_vm5, %v2199_v31, %v2227_v32  ;;  %v2312_v29 = vsel %vm2301_vm5, %v2255_v43, %v2283_v40  ;;  %v2396_v5 = vsel %vm2301_vm5, %v2283_v40, %v2199_v31 }
 0x270   : > { %v2454_v2 = vmax.f32 %v2171_v20, %v2368_v3  ;;  %v2455_v50 = vmax.f32 %v2143_v45, %v2340_v9  ;;  %v2456_v49 = vmax.f32 %v2115_v25, %v2312_v29  ;;  %v2457_v26 = vmax.f32 %v2087_v30, %v2396_v5  ;;  %v7822_v45 = vld [vmem:[#allocation2 + $0x180] sm:$0xff]  ;;  %v17073_v25 = vld [vmem:[#allocation14_spill] sm:$0xff] }
 0x271   : > { %v3570_v39 = vmax.f32 %v3538_v8, %v10132_v17  ;;  %v3571_v22 = vmax.f32 %v3539_v61, %v10135_v52  ;;  %v1815_v18 = vmax.f32 %v17071_v23, %v10478_v62  ;;  %v1892_v11 = vmax.f32 %v7818_v10, %v1780_v15  ;;  %v17074_v30 = vld [vmem:[#allocation102_spill] sm:$0xff]  ;;  %v7823_v8 = vld [vmem:[#allocation2 + $0x198] sm:$0xff]  ;;  %v17076_v9 = vld [vmem:[#allocation100_spill] sm:$0xff] }
 0x272   : > { %v10588_v36 = vmax.f32 %v1893_v34, %v2455_v50  ;;  %v1895_v32 = vmax.f32 %v7819_v57, %v1783_v28  ;;  %v10592_v56 = vmax.f32 %v1894_v41, %v2456_v49  ;;  %v17075_v20 = vmax.f32 %v17073_v25, %v17074_v30  ;;  %v17077_v34 = vld [vmem:[#allocation15_spill] sm:$0xff]  ;;  %v7824_v29 = vld [vmem:[#allocation2 + $0x1a0] sm:$0xff]  ;;  %v17080_v10 = vld [vmem:[#allocation106_spill] sm:$0xff] }
 0x273   : > { %v3602_v43 = vmax.f32 %v3570_v39, %v10456_v12  ;;  %v3603_v31 = vmax.f32 %v3571_v22, %v10458_v55  ;;  %v17078_v3 = vmax.f32 %v17076_v9, %v17077_v34  ;;  %v17079_v62 = vld [vmem:[#allocation16_spill] sm:$0xff]  ;;  %v7825_v15 = vld [vmem:[#allocation2 + $0x1b8] sm:$0xff]  ;;  %v17082_v28 = vld [vmem:[#allocation105_spill] sm:$0xff] }
 0x274   : > { %17070 = vst [vmem:[#allocation61_spill] sm:$0xff] %v10588_v36  ;;  %17072 = vst [vmem:[#allocation19_spill] sm:$0xff] %v10592_v56  ;;  %v1900_v40 = vmax.f32 %v7822_v45, %v17075_v20  ;;  %v17081_v57 = vmax.f32 %v17079_v62, %v17080_v10  ;;  %v17083_v5 = vld [vmem:[#allocation18_spill] sm:$0xff]  ;;  %v7826_v39 = vld [vmem:[#allocation2 + $0x1c0] sm:$0xff] }
 0x275   : > { %v1903_v61 = vmax.f32 %v7823_v8, %v17078_v3  ;;  %v17084_v50 = vmax.f32 %v17082_v28, %v17083_v5  ;;  %v17085_v22 = vld [vmem:[#allocation21_spill] sm:$0xff]  ;;  %v17086_v23 = vld [vmem:[#allocation116_spill] sm:$0xff]  ;;  %v3634_v30 = vmax.f32 %v3602_v43, %v10588_v36  ;;  %v3635_v20 = vmax.f32 %v3603_v31, %v10592_v56  ;;  %v7827_v8 = vld [vmem:[#allocation2 + $0x1d8] sm:$0xff] }
 0x276   : > { %v1904_v41 = vmax.f32 %v7824_v29, %v17081_v57  ;;  %v17087_v25 = vmax.f32 %v17085_v22, %v17086_v23  ;;  %v17088_v9 = vld [vmem:[#allocation115_spill] sm:$0xff]  ;;  %v17089_v34 = vld [vmem:[#allocation24_spill] sm:$0xff]  ;;  %v17091_v29 = vmax.f32 %v10299_v44, %v9769_v58  ;;  %v17092_v57 = vmax.f32 %v17022_v4, %v10309_v48  ;;  %v17096_v44 = vld [vmem:[#allocation5_spill] sm:$0xff] }
 0x277   : > { %v1907_v49 = vmax.f32 %v7825_v15, %v17084_v50  ;;  %v17090_v3 = vmax.f32 %v17088_v9, %v17089_v34  ;;  %v1924_v28 = vmax.f32 %v10422_v54, %v1812_v51  ;;  %v1927_v43 = vmax.f32 %v10431_v0, %v1815_v18  ;;  %v17098_v4 = vld [vmem:[#allocation12_spill] sm:$0xff]  ;;  %v17100_v54 = vld [vmem:[#allocation6_spill] sm:$0xff]  ;;  %v17101_v51 = vld [vmem:[#allocation11_spill] sm:$0xff] }
 0x278   : > { %v1908_v45 = vmax.f32 %v7826_v39, %v17087_v25  ;;  %v1920_v10 = vmax.f32 %v10270_v19, %v17091_v29  ;;  %v1923_v15 = vmax.f32 %v10279_v63, %v17092_v57  ;;  %v2486_v31 = vmax.f32 %v10500_v6, %v10508_v7  ;;  %v17095_v19 = vld [vmem:[#allocation13_spill] sm:$0xff]  ;;  %v17103_v18 = vld [vmem:[#allocation10_spill] sm:$0xff]  ;;  %v17107_v7 = vld [vmem:[#allocation108_spill] sm:$0xff] }
 0x279   : > { %v1911_v62 = vmax.f32 %v7827_v8, %v17090_v3  ;;  %v7374_v5 = vpack.c.bf16 %v3635_v20, %v3634_v30  ;;  %v2489_v50 = vmax.f32 %v10496_v35, %v10520_v53  ;;  %v10630_v39 = vmax.f32 %v1892_v11, %v2454_v2  ;;  %v17108_v53 = vld [vmem:[#allocation40_spill] sm:$0xff]  ;;  %v17115_v30 = vld [vmem:[#allocation109_spill] sm:$0xff]  ;;  %v17124_v3 = vld [vmem:[#allocation47_spill] sm:$0xff] }
 0x27a   : > { %v10632_v58 = vmax.f32 %v1895_v32, %v2457_v26  ;;  %v17097_v48 = vmax.f32 %v17095_v19, %v17096_v44  ;;  %v17102_v0 = vmax.f32 %v17100_v54, %v17101_v51  ;;  %v17105_v6 = vmax.f32 %v16899_v38, %v9573_v59  ;;  %v17111_v11 = vld [vmem:[#allocation36_spill] sm:$0xff]  ;;  %v17112_v32 = vld [vmem:[#allocation114_spill] sm:$0xff]  ;;  %v17116_v20 = vld [vmem:[#allocation45_spill] sm:$0xff] }
 0x27b   : > { %17093 = vst [vmem:[#allocation20_spill] sm:$0xff] %v10630_v39  ;;  %v17109_v2 = vmax.f32 %v17107_v7, %v17108_v53  ;;  %7376 = vmatpush3.bf16.xpose.msk.msra.mxu0 %vm9487_vm6, %v7374_v5  ;;  %v17113_v23 = vmax.f32 %v17111_v11, %v17112_v32  ;;  %v17117_v8 = vmax.f32 %v17115_v30, %v17116_v20  ;;  %v17119_v59 = vld [vmem:[#allocation38_spill] sm:$0xff]  ;;  %v17137_v11 = vld [vmem:[#allocation83_spill] sm:$0xff]  ;;  %v16124_v30 = vrot.slane %v10135_v52, 6  ;;  %v17144_v54 = vld [vmem:[#allocation92_spill] sm:$0xff] }
 0x27c   : > { %17094 = vst [vmem:[#allocation63_spill] sm:$0xff] %v10632_v58  ;;  %v10638_v63 = vmax.f32 %v17098_v4, %v17097_v48  ;;  %v10644_v22 = vmax.f32 %v17103_v18, %v17102_v0  ;;  %v10649_v35 = vmax.f32 %v1900_v40, %v17105_v6  ;;  %v17120_v38 = vld [vmem:[#allocation118_spill] sm:$0xff]  ;;  %v17127_v5 = vmax.f32 %v10335_v33, %v10361_v47  ;;  %v17135_v6 = vld [vmem:[#allocation44_spill] sm:$0xff]  ;;  %v17143_v47 = vld [vmem:[#allocation111_spill] sm:$0xff] }
 0x27d   : > { %v10654_v26 = vmax.f32 %v1903_v61, %v17109_v2  ;;  %v10661_v25 = vmax.f32 %v1904_v41, %v17113_v23  ;;  %v10666_v9 = vmax.f32 %v1907_v49, %v17117_v8  ;;  %v17121_v40 = vmax.f32 %v17119_v59, %v17120_v38  ;;  %v17123_v61 = vld [vmem:[#allocation35_spill] sm:$0xff]  ;;  %v17136_v53 = vld [vmem:[#allocation110_spill] sm:$0xff]  ;;  %v17138_v59 = vld [vmem:[#allocation97_spill] sm:$0xff] }
 0x27e   : > { %17099 = vst [vmem:[#allocation99_spill] sm:$0xff] %v10638_v63  ;;  %17104 = vst [vmem:[#allocation101_spill] sm:$0xff] %v10644_v22  ;;  %v17125_v29 = vmax.f32 %v17123_v61, %v17124_v3  ;;  %v10681_v41 = vmax.f32 %v1920_v10, %v17127_v5  ;;  %v17129_v19 = vmax.f32 %v10327_v60, %v10365_v13  ;;  %v2674_v10 = vrot.slane %v10132_v17, 6  ;;  %v17140_v3 = vld [vmem:[#allocation113_spill] sm:$0xff]  ;;  %v17141_v5 = vld [vmem:[#allocation43_spill] sm:$0xff] }
 0x27f   : > { %17106 = vst [vmem:[#allocation64_spill] sm:$0xff] %v10649_v35  ;;  %17110 = vst [vmem:[#allocation65_spill] sm:$0xff] %v10654_v26  ;;  %v10671_v34 = vmax.f32 %v1908_v45, %v17121_v40  ;;  %v10688_v44 = vmax.f32 %v1924_v28, %v2486_v31  ;;  %v10690_v48 = vmax.f32 %v1927_v43, %v2489_v50  ;;  %v2676_v28 = vrot.slane %v10588_v36, 6  ;;  %v17133_v43 = vld [vmem:[#allocation98_spill] sm:$0xff]  ;;  %v17134_v50 = vld [vmem:[#allocation27_spill] sm:$0xff] }
 0x280   : > { %17114 = vst [vmem:[#allocation66_spill] sm:$0xff] %v10661_v25  ;;  %17118 = vst [vmem:[#allocation68_spill] sm:$0xff] %v10666_v9  ;;  %v10676_v57 = vmax.f32 %v1911_v62, %v17125_v29  ;;  %v10686_v49 = vmax.f32 %v1923_v15, %v17129_v19  ;;  %v2675_v15 = vrot.slane %v10456_v12, 6  ;;  %v2677_v31 = vrot.slane %v17133_v43, 6  ;;  %v17139_v40 = vld [vmem:[#allocation77_spill] sm:$0xff] }
 0x281   : > { %17122 = vst [vmem:[#allocation69_spill] sm:$0xff] %v10671_v34  ;;  %17128 = vst [vmem:[#allocation53_spill] sm:$0xff] %v10681_v41  ;;  %v2678_v51 = vrot.slane %v17134_v50, 6  ;;  %v2679_v0 = vrot.slane %v10014_v16, 6  ;;  %v2680_v18 = vrot.slane %v10020_v14, 6  ;;  %v2681_v7 = vrot.slane %v17135_v6, 6 }
 0x282   : > { %17126 = vst [vmem:[#allocation56_spill] sm:$0xff] %v10676_v57  ;;  %17130 = vst [vmem:[#allocation57_spill] sm:$0xff] %v10686_v49  ;;  %v2682_v2 = vrot.slane %v17136_v53, 6  ;;  %v2683_v32 = vrot.slane %v17137_v11, 6  ;;  %v2684_v23 = vrot.slane %v10544_v46, 6  ;;  %v16125_v20 = vrot.slane %v10458_v55, 6 }
 0x283   : > { %17131 = vst [vmem:[#allocation54_spill] sm:$0xff] %v10688_v44  ;;  %17132 = vst [vmem:[#allocation58_spill] sm:$0xff] %v10690_v48  ;;  %v16128_v61 = vrot.slane %v17139_v40, 6  ;;  %v16129_v29 = vrot.slane %v17140_v3, 6  ;;  %v17142_v60 = vld [vmem:[#allocation49_spill] sm:$0xff]  ;;  %v17145_v45 = vrot.slane %v10118_v1, 6  ;;  %v10734_v19 = vsel %vm2076_vm4, %v2674_v10, %v16124_v30 }
 0x284   : > { %v17146_v8 = vrot.slane %v10115_v21, 6  ;;  %v10740_v62 = vsel %vm2076_vm4, %v2675_v15, %v16125_v20  ;;  %v17147_v4 = vrot.slane %v10592_v56, 6 }
 0x285   : > { %v10758_v30 = vsel %vm2076_vm4, %v2678_v51, %v16128_v61  ;;  %v10764_v20 = vsel %vm2076_vm4, %v2679_v0, %v16129_v29  ;;  %v17157_v61 = vrot.slane %v17143_v47, 6  ;;  %v17159_v29 = vrot.slane %v17144_v54, 6 }
 0x286   : > { %v10728_v38 = vsel %vm2076_vm4, %v17146_v8, %v17145_v45  ;;  %v10746_v33 = vsel %vm2076_vm4, %v2676_v28, %v17147_v4  ;;  %v17149_v45 = vrot.slane %v17138_v59, 6  ;;  %17151 = vst [vmem:[#allocation55_spill] sm:$0xff] %v10758_v30  ;;  %17152 = vst [vmem:[#allocation25_spill] sm:$0xff] %v10764_v20  ;;  %v17153_v4 = vrot.slane %v17141_v5, 6 }
 0x287   : > { %17148 = vst [vmem:[#allocation52_spill] sm:$0xff] %v10746_v33  ;;  %v10782_v30 = vsel %vm2076_vm4, %v2682_v2, %v17157_v61  ;;  %v10788_v20 = vsel %vm2076_vm4, %v2683_v32, %v17159_v29 }
 0x288   : > { %v10752_v8 = vsel %vm2076_vm4, %v2677_v31, %v17149_v45  ;;  %v10770_v13 = vsel %vm2076_vm4, %v2680_v18, %v17153_v4  ;;  %v17155_v45 = vrot.slane %v17142_v60, 6  ;;  %17158 = vst [vmem:[#allocation4_spill] sm:$0xff] %v10782_v30  ;;  %17160 = vst [vmem:[#allocation71_spill] sm:$0xff] %v10788_v20  ;;  %v17161_v4 = vrot.slane %v10546_v42, 6  ;;  %v17166_v30 = vld [vmem:[#allocation89_spill] sm:$0xff] }
 0x289   : > { %17150 = vst [vmem:[#allocation51_spill] sm:$0xff] %v10752_v8  ;;  %17154 = vst [vmem:[#allocation23_spill] sm:$0xff] %v10770_v13  ;;  %v17167_v33 = vrot.slane %v17166_v30, 6  ;;  %v17168_v20 = vrot.slane %v10454_v24, 6 }
 0x28a   : > { %v10776_v27 = vsel %vm2076_vm4, %v2681_v7, %v17155_v45  ;;  %v10794_v13 = vsel %vm2076_vm4, %v2684_v23, %v17161_v4  ;;  %v17163_v45 = vrot.slane %v10115_v21, 6 }
 0x28b   : > { %17156 = vst [vmem:[#allocation67_spill] sm:$0xff] %v10776_v27  ;;  %17162 = vst [vmem:[#allocation7_spill] sm:$0xff] %v10794_v13  ;;  %v17164_v27 = vld [vmem:[#allocation62_spill] sm:$0xff]  ;;  %v10808_v29 = vsel %vm2076_vm4, %v17167_v33, %v2674_v10  ;;  %v10814_v4 = vsel %vm2076_vm4, %v17168_v20, %v2675_v15  ;;  %v17169_v13 = vrot.slane %v10630_v39, 6  ;;  %v17171_v33 = vrot.slane %v10649_v35, 6 }
 0x28c   : > { %v17165_v8 = vrot.slane %v17164_v27, 6  ;;  %v17172_v15 = vrot.slane %v10661_v25, 6  ;;  %v16161_v39 = vrot.slane %v10644_v22, 2 }
 0x28d   : > { %v10820_v27 = vsel %vm2076_vm4, %v17169_v13, %v2676_v28  ;;  %v10832_v10 = vsel %vm2076_vm4, %v17171_v33, %v2678_v51  ;;  %v17173_v13 = vrot.slane %v10671_v34, 6  ;;  %v17176_v51 = vld [vmem:[#allocation104_spill] sm:$0xff] }
 0x28e   : > { %v10802_v61 = vsel %vm2076_vm4, %v17165_v8, %v17163_v45  ;;  %v17170_v8 = vrot.slane %v10638_v63, 6  ;;  %v10838_v20 = vsel %vm2076_vm4, %v17172_v15, %v2679_v0  ;;  %v17177_v33 = vrot.slane %v17176_v51, 6  ;;  %v17184_v63 = vld [vmem:[#allocation75_spill] sm:$0xff] }
 0x28f   : > { %v10844_v28 = vsel %vm2076_vm4, %v17173_v13, %v2680_v18  ;;  %v17178_v0 = vrot.slane %v10681_v41, 6  ;;  %v17179_v18 = vrot.slane %v10688_v44, 6  ;;  %v2927_v51 = vrot.slane %v10458_v55, 2 }
 0x290   : > { %v10826_v45 = vsel %vm2076_vm4, %v17170_v8, %v2677_v31  ;;  %v17174_v31 = vld [vmem:[#allocation48_spill] sm:$0xff]  ;;  %v10856_v25 = vsel %vm2076_vm4, %v17177_v33, %v2682_v2  ;;  %v2928_v2 = vrot.slane %v10592_v56, 2  ;;  %v2929_v33 = vrot.slane %v17138_v59, 2  ;;  %v17181_v59 = vld [vmem:[#allocation26_spill] sm:$0xff] }
 0x291   : > { %v17175_v8 = vrot.slane %v17174_v31, 6  ;;  %v10862_v15 = vsel %vm2076_vm4, %v17178_v0, %v2683_v32  ;;  %v10868_v13 = vsel %vm2076_vm4, %v17179_v18, %v2684_v23  ;;  %v2930_v41 = vrot.slane %v17139_v40, 2  ;;  %v17180_v31 = vld [vmem:[#allocation32_spill] sm:$0xff] }
 0x292   : > { %v2931_v32 = vrot.slane %v17140_v3, 2  ;;  %v2932_v0 = vrot.slane %v17141_v5, 2  ;;  %v2933_v44 = vrot.slane %v17142_v60, 2  ;;  %v2934_v23 = vrot.slane %v17143_v47, 2 }
 0x293   : > { %v10850_v35 = vsel %vm2076_vm4, %v17175_v8, %v2681_v7  ;;  %v2926_v8 = vrot.slane %v10135_v52, 2  ;;  %v2935_v18 = vrot.slane %v17144_v54, 2  ;;  %v2936_v7 = vrot.slane %v10546_v42, 2 }
 0x294   : > { %v17182_v56 = vrot.slane %v17181_v59, 2  ;;  %v17183_v42 = vrot.slane %v10118_v1, 2  ;;  %v17185_v55 = vrot.slane %v17184_v63, 2  ;;  %v17186_v30 = vrot.slane %v17180_v31, 2  ;;  %v17191_v31 = vld [vmem:[#allocation103_spill] sm:$0xff]  ;;  %v17193_v63 = vld [vmem:[#allocation120_spill] sm:$0xff] }
 0x295   : > { %v17187_v3 = vrot.slane %v10632_v58, 2  ;;  %v17189_v59 = vrot.slane %v10666_v9, 2  ;;  %v17190_v58 = vrot.slane %v10676_v57, 2  ;;  %v17192_v22 = vrot.slane %v17191_v31, 2 }
 0x296   : > { %v2981_v34 = vsel %vm2301_vm5, %v17183_v42, %v17182_v56  ;;  %v2982_v24 = vsel %vm2301_vm5, %v2926_v8, %v17185_v55  ;;  %v2983_v5 = vsel %vm2301_vm5, %v2927_v51, %v17186_v30  ;;  %v2985_v42 = vsel %vm2301_vm5, %v2929_v33, %v16161_v39 }
 0x297   : > { %v2984_v40 = vsel %vm2301_vm5, %v2928_v2, %v17187_v3  ;;  %v17188_v56 = vrot.slane %v10654_v26, 2  ;;  %v2987_v30 = vsel %vm2301_vm5, %v2931_v32, %v17189_v59  ;;  %v2988_v3 = vsel %vm2301_vm5, %v2932_v0, %v17190_v58 }
 0x298   : > { %v2989_v39 = vsel %vm2301_vm5, %v2933_v44, %v17192_v22  ;;  %v17194_v26 = vrot.slane %v17193_v63, 2  ;;  %v17195_v9 = vrot.slane %v10686_v49, 2  ;;  %v17196_v57 = vrot.slane %v10690_v48, 2 }
 0x299   : > { %v2986_v55 = vsel %vm2301_vm5, %v2930_v41, %v17188_v56  ;;  %v17197_v31 = vrot.slane %v10118_v1, 2  ;;  %v17198_v54 = vrot.slane %v10115_v21, 2  ;;  %v17199_v63 = vrot.slane %v10132_v17, 2 }
 0x29a   : > { %v2990_v56 = vsel %vm2301_vm5, %v2934_v23, %v17194_v26  ;;  %v2991_v59 = vsel %vm2301_vm5, %v2935_v18, %v17195_v9  ;;  %v2992_v58 = vsel %vm2301_vm5, %v2936_v7, %v17196_v57  ;;  %v17200_v49 = vrot.slane %v10456_v12, 2 }
 0x29b   : > { %v3009_v22 = vsel %vm2301_vm5, %v17198_v54, %v17197_v31  ;;  %v3010_v26 = vsel %vm2301_vm5, %v17199_v63, %v2926_v8  ;;  %v17201_v48 = vrot.slane %v10588_v36, 2  ;;  %v17202_v1 = vrot.slane %v17133_v43, 2 }
 0x29c   : > { %v3011_v9 = vsel %vm2301_vm5, %v17200_v49, %v2927_v51  ;;  %v17203_v31 = vrot.slane %v17134_v50, 2  ;;  %v17204_v8 = vrot.slane %v10014_v16, 2  ;;  %v17205_v51 = vrot.slane %v10020_v14, 2  ;;  %v7830_v16 = vld [vmem:[#allocation2 + $0x268] sm:$0xff] }
 0x29d   : > { %v3012_v57 = vsel %vm2301_vm5, %v17201_v48, %v2928_v2  ;;  %v3013_v54 = vsel %vm2301_vm5, %v17202_v1, %v2929_v33  ;;  %v17206_v2 = vrot.slane %v17135_v6, 2  ;;  %v17207_v33 = vrot.slane %v17136_v53, 2 }
 0x29e   : > { %v3014_v63 = vsel %vm2301_vm5, %v17203_v31, %v2930_v41  ;;  %v3015_v49 = vsel %vm2301_vm5, %v17204_v8, %v2931_v32  ;;  %v3016_v48 = vsel %vm2301_vm5, %v17205_v51, %v2932_v0  ;;  %v17208_v31 = vrot.slane %v17137_v11, 2 }
 0x29f   : > { %v3017_v1 = vsel %vm2301_vm5, %v17206_v2, %v2933_v44  ;;  %v3018_v41 = vsel %vm2301_vm5, %v17207_v33, %v2934_v23  ;;  %v17209_v8 = vrot.slane %v10544_v46, 2  ;;  %v11001_v51 = vmax.f32 %v10802_v61, %v3009_v22  ;;  %v17217_v61 = vld [vmem:[#allocation52_spill] sm:$0xff] }
 0x2a0   : > { %v3019_v32 = vsel %vm2301_vm5, %v17208_v31, %v2935_v18  ;;  %v11004_v44 = vmax.f32 %v10728_v38, %v2981_v34  ;;  %v11007_v2 = vmax.f32 %v10808_v29, %v3010_v26  ;;  %v11010_v23 = vmax.f32 %v10734_v19, %v2982_v24  ;;  %v17220_v38 = vld [vmem:[#allocation51_spill] sm:$0xff] }
 0x2a1   : > { %v3020_v0 = vsel %vm2301_vm5, %v17209_v8, %v2936_v7  ;;  %17210 = vst [vmem:[#allocation70_spill] sm:$0xff] %v11001_v51  ;;  %v11013_v33 = vmax.f32 %v10814_v4, %v3011_v9  ;;  %v11016_v18 = vmax.f32 %v10740_v62, %v2983_v5  ;;  %v11019_v7 = vmax.f32 %v10820_v27, %v3012_v57  ;;  %v17223_v19 = vld [vmem:[#allocation55_spill] sm:$0xff]  ;;  %v17226_v27 = vld [vmem:[#allocation25_spill] sm:$0xff] }
 0x2a2   : > { %17211 = vst [vmem:[#allocation33_spill] sm:$0xff] %v11004_v44  ;;  %17212 = vst [vmem:[#allocation34_spill] sm:$0xff] %v11007_v2  ;;  %v11022_v22 = vmax.f32 %v17217_v61, %v2984_v40  ;;  %v11025_v34 = vmax.f32 %v10826_v45, %v3013_v54  ;;  %v11028_v29 = vmax.f32 %v17220_v38, %v2985_v42  ;;  %v17229_v45 = vld [vmem:[#allocation23_spill] sm:$0xff]  ;;  %v2011_v50 = vrot.slane %v7830_v16, 6 }
 0x2a3   : > { %17213 = vst [vmem:[#allocation80_spill] sm:$0xff] %v11010_v23  ;;  %17214 = vst [vmem:[#allocation84_spill] sm:$0xff] %v11013_v33  ;;  %v11031_v24 = vmax.f32 %v10832_v10, %v3014_v63  ;;  %v11034_v4 = vmax.f32 %v17223_v19, %v2986_v55  ;;  %v11037_v62 = vmax.f32 %v10838_v20, %v3015_v49  ;;  %v17232_v10 = vld [vmem:[#allocation67_spill] sm:$0xff]  ;;  %v17235_v20 = vld [vmem:[#allocation4_spill] sm:$0xff] }
 0x2a4   : > { %17215 = vst [vmem:[#allocation8_spill] sm:$0xff] %v11016_v18  ;;  %17216 = vst [vmem:[#allocation9_spill] sm:$0xff] %v11019_v7  ;;  %v11040_v5 = vmax.f32 %v17226_v27, %v2987_v30  ;;  %v11043_v40 = vmax.f32 %v10844_v28, %v3016_v48  ;;  %v11046_v26 = vmax.f32 %v17229_v45, %v2988_v3  ;;  %v17238_v28 = vld [vmem:[#allocation71_spill] sm:$0xff] }
 0x2a5   : > { %17218 = vst [vmem:[#allocation86_spill] sm:$0xff] %v11022_v22  ;;  %17219 = vst [vmem:[#allocation85_spill] sm:$0xff] %v11025_v34  ;;  %v11049_v42 = vmax.f32 %v10850_v35, %v3017_v1  ;;  %v11052_v9 = vmax.f32 %v17232_v10, %v2989_v39  ;;  %v11055_v55 = vmax.f32 %v10856_v25, %v3018_v41  ;;  %v17241_v35 = vld [vmem:[#allocation7_spill] sm:$0xff]  ;;  %v17243_v39 = vld [vmem:[#allocation88_spill] sm:$0xff] }
 0x2a6   : > { %17221 = vst [vmem:[#allocation31_spill] sm:$0xff] %v11028_v29  ;;  %17222 = vst [vmem:[#allocation30_spill] sm:$0xff] %v11031_v24  ;;  %v11058_v57 = vmax.f32 %v17235_v20, %v2990_v56  ;;  %v11061_v30 = vmax.f32 %v10862_v15, %v3019_v32  ;;  %v11064_v54 = vmax.f32 %v17238_v28, %v2991_v59  ;;  %v17244_v25 = vld [vmem:[#allocation76_spill] sm:$0xff]  ;;  %v17245_v41 = vld [vmem:[#allocation37_spill] sm:$0xff] }
 0x2a7   : > { %17224 = vst [vmem:[#allocation14_spill] sm:$0xff] %v11034_v4  ;;  %17225 = vst [vmem:[#allocation102_spill] sm:$0xff] %v11037_v62  ;;  %v11067_v3 = vmax.f32 %v10868_v13, %v3020_v0  ;;  %v11070_v63 = vmax.f32 %v17241_v35, %v2992_v58  ;;  %v3670_v49 = vmax.f32 %v17243_v39, %v11001_v51  ;;  %v11084_v58 = vld [vmem:[#allocation2 + $0x260] sm:$0xff]  ;;  %v17246_v31 = vrot.slane %v17245_v41, 7  ;;  %v17247_v32 = vld [vmem:[#allocation22_spill] sm:$0xff] }
 0x2a8   : > { %17227 = vst [vmem:[#allocation100_spill] sm:$0xff] %v11040_v5  ;;  %17228 = vst [vmem:[#allocation15_spill] sm:$0xff] %v11043_v40  ;;  %v3671_v48 = vmax.f32 %v17244_v25, %v11004_v44  ;;  %v3678_v56 = vmax.f32 %v11019_v7, %v11025_v34  ;;  %v3679_v15 = vmax.f32 %v11022_v22, %v11028_v29  ;;  %v1307_v1 = vrot.slane %v11084_v58, 7  ;;  %v17250_v35 = vld [vmem:[#allocation41_spill] sm:$0xff] }
 0x2a9   : > { %17230 = vst [vmem:[#allocation16_spill] sm:$0xff] %v11046_v26  ;;  %17231 = vst [vmem:[#allocation106_spill] sm:$0xff] %v11049_v42  ;;  %v3686_v59 = vmax.f32 %v11043_v40, %v11049_v42  ;;  %v3687_v13 = vmax.f32 %v11046_v26, %v11052_v9  ;;  %v17248_v8 = vrot.slane %v17247_v32, 7  ;;  %v3710_v61 = vmax.f32 %v3670_v49, %v11007_v2 }
 0x2aa   : > { %17233 = vst [vmem:[#allocation105_spill] sm:$0xff] %v11052_v9  ;;  %17234 = vst [vmem:[#allocation18_spill] sm:$0xff] %v11055_v55  ;;  %v3711_v38 = vmax.f32 %v3671_v48, %v11010_v23  ;;  %v3718_v19 = vmax.f32 %v3678_v56, %v11031_v24  ;;  %v3719_v27 = vmax.f32 %v3679_v15, %v11034_v4  ;;  %v17251_v14 = vrot.slane %v17250_v35, 7 }
 0x2ab   : > { %17236 = vst [vmem:[#allocation21_spill] sm:$0xff] %v11058_v57  ;;  %17237 = vst [vmem:[#allocation116_spill] sm:$0xff] %v11061_v30  ;;  %v1450_v0 = vsel %vm1402_vm2, %v17248_v8, %v17246_v31  ;;  %v3726_v45 = vmax.f32 %v3686_v59, %v11055_v55  ;;  %v3727_v10 = vmax.f32 %v3687_v13, %v11058_v57  ;;  %v17249_v20 = vmov %v17248_v8  ;;  %v11115_v8 = vld [vmem:[#allocation2 + $0x278] sm:$0xff] }
 0x2ac   : > { %17239 = vst [vmem:[#allocation115_spill] sm:$0xff] %v11064_v54  ;;  %17240 = vst [vmem:[#allocation24_spill] sm:$0xff] %v11067_v3  ;;  %v1478_v28 = vsel %vm1402_vm2, %v1307_v1, %v17249_v20  ;;  %v11107_v49 = vsel %vm1402_vm2, %v17251_v14, %v1307_v1  ;;  %v3750_v48 = vmax.f32 %v3710_v61, %v11013_v33  ;;  %v1618_v20 = vrot.slane %v11115_v8, 1 }
 0x2ad   : > { %17242 = vst [vmem:[#allocation13_spill] sm:$0xff] %v11070_v63  ;;  %v3751_v56 = vmax.f32 %v3711_v38, %v11016_v18  ;;  %v3758_v15 = vmax.f32 %v3718_v19, %v11037_v62  ;;  %v3759_v59 = vmax.f32 %v3719_v27, %v11040_v5  ;;  %v3766_v13 = vmax.f32 %v3726_v45, %v11061_v30 }
 0x2ae   : > { %v3767_v31 = vmax.f32 %v3727_v10, %v11064_v54  ;;  %v17252_v35 = vrot.slane %v17245_v41, 1  ;;  %v17253_v14 = vrot.slane %v17247_v32, 1  ;;  %v11125_v61 = vmax.f32 %v3750_v48, %v11019_v7  ;;  %v11211_v7 = vld [vmem:[#allocation2 + $0x68] sm:$0xff]  ;;  %v11213_v54 = vld [vmem:[#allocation2 + $0x70] sm:$0xff] }
 0x2af   : > { %v11128_v38 = vmax.f32 %v3751_v56, %v11022_v22  ;;  %v11131_v19 = vmax.f32 %v3758_v15, %v11043_v40  ;;  %v11134_v27 = vmax.f32 %v3759_v59, %v11046_v26  ;;  %v11137_v45 = vmax.f32 %v3766_v13, %v11067_v3  ;;  %v11209_v22 = vld [vmem:[#allocation2 + $0x50] sm:$0xff] }
 0x2b0   : > { %v1675_v1 = vsel %vm1627_vm3, %v17253_v14, %v17252_v35  ;;  %17254 = vst [vmem:[#allocation5_spill] sm:$0xff] %v11125_v61  ;;  %v11140_v32 = vmax.f32 %v3767_v31, %v11070_v63  ;;  %v17260_v10 = vmov %v17252_v35  ;;  %v17261_v35 = vld [vmem:[#allocation42_spill] sm:$0xff]  ;;  %v2067_v59 = vrot.slane %v11115_v8, 6 }
 0x2b1   : > { %17255 = vst [vmem:[#allocation12_spill] sm:$0xff] %v11128_v38  ;;  %17256 = vst [vmem:[#allocation6_spill] sm:$0xff] %v11131_v19  ;;  %v1647_v48 = vsel %vm1627_vm3, %v17260_v10, %v1618_v20  ;;  %v17262_v56 = vrot.slane %v17261_v35, 1  ;;  %v1817_v14 = vmax.f32 %v1478_v28, %v1675_v1  ;;  %v3838_v41 = vmax.f32 %v11131_v19, %v11137_v45 }
 0x2b2   : > { %17257 = vst [vmem:[#allocation11_spill] sm:$0xff] %v11134_v27  ;;  %17258 = vst [vmem:[#allocation10_spill] sm:$0xff] %v11137_v45  ;;  %v1818_v31 = vmax.f32 %v1450_v0, %v1647_v48  ;;  %v3839_v10 = vmax.f32 %v11134_v27, %v11140_v32  ;;  %v1983_v35 = vrot.slane %v11084_v58, 6  ;;  %v2208_v28 = vrot.slane %v11084_v58, 2  ;;  %v11165_v48 = vld [vmem:[#allocation2 + $0x40] sm:$0xff] }
 0x2b3   : > { %17259 = vst [vmem:[#allocation108_spill] sm:$0xff] %v11140_v32  ;;  %v11150_v15 = vsel %vm1627_vm3, %v1618_v20, %v17262_v56  ;;  %v1929_v20 = vmax.f32 %v7830_v16, %v1817_v14  ;;  %v7831_v56 = vld [vmem:[#allocation2 + $0x270] sm:$0xff]  ;;  %v2236_v1 = vrot.slane %v7830_v16, 2  ;;  %v2292_v32 = vrot.slane %v11115_v8, 2  ;;  %v11196_v27 = vld [vmem:[#allocation2 + $0x60] sm:$0xff] }
 0x2b4   : > { %v1930_v63 = vmax.f32 %v7831_v56, %v1818_v31  ;;  %v2039_v3 = vrot.slane %v7831_v56, 6  ;;  %v7455_v26 = vpack.c.bf16 %v3839_v10, %v3838_v41  ;;  %v2152_v0 = vsel %vm2076_vm4, %v1983_v35, %v2011_v50 }
 0x2b5   : > { %v11175_v31 = vsel %vm2076_vm4, %v2067_v59, %v1983_v35  ;;  %v2264_v41 = vrot.slane %v7831_v56, 2  ;;  %v11182_v16 = vsel %vm2301_vm5, %v2208_v28, %v2236_v1  ;;  %v3556_v45 = vmax.f32 %v17135_v6, %v17136_v53  ;;  %v11194_v56 = vld [vmem:[#allocation2 + $0x48] sm:$0xff] }
 0x2b6   : > { %v11169_v13 = vsel %vm2076_vm4, %v2039_v3, %v2067_v59  ;;  %v2124_v14 = vsel %vm2076_vm4, %v2011_v50, %v2039_v3  ;;  %7457 = vmatprep.subr.msk.bf16.mxu1 %vm9487_vm6, %v7455_v26  ;;  %v3557_v50 = vmax.f32 %v17142_v60, %v17143_v47  ;;  %v3540_v59 = vmax.f32 %v10115_v21, %v10132_v17  ;;  %v17264_v26 = vld [vmem:[#allocation95_spill] sm:$0xff]  ;;  %v17265_v17 = vld [vmem:[#allocation92_spill] sm:$0xff] }
 0x2b7   : > { %v2349_v3 = vsel %vm2301_vm5, %v2236_v1, %v2264_v41  ;;  %v3541_v35 = vmax.f32 %v17264_v26, %v10135_v52  ;;  %v1290_v19 = vrot.slane %v11165_v48, 7  ;;  %v2321_v6 = vsel %vm2301_vm5, %v2264_v41, %v2292_v32  ;;  %v17266_v52 = vld [vmem:[#allocation74_spill] sm:$0xff] }
 0x2b8   : > { %v11203_v60 = vsel %vm2301_vm5, %v2292_v32, %v2208_v28  ;;  %v2491_v1 = vmax.f32 %v2152_v0, %v2349_v3  ;;  %v3588_v47 = vmax.f32 %v3556_v45, %v17137_v11  ;;  %v2492_v21 = vmax.f32 %v2124_v14, %v2321_v6  ;;  %v11218_v0 = vld [vmem:[#allocation2 + $0x58] sm:$0xff]  ;;  %v17267_v14 = vld [vmem:[#allocation60_spill] sm:$0xff] }
 0x2b9   : > { %v3589_v53 = vmax.f32 %v3557_v50, %v17265_v17  ;;  %v3572_v26 = vmax.f32 %v3540_v59, %v10456_v12  ;;  %v3573_v40 = vmax.f32 %v3541_v35, %v17266_v52  ;;  %v1291_v6 = vrot.slane %v11196_v27, 7  ;;  %v17268_v59 = vld [vmem:[#allocation19_spill] sm:$0xff] }
 0x2ba   : > { %v11215_v41 = vmax.f32 %v1929_v20, %v2491_v1  ;;  %v3620_v32 = vmax.f32 %v3588_v47, %v10544_v46  ;;  %v1318_v45 = vrot.slane %v11194_v56, 7  ;;  %v11222_v28 = vmax.f32 %v1930_v63, %v2492_v21  ;;  %v11227_v52 = vld [vmem:[#allocation2 + $0x78] sm:$0xff]  ;;  %v17269_v63 = vld [vmem:[#allocation97_spill] sm:$0xff] }
 0x2bb   : > { %v3621_v50 = vmax.f32 %v3589_v53, %v17267_v14  ;;  %v3604_v3 = vmax.f32 %v3572_v26, %v10588_v36  ;;  %v3605_v35 = vmax.f32 %v3573_v40, %v17268_v59  ;;  %v1319_v47 = vrot.slane %v11211_v7, 7 }
 0x2bc   : > { %v3652_v20 = vmax.f32 %v3620_v32, %v11215_v41  ;;  %v1346_v1 = vrot.slane %v11209_v22, 7  ;;  %v1347_v46 = vrot.slane %v11213_v54, 7  ;;  %v1374_v26 = vrot.slane %v11218_v0, 7 }
 0x2bd   : > { %v3653_v12 = vmax.f32 %v3621_v50, %v11222_v28  ;;  %v3636_v21 = vmax.f32 %v3604_v3, %v17133_v43  ;;  %v3637_v53 = vmax.f32 %v3605_v35, %v17269_v63  ;;  %v1375_v40 = vrot.slane %v11227_v52, 7 }
 0x2be   : > { %v1433_v59 = vsel %vm1402_vm2, %v1318_v45, %v1346_v1  ;;  %v1434_v32 = vsel %vm1402_vm2, %v1319_v47, %v1347_v46  ;;  %v1461_v36 = vsel %vm1402_vm2, %v1290_v19, %v1318_v45  ;;  %v1405_v50 = vsel %vm1402_vm2, %v1346_v1, %v1374_v26 }
 0x2bf   : > { %v7377_v14 = vpack.c.bf16 %v3653_v12, %v3652_v20  ;;  %v7380_v17 = vpack.c.bf16 %v3637_v53, %v3636_v21  ;;  %v1462_v3 = vsel %vm1402_vm2, %v1291_v6, %v1319_v47  ;;  %v1406_v35 = vsel %vm1402_vm2, %v1347_v46, %v1375_v40 }
 0x2c0   : > { %v1489_v63 = vsel %vm1402_vm2, %v1374_v26, %v1290_v19  ;;  %v1490_v43 = vsel %vm1402_vm2, %v1375_v40, %v1291_v6  ;;  %v1517_v11 = vrot.slane %v11165_v48, 1  ;;  %v1518_v12 = vrot.slane %v11196_v27, 1 }
 0x2c1   : > { %7379 = vmatprep.subr.msk.bf16.mxu0 %vm9487_vm6, %v7377_v14  ;;  %v1545_v45 = vrot.slane %v11194_v56, 1  ;;  %v1546_v20 = vrot.slane %v11211_v7, 1  ;;  %v1573_v47 = vrot.slane %v11209_v22, 1  ;;  %v1574_v46 = vrot.slane %v11213_v54, 1 }
 0x2c2   : > { %7382 = vmatpush3.bf16.xpose.msk.msra.mxu0 %vm9487_vm6, %v7380_v17  ;;  %v1601_v19 = vrot.slane %v11218_v0, 1  ;;  %v1602_v6 = vrot.slane %v11227_v52, 1  ;;  %v1966_v1 = vrot.slane %v11165_v48, 6  ;;  %v1967_v26 = vrot.slane %v11196_v27, 6 }
 0x2c3   : > { %v1658_v14 = vsel %vm1627_vm3, %v1545_v45, %v1573_v47  ;;  %v1686_v21 = vsel %vm1627_vm3, %v1517_v11, %v1545_v45  ;;  %v1687_v53 = vsel %vm1627_vm3, %v1518_v12, %v1546_v20  ;;  %v1659_v10 = vsel %vm1627_vm3, %v1546_v20, %v1574_v46 }
 0x2c4   : > { %v1630_v17 = vsel %vm1627_vm3, %v1573_v47, %v1601_v19  ;;  %v1631_v40 = vsel %vm1627_vm3, %v1574_v46, %v1602_v6  ;;  %v1714_v38 = vsel %vm1627_vm3, %v1601_v19, %v1517_v11  ;;  %v1715_v45 = vsel %vm1627_vm3, %v1602_v6, %v1518_v12 }
 0x2c5   : > { %v1748_v61 = vmax.f32 %v1489_v63, %v1686_v21  ;;  %v1749_v30 = vmax.f32 %v1461_v36, %v1658_v14  ;;  %v1750_v5 = vmax.f32 %v1433_v59, %v1630_v17  ;;  %v1751_v62 = vmax.f32 %v1405_v50, %v1714_v38  ;;  %v17270_v17 = vld [vmem:[#allocation119_spill] sm:$0xff] }
 0x2c6   : > { %v1752_v18 = vmax.f32 %v1490_v43, %v1687_v53  ;;  %v1753_v33 = vmax.f32 %v1462_v3, %v1659_v10  ;;  %v1754_v9 = vmax.f32 %v1434_v32, %v1631_v40  ;;  %v1755_v47 = vmax.f32 %v1406_v35, %v1715_v45 }
 0x2c7   : > { %v1860_v57 = vmax.f32 %v11165_v48, %v1748_v61  ;;  %v1861_v25 = vmax.f32 %v11194_v56, %v1749_v30  ;;  %v1862_v20 = vmax.f32 %v11209_v22, %v1750_v5  ;;  %v1863_v46 = vmax.f32 %v11218_v0, %v1751_v62 }
 0x2c8   : > { %v1864_v11 = vmax.f32 %v11196_v27, %v1752_v18  ;;  %v1865_v12 = vmax.f32 %v11211_v7, %v1753_v33  ;;  %v1866_v36 = vmax.f32 %v11213_v54, %v1754_v9  ;;  %v1867_v38 = vmax.f32 %v11227_v52, %v1755_v47 }
 0x2c9   : > { %v1994_v43 = vrot.slane %v11194_v56, 6  ;;  %v1995_v10 = vrot.slane %v11211_v7, 6  ;;  %v2022_v61 = vrot.slane %v11209_v22, 6  ;;  %v2023_v30 = vrot.slane %v11213_v54, 6 }
 0x2ca   : > { %v2050_v5 = vrot.slane %v11218_v0, 6  ;;  %v2051_v62 = vrot.slane %v11227_v52, 6  ;;  %v2191_v18 = vrot.slane %v11165_v48, 2  ;;  %v2192_v63 = vrot.slane %v11196_v27, 2 }
 0x2cb   : > { %v2107_v33 = vsel %vm2076_vm4, %v1994_v43, %v2022_v61  ;;  %v2135_v9 = vsel %vm2076_vm4, %v1966_v1, %v1994_v43  ;;  %v2136_v59 = vsel %vm2076_vm4, %v1967_v26, %v1995_v10  ;;  %v2108_v48 = vsel %vm2076_vm4, %v1995_v10, %v2023_v30 }
 0x2cc   : > { %v2079_v32 = vsel %vm2076_vm4, %v2022_v61, %v2050_v5  ;;  %v2080_v50 = vsel %vm2076_vm4, %v2023_v30, %v2051_v62  ;;  %v2163_v3 = vsel %vm2076_vm4, %v2050_v5, %v1966_v1  ;;  %v2164_v35 = vsel %vm2076_vm4, %v2051_v62, %v1967_v26 }
 0x2cd   : > { %v2219_v19 = vrot.slane %v11194_v56, 2  ;;  %v2220_v6 = vrot.slane %v11211_v7, 2  ;;  %v2247_v27 = vrot.slane %v11209_v22, 2  ;;  %v2248_v14 = vrot.slane %v11213_v54, 2  ;;  %v17271_v22 = vld [vmem:[#allocation117_spill] sm:$0xff] }
 0x2ce   : > { %v2275_v21 = vrot.slane %v11218_v0, 2  ;;  %v2276_v53 = vrot.slane %v11227_v52, 2  ;;  %v1816_v40 = vmax.f32 %v11107_v49, %v17270_v17  ;;  %v1819_v56 = vmax.f32 %v17271_v22, %v11150_v15 }
 0x2cf   : > { %v2332_v1 = vsel %vm2301_vm5, %v2219_v19, %v2247_v27  ;;  %v2360_v26 = vsel %vm2301_vm5, %v2191_v18, %v2219_v19  ;;  %v2361_v7 = vsel %vm2301_vm5, %v2192_v63, %v2220_v6  ;;  %v2333_v49 = vsel %vm2301_vm5, %v2220_v6, %v2248_v14 }
 0x2d0   : > { %v2304_v54 = vsel %vm2301_vm5, %v2247_v27, %v2275_v21  ;;  %v2305_v52 = vsel %vm2301_vm5, %v2248_v14, %v2276_v53  ;;  %v2388_v0 = vsel %vm2301_vm5, %v2275_v21, %v2191_v18  ;;  %v2389_v45 = vsel %vm2301_vm5, %v2276_v53, %v2192_v63 }
 0x2d1   : > { %v2422_v47 = vmax.f32 %v2163_v3, %v2360_v26  ;;  %v2423_v43 = vmax.f32 %v2135_v9, %v2332_v1  ;;  %v2424_v10 = vmax.f32 %v2107_v33, %v2304_v54  ;;  %v2425_v61 = vmax.f32 %v2079_v32, %v2388_v0 }
 0x2d2   : > { %v2426_v15 = vmax.f32 %v2164_v35, %v2361_v7  ;;  %v2427_v30 = vmax.f32 %v2136_v59, %v2333_v49  ;;  %v2428_v5 = vmax.f32 %v2108_v48, %v2305_v52  ;;  %v2429_v62 = vmax.f32 %v2080_v50, %v2389_v45 }
 0x2d3   : > { %v11342_v19 = vmax.f32 %v1860_v57, %v2422_v47  ;;  %v11344_v27 = vmax.f32 %v1861_v25, %v2423_v43  ;;  %v11346_v17 = vmax.f32 %v1862_v20, %v2424_v10  ;;  %v11348_v6 = vmax.f32 %v1863_v46, %v2425_v61  ;;  %v17292_v10 = vld [vmem:[#allocation76_spill] sm:$0xff]  ;;  %v17293_v43 = vld [vmem:[#allocation21_spill] sm:$0xff] }
 0x2d4   : > { %v11350_v18 = vmax.f32 %v1864_v11, %v2426_v15  ;;  %v11352_v14 = vmax.f32 %v1865_v12, %v2427_v30  ;;  %v11354_v63 = vmax.f32 %v1866_v36, %v2428_v5  ;;  %v11356_v33 = vmax.f32 %v1867_v38, %v2429_v62  ;;  %v17298_v38 = vld [vmem:[#allocation100_spill] sm:$0xff] }
 0x2d5   : > { %17272 = vst [vmem:[#allocation40_spill] sm:$0xff] %v11342_v19  ;;  %17273 = vst [vmem:[#allocation36_spill] sm:$0xff] %v11344_v27  ;;  %v16239_v9 = vrot.slane %v11342_v19, 6  ;;  %v2668_v59 = vrot.slane %v11344_v27, 6  ;;  %v16241_v57 = vrot.slane %v11346_v17, 6  ;;  %v16237_v32 = vrot.slane %v11344_v27, 2 }
 0x2d6   : > { %17274 = vst [vmem:[#allocation114_spill] sm:$0xff] %v11346_v17  ;;  %17275 = vst [vmem:[#allocation109_spill] sm:$0xff] %v11348_v6  ;;  %v16238_v25 = vrot.slane %v11350_v18, 6  ;;  %v2669_v20 = vrot.slane %v11352_v14, 6  ;;  %v16240_v46 = vrot.slane %v11354_v63, 6  ;;  %v16236_v3 = vrot.slane %v11352_v14, 2 }
 0x2d7   : > { %17276 = vst [vmem:[#allocation45_spill] sm:$0xff] %v11350_v18  ;;  %17277 = vst [vmem:[#allocation38_spill] sm:$0xff] %v11352_v14  ;;  %v2780_v12 = vsel %vm2076_vm4, %v2668_v59, %v16241_v57  ;;  %v2808_v36 = vsel %vm2076_vm4, %v16239_v9, %v2668_v59  ;;  %v2920_v35 = vrot.slane %v11346_v17, 2  ;;  %v2921_v21 = vrot.slane %v11354_v63, 2  ;;  %v17300_v57 = vld [vmem:[#allocation5_spill] sm:$0xff]  ;;  %v17306_v14 = vld [vmem:[#allocation16_spill] sm:$0xff] }
 0x2d8   : > { %17278 = vst [vmem:[#allocation118_spill] sm:$0xff] %v11354_v63  ;;  %17279 = vst [vmem:[#allocation35_spill] sm:$0xff] %v11356_v33  ;;  %v2781_v50 = vsel %vm2076_vm4, %v2669_v20, %v16240_v46  ;;  %v2809_v48 = vsel %vm2076_vm4, %v16238_v25, %v2669_v20  ;;  %v16235_v53 = vrot.slane %v11348_v6, 2  ;;  %v16234_v1 = vrot.slane %v11356_v33, 2  ;;  %v17286_v20 = vld [vmem:[#allocation96_spill] sm:$0xff]  ;;  %v1257_v18 = vld [vmem:[#allocation2 + $0x288] sm:$0xff] }
 0x2d9   : > { %v1928_v26 = vmax.f32 %v11084_v58, %v1816_v40  ;;  %v3004_v7 = vsel %vm2301_vm5, %v16237_v32, %v2920_v35  ;;  %v1931_v22 = vmax.f32 %v11115_v8, %v1819_v56  ;;  %v2490_v54 = vmax.f32 %v11175_v31, %v11182_v16  ;;  %v17299_v25 = vld [vmem:[#allocation116_spill] sm:$0xff]  ;;  %v1259_v19 = vld [vmem:[#allocation2 + $0x298] sm:$0xff]  ;;  %v17308_v17 = vld [vmem:[#allocation13_spill] sm:$0xff] }
 0x2da   : > { %v2493_v52 = vmax.f32 %v11169_v13, %v11203_v60  ;;  %v2976_v49 = vsel %vm2301_vm5, %v2920_v35, %v16235_v53  ;;  %v2977_v58 = vsel %vm2301_vm5, %v2921_v21, %v16234_v1  ;;  %v3005_v8 = vsel %vm2301_vm5, %v16236_v3, %v2921_v21  ;;  %v17294_v1 = vld [vmem:[#allocation105_spill] sm:$0xff]  ;;  %v17297_v53 = vld [vmem:[#allocation102_spill] sm:$0xff]  ;;  %v11479_v46 = vld [vmem:[#allocation2 + $0x280] sm:$0xff] }
 0x2db   : > { %v11410_v40 = vmax.f32 %v2808_v36, %v3004_v7  ;;  %v11412_v31 = vmax.f32 %v2780_v12, %v2976_v49  ;;  %v11414_v60 = vmax.f32 %v2809_v48, %v3005_v8  ;;  %v11416_v13 = vmax.f32 %v2781_v50, %v2977_v58  ;;  %v17287_v36 = vld [vmem:[#allocation28_spill] sm:$0xff]  ;;  %v17289_v49 = vld [vmem:[#allocation82_spill] sm:$0xff] }
 0x2dc   : > { %v11418_v16 = vmax.f32 %v1928_v26, %v2490_v54  ;;  %v11422_v45 = vmax.f32 %v1931_v22, %v2493_v52  ;;  %v2685_v47 = vrot.slane %v11215_v41, 6  ;;  %v16245_v5 = vrot.slane %v11222_v28, 6  ;;  %v17288_v54 = vld [vmem:[#allocation90_spill] sm:$0xff]  ;;  %v17307_v27 = vld [vmem:[#allocation24_spill] sm:$0xff] }
 0x2dd   : > { %17280 = vst [vmem:[#allocation47_spill] sm:$0xff] %v11410_v40  ;;  %17281 = vst [vmem:[#allocation52_spill] sm:$0xff] %v11412_v31  ;;  %v3662_v61 = vmax.f32 %v11410_v40, %v11414_v60  ;;  %v3663_v15 = vmax.f32 %v11412_v31, %v11416_v13  ;;  %v16243_v62 = vrot.slane %v11215_v41, 2  ;;  %v2937_v59 = vrot.slane %v11222_v28, 2  ;;  %v17304_v40 = vld [vmem:[#allocation86_spill] sm:$0xff]  ;;  %v17305_v31 = vld [vmem:[#allocation15_spill] sm:$0xff] }
 0x2de   : > { %17282 = vst [vmem:[#allocation51_spill] sm:$0xff] %v11414_v60  ;;  %17283 = vst [vmem:[#allocation55_spill] sm:$0xff] %v11416_v13  ;;  %v16244_v30 = vrot.slane %v11418_v16, 6  ;;  %v16242_v48 = vrot.slane %v11422_v45, 2  ;;  %v3672_v35 = vmax.f32 %v11001_v51, %v11007_v2  ;;  %v2797_v21 = vsel %vm2076_vm4, %v2685_v47, %v16245_v5 }
 0x2df   : > { %17284 = vst [vmem:[#allocation25_spill] sm:$0xff] %v11418_v16  ;;  %17285 = vst [vmem:[#allocation23_spill] sm:$0xff] %v11422_v45  ;;  %v3702_v12 = vmax.f32 %v3662_v61, %v17286_v20  ;;  %v3703_v50 = vmax.f32 %v3663_v15, %v17287_v36  ;;  %v3021_v7 = vsel %vm2301_vm5, %v16243_v62, %v2937_v59  ;;  %v1563_v33 = vrot.slane %v1257_v18, 1 }
 0x2e0   : > { %v2825_v26 = vsel %vm2076_vm4, %v16244_v30, %v2685_v47  ;;  %v3673_v22 = vmax.f32 %v11004_v44, %v11010_v23  ;;  %v2993_v8 = vsel %vm2301_vm5, %v2937_v59, %v16242_v48  ;;  %v3680_v15 = vmax.f32 %v11025_v34, %v11031_v24  ;;  %v17303_v30 = vld [vmem:[#allocation9_spill] sm:$0xff] }
 0x2e1   : > { %v3742_v52 = vmax.f32 %v3702_v12, %v17288_v54  ;;  %v3743_v58 = vmax.f32 %v3703_v50, %v17289_v49  ;;  %v11460_v61 = vmax.f32 %v2825_v26, %v3021_v7  ;;  %v11462_v47 = vmax.f32 %v2797_v21, %v2993_v8  ;;  %v17295_v26 = vld [vmem:[#allocation84_spill] sm:$0xff] }
 0x2e2   : > { %v3681_v0 = vmax.f32 %v11028_v29, %v11034_v4  ;;  %v3688_v12 = vmax.f32 %v11049_v42, %v11055_v55  ;;  %v3689_v59 = vmax.f32 %v17294_v1, %v17293_v43  ;;  %v3712_v7 = vmax.f32 %v3672_v35, %v17295_v26  ;;  %v17296_v21 = vld [vmem:[#allocation8_spill] sm:$0xff] }
 0x2e3   : > { %17290 = vst [vmem:[#allocation67_spill] sm:$0xff] %v11460_v61  ;;  %17291 = vst [vmem:[#allocation4_spill] sm:$0xff] %v11462_v47  ;;  %v3782_v50 = vmax.f32 %v3742_v52, %v17243_v39  ;;  %v3783_v56 = vmax.f32 %v3743_v58, %v17292_v10  ;;  %v3713_v8 = vmax.f32 %v3673_v22, %v17296_v21  ;;  %v17301_v52 = vld [vmem:[#allocation12_spill] sm:$0xff]  ;;  %v17302_v58 = vld [vmem:[#allocation115_spill] sm:$0xff]  ;;  %v1619_v45 = vrot.slane %v1259_v19, 1 }
 0x2e4   : > { %v3720_v3 = vmax.f32 %v3680_v15, %v17297_v53  ;;  %v3721_v32 = vmax.f32 %v3681_v0, %v17298_v38  ;;  %v3728_v9 = vmax.f32 %v3688_v12, %v17299_v25  ;;  %v3729_v62 = vmax.f32 %v3689_v59, %v17302_v58  ;;  %v1258_v12 = vld [vmem:[#allocation2 + $0x290] sm:$0xff] }
 0x2e5   : > { %v3822_v11 = vmax.f32 %v3782_v50, %v17300_v57  ;;  %v3823_v48 = vmax.f32 %v3783_v56, %v17301_v52  ;;  %v3752_v5 = vmax.f32 %v3712_v7, %v17303_v30  ;;  %v3753_v35 = vmax.f32 %v3713_v8, %v17304_v40 }
 0x2e6   : > { %v3760_v22 = vmax.f32 %v3720_v3, %v17305_v31  ;;  %v3761_v15 = vmax.f32 %v3721_v32, %v17306_v14  ;;  %v3768_v0 = vmax.f32 %v3728_v9, %v17307_v27  ;;  %v3769_v50 = vmax.f32 %v3729_v62, %v17308_v17 }
 0x2e7   : > { %v7458_v63 = vpack.c.bf16 %v3823_v48, %v3822_v11  ;;  %v11491_v56 = vmax.f32 %v3752_v5, %v11025_v34  ;;  %v1308_v59 = vrot.slane %v11479_v46, 7  ;;  %v11495_v7 = vmax.f32 %v3753_v35, %v11028_v29  ;;  %v17320_v34 = vld [vmem:[#allocation50_spill] sm:$0xff] }
 0x2e8   : > { %v11498_v3 = vmax.f32 %v3760_v22, %v11049_v42  ;;  %v11501_v32 = vmax.f32 %v3761_v15, %v17294_v1  ;;  %v11504_v9 = vmax.f32 %v3768_v0, %v11460_v61  ;;  %v11509_v5 = vmax.f32 %v3769_v50, %v11462_v47 }
 0x2e9   : > { %17309 = vst [vmem:[#allocation71_spill] sm:$0xff] %v11491_v56  ;;  %17310 = vst [vmem:[#allocation7_spill] sm:$0xff] %v11495_v7  ;;  %7460 = vmatpush3.bf16.xpose.msk.msra.mxu1 %vm9487_vm6, %v7458_v63  ;;  %v1336_v62 = vrot.slane %v1257_v18, 7  ;;  %v1364_v48 = vrot.slane %v1258_v12, 7  ;;  %v1392_v8 = vrot.slane %v1259_v19, 7  ;;  %v1535_v0 = vrot.slane %v11479_v46, 1 }
 0x2ea   : > { %17311 = vst [vmem:[#allocation37_spill] sm:$0xff] %v11498_v3  ;;  %17312 = vst [vmem:[#allocation22_spill] sm:$0xff] %v11501_v32  ;;  %v3840_v15 = vmax.f32 %v11498_v3, %v11504_v9  ;;  %v3841_v63 = vmax.f32 %v11501_v32, %v11509_v5  ;;  %v1591_v16 = vrot.slane %v1258_v12, 1  ;;  %v1984_v3 = vrot.slane %v11479_v46, 6 }
 0x2eb   : > { %17313 = vst [vmem:[#allocation41_spill] sm:$0xff] %v11504_v9  ;;  %17315 = vst [vmem:[#allocation42_spill] sm:$0xff] %v11509_v5  ;;  %v1423_v50 = vsel %vm1402_vm2, %v1364_v48, %v1392_v8  ;;  %v1451_v6 = vsel %vm1402_vm2, %v1336_v62, %v1364_v48  ;;  %v1479_v35 = vsel %vm1402_vm2, %v1308_v59, %v1336_v62  ;;  %v2012_v52 = vrot.slane %v1257_v18, 6 }
 0x2ec   : > { %v1507_v22 = vsel %vm1402_vm2, %v1392_v8, %v1308_v59  ;;  %v7461_v9 = vpack.c.bf16 %v3841_v63, %v3840_v15  ;;  %v2040_v5 = vrot.slane %v1258_v12, 6  ;;  %v1648_v32 = vsel %vm1627_vm3, %v1591_v16, %v1619_v45 }
 0x2ed   : > { %v1676_v48 = vsel %vm1627_vm3, %v1563_v33, %v1591_v16  ;;  %v1704_v62 = vsel %vm1627_vm3, %v1535_v0, %v1563_v33  ;;  %v1732_v59 = vsel %vm1627_vm3, %v1619_v45, %v1535_v0  ;;  %v1822_v63 = vmax.f32 %v1451_v6, %v1648_v32 }
 0x2ee   : > { %7463 = vmatprep.subr.msk.bf16.mxu1 %vm9487_vm6, %v7461_v9  ;;  %v1820_v8 = vmax.f32 %v1507_v22, %v1704_v62  ;;  %v1821_v15 = vmax.f32 %v1479_v35, %v1676_v48  ;;  %v1823_v57 = vmax.f32 %v1423_v50, %v1732_v59  ;;  %v2068_v47 = vrot.slane %v1259_v19, 6  ;;  %v17316_v50 = vld [vmem:[#allocation83_spill] sm:$0xff]  ;;  %v17317_v48 = vld [vmem:[#allocation110_spill] sm:$0xff] }
 0x2ef   : > { %v2125_v61 = vsel %vm2076_vm4, %v2012_v52, %v2040_v5  ;;  %v2153_v16 = vsel %vm2076_vm4, %v1984_v3, %v2012_v52  ;;  %v2209_v1 = vrot.slane %v11479_v46, 2  ;;  %v1934_v45 = vmax.f32 %v1258_v12, %v1822_v63  ;;  %v17318_v52 = vld [vmem:[#allocation92_spill] sm:$0xff]  ;;  %v17319_v59 = vld [vmem:[#allocation111_spill] sm:$0xff] }
 0x2f0   : > { %v1932_v33 = vmax.f32 %v11479_v46, %v1820_v8  ;;  %v1933_v42 = vmax.f32 %v1257_v18, %v1821_v15  ;;  %v1935_v0 = vmax.f32 %v1259_v19, %v1823_v57  ;;  %v2097_v9 = vsel %vm2076_vm4, %v2040_v5, %v2068_v47  ;;  %v17321_v46 = vld [vmem:[#allocation79_spill] sm:$0xff]  ;;  %v17322_v15 = vld [vmem:[#allocation74_spill] sm:$0xff] }
 0x2f1   : > { %v2181_v6 = vsel %vm2076_vm4, %v2068_v47, %v1984_v3  ;;  %v2237_v32 = vrot.slane %v1257_v18, 2  ;;  %v2265_v35 = vrot.slane %v1258_v12, 2  ;;  %v2293_v22 = vrot.slane %v1259_v19, 2  ;;  %v17323_v47 = vld [vmem:[#allocation87_spill] sm:$0xff] }
 0x2f2   : > { %v3558_v62 = vmax.f32 %v17317_v48, %v17316_v50  ;;  %v3559_v29 = vmax.f32 %v17319_v59, %v17318_v52  ;;  %v3542_v8 = vmax.f32 %v17321_v46, %v17320_v34  ;;  %v3543_v18 = vmax.f32 %v17323_v47, %v17322_v15  ;;  %v17324_v34 = vld [vmem:[#allocation59_spill] sm:$0xff]  ;;  %v17325_v50 = vld [vmem:[#allocation60_spill] sm:$0xff]  ;;  %v17328_v15 = vld [vmem:[#allocation61_spill] sm:$0xff] }
 0x2f3   : > { %v2350_v57 = vsel %vm2301_vm5, %v2237_v32, %v2265_v35  ;;  %v2378_v5 = vsel %vm2301_vm5, %v2209_v1, %v2237_v32  ;;  %v3664_v19 = vmax.f32 %v11414_v60, %v17286_v20  ;;  %v2322_v12 = vsel %vm2301_vm5, %v2265_v35, %v2293_v22  ;;  %v17329_v20 = vld [vmem:[#allocation19_spill] sm:$0xff] }
 0x2f4   : > { %v2406_v3 = vsel %vm2301_vm5, %v2293_v22, %v2209_v1  ;;  %v2494_v63 = vmax.f32 %v2181_v6, %v2378_v5  ;;  %v2495_v48 = vmax.f32 %v2153_v16, %v2350_v57  ;;  %v2496_v46 = vmax.f32 %v2125_v61, %v2322_v12  ;;  %v17331_v16 = vld [vmem:[#allocation98_spill] sm:$0xff]  ;;  %v17332_v6 = vld [vmem:[#allocation97_spill] sm:$0xff] }
 0x2f5   : > { %v2497_v59 = vmax.f32 %v2097_v9, %v2406_v3  ;;  %v3590_v52 = vmax.f32 %v3558_v62, %v17324_v34  ;;  %v3591_v32 = vmax.f32 %v3559_v29, %v17325_v50  ;;  %v3574_v60 = vmax.f32 %v3542_v8, %v17328_v15  ;;  %v17333_v62 = vld [vmem:[#allocation27_spill] sm:$0xff] }
 0x2f6   : > { %v11569_v17 = vmax.f32 %v1932_v33, %v2494_v63  ;;  %v11571_v47 = vmax.f32 %v1933_v42, %v2495_v48  ;;  %v3575_v27 = vmax.f32 %v3543_v18, %v17329_v20  ;;  %v11575_v35 = vmax.f32 %v1934_v45, %v2496_v46 }
 0x2f7   : > { %v11577_v14 = vmax.f32 %v1935_v0, %v2497_v59  ;;  %v3622_v1 = vmax.f32 %v3590_v52, %v11215_v41  ;;  %v3623_v61 = vmax.f32 %v3591_v32, %v11222_v28  ;;  %v3606_v9 = vmax.f32 %v3574_v60, %v17331_v16  ;;  %v17334_v59 = vld [vmem:[#allocation77_spill] sm:$0xff] }
 0x2f8   : > { %17326 = vst [vmem:[#allocation119_spill] sm:$0xff] %v11569_v17  ;;  %17327 = vst [vmem:[#allocation117_spill] sm:$0xff] %v11571_v47  ;;  %v3607_v29 = vmax.f32 %v3575_v27, %v17332_v6  ;;  %v3665_v42 = vmax.f32 %v11416_v13, %v17287_v36  ;;  %v3704_v33 = vmax.f32 %v3664_v19, %v17288_v54  ;;  %v16286_v0 = vrot.slane %v11569_v17, 6  ;;  %v17340_v13 = vld [vmem:[#allocation85_spill] sm:$0xff] }
 0x2f9   : > { %17330 = vst [vmem:[#allocation121_spill] sm:$0xff] %v11577_v14  ;;  %v3654_v22 = vmax.f32 %v3622_v1, %v11571_v47  ;;  %v3655_v45 = vmax.f32 %v3623_v61, %v11575_v35  ;;  %v2686_v48 = vrot.slane %v11571_v47, 6  ;;  %v3638_v52 = vmax.f32 %v3606_v9, %v17333_v62 }
 0x2fa   : > { %v3639_v46 = vmax.f32 %v3607_v29, %v17334_v59  ;;  %v3705_v60 = vmax.f32 %v3665_v42, %v17289_v49  ;;  %v3744_v27 = vmax.f32 %v3704_v33, %v17243_v39  ;;  %v16287_v57 = vrot.slane %v11575_v35, 6 }
 0x2fb   : > { %v7383_v8 = vpack.c.bf16 %v3655_v45, %v3654_v22  ;;  %v2826_v5 = vsel %vm2076_vm4, %v16286_v0, %v2686_v48  ;;  %v16285_v18 = vrot.slane %v11571_v47, 2  ;;  %v2938_v63 = vrot.slane %v11575_v35, 2  ;;  %v11646_v0 = vld [vmem:[#allocation2 + $0x2a8] sm:$0xff] }
 0x2fc   : > { %v7386_v19 = vpack.c.bf16 %v3639_v46, %v3638_v52  ;;  %v3745_v12 = vmax.f32 %v3705_v60, %v17292_v10  ;;  %v3784_v3 = vmax.f32 %v3744_v27, %v11001_v51  ;;  %v2798_v32 = vsel %vm2076_vm4, %v2686_v48, %v16287_v57  ;;  %v11634_v60 = vld [vmem:[#allocation2 + $0x2a0] sm:$0xff]  ;;  %v11648_v57 = vld [vmem:[#allocation2 + $0x2b0] sm:$0xff] }
 0x2fd   : > { %7385 = vmatprep.subr.msk.bf16.mxu0 %vm9487_vm6, %v7383_v8  ;;  %v16284_v1 = vrot.slane %v11577_v14, 2  ;;  %v3674_v61 = vmax.f32 %v11007_v2, %v17295_v26  ;;  %v3675_v9 = vmax.f32 %v11010_v23, %v17296_v21  ;;  %v3022_v33 = vsel %vm2301_vm5, %v16285_v18, %v2938_v63 }
 0x2fe   : > { %7388 = vmatpush3.bf16.xpose.msk.msra.mxu0 %vm9487_vm6, %v7386_v19  ;;  %v3785_v29 = vmax.f32 %v3745_v12, %v11004_v44  ;;  %v3824_v42 = vmax.f32 %v3784_v3, %v11491_v56  ;;  %v3682_v22 = vmax.f32 %v11031_v24, %v17297_v53  ;;  %v11628_v48 = vmax.f32 %v2826_v5, %v3022_v33 }
 0x2ff   : > { %v2994_v45 = vsel %vm2301_vm5, %v2938_v63, %v16284_v1  ;;  %v3683_v52 = vmax.f32 %v11034_v4, %v17298_v38  ;;  %v3690_v46 = vmax.f32 %v11055_v55, %v17299_v25  ;;  %v3691_v19 = vmax.f32 %v17293_v43, %v17302_v58  ;;  %v17337_v63 = vld [vmem:[#allocation16_spill] sm:$0xff] }
 0x300   : > { %17335 = vst [vmem:[#allocation98_spill] sm:$0xff] %v11628_v48  ;;  %v3825_v27 = vmax.f32 %v3785_v29, %v11495_v7  ;;  %v11637_v8 = vmax.f32 %v2798_v32, %v2994_v45  ;;  %v3714_v12 = vmax.f32 %v3674_v61, %v17303_v30  ;;  %v3715_v5 = vmax.f32 %v3675_v9, %v17304_v40  ;;  %v17338_v1 = vld [vmem:[#allocation24_spill] sm:$0xff]  ;;  %v17339_v32 = vld [vmem:[#allocation13_spill] sm:$0xff]  ;;  %v17341_v61 = vld [vmem:[#allocation31_spill] sm:$0xff] }
 0x301   : > { %v3722_v3 = vmax.f32 %v3682_v22, %v17305_v31  ;;  %v3723_v33 = vmax.f32 %v3683_v52, %v17337_v63  ;;  %v3730_v18 = vmax.f32 %v3690_v46, %v17338_v1  ;;  %v3731_v45 = vmax.f32 %v3691_v19, %v17339_v32  ;;  %v17342_v9 = vld [vmem:[#allocation106_spill] sm:$0xff]  ;;  %v17343_v22 = vld [vmem:[#allocation105_spill] sm:$0xff]  ;;  %v17344_v52 = vld [vmem:[#allocation67_spill] sm:$0xff] }
 0x302   : > { %17336 = vst [vmem:[#allocation97_spill] sm:$0xff] %v11637_v8  ;;  %v7464_v29 = vpack.c.bf16 %v3825_v27, %v3824_v42  ;;  %v3754_v17 = vmax.f32 %v3714_v12, %v17340_v13  ;;  %v1309_v14 = vrot.slane %v11634_v60, 7  ;;  %v3755_v7 = vmax.f32 %v3715_v5, %v17341_v61  ;;  %v1263_v46 = vld [vmem:[#allocation2 + $0x2b8] sm:$0xff]  ;;  %v17345_v1 = vld [vmem:[#allocation4_spill] sm:$0xff] }
 0x303   : > { %v3762_v56 = vmax.f32 %v3722_v3, %v17342_v9  ;;  %v3763_v58 = vmax.f32 %v3723_v33, %v17343_v22  ;;  %v3770_v25 = vmax.f32 %v3730_v18, %v17344_v52  ;;  %v3771_v42 = vmax.f32 %v3731_v45, %v17345_v1 }
 0x304   : > { %7466 = vmatpush3.bf16.xpose.msk.msra.mxu1 %vm9487_vm6, %v7464_v29  ;;  %v11661_v27 = vmax.f32 %v3754_v17, %v11031_v24  ;;  %v1337_v19 = vrot.slane %v11646_v0, 7  ;;  %v1365_v12 = vrot.slane %v11648_v57, 7  ;;  %v11666_v5 = vmax.f32 %v3755_v7, %v11034_v4 }
 0x305   : > { %v11669_v3 = vmax.f32 %v3762_v56, %v11055_v55  ;;  %v11672_v18 = vmax.f32 %v3763_v58, %v17293_v43  ;;  %v11675_v33 = vmax.f32 %v3770_v25, %v11628_v48  ;;  %v11678_v29 = vmax.f32 %v3771_v42, %v11637_v8 }
 0x306   : > { %17346 = vst [vmem:[#allocation27_spill] sm:$0xff] %v11661_v27  ;;  %17347 = vst [vmem:[#allocation77_spill] sm:$0xff] %v11666_v5  ;;  %v1393_v17 = vrot.slane %v1263_v46, 7  ;;  %v1452_v45 = vsel %vm1402_vm2, %v1337_v19, %v1365_v12  ;;  %v1480_v7 = vsel %vm1402_vm2, %v1309_v14, %v1337_v19  ;;  %v1536_v48 = vrot.slane %v11634_v60, 1 }
 0x307   : > { %17348 = vst [vmem:[#allocation122_spill] sm:$0xff] %v11669_v3  ;;  %17349 = vst [vmem:[#allocation123_spill] sm:$0xff] %v11672_v18  ;;  %v3842_v25 = vmax.f32 %v11669_v3, %v11675_v33  ;;  %v3843_v42 = vmax.f32 %v11672_v18, %v11678_v29  ;;  %v1564_v43 = vrot.slane %v11646_v0, 1  ;;  %v1592_v56 = vrot.slane %v11648_v57, 1 }
 0x308   : > { %17350 = vst [vmem:[#allocation124_spill] sm:$0xff] %v11675_v33  ;;  %17351 = vst [vmem:[#allocation125_spill] sm:$0xff] %v11678_v29  ;;  %v1424_v8 = vsel %vm1402_vm2, %v1365_v12, %v1393_v17  ;;  %v1508_v19 = vsel %vm1402_vm2, %v1393_v17, %v1309_v14  ;;  %v1620_v55 = vrot.slane %v1263_v46, 1  ;;  %v1985_v58 = vrot.slane %v11634_v60, 6 }
 0x309   : > { %v2013_v33 = vrot.slane %v11646_v0, 6  ;;  %v7467_v3 = vpack.c.bf16 %v3843_v42, %v3842_v25  ;;  %v1705_v4 = vsel %vm1627_vm3, %v1536_v48, %v1564_v43  ;;  %v2041_v29 = vrot.slane %v11648_v57, 6 }
 0x30a   : > { %v2069_v18 = vrot.slane %v1263_v46, 6  ;;  %v1649_v12 = vsel %vm1627_vm3, %v1592_v56, %v1620_v55  ;;  %v1677_v14 = vsel %vm1627_vm3, %v1564_v43, %v1592_v56  ;;  %v1733_v17 = vsel %vm1627_vm3, %v1620_v55, %v1536_v48  ;;  %v11721_v55 = vld [vmem:[#allocation2 + $0x2c0] sm:$0xff]  ;;  %v17352_v56 = vld [vmem:[#allocation83_spill] sm:$0xff] }
 0x30b   : > { %v1824_v24 = vmax.f32 %v1508_v19, %v1705_v4  ;;  %7469 = vmatprep.subr.msk.bf16.mxu1 %vm9487_vm6, %v7467_v3  ;;  %v1825_v25 = vmax.f32 %v1480_v7, %v1677_v14  ;;  %v1826_v42 = vmax.f32 %v1452_v45, %v1649_v12  ;;  %v1827_v1 = vmax.f32 %v1424_v8, %v1733_v17  ;;  %v17353_v19 = vld [vmem:[#allocation92_spill] sm:$0xff]  ;;  %v17355_v14 = vld [vmem:[#allocation74_spill] sm:$0xff] }
 0x30c   : > { %v2098_v52 = vsel %vm2076_vm4, %v2041_v29, %v2069_v18  ;;  %v2126_v9 = vsel %vm2076_vm4, %v2013_v33, %v2041_v29  ;;  %v2154_v43 = vsel %vm2076_vm4, %v1985_v58, %v2013_v33  ;;  %v2182_v4 = vsel %vm2076_vm4, %v2069_v18, %v1985_v58  ;;  %v17354_v58 = vld [vmem:[#allocation50_spill] sm:$0xff] }
 0x30d   : > { %v1936_v22 = vmax.f32 %v11634_v60, %v1824_v24  ;;  %v1937_v48 = vmax.f32 %v11646_v0, %v1825_v25  ;;  %v1938_v8 = vmax.f32 %v11648_v57, %v1826_v42  ;;  %v1939_v3 = vmax.f32 %v1263_v46, %v1827_v1 }
 0x30e   : > { %v2210_v45 = vrot.slane %v11634_v60, 2  ;;  %v2238_v24 = vrot.slane %v11646_v0, 2  ;;  %v2266_v7 = vrot.slane %v11648_v57, 2  ;;  %v2294_v29 = vrot.slane %v1263_v46, 2 }
 0x30f   : > { %v3560_v33 = vmax.f32 %v17352_v56, %v17324_v34  ;;  %v3561_v18 = vmax.f32 %v17353_v19, %v17325_v50  ;;  %v3544_v12 = vmax.f32 %v17354_v58, %v17328_v15  ;;  %v3545_v17 = vmax.f32 %v17355_v14, %v17329_v20 }
 0x310   : > { %v1310_v1 = vrot.slane %v11721_v55, 7  ;;  %v2323_v0 = vsel %vm2301_vm5, %v2266_v7, %v2294_v29  ;;  %v2351_v57 = vsel %vm2301_vm5, %v2238_v24, %v2266_v7  ;;  %v2379_v60 = vsel %vm2301_vm5, %v2210_v45, %v2238_v24 }
 0x311   : > { %v2407_v46 = vsel %vm2301_vm5, %v2294_v29, %v2210_v45  ;;  %v2498_v25 = vmax.f32 %v2182_v4, %v2379_v60  ;;  %v2499_v42 = vmax.f32 %v2154_v43, %v2351_v57  ;;  %v2500_v56 = vmax.f32 %v2126_v9, %v2323_v0  ;;  %v1265_v45 = vld [vmem:[#allocation2 + $0x2c8] sm:$0xff]  ;;  %v1266_v29 = vld [vmem:[#allocation2 + $0x2d0] sm:$0xff] }
 0x312   : > { %v2501_v58 = vmax.f32 %v2098_v52, %v2407_v46  ;;  %v3592_v19 = vmax.f32 %v3560_v33, %v11215_v41  ;;  %v3593_v14 = vmax.f32 %v3561_v18, %v11222_v28  ;;  %v3576_v20 = vmax.f32 %v3544_v12, %v17331_v16  ;;  %v17361_v12 = vld [vmem:[#allocation113_spill] sm:$0xff] }
 0x313   : > { %v3577_v15 = vmax.f32 %v3545_v17, %v17332_v6  ;;  %v11749_v61 = vmax.f32 %v1936_v22, %v2498_v25  ;;  %v11751_v7 = vmax.f32 %v1937_v48, %v2499_v42  ;;  %v11753_v24 = vmax.f32 %v1938_v8, %v2500_v56 }
 0x314   : > { %v11755_v13 = vmax.f32 %v1939_v3, %v2501_v58  ;;  %v3624_v43 = vmax.f32 %v3592_v19, %v11571_v47  ;;  %v3625_v9 = vmax.f32 %v3593_v14, %v11575_v35  ;;  %v3608_v52 = vmax.f32 %v3576_v20, %v17333_v62  ;;  %v1267_v3 = vld [vmem:[#allocation2 + $0x2d8] sm:$0xff] }
 0x315   : > { %17356 = vst [vmem:[#allocation126_spill] sm:$0xff] %v11749_v61  ;;  %17357 = vst [vmem:[#allocation127_spill] sm:$0xff] %v11751_v7  ;;  %v3609_v4 = vmax.f32 %v3577_v15, %v17334_v59  ;;  %v17360_v15 = vld [vmem:[#allocation81_spill] sm:$0xff]  ;;  %v1338_v17 = vrot.slane %v1265_v45, 7  ;;  %v1366_v0 = vrot.slane %v1266_v29, 7  ;;  %v1394_v60 = vrot.slane %v1267_v3, 7 }
 0x316   : > { %17358 = vst [vmem:[#allocation128_spill] sm:$0xff] %v11753_v24  ;;  %17359 = vst [vmem:[#allocation129_spill] sm:$0xff] %v11755_v13  ;;  %v3656_v18 = vmax.f32 %v3624_v43, %v11751_v7  ;;  %v3657_v20 = vmax.f32 %v3625_v9, %v11753_v24  ;;  %v3640_v58 = vmax.f32 %v3608_v52, %v17360_v15  ;;  %v1537_v46 = vrot.slane %v11721_v55, 1 }
 0x317   : > { %v3641_v14 = vmax.f32 %v3609_v4, %v17361_v12  ;;  %v1565_v25 = vrot.slane %v1265_v45, 1  ;;  %v1453_v8 = vsel %vm1402_vm2, %v1338_v17, %v1366_v0  ;;  %v1481_v43 = vsel %vm1402_vm2, %v1310_v1, %v1338_v17 }
 0x318   : > { %v7389_v57 = vpack.c.bf16 %v3657_v20, %v3656_v18  ;;  %v1593_v56 = vrot.slane %v1266_v29, 1  ;;  %v1425_v9 = vsel %vm1402_vm2, %v1366_v0, %v1394_v60  ;;  %v1509_v52 = vsel %vm1402_vm2, %v1394_v60, %v1310_v1 }
 0x319   : > { %v7392_v42 = vpack.c.bf16 %v3641_v14, %v3640_v58  ;;  %v1621_v4 = vrot.slane %v1267_v3, 1  ;;  %v1706_v18 = vsel %vm1627_vm3, %v1537_v46, %v1565_v25  ;;  %v1986_v14 = vrot.slane %v11721_v55, 6 }
 0x31a   : > { %7391 = vmatprep.subr.msk.bf16.mxu0 %vm9487_vm6, %v7389_v57  ;;  %v1678_v20 = vsel %vm1627_vm3, %v1565_v25, %v1593_v56  ;;  %v1828_v58 = vmax.f32 %v1509_v52, %v1706_v18  ;;  %v2014_v17 = vrot.slane %v1265_v45, 6  ;;  %v2042_v60 = vrot.slane %v1266_v29, 6 }
 0x31b   : > { %7394 = vmatpush3.bf16.xpose.msk.msra.mxu0 %vm9487_vm6, %v7392_v42  ;;  %v1650_v0 = vsel %vm1627_vm3, %v1593_v56, %v1621_v4  ;;  %v1734_v1 = vsel %vm1627_vm3, %v1621_v4, %v1537_v46  ;;  %v1829_v57 = vmax.f32 %v1481_v43, %v1678_v20  ;;  %v2070_v42 = vrot.slane %v1267_v3, 6 }
 0x31c   : > { %v1830_v19 = vmax.f32 %v1453_v8, %v1650_v0  ;;  %v1831_v33 = vmax.f32 %v1425_v9, %v1734_v1  ;;  %v1940_v22 = vmax.f32 %v11721_v55, %v1828_v58  ;;  %v2127_v25 = vsel %vm2076_vm4, %v2014_v17, %v2042_v60 }
 0x31d   : > { %v1941_v48 = vmax.f32 %v1265_v45, %v1829_v57  ;;  %v2155_v52 = vsel %vm2076_vm4, %v1986_v14, %v2014_v17  ;;  %v2211_v18 = vrot.slane %v11721_v55, 2  ;;  %v2099_v46 = vsel %vm2076_vm4, %v2042_v60, %v2070_v42  ;;  %v17362_v17 = vld [vmem:[#allocation96_spill] sm:$0xff] }
 0x31e   : > { %v1942_v56 = vmax.f32 %v1266_v29, %v1830_v19  ;;  %v1943_v12 = vmax.f32 %v1267_v3, %v1831_v33  ;;  %v2183_v8 = vsel %vm2076_vm4, %v2070_v42, %v1986_v14  ;;  %v2239_v43 = vrot.slane %v1265_v45, 2 }
 0x31f   : > { %v2267_v9 = vrot.slane %v1266_v29, 2  ;;  %v2295_v4 = vrot.slane %v1267_v3, 2  ;;  %v3562_v20 = vmax.f32 %v17324_v34, %v11215_v41  ;;  %v3563_v58 = vmax.f32 %v17325_v50, %v11222_v28 }
 0x320   : > { %v3666_v55 = vmax.f32 %v17362_v17, %v17288_v54  ;;  %v3667_v33 = vmax.f32 %v17287_v36, %v17289_v49  ;;  %v17363_v19 = vrot.slane %v11753_v24, 6  ;;  %v17364_v0 = vrot.slane %v11751_v7, 6 }
 0x321   : > { %v2324_v29 = vsel %vm2301_vm5, %v2267_v9, %v2295_v4  ;;  %v2352_v3 = vsel %vm2301_vm5, %v2239_v43, %v2267_v9  ;;  %v2380_v14 = vsel %vm2301_vm5, %v2211_v18, %v2239_v43  ;;  %v2408_v1 = vsel %vm2301_vm5, %v2295_v4, %v2211_v18 }
 0x322   : > { %v2799_v45 = vsel %vm2076_vm4, %v17364_v0, %v17363_v19  ;;  %v2502_v57 = vmax.f32 %v2183_v8, %v2380_v14  ;;  %v2503_v60 = vmax.f32 %v2155_v52, %v2352_v3  ;;  %v2504_v42 = vmax.f32 %v2127_v25, %v2324_v29 }
 0x323   : > { %v2505_v36 = vmax.f32 %v2099_v46, %v2408_v1  ;;  %v3594_v17 = vmax.f32 %v3562_v20, %v11571_v47  ;;  %v3595_v19 = vmax.f32 %v3563_v58, %v11575_v35  ;;  %v3706_v0 = vmax.f32 %v3666_v55, %v17243_v39 }
 0x324   : > { %v3707_v34 = vmax.f32 %v3667_v33, %v17292_v10  ;;  %v11829_v50 = vmax.f32 %v1940_v22, %v2502_v57  ;;  %v11831_v9 = vmax.f32 %v1941_v48, %v2503_v60  ;;  %v11833_v43 = vmax.f32 %v1942_v56, %v2504_v42 }
 0x325   : > { %v11835_v49 = vmax.f32 %v1943_v12, %v2505_v36  ;;  %v3626_v52 = vmax.f32 %v3594_v17, %v11751_v7  ;;  %v3627_v25 = vmax.f32 %v3595_v19, %v11753_v24  ;;  %v3746_v18 = vmax.f32 %v3706_v0, %v11001_v51 }
 0x326   : > { %17365 = vst [vmem:[#allocation81_spill] sm:$0xff] %v11829_v50  ;;  %v3747_v46 = vmax.f32 %v3707_v34, %v11004_v44  ;;  %v16322_v8 = vrot.slane %v11829_v50, 6  ;;  %v2688_v4 = vrot.slane %v11831_v9, 6  ;;  %v2716_v22 = vrot.slane %v11833_v43, 6 }
 0x327   : > { %17366 = vst [vmem:[#allocation130_spill] sm:$0xff] %v11835_v49  ;;  %v16321_v48 = vrot.slane %v11835_v49, 6  ;;  %v16320_v56 = vrot.slane %v11829_v50, 2  ;;  %v2912_v36 = vrot.slane %v11831_v9, 2  ;;  %v2940_v12 = vrot.slane %v11833_v43, 2  ;;  %v17385_v50 = vld [vmem:[#allocation67_spill] sm:$0xff] }
 0x328   : > { %v16319_v20 = vrot.slane %v11835_v49, 2  ;;  %v11857_v58 = vsel %vm2076_vm4, %v2688_v4, %v2716_v22  ;;  %v11863_v17 = vsel %vm2076_vm4, %v16322_v8, %v2688_v4  ;;  %v3658_v55 = vmax.f32 %v3626_v52, %v11831_v9  ;;  %v17383_v8 = vld [vmem:[#allocation106_spill] sm:$0xff] }
 0x329   : > { %v11853_v34 = vsel %vm2076_vm4, %v2716_v22, %v16321_v48  ;;  %v11874_v29 = vsel %vm2301_vm5, %v2912_v36, %v2940_v12  ;;  %v11880_v3 = vsel %vm2301_vm5, %v16320_v56, %v2912_v36  ;;  %v3659_v14 = vmax.f32 %v3627_v25, %v11833_v43  ;;  %v17382_v48 = vld [vmem:[#allocation61_spill] sm:$0xff] }
 0x32a   : > { %17367 = vst [vmem:[#allocation131_spill] sm:$0xff] %v11853_v34  ;;  %v11870_v33 = vsel %vm2301_vm5, %v2940_v12, %v16319_v20  ;;  %17368 = vst [vmem:[#allocation132_spill] sm:$0xff] %v11880_v3  ;;  %v3786_v1 = vmax.f32 %v3746_v18, %v11007_v2  ;;  %v3787_v57 = vmax.f32 %v3747_v46, %v11010_v23  ;;  %v17369_v60 = vrot.slane %v11751_v7, 6  ;;  %v17384_v3 = vld [vmem:[#allocation105_spill] sm:$0xff] }
 0x32b   : > { %v17370_v42 = vrot.slane %v11749_v61, 6  ;;  %v17371_v0 = vrot.slane %v11755_v13, 2  ;;  %v17372_v52 = vrot.slane %v11753_v24, 2  ;;  %v7395_v22 = vpack.c.bf16 %v3659_v14, %v3658_v55  ;;  %v17386_v13 = vld [vmem:[#allocation4_spill] sm:$0xff] }
 0x32c   : > { %v17374_v18 = vrot.slane %v11751_v7, 2  ;;  %v3676_v12 = vmax.f32 %v17295_v26, %v17303_v30  ;;  %v3677_v55 = vmax.f32 %v17296_v21, %v17304_v40  ;;  %v3684_v14 = vmax.f32 %v17297_v53, %v17305_v31  ;;  %v17387_v40 = vld [vmem:[#allocation30_spill] sm:$0xff]  ;;  %v17393_v30 = vld [vmem:[#allocation97_spill] sm:$0xff] }
 0x32d   : > { %v2827_v19 = vsel %vm2076_vm4, %v17370_v42, %v17369_v60  ;;  %v2995_v4 = vsel %vm2301_vm5, %v17372_v52, %v17371_v0  ;;  %v17373_v25 = vmov %v17372_v52  ;;  %v3826_v60 = vmax.f32 %v3786_v1, %v11661_v27  ;;  %7397 = vmatprep.subr.msk.bf16.mxu0 %vm9487_vm6, %v7395_v22  ;;  %v17377_v0 = vld [vmem:[#allocation24_spill] sm:$0xff]  ;;  %v17379_v1 = vld [vmem:[#allocation115_spill] sm:$0xff] }
 0x32e   : > { %v3023_v46 = vsel %vm2301_vm5, %v17374_v18, %v17373_v25  ;;  %v11903_v36 = vmax.f32 %v2799_v45, %v2995_v4  ;;  %v3827_v42 = vmax.f32 %v3787_v57, %v11666_v5  ;;  %v3685_v45 = vmax.f32 %v17298_v38, %v17337_v63  ;;  %v17378_v52 = vld [vmem:[#allocation116_spill] sm:$0xff]  ;;  %v17380_v25 = vld [vmem:[#allocation85_spill] sm:$0xff] }
 0x32f   : > { %v11909_v20 = vmax.f32 %v2827_v19, %v3023_v46  ;;  %v3692_v4 = vmax.f32 %v17378_v52, %v17377_v0  ;;  %v3693_v57 = vmax.f32 %v17379_v1, %v17339_v32  ;;  %v3716_v18 = vmax.f32 %v3676_v12, %v17380_v25  ;;  %v17381_v46 = vld [vmem:[#allocation31_spill] sm:$0xff]  ;;  %v17390_v25 = vld [vmem:[#allocation18_spill] sm:$0xff] }
 0x330   : > { %17375 = vst [vmem:[#allocation133_spill] sm:$0xff] %v11903_v36  ;;  %v7470_v19 = vpack.c.bf16 %v3827_v42, %v3826_v60  ;;  %v3717_v56 = vmax.f32 %v3677_v55, %v17381_v46  ;;  %v3546_v22 = vmax.f32 %v17382_v48, %v17331_v16  ;;  %v3724_v34 = vmax.f32 %v3684_v14, %v17383_v8  ;;  %v17388_v42 = vld [vmem:[#allocation14_spill] sm:$0xff]  ;;  %v17389_v55 = vld [vmem:[#allocation19_spill] sm:$0xff]  ;;  %v17391_v8 = vld [vmem:[#allocation21_spill] sm:$0xff] }
 0x331   : > { %17376 = vst [vmem:[#allocation134_spill] sm:$0xff] %v11909_v20  ;;  %v3725_v49 = vmax.f32 %v3685_v45, %v17384_v3  ;;  %v3732_v61 = vmax.f32 %v3692_v4, %v17385_v50  ;;  %v3733_v63 = vmax.f32 %v3693_v57, %v17386_v13  ;;  %v3756_v60 = vmax.f32 %v3716_v18, %v17387_v40  ;;  %v17392_v3 = vld [vmem:[#allocation98_spill] sm:$0xff]  ;;  %v11942_v48 = vld [vmem:[#allocation2 + $0x2e0] sm:$0xff] }
 0x332   : > { %7472 = vmatpush3.bf16.xpose.msk.msra.mxu1 %vm9487_vm6, %v7470_v19  ;;  %v3757_v12 = vmax.f32 %v3717_v56, %v17388_v42  ;;  %v3547_v46 = vmax.f32 %v17389_v55, %v17332_v6  ;;  %v3578_v31 = vmax.f32 %v3546_v22, %v17333_v62  ;;  %v3764_v14 = vmax.f32 %v3724_v34, %v17390_v25  ;;  %v11944_v19 = vld [vmem:[#allocation2 + $0x2e8] sm:$0xff]  ;;  %v1271_v42 = vld [vmem:[#allocation2 + $0x2f8] sm:$0xff]  ;;  %v17399_v25 = vld [vmem:[#allocation112_spill] sm:$0xff] }
 0x333   : > { %v3765_v45 = vmax.f32 %v3725_v49, %v17391_v8  ;;  %v3772_v4 = vmax.f32 %v3732_v61, %v17392_v3  ;;  %v3773_v57 = vmax.f32 %v3733_v63, %v17393_v30  ;;  %v11947_v18 = vmax.f32 %v3756_v60, %v17297_v53  ;;  %v1270_v60 = vld [vmem:[#allocation2 + $0x2f0] sm:$0xff] }
 0x334   : > { %v11950_v56 = vmax.f32 %v3757_v12, %v17298_v38  ;;  %v3579_v22 = vmax.f32 %v3547_v46, %v17334_v59  ;;  %v3610_v34 = vmax.f32 %v3578_v31, %v17360_v15  ;;  %v11955_v49 = vmax.f32 %v3764_v14, %v17378_v52  ;;  %v17398_v12 = vld [vmem:[#allocation113_spill] sm:$0xff]  ;;  %v17400_v52 = vld [vmem:[#allocation43_spill] sm:$0xff] }
 0x335   : > { %v11958_v61 = vmax.f32 %v3765_v45, %v17379_v1  ;;  %v11961_v63 = vmax.f32 %v3772_v4, %v11909_v20  ;;  %v11964_v8 = vmax.f32 %v3773_v57, %v11903_v36  ;;  %v1311_v31 = vrot.slane %v11942_v48, 7 }
 0x336   : > { %17394 = vst [vmem:[#allocation135_spill] sm:$0xff] %v11955_v49  ;;  %v3611_v38 = vmax.f32 %v3579_v22, %v17398_v12  ;;  %v3642_v46 = vmax.f32 %v3610_v34, %v17399_v25  ;;  %v1339_v14 = vrot.slane %v11944_v19, 7  ;;  %v1367_v53 = vrot.slane %v1270_v60, 7 }
 0x337   : > { %17395 = vst [vmem:[#allocation136_spill] sm:$0xff] %v11958_v61  ;;  %17396 = vst [vmem:[#allocation137_spill] sm:$0xff] %v11961_v63  ;;  %v3844_v57 = vmax.f32 %v11955_v49, %v11961_v63  ;;  %v3845_v1 = vmax.f32 %v11958_v61, %v11964_v8  ;;  %v1395_v34 = vrot.slane %v1271_v42, 7  ;;  %v1538_v5 = vrot.slane %v11942_v48, 1 }
 0x338   : > { %17397 = vst [vmem:[#allocation138_spill] sm:$0xff] %v11964_v8  ;;  %v3643_v22 = vmax.f32 %v3611_v38, %v17400_v52  ;;  %v1482_v40 = vsel %vm1402_vm2, %v1311_v31, %v1339_v14  ;;  %v1566_v45 = vrot.slane %v11944_v19, 1  ;;  %v1594_v27 = vrot.slane %v1270_v60, 1 }
 0x339   : > { %v7473_v55 = vpack.c.bf16 %v3845_v1, %v3844_v57  ;;  %v1426_v63 = vsel %vm1402_vm2, %v1367_v53, %v1395_v34  ;;  %v1454_v8 = vsel %vm1402_vm2, %v1339_v14, %v1367_v53  ;;  %v1510_v38 = vsel %vm1402_vm2, %v1395_v34, %v1311_v31 }
 0x33a   : > { %v7398_v4 = vpack.c.bf16 %v3643_v22, %v3642_v46  ;;  %v1622_v61 = vrot.slane %v1271_v42, 1  ;;  %v1679_v1 = vsel %vm1627_vm3, %v1566_v45, %v1594_v27  ;;  %v1707_v57 = vsel %vm1627_vm3, %v1538_v5, %v1566_v45 }
 0x33b   : > { %7475 = vmatprep.subr.msk.bf16.mxu1 %vm9487_vm6, %v7473_v55  ;;  %v1987_v46 = vrot.slane %v11942_v48, 6  ;;  %v1832_v22 = vmax.f32 %v1510_v38, %v1707_v57  ;;  %v1833_v53 = vmax.f32 %v1482_v40, %v1679_v1  ;;  %v2015_v14 = vrot.slane %v11944_v19, 6 }
 0x33c   : > { %7400 = vmatpush3.bf16.xpose.msk.msra.mxu0 %vm9487_vm6, %v7398_v4  ;;  %v2043_v31 = vrot.slane %v1270_v60, 6  ;;  %v1651_v55 = vsel %vm1627_vm3, %v1594_v27, %v1622_v61  ;;  %v1735_v34 = vsel %vm1627_vm3, %v1622_v61, %v1538_v5  ;;  %v2071_v49 = vrot.slane %v1271_v42, 6 }
 0x33d   : > { %v2212_v52 = vrot.slane %v11942_v48, 2  ;;  %v1834_v45 = vmax.f32 %v1454_v8, %v1651_v55  ;;  %v1835_v25 = vmax.f32 %v1426_v63, %v1735_v34  ;;  %v1944_v36 = vmax.f32 %v11942_v48, %v1832_v22 }
 0x33e   : > { %v1945_v4 = vmax.f32 %v11944_v19, %v1833_v53  ;;  %v2100_v40 = vsel %vm2076_vm4, %v2043_v31, %v2071_v49  ;;  %v2128_v38 = vsel %vm2076_vm4, %v2015_v14, %v2043_v31  ;;  %v2156_v27 = vsel %vm2076_vm4, %v1987_v46, %v2015_v14 }
 0x33f   : > { %v2184_v5 = vsel %vm2076_vm4, %v2071_v49, %v1987_v46  ;;  %v1946_v61 = vmax.f32 %v1270_v60, %v1834_v45  ;;  %v1947_v1 = vmax.f32 %v1271_v42, %v1835_v25  ;;  %v2240_v8 = vrot.slane %v11944_v19, 2  ;;  %v17401_v25 = vld [vmem:[#allocation82_spill] sm:$0xff] }
 0x340   : > { %v2268_v63 = vrot.slane %v1270_v60, 2  ;;  %v2296_v48 = vrot.slane %v1271_v42, 2  ;;  %v3564_v57 = vmax.f32 %v11215_v41, %v11571_v47  ;;  %v3565_v22 = vmax.f32 %v11222_v28, %v11575_v35 }
 0x341   : > { %v3668_v53 = vmax.f32 %v17288_v54, %v17243_v39  ;;  %v2381_v49 = vsel %vm2301_vm5, %v2212_v52, %v2240_v8  ;;  %v3669_v19 = vmax.f32 %v17401_v25, %v17292_v10  ;;  %v12029_v42 = vmax.f32 %v11863_v17, %v11874_v29 }
 0x342   : > { %v2353_v14 = vsel %vm2301_vm5, %v2240_v8, %v2268_v63  ;;  %v2325_v60 = vsel %vm2301_vm5, %v2268_v63, %v2296_v48  ;;  %v2409_v46 = vsel %vm2301_vm5, %v2296_v48, %v2212_v52  ;;  %v2506_v31 = vmax.f32 %v2184_v5, %v2381_v49 }
 0x343   : > { %17402 = vst [vmem:[#allocation113_spill] sm:$0xff] %v12029_v42  ;;  %v2507_v55 = vmax.f32 %v2156_v27, %v2353_v14  ;;  %v2508_v34 = vmax.f32 %v2128_v38, %v2325_v60  ;;  %v2509_v45 = vmax.f32 %v2100_v40, %v2409_v46  ;;  %v3596_v39 = vmax.f32 %v3564_v57, %v11751_v7 }
 0x344   : > { %v3597_v8 = vmax.f32 %v3565_v22, %v11753_v24  ;;  %v2618_v54 = vmax.f32 %v1944_v36, %v2506_v31  ;;  %v3708_v25 = vmax.f32 %v3668_v53, %v11001_v51  ;;  %v3709_v17 = vmax.f32 %v3669_v19, %v11004_v44 }
 0x345   : > { %v2619_v10 = vmax.f32 %v1945_v4, %v2507_v55  ;;  %v2620_v29 = vmax.f32 %v1946_v61, %v2508_v34  ;;  %v2621_v47 = vmax.f32 %v1947_v1, %v2509_v45  ;;  %v3628_v63 = vmax.f32 %v3596_v39, %v11831_v9 }
 0x346   : > { %v3629_v52 = vmax.f32 %v3597_v8, %v11833_v43  ;;  %v2661_v5 = vrot.slane %v2618_v54, 6  ;;  %v2885_v38 = vrot.slane %v2618_v54, 2  ;;  %v3748_v60 = vmax.f32 %v3708_v25, %v11007_v2  ;;  %v12076_v8 = vld [vmem:[%s15944_s5] sm:$0xff] }
 0x347   : > { %v2689_v27 = vrot.slane %v2619_v10, 6  ;;  %v2913_v40 = vrot.slane %v2619_v10, 2  ;;  %v2717_v48 = vrot.slane %v2620_v29, 6  ;;  %v2745_v57 = vrot.slane %v2621_v47, 6  ;;  %7107 = vmatprep.mubr.msk.f32.mxu1 %vm1061_vm1, %v12076_v8 }
 0x348   : > { %v2941_v14 = vrot.slane %v2620_v29, 2  ;;  %v2969_v22 = vrot.slane %v2621_v47, 2  ;;  %v3660_v61 = vmax.f32 %v3628_v63, %v2619_v10  ;;  %v3661_v1 = vmax.f32 %v3629_v52, %v2620_v29 }
 0x349   : > { %v2829_v36 = vsel %vm2076_vm4, %v2661_v5, %v2689_v27  ;;  %v3053_v4 = vsel %vm2301_vm5, %v2885_v38, %v2913_v40  ;;  %v2773_v39 = vsel %vm2076_vm4, %v2717_v48, %v2745_v57  ;;  %v2801_v9 = vsel %vm2076_vm4, %v2689_v27, %v2717_v48  ;;  %v17406_v27 = vld [vmem:[#allocation5_spill] sm:$0xff]  ;;  %v17409_v48 = vld [vmem:[#allocation12_spill] sm:$0xff] }
 0x34a   : > { %v2857_v54 = vsel %vm2076_vm4, %v2745_v57, %v2661_v5  ;;  %v2997_v47 = vsel %vm2301_vm5, %v2941_v14, %v2969_v22  ;;  %v3025_v43 = vsel %vm2301_vm5, %v2913_v40, %v2941_v14  ;;  %v3081_v53 = vsel %vm2301_vm5, %v2969_v22, %v2885_v38  ;;  %v17407_v38 = vld [vmem:[#allocation6_spill] sm:$0xff]  ;;  %v17410_v57 = vld [vmem:[#allocation11_spill] sm:$0xff] }
 0x34b   : > { %v3178_v10 = vmax.f32 %v2857_v54, %v3053_v4  ;;  %v7401_v49 = vpack.c.bf16 %v3661_v1, %v3660_v61  ;;  %v3181_v19 = vmax.f32 %v2773_v39, %v3081_v53  ;;  %v3749_v46 = vmax.f32 %v3709_v17, %v11010_v23  ;;  %v17413_v53 = vld [vmem:[#allocation133_spill] sm:$0xff] }
 0x34c   : > { %v12061_v31 = vmax.f32 %v11857_v58, %v11870_v33  ;;  %v3694_v34 = vmax.f32 %v17377_v0, %v17385_v50  ;;  %v3695_v45 = vmax.f32 %v17339_v32, %v17386_v13  ;;  %v3548_v25 = vmax.f32 %v17331_v16, %v17333_v62  ;;  %v17508_v0 = vld [vmem:[#allocation99_spill] sm:$0xff] }
 0x34d   : > { %v12063_v55 = vrot.slane %v3178_v10, 6  ;;  %7403 = vmatprep.subr.msk.bf16.mxu0 %vm9487_vm6, %v7401_v49  ;;  %v12078_v58 = vrot.slane %v3181_v19, 2  ;;  %v3788_v33 = vmax.f32 %v3748_v60, %v17295_v26  ;;  %v3789_v17 = vmax.f32 %v3749_v46, %v17296_v21  ;;  %v17414_v49 = vld [vmem:[#allocation112_spill] sm:$0xff] }
 0x34e   : > { %17403 = vst [vmem:[#allocation139_spill] sm:$0xff] %v12061_v31  ;;  %v3549_v29 = vmax.f32 %v17332_v6, %v17334_v59  ;;  %v3734_v63 = vmax.f32 %v3694_v34, %v17392_v3  ;;  %v3735_v52 = vmax.f32 %v3695_v45, %v17393_v30  ;;  %v3580_v5 = vmax.f32 %v3548_v25, %v17360_v15  ;;  %v12105_v46 = vld [vmem:[#allocation2 + $0x300] sm:$0xff]  ;;  %v17416_v45 = vld [vmem:[#allocation43_spill] sm:$0xff] }
 0x34f   : > { %17404 = vst [vmem:[#allocation140_spill] sm:$0xff] %v12063_v55  ;;  %17405 = vst [vmem:[#allocation141_spill] sm:$0xff] %v12078_v58  ;;  %v17408_v40 = vmax.f32 %v17406_v27, %v17407_v38  ;;  %v17411_v14 = vmax.f32 %v17409_v48, %v17410_v57  ;;  %v3828_v4 = vmax.f32 %v3788_v33, %v11947_v18  ;;  %v17421_v38 = vld [vmem:[#allocation7_spill] sm:$0xff]  ;;  %v17509_v26 = vrot.slane %v17508_v0, 6 }
 0x350   : > { %v3829_v61 = vmax.f32 %v3789_v17, %v11950_v56  ;;  %v3581_v1 = vmax.f32 %v3549_v29, %v17398_v12  ;;  %v12098_v39 = vmax.f32 %v2829_v36, %v3025_v43  ;;  %v3774_v54 = vmax.f32 %v3734_v63, %v11909_v20  ;;  %v12112_v43 = vld [vmem:[#allocation2 + $0x308] sm:$0xff]  ;;  %v12114_v17 = vld [vmem:[#allocation2 + $0x310] sm:$0xff] }
 0x351   : > { %v7482_v22 = vpack.c.bf16 %v17411_v14, %v17408_v40  ;;  %v3775_v10 = vmax.f32 %v3735_v52, %v17413_v53  ;;  %v3612_v19 = vmax.f32 %v3580_v5, %v17414_v49  ;;  %v12103_v60 = vmax.f32 %v2801_v9, %v2997_v47  ;;  %v17417_v47 = vld [vmem:[#allocation44_spill] sm:$0xff]  ;;  %v17418_v52 = vld [vmem:[#allocation71_spill] sm:$0xff]  ;;  %v17419_v5 = vld [vmem:[#allocation37_spill] sm:$0xff] }
 0x352   : > { %17412 = vst [vmem:[#allocation5_spill] sm:$0xff] %v12098_v39  ;;  %v7476_v34 = vpack.c.bf16 %v3829_v61, %v3828_v4  ;;  %v3613_v25 = vmax.f32 %v3581_v1, %v17416_v45  ;;  %v3696_v33 = vmax.f32 %v17385_v50, %v17392_v3  ;;  %v3697_v36 = vmax.f32 %v17386_v13, %v17393_v30  ;;  %v17422_v40 = vld [vmem:[#allocation22_spill] sm:$0xff]  ;;  %v12127_v14 = vld [vmem:[#allocation2 + $0x318] sm:$0xff]  ;;  %v17424_v4 = vld [vmem:[#allocation49_spill] sm:$0xff] }
 0x353   : > { %17415 = vst [vmem:[#allocation6_spill] sm:$0xff] %v12103_v60  ;;  %v3814_v29 = vmax.f32 %v3774_v54, %v12029_v42  ;;  %v3815_v9 = vmax.f32 %v3775_v10, %v12061_v31  ;;  %v3644_v63 = vmax.f32 %v3612_v19, %v17417_v47  ;;  %v17420_v27 = vmax.f32 %v17418_v52, %v17419_v5  ;;  %v17425_v19 = vld [vmem:[#allocation10_spill] sm:$0xff]  ;;  %v17426_v5 = vld [vmem:[#allocation108_spill] sm:$0xff] }
 0x354   : > { %v17423_v48 = vmax.f32 %v17421_v38, %v17422_v40  ;;  %7478 = vmatpush3.bf16.xpose.msk.msra.mxu1 %vm9487_vm6, %v7476_v34  ;;  %v3645_v61 = vmax.f32 %v3613_v25, %v17424_v4  ;;  %v3736_v1 = vmax.f32 %v3696_v33, %v11909_v20  ;;  %v3737_v54 = vmax.f32 %v3697_v36, %v17413_v53 }
 0x355   : > { %v1312_v10 = vrot.slane %v12105_v46, 7  ;;  %v3846_v52 = vmax.f32 %v17425_v19, %v3814_v29  ;;  %v3847_v58 = vmax.f32 %v17426_v5, %v3815_v9  ;;  %v1368_v38 = vrot.slane %v12114_v17, 7 }
 0x356   : > { %v12125_v57 = vpack.c.bf16 %v17423_v48, %v17420_v27  ;;  %v1340_v27 = vrot.slane %v12112_v43, 7  ;;  %v7404_v40 = vpack.c.bf16 %v3645_v61, %v3644_v63  ;;  %v3776_v48 = vmax.f32 %v3736_v1, %v12029_v42 }
 0x357   : > { %v3777_v34 = vmax.f32 %v3737_v54, %v12061_v31  ;;  %v1396_v25 = vrot.slane %v12127_v14, 7  ;;  %v7479_v33 = vpack.c.bf16 %v3847_v58, %v3846_v52  ;;  %v1539_v9 = vrot.slane %v12105_v46, 1 }
 0x358   : > { %v1455_v36 = vsel %vm1402_vm2, %v1340_v27, %v1368_v38  ;;  %v1483_v29 = vsel %vm1402_vm2, %v1312_v10, %v1340_v27  ;;  %7406 = vmatpush3.bf16.xpose.msk.msra.mxu0 %vm9487_vm6, %v7404_v40  ;;  %v3816_v63 = vmax.f32 %v3776_v48, %v12098_v39  ;;  %v1567_v54 = vrot.slane %v12112_v43, 1  ;;  %v17427_v27 = vld [vmem:[#allocation41_spill] sm:$0xff]  ;;  %v17428_v48 = vld [vmem:[#allocation42_spill] sm:$0xff] }
 0x359   : > { %v3817_v61 = vmax.f32 %v3777_v34, %v12103_v60  ;;  %v1427_v1 = vsel %vm1402_vm2, %v1368_v38, %v1396_v25  ;;  %v1511_v58 = vsel %vm1402_vm2, %v1396_v25, %v1312_v10  ;;  %7481 = vmatprep.subr.msk.bf16.mxu1 %vm9487_vm6, %v7479_v33  ;;  %v1595_v19 = vrot.slane %v12114_v17, 1 }
 0x35a   : > { %v1623_v52 = vrot.slane %v12127_v14, 1  ;;  %v1988_v5 = vrot.slane %v12105_v46, 6  ;;  %v3848_v40 = vmax.f32 %v17427_v27, %v3816_v63  ;;  %v2016_v38 = vrot.slane %v12112_v43, 6 }
 0x35b   : > { %v3849_v34 = vmax.f32 %v17428_v48, %v3817_v61  ;;  %v2044_v55 = vrot.slane %v12114_v17, 6  ;;  %v1680_v25 = vsel %vm1627_vm3, %v1567_v54, %v1595_v19  ;;  %v1708_v33 = vsel %vm1627_vm3, %v1539_v9, %v1567_v54 }
 0x35c   : > { %v1652_v10 = vsel %vm1627_vm3, %v1595_v19, %v1623_v52  ;;  %v1736_v7 = vsel %vm1627_vm3, %v1623_v52, %v1539_v9  ;;  %7484 = vmatpush3.bf16.xpose.msk.msra.mxu1 %vm9487_vm6, %v7482_v22  ;;  %v1836_v61 = vmax.f32 %v1511_v58, %v1708_v33  ;;  %v1837_v27 = vmax.f32 %v1483_v29, %v1680_v25  ;;  %v12188_v29 = vld [vmem:[#allocation2 + $0x328] sm:$0xff]  ;;  %v17429_v25 = vld [vmem:[#allocation27_spill] sm:$0xff] }
 0x35d   : > { %v7485_v63 = vpack.c.bf16 %v3849_v34, %v3848_v40  ;;  %v1838_v48 = vmax.f32 %v1455_v36, %v1652_v10  ;;  %v1839_v24 = vmax.f32 %v1427_v1, %v1736_v7  ;;  %v2072_v44 = vrot.slane %v12127_v14, 6  ;;  %v12186_v7 = vld [vmem:[#allocation2 + $0x320] sm:$0xff] }
 0x35e   : > { %v2129_v51 = vsel %vm2076_vm4, %v2016_v38, %v2044_v55  ;;  %v2157_v19 = vsel %vm2076_vm4, %v1988_v5, %v2016_v38  ;;  %v1948_v9 = vmax.f32 %v12105_v46, %v1836_v61  ;;  %v1949_v22 = vmax.f32 %v12112_v43, %v1837_v27 }
 0x35f   : > { %7487 = vmatprep.subr.msk.bf16.mxu1 %vm9487_vm6, %v7485_v63  ;;  %v1950_v58 = vmax.f32 %v12114_v17, %v1838_v48  ;;  %v2213_v36 = vrot.slane %v12105_v46, 2  ;;  %v1951_v1 = vmax.f32 %v12127_v14, %v1839_v24  ;;  %v2101_v54 = vsel %vm2076_vm4, %v2044_v55, %v2072_v44  ;;  %v17430_v55 = vld [vmem:[#allocation122_spill] sm:$0xff]  ;;  %v17432_v63 = vld [vmem:[#allocation77_spill] sm:$0xff] }
 0x360   : > { %v2185_v52 = vsel %vm2076_vm4, %v2072_v44, %v1988_v5  ;;  %v2241_v40 = vrot.slane %v12112_v43, 2  ;;  %v2269_v34 = vrot.slane %v12114_v17, 2  ;;  %v2297_v38 = vrot.slane %v12127_v14, 2  ;;  %v17433_v44 = vld [vmem:[#allocation123_spill] sm:$0xff]  ;;  %v12212_v17 = vld [vmem:[#allocation2 + $0x330] sm:$0xff] }
 0x361   : > { %v3698_v46 = vmax.f32 %v17392_v3, %v11909_v20  ;;  %v3699_v10 = vmax.f32 %v17393_v30, %v17413_v53  ;;  %v17431_v33 = vmax.f32 %v17429_v25, %v17430_v55  ;;  %v17434_v5 = vmax.f32 %v17432_v63, %v17433_v44  ;;  %v12214_v14 = vld [vmem:[#allocation2 + $0x338] sm:$0xff] }
 0x362   : > { %v2382_v24 = vsel %vm2301_vm5, %v2213_v36, %v2241_v40  ;;  %v1313_v61 = vrot.slane %v12186_v7, 7  ;;  %v1341_v27 = vrot.slane %v12188_v29, 7  ;;  %v2326_v48 = vsel %vm2301_vm5, %v2269_v34, %v2297_v38 }
 0x363   : > { %v12210_v43 = vpack.c.bf16 %v17434_v5, %v17431_v33  ;;  %v2354_v30 = vsel %vm2301_vm5, %v2241_v40, %v2269_v34  ;;  %v2410_v25 = vsel %vm2301_vm5, %v2297_v38, %v2213_v36  ;;  %v2510_v55 = vmax.f32 %v2185_v52, %v2382_v24 }
 0x364   : > { %v2511_v33 = vmax.f32 %v2157_v19, %v2354_v30  ;;  %v2512_v63 = vmax.f32 %v2129_v51, %v2326_v48  ;;  %v2513_v44 = vmax.f32 %v2101_v54, %v2410_v25  ;;  %v3738_v5 = vmax.f32 %v3698_v46, %v12029_v42  ;;  %7490 = vmatpush3.bf16.xpose.msk.msra.mxu1 %vm9487_vm6, %v12125_v57 }
 0x365   : > { %v12228_v13 = vmax.f32 %v1948_v9, %v2510_v55  ;;  %v3739_v32 = vmax.f32 %v3699_v10, %v12061_v31  ;;  %v1369_v21 = vrot.slane %v12212_v17, 7  ;;  %v1397_v40 = vrot.slane %v12214_v14, 7 }
 0x366   : > { %v12233_v34 = vmax.f32 %v1949_v22, %v2511_v33  ;;  %v12235_v36 = vmax.f32 %v1950_v58, %v2512_v63  ;;  %v12237_v51 = vmax.f32 %v1951_v1, %v2513_v44  ;;  %v3778_v30 = vmax.f32 %v3738_v5, %v12098_v39 }
 0x367   : > { %17435 = vst [vmem:[#allocation12_spill] sm:$0xff] %v12228_v13  ;;  %v16363_v19 = vrot.slane %v12228_v13, 6  ;;  %v3779_v9 = vmax.f32 %v3739_v32, %v12103_v60  ;;  %v1428_v54 = vsel %vm1402_vm2, %v1369_v21, %v1397_v40  ;;  %v1456_v10 = vsel %vm1402_vm2, %v1341_v27, %v1369_v21  ;;  %v17442_v13 = vld [vmem:[#allocation125_spill] sm:$0xff] }
 0x368   : > { %17436 = vst [vmem:[#allocation11_spill] sm:$0xff] %v12233_v34  ;;  %17437 = vst [vmem:[#allocation112_spill] sm:$0xff] %v12235_v36  ;;  %v2690_v52 = vrot.slane %v12233_v34, 6  ;;  %v16364_v22 = vrot.slane %v12235_v36, 6  ;;  %v16362_v1 = vrot.slane %v12233_v34, 2  ;;  %v2942_v38 = vrot.slane %v12235_v36, 2 }
 0x369   : > { %17438 = vst [vmem:[#allocation43_spill] sm:$0xff] %v12237_v51  ;;  %v16361_v46 = vrot.slane %v12237_v51, 2  ;;  %v1484_v32 = vsel %vm1402_vm2, %v1313_v61, %v1341_v27  ;;  %v1512_v25 = vsel %vm1402_vm2, %v1397_v40, %v1313_v61  ;;  %v1540_v55 = vrot.slane %v12186_v7, 1  ;;  %v17441_v34 = vld [vmem:[#allocation124_spill] sm:$0xff] }
 0x36a   : > { %v2802_v24 = vsel %vm2076_vm4, %v2690_v52, %v16364_v22  ;;  %v2830_v48 = vsel %vm2076_vm4, %v16363_v19, %v2690_v52  ;;  %v3026_v27 = vsel %vm2301_vm5, %v16362_v1, %v2942_v38  ;;  %v1568_v33 = vrot.slane %v12188_v29, 1 }
 0x36b   : > { %v2998_v21 = vsel %vm2301_vm5, %v2942_v38, %v16361_v46  ;;  %v1596_v63 = vrot.slane %v12212_v17, 1  ;;  %v12276_v44 = vmax.f32 %v2830_v48, %v3026_v27  ;;  %v1624_v61 = vrot.slane %v12214_v14, 1 }
 0x36c   : > { %v12278_v5 = vmax.f32 %v2802_v24, %v2998_v21  ;;  %v1989_v40 = vrot.slane %v12186_v7, 6  ;;  %v1709_v46 = vsel %vm1627_vm3, %v1540_v55, %v1568_v33  ;;  %v2017_v38 = vrot.slane %v12188_v29, 6 }
 0x36d   : > { %17439 = vst [vmem:[#allocation44_spill] sm:$0xff] %v12276_v44  ;;  %v1681_v52 = vsel %vm1627_vm3, %v1568_v33, %v1596_v63  ;;  %v2045_v57 = vrot.slane %v12212_v17, 6  ;;  %v3818_v1 = vmax.f32 %v3778_v30, %v12276_v44  ;;  %v1653_v24 = vsel %vm1627_vm3, %v1596_v63, %v1624_v61 }
 0x36e   : > { %17440 = vst [vmem:[#allocation71_spill] sm:$0xff] %v12278_v5  ;;  %v3819_v48 = vmax.f32 %v3779_v9, %v12278_v5  ;;  %v1737_v21 = vsel %vm1627_vm3, %v1624_v61, %v1540_v55  ;;  %v1840_v27 = vmax.f32 %v1512_v25, %v1709_v46  ;;  %v1841_v19 = vmax.f32 %v1484_v32, %v1681_v52 }
 0x36f   : > { %v1842_v22 = vmax.f32 %v1456_v10, %v1653_v24  ;;  %v1843_v58 = vmax.f32 %v1428_v54, %v1737_v21  ;;  %v3850_v33 = vmax.f32 %v17441_v34, %v3818_v1  ;;  %v2073_v51 = vrot.slane %v12214_v14, 6  ;;  %v17448_v21 = vld [vmem:[#allocation32_spill] sm:$0xff] }
 0x370   : > { %v3851_v36 = vmax.f32 %v17442_v13, %v3819_v48  ;;  %v2130_v30 = vsel %vm2076_vm4, %v2017_v38, %v2045_v57  ;;  %v1952_v9 = vmax.f32 %v12186_v7, %v1840_v27  ;;  %v1953_v63 = vmax.f32 %v12188_v29, %v1841_v19 }
 0x371   : > { %v1954_v23 = vmax.f32 %v12212_v17, %v1842_v22  ;;  %v1955_v46 = vmax.f32 %v12214_v14, %v1843_v58  ;;  %v2102_v54 = vsel %vm2076_vm4, %v2045_v57, %v2073_v51  ;;  %v2158_v13 = vsel %vm2076_vm4, %v1989_v40, %v2017_v38  ;;  %v17443_v58 = vld [vmem:[#allocation135_spill] sm:$0xff] }
 0x372   : > { %v7491_v32 = vpack.c.bf16 %v3851_v36, %v3850_v33  ;;  %v2186_v34 = vsel %vm2076_vm4, %v2073_v51, %v1989_v40  ;;  %v2214_v1 = vrot.slane %v12186_v7, 2  ;;  %v2242_v10 = vrot.slane %v12188_v29, 2  ;;  %v17445_v7 = vld [vmem:[#allocation136_spill] sm:$0xff]  ;;  %v17449_v33 = vld [vmem:[#allocation63_spill] sm:$0xff] }
 0x373   : > { %v2270_v19 = vrot.slane %v12212_v17, 2  ;;  %v2298_v22 = vrot.slane %v12214_v14, 2  ;;  %v3700_v36 = vmax.f32 %v11909_v20, %v12029_v42  ;;  %v3701_v57 = vmax.f32 %v17413_v53, %v12061_v31  ;;  %v17447_v17 = vld [vmem:[#allocation75_spill] sm:$0xff] }
 0x374   : > { %7493 = vmatprep.subr.msk.bf16.mxu1 %vm9487_vm6, %v7491_v32  ;;  %v17444_v51 = vmax.f32 %v11947_v18, %v17443_v58  ;;  %v17446_v25 = vmax.f32 %v11950_v56, %v17445_v7  ;;  %v2383_v18 = vsel %vm2301_vm5, %v2214_v1, %v2242_v10  ;;  %v2731_v27 = vrot.slane %v17448_v21, 6 }
 0x375   : > { %7496 = vmatpush3.bf16.xpose.msk.msra.mxu1 %vm9487_vm6, %v12210_v43  ;;  %v2327_v14 = vsel %vm2301_vm5, %v2270_v19, %v2298_v22  ;;  %v2355_v61 = vsel %vm2301_vm5, %v2242_v10, %v2270_v19  ;;  %v2411_v56 = vsel %vm2301_vm5, %v2298_v22, %v2214_v1  ;;  %v2514_v40 = vmax.f32 %v2186_v34, %v2383_v18  ;;  %v17455_v1 = vld [vmem:[#allocation65_spill] sm:$0xff]  ;;  %v17456_v18 = vld [vmem:[#allocation68_spill] sm:$0xff] }
 0x376   : > { %v12325_v29 = vpack.c.bf16 %v17446_v25, %v17444_v51  ;;  %v2515_v52 = vmax.f32 %v2158_v13, %v2355_v61  ;;  %v2516_v38 = vmax.f32 %v2130_v30, %v2327_v14  ;;  %v2517_v48 = vmax.f32 %v2102_v54, %v2411_v56  ;;  %v17454_v54 = vld [vmem:[#allocation101_spill] sm:$0xff] }
 0x377   : > { %v3740_v24 = vmax.f32 %v3700_v36, %v12098_v39  ;;  %v3741_v43 = vmax.f32 %v3701_v57, %v12103_v60  ;;  %v2732_v32 = vrot.slane %v17449_v33, 6  ;;  %v12343_v58 = vmax.f32 %v1952_v9, %v2514_v40  ;;  %v17457_v40 = vld [vmem:[#allocation56_spill] sm:$0xff]  ;;  %v17467_v60 = vld [vmem:[#allocation87_spill] sm:$0xff]  ;;  %v17487_v39 = vld [vmem:[#allocation138_spill] sm:$0xff] }
 0x378   : > { %v12345_v19 = vmax.f32 %v1953_v63, %v2515_v52  ;;  %v12347_v10 = vmax.f32 %v1954_v23, %v2516_v38  ;;  %v12349_v51 = vmax.f32 %v1955_v46, %v2517_v48  ;;  %v2733_v34 = vrot.slane %v17454_v54, 6  ;;  %v17459_v23 = vld [vmem:[#allocation120_spill] sm:$0xff] }
 0x379   : > { %17450 = vst [vmem:[#allocation37_spill] sm:$0xff] %v12343_v58  ;;  %v3780_v13 = vmax.f32 %v3740_v24, %v12276_v44  ;;  %v3781_v30 = vmax.f32 %v3741_v43, %v12278_v5  ;;  %v2734_v22 = vrot.slane %v17455_v1, 6  ;;  %v16374_v36 = vrot.slane %v12343_v58, 6  ;;  %v17458_v24 = vld [vmem:[#allocation103_spill] sm:$0xff]  ;;  %v17463_v58 = vld [vmem:[#allocation58_spill] sm:$0xff] }
 0x37a   : > { %17451 = vst [vmem:[#allocation7_spill] sm:$0xff] %v12345_v19  ;;  %17452 = vst [vmem:[#allocation22_spill] sm:$0xff] %v12347_v10  ;;  %v2691_v57 = vrot.slane %v12345_v19, 6  ;;  %v16373_v9 = vrot.slane %v12347_v10, 6  ;;  %v16388_v46 = vrot.slane %v12345_v19, 2  ;;  %v2943_v7 = vrot.slane %v12347_v10, 2 }
 0x37b   : > { %17453 = vst [vmem:[#allocation49_spill] sm:$0xff] %v12349_v51  ;;  %v16382_v25 = vrot.slane %v12349_v51, 2  ;;  %v2735_v56 = vrot.slane %v17456_v18, 6  ;;  %v2736_v52 = vrot.slane %v17457_v40, 6  ;;  %v2737_v43 = vrot.slane %v17458_v24, 6  ;;  %v17464_v51 = vld [vmem:[#allocation23_spill] sm:$0xff] }
 0x37c   : > { %v2803_v14 = vsel %vm2076_vm4, %v2691_v57, %v16373_v9  ;;  %v2831_v61 = vsel %vm2076_vm4, %v16374_v36, %v2691_v57  ;;  %v3027_v48 = vsel %vm2301_vm5, %v16388_v46, %v2943_v7  ;;  %v2738_v9 = vrot.slane %v17459_v23, 6  ;;  %v17462_v36 = vld [vmem:[#allocation57_spill] sm:$0xff] }
 0x37d   : > { %v2999_v38 = vsel %vm2301_vm5, %v2943_v7, %v16382_v25  ;;  %v12383_v63 = vmax.f32 %v2831_v61, %v3027_v48  ;;  %v2739_v55 = vrot.slane %v17462_v36, 6  ;;  %v2740_v10 = vrot.slane %v17463_v58, 6  ;;  %v17465_v25 = vld [vmem:[#allocation121_spill] sm:$0xff]  ;;  %v17470_v61 = vld [vmem:[#allocation74_spill] sm:$0xff] }
 0x37e   : > { %v12385_v57 = vmax.f32 %v2803_v14, %v2999_v38  ;;  %v2741_v5 = vrot.slane %v17464_v51, 6  ;;  %v2742_v44 = vrot.slane %v17465_v25, 6  ;;  %v17466_v19 = vrot.slane %v17447_v17, 6 }
 0x37f   : > { %17460 = vst [vmem:[#allocation10_spill] sm:$0xff] %v12383_v63  ;;  %v17468_v7 = vrot.slane %v17467_v60, 6  ;;  %v17471_v48 = vrot.slane %v17470_v61, 6  ;;  %v3820_v60 = vmax.f32 %v3780_v13, %v12383_v63  ;;  %v17478_v31 = vrot.slane %v17334_v59, 6  ;;  %v17488_v63 = vld [vmem:[#allocation111_spill] sm:$0xff] }
 0x380   : > { %17461 = vst [vmem:[#allocation108_spill] sm:$0xff] %v12385_v57  ;;  %v3821_v53 = vmax.f32 %v3781_v30, %v12385_v57  ;;  %v17480_v13 = vrot.slane %v17398_v12, 6  ;;  %v17489_v57 = vrot.slane %v17488_v63, 6  ;;  %v17499_v63 = vrot.slane %v11575_v35, 6  ;;  %v17506_v35 = vld [vmem:[#allocation20_spill] sm:$0xff] }
 0x381   : > { %v12397_v46 = vsel %vm2076_vm4, %v17468_v7, %v17466_v19  ;;  %v12403_v14 = vsel %vm2076_vm4, %v17471_v48, %v2731_v27  ;;  %v17473_v19 = vld [vmem:[#allocation19_spill] sm:$0xff]  ;;  %v17476_v48 = vrot.slane %v17332_v6, 6  ;;  %v12427_v42 = vsel %vm2076_vm4, %v17478_v31, %v2734_v22  ;;  %v17486_v31 = vld [vmem:[#allocation137_spill] sm:$0xff] }
 0x382   : > { %17469 = vst [vmem:[#allocation41_spill] sm:$0xff] %v12397_v46  ;;  %17472 = vst [vmem:[#allocation42_spill] sm:$0xff] %v12403_v14  ;;  %v17474_v7 = vrot.slane %v17473_v19, 6  ;;  %v12433_v30 = vsel %vm2076_vm4, %v17480_v13, %v2735_v56  ;;  %v17482_v19 = vrot.slane %v17416_v45, 6  ;;  %v3853_v12 = vmax.f32 %v17487_v39, %v3821_v53  ;;  %v17491_v45 = vld [vmem:[#allocation92_spill] sm:$0xff] }
 0x383   : > { %v12421_v38 = vsel %vm2076_vm4, %v17476_v48, %v2733_v34  ;;  %17479 = vst [vmem:[#allocation77_spill] sm:$0xff] %v12427_v42  ;;  %17481 = vst [vmem:[#allocation123_spill] sm:$0xff] %v12433_v30  ;;  %v3852_v48 = vmax.f32 %v17486_v31, %v3820_v60  ;;  %v12453_v13 = vsel %vm2076_vm4, %v17489_v57, %v2738_v9  ;;  %v17492_v20 = vrot.slane %v17491_v45, 6 }
 0x384   : > { %v12415_v61 = vsel %vm2076_vm4, %v17474_v7, %v2732_v32  ;;  %17477 = vst [vmem:[#allocation122_spill] sm:$0xff] %v12421_v38  ;;  %v12439_v6 = vsel %vm2076_vm4, %v17482_v19, %v2736_v52  ;;  %v17484_v7 = vrot.slane %v17424_v4, 6  ;;  %17490 = vst [vmem:[#allocation135_spill] sm:$0xff] %v12453_v13  ;;  %v17494_v4 = vld [vmem:[#allocation60_spill] sm:$0xff]  ;;  %v17497_v39 = vrot.slane %v11222_v28, 6  ;;  %v17504_v28 = vld [vmem:[#allocation78_spill] sm:$0xff] }
 0x385   : > { %17475 = vst [vmem:[#allocation27_spill] sm:$0xff] %v12415_v61  ;;  %17483 = vst [vmem:[#allocation124_spill] sm:$0xff] %v12439_v6  ;;  %v12459_v19 = vsel %vm2076_vm4, %v17492_v20, %v2739_v55  ;;  %v17495_v3 = vrot.slane %v17494_v4, 6  ;;  %v12477_v57 = vsel %vm2076_vm4, %v17499_v63, %v2742_v44  ;;  %v17501_v20 = vld [vmem:[#allocation89_spill] sm:$0xff]  ;;  %v17503_v31 = vrot.slane %v17447_v17, 6 }
 0x386   : > { %v12445_v59 = vsel %vm2076_vm4, %v17484_v7, %v2737_v43  ;;  %17493 = vst [vmem:[#allocation136_spill] sm:$0xff] %v12459_v19  ;;  %v12471_v53 = vsel %vm2076_vm4, %v17497_v39, %v2741_v5  ;;  %17500 = vst [vmem:[#allocation63_spill] sm:$0xff] %v12477_v57  ;;  %v17502_v60 = vrot.slane %v17501_v20, 6  ;;  %v7497_v45 = vpack.c.bf16 %v3853_v12, %v3852_v48 }
 0x387   : > { %17485 = vst [vmem:[#allocation125_spill] sm:$0xff] %v12445_v59  ;;  %v12465_v7 = vsel %vm2076_vm4, %v17495_v3, %v2740_v10  ;;  %17498 = vst [vmem:[#allocation32_spill] sm:$0xff] %v12471_v53  ;;  %v17505_v4 = vrot.slane %v17504_v28, 6  ;;  %v17507_v50 = vrot.slane %v17506_v35, 6  ;;  %v12503_v2 = vsel %vm2076_vm4, %v2733_v34, %v17509_v26  ;;  %v17516_v26 = vld [vmem:[#allocation48_spill] sm:$0xff]  ;;  %v17551_v59 = vld [vmem:[#allocation117_spill] sm:$0xff] }
 0x388   : > { %17496 = vst [vmem:[#allocation75_spill] sm:$0xff] %v12465_v7  ;;  %v12485_v3 = vsel %vm2076_vm4, %v17503_v31, %v17502_v60  ;;  %v17510_v60 = vld [vmem:[#allocation64_spill] sm:$0xff]  ;;  %v17517_v34 = vrot.slane %v17516_v26, 6  ;;  %7499 = vmatprep.subr.msk.bf16.mxu1 %vm9487_vm6, %v7497_v45  ;;  %v2877_v11 = vrot.slane %v17516_v26, 2  ;;  %v17537_v26 = vld [vmem:[#allocation61_spill] sm:$0xff] }
 0x389   : > { %v12491_v39 = vsel %vm2076_vm4, %v2731_v27, %v17505_v4  ;;  %v12497_v63 = vsel %vm2076_vm4, %v2732_v32, %v17507_v50  ;;  %v17511_v48 = vrot.slane %v17510_v60, 6  ;;  %v17512_v27 = vld [vmem:[#allocation66_spill] sm:$0xff]  ;;  %v17514_v50 = vld [vmem:[#allocation69_spill] sm:$0xff]  ;;  %7502 = vmatpush3.bf16.xpose.msk.msra.mxu1 %vm9487_vm6, %v12325_v29 }
 0x38a   : > { %v17513_v31 = vrot.slane %v17512_v27, 6  ;;  %v17515_v32 = vrot.slane %v17514_v50, 6  ;;  %v12527_v53 = vsel %vm2076_vm4, %v2737_v43, %v17517_v34  ;;  %v17527_v34 = vld [vmem:[#allocation25_spill] sm:$0xff]  ;;  %v2876_v29 = vrot.slane %v17514_v50, 2 }
 0x38b   : > { %v12509_v12 = vsel %vm2076_vm4, %v2734_v22, %v17511_v48  ;;  %v17518_v22 = vld [vmem:[#allocation104_spill] sm:$0xff]  ;;  %v17528_v45 = vrot.slane %v17527_v34, 6 }
 0x38c   : > { %v12515_v4 = vsel %vm2076_vm4, %v2735_v56, %v17513_v31  ;;  %v12521_v57 = vsel %vm2076_vm4, %v2736_v52, %v17515_v32  ;;  %v17519_v48 = vrot.slane %v17518_v22, 6  ;;  %v17521_v31 = vld [vmem:[#allocation53_spill] sm:$0xff]  ;;  %v17524_v32 = vld [vmem:[#allocation54_spill] sm:$0xff] }
 0x38d   : > { %v17522_v7 = vrot.slane %v17521_v31, 6  ;;  %v17525_v19 = vrot.slane %v17524_v32, 6  ;;  %v12553_v13 = vsel %vm2076_vm4, %v2741_v5, %v17528_v45  ;;  %v2874_v5 = vrot.slane %v17510_v60, 2 }
 0x38e   : > { %v12535_v56 = vsel %vm2076_vm4, %v2738_v9, %v17519_v48  ;;  %17529 = vst [vmem:[#allocation56_spill] sm:$0xff] %v12553_v13  ;;  %v17530_v9 = vld [vmem:[#allocation119_spill] sm:$0xff]  ;;  %v2875_v45 = vrot.slane %v17512_v27, 2  ;;  %v2878_v13 = vrot.slane %v17518_v22, 2  ;;  %v17535_v27 = vld [vmem:[#allocation50_spill] sm:$0xff]  ;;  %v17538_v22 = vrot.slane %v17537_v26, 2 }
 0x38f   : > { %17520 = vst [vmem:[#allocation101_spill] sm:$0xff] %v12535_v56  ;;  %v12541_v52 = vsel %vm2076_vm4, %v2739_v55, %v17522_v7  ;;  %v12547_v43 = vsel %vm2076_vm4, %v2740_v10, %v17525_v19  ;;  %v17531_v48 = vrot.slane %v17530_v9, 6  ;;  %v2870_v7 = vrot.slane %v17501_v20, 2  ;;  %v17548_v56 = vld [vmem:[#allocation59_spill] sm:$0xff] }
 0x390   : > { %17523 = vst [vmem:[#allocation65_spill] sm:$0xff] %v12541_v52  ;;  %17526 = vst [vmem:[#allocation68_spill] sm:$0xff] %v12547_v43  ;;  %v2871_v10 = vrot.slane %v17504_v28, 2  ;;  %v2872_v19 = vrot.slane %v17506_v35, 2  ;;  %v2873_v43 = vrot.slane %v17508_v0, 2  ;;  %v2880_v20 = vrot.slane %v17524_v32, 2  ;;  %7108 = vmatmul.mubr.msk.f32.vlgmr.msra.gmra.mrb[32].mxu1 %vm1061_vm1, %v12076_v8 }
 0x391   : > { %v12562_v55 = vsel %vm2076_vm4, %v2742_v44, %v17531_v48  ;;  %v2879_v44 = vrot.slane %v17521_v31, 2  ;;  %v2881_v28 = vrot.slane %v17527_v34, 2  ;;  %v2882_v35 = vrot.slane %v17530_v9, 2  ;;  %v17533_v48 = vld [vmem:[#allocation79_spill] sm:$0xff] }
 0x392   : > { %17532 = vst [vmem:[#allocation103_spill] sm:$0xff] %v12562_v55  ;;  %v17534_v0 = vrot.slane %v17533_v48, 2  ;;  %v17536_v55 = vrot.slane %v17535_v27, 2  ;;  %v3040_v31 = vsel %vm2301_vm5, %v2872_v19, %v17538_v22  ;;  %v17539_v32 = vrot.slane %v17331_v16, 2  ;;  %v17546_v52 = vld [vmem:[#allocation83_spill] sm:$0xff] }
 0x393   : > { %v17540_v9 = vrot.slane %v17333_v62, 2  ;;  %v17542_v27 = vrot.slane %v17414_v49, 2  ;;  %v17543_v16 = vrot.slane %v17417_v47, 2  ;;  %v17549_v49 = vrot.slane %v17548_v56, 2 }
 0x394   : > { %v3038_v60 = vsel %vm2301_vm5, %v2870_v7, %v17534_v0  ;;  %v3039_v50 = vsel %vm2301_vm5, %v2871_v10, %v17536_v55  ;;  %v3041_v34 = vsel %vm2301_vm5, %v2873_v43, %v17539_v32  ;;  %v17541_v0 = vrot.slane %v17360_v15, 2  ;;  %v17544_v32 = vld [vmem:[#allocation110_spill] sm:$0xff] }
 0x395   : > { %v3042_v48 = vsel %vm2301_vm5, %v2874_v5, %v17540_v9  ;;  %v3044_v26 = vsel %vm2301_vm5, %v2876_v29, %v17542_v27  ;;  %v3045_v22 = vsel %vm2301_vm5, %v2877_v11, %v17543_v16  ;;  %v17545_v62 = vrot.slane %v17544_v32, 2 }
 0x396   : > { %v3043_v55 = vsel %vm2301_vm5, %v2875_v45, %v17541_v0  ;;  %v17547_v15 = vrot.slane %v17546_v52, 2  ;;  %v3048_v27 = vsel %vm2301_vm5, %v2880_v20, %v17549_v49  ;;  %v17550_v47 = vrot.slane %v11215_v41, 2 }
 0x397   : > { %v3046_v9 = vsel %vm2301_vm5, %v2878_v13, %v17545_v62  ;;  %v17552_v32 = vrot.slane %v17551_v59, 2  ;;  %v17553_v52 = vrot.slane %v17447_v17, 2  ;;  %v17555_v56 = vrot.slane %v17448_v21, 2 }
 0x398   : > { %v3047_v0 = vsel %vm2301_vm5, %v2879_v44, %v17547_v15  ;;  %v3049_v16 = vsel %vm2301_vm5, %v2881_v28, %v17550_v47  ;;  %v17557_v41 = vrot.slane %v17449_v33, 2  ;;  %v17559_v47 = vrot.slane %v17454_v54, 2 }
 0x399   : > { %v3050_v62 = vsel %vm2301_vm5, %v2882_v35, %v17552_v32  ;;  %v12633_v15 = vsel %vm2301_vm5, %v17553_v52, %v2870_v7  ;;  %v12639_v49 = vsel %vm2301_vm5, %v17555_v56, %v2871_v10  ;;  %v17561_v7 = vrot.slane %v17455_v1, 2  ;;  %v17580_v52 = vld [vmem:[#allocation101_spill] sm:$0xff] }
 0x39a   : > { %17554 = vst [vmem:[#allocation120_spill] sm:$0xff] %v12633_v15  ;;  %17556 = vst [vmem:[#allocation57_spill] sm:$0xff] %v12639_v49  ;;  %v12645_v59 = vsel %vm2301_vm5, %v17557_v41, %v2872_v19  ;;  %v12651_v17 = vsel %vm2301_vm5, %v17559_v47, %v2873_v43  ;;  %v17563_v33 = vrot.slane %v17456_v18, 2  ;;  %v17565_v54 = vrot.slane %v17457_v40, 2  ;;  %v17582_v41 = vld [vmem:[#allocation65_spill] sm:$0xff]  ;;  %v17614_v15 = vld [vmem:[#allocation4_spill] sm:$0xff] }
 0x39b   : > { %17558 = vst [vmem:[#allocation58_spill] sm:$0xff] %v12645_v59  ;;  %17560 = vst [vmem:[#allocation23_spill] sm:$0xff] %v12651_v17  ;;  %v12657_v21 = vsel %vm2301_vm5, %v17561_v7, %v2874_v5  ;;  %v17567_v1 = vrot.slane %v17458_v24, 2  ;;  %v17569_v8 = vrot.slane %v17459_v23, 2  ;;  %v17571_v5 = vrot.slane %v17462_v36, 2  ;;  %v17584_v7 = vld [vmem:[#allocation68_spill] sm:$0xff] }
 0x39c   : > { %17562 = vst [vmem:[#allocation121_spill] sm:$0xff] %v12657_v21  ;;  %v12665_v10 = vsel %vm2301_vm5, %v17563_v33, %v2875_v45  ;;  %v12671_v43 = vsel %vm2301_vm5, %v17565_v54, %v2876_v29  ;;  %v17573_v45 = vrot.slane %v17463_v58, 2  ;;  %v3118_v29 = vmax.f32 %v12485_v3, %v3038_v60  ;;  %v17586_v54 = vld [vmem:[#allocation56_spill] sm:$0xff]  ;;  %v17610_v21 = vld [vmem:[#allocation105_spill] sm:$0xff]  ;;  %v17612_v59 = vld [vmem:[#allocation115_spill] sm:$0xff] }
 0x39d   : > { %17564 = vst [vmem:[#allocation87_spill] sm:$0xff] %v12665_v10  ;;  %17566 = vst [vmem:[#allocation74_spill] sm:$0xff] %v12671_v43  ;;  %v12677_v19 = vsel %vm2301_vm5, %v17567_v1, %v2877_v11  ;;  %v12683_v18 = vsel %vm2301_vm5, %v17569_v8, %v2878_v13  ;;  %v12689_v40 = vsel %vm2301_vm5, %v17571_v5, %v2879_v44  ;;  %v17575_v11 = vrot.slane %v17464_v51, 2  ;;  %v17588_v8 = vld [vmem:[#allocation103_spill] sm:$0xff]  ;;  %v17608_v43 = vld [vmem:[#allocation100_spill] sm:$0xff] }
 0x39e   : > { %17568 = vst [vmem:[#allocation19_spill] sm:$0xff] %v12677_v19  ;;  %17570 = vst [vmem:[#allocation137_spill] sm:$0xff] %v12683_v18  ;;  %v12695_v24 = vsel %vm2301_vm5, %v17573_v45, %v2880_v20  ;;  %v17577_v13 = vrot.slane %v17465_v25, 2  ;;  %v3122_v44 = vmax.f32 %v12491_v39, %v3039_v50  ;;  %v3126_v20 = vmax.f32 %v12497_v63, %v3040_v31  ;;  %v17590_v31 = vld [vmem:[#allocation34_spill] sm:$0xff]  ;;  %v17591_v50 = vld [vmem:[#allocation84_spill] sm:$0xff] }
 0x39f   : > { %17572 = vst [vmem:[#allocation138_spill] sm:$0xff] %v12689_v40  ;;  %17574 = vst [vmem:[#allocation111_spill] sm:$0xff] %v12695_v24  ;;  %v12701_v23 = vsel %vm2301_vm5, %v17575_v11, %v2881_v28  ;;  %v3130_v25 = vmax.f32 %v12503_v2, %v3041_v34  ;;  %v3134_v3 = vmax.f32 %v12509_v12, %v3042_v48  ;;  %v3206_v11 = vrot.slane %v3118_v29, 6  ;;  %v17593_v45 = vld [vmem:[#allocation85_spill] sm:$0xff]  ;;  %v17601_v51 = vld [vmem:[#allocation67_spill] sm:$0xff] }
 0x3a0   : > { %17576 = vst [vmem:[#allocation92_spill] sm:$0xff] %v12701_v23  ;;  %v12707_v36 = vsel %vm2301_vm5, %v17577_v13, %v2882_v35  ;;  %v3138_v39 = vmax.f32 %v12515_v4, %v3043_v55  ;;  %v3142_v63 = vmax.f32 %v12521_v57, %v3044_v26  ;;  %v3146_v2 = vmax.f32 %v12527_v53, %v3045_v22  ;;  %v17600_v35 = vld [vmem:[#allocation24_spill] sm:$0xff]  ;;  %v17605_v40 = vld [vmem:[#allocation86_spill] sm:$0xff]  ;;  %v17606_v18 = vld [vmem:[#allocation31_spill] sm:$0xff] }
 0x3a1   : > { %17578 = vst [vmem:[#allocation60_spill] sm:$0xff] %v12707_v36  ;;  %v3150_v12 = vmax.f32 %v17580_v52, %v3046_v9  ;;  %v3154_v4 = vmax.f32 %v17582_v41, %v3047_v0  ;;  %v3158_v57 = vmax.f32 %v17584_v7, %v3048_v27  ;;  %v3162_v53 = vmax.f32 %v17586_v54, %v3049_v16  ;;  %v17602_v36 = vld [vmem:[#allocation98_spill] sm:$0xff]  ;;  %v17603_v23 = vld [vmem:[#allocation80_spill] sm:$0xff]  ;;  %v17611_v17 = vld [vmem:[#allocation21_spill] sm:$0xff] }
 0x3a2   : > { %v3166_v9 = vmax.f32 %v17588_v8, %v3050_v62  ;;  %v3207_v0 = vrot.slane %v3122_v44, 6  ;;  %v3208_v13 = vrot.slane %v3126_v20, 6  ;;  %v3209_v52 = vrot.slane %v3130_v25, 6  ;;  %v17592_v8 = vld [vmem:[#allocation9_spill] sm:$0xff]  ;;  %v17594_v44 = vld [vmem:[#allocation30_spill] sm:$0xff]  ;;  %v17604_v24 = vld [vmem:[#allocation8_spill] sm:$0xff] }
 0x3a3   : > { %v3210_v41 = vrot.slane %v3134_v3, 6  ;;  %v3211_v47 = vrot.slane %v3138_v39, 6  ;;  %v3212_v27 = vrot.slane %v3142_v63, 6  ;;  %v3213_v7 = vrot.slane %v3146_v2, 6  ;;  %v17595_v25 = vld [vmem:[#allocation102_spill] sm:$0xff]  ;;  %v17596_v39 = vld [vmem:[#allocation15_spill] sm:$0xff] }
 0x3a4   : > { %v3214_v56 = vrot.slane %v3150_v12, 6  ;;  %v3215_v33 = vrot.slane %v3154_v4, 6  ;;  %v3216_v32 = vrot.slane %v3158_v57, 6  ;;  %v3217_v16 = vrot.slane %v3162_v53, 6  ;;  %v17597_v2 = vld [vmem:[#allocation106_spill] sm:$0xff]  ;;  %v17599_v53 = vld [vmem:[#allocation116_spill] sm:$0xff] }
 0x3a5   : > { %v3218_v54 = vrot.slane %v3166_v9, 6  ;;  %v3234_v1 = vrot.slane %v17590_v31, 6  ;;  %v3235_v62 = vrot.slane %v17591_v50, 6  ;;  %v3236_v60 = vrot.slane %v17592_v8, 6  ;;  %v17598_v4 = vld [vmem:[#allocation18_spill] sm:$0xff]  ;;  %v17609_v10 = vld [vmem:[#allocation16_spill] sm:$0xff] }
 0x3a6   : > { %v3237_v29 = vrot.slane %v17593_v45, 6  ;;  %v3238_v20 = vrot.slane %v17594_v44, 6  ;;  %v3239_v3 = vrot.slane %v17595_v25, 6  ;;  %v3240_v63 = vrot.slane %v17596_v39, 6  ;;  %v17607_v19 = vld [vmem:[#allocation14_spill] sm:$0xff]  ;;  %v17613_v49 = vld [vmem:[#allocation13_spill] sm:$0xff] }
 0x3a7   : > { %v3241_v12 = vrot.slane %v17597_v2, 6  ;;  %v3242_v57 = vrot.slane %v17598_v4, 6  ;;  %v3243_v9 = vrot.slane %v17599_v53, 6  ;;  %v3244_v28 = vrot.slane %v17600_v35, 6 }
 0x3a8   : > { %v3245_v58 = vrot.slane %v17601_v51, 6  ;;  %v3246_v5 = vrot.slane %v17602_v36, 6  ;;  %v3262_v22 = vrot.slane %v17603_v23, 6  ;;  %v3263_v26 = vrot.slane %v17604_v24, 6  ;;  %v17615_v24 = vld [vmem:[#allocation97_spill] sm:$0xff] }
 0x3a9   : > { %v3264_v55 = vrot.slane %v17605_v40, 6  ;;  %v3265_v48 = vrot.slane %v17606_v18, 6  ;;  %v3266_v34 = vrot.slane %v17607_v19, 6  ;;  %v3267_v6 = vrot.slane %v17608_v43, 6 }
 0x3aa   : > { %v3268_v30 = vrot.slane %v17609_v10, 6  ;;  %v3269_v42 = vrot.slane %v17610_v21, 6  ;;  %v3270_v38 = vrot.slane %v17611_v17, 6  ;;  %v3271_v61 = vrot.slane %v17612_v59, 6 }
 0x3ab   : > { %v3272_v14 = vrot.slane %v17613_v49, 6  ;;  %v3273_v46 = vrot.slane %v17614_v15, 6  ;;  %v3274_v40 = vrot.slane %v17615_v24, 6  ;;  %v12776_v18 = vsel %vm2076_vm4, %v3234_v1, %v3262_v22 }
 0x3ac   : > { %v12780_v43 = vsel %vm2076_vm4, %v3235_v62, %v3263_v26  ;;  %v12784_v21 = vsel %vm2076_vm4, %v3236_v60, %v3264_v55  ;;  %v12788_v59 = vsel %vm2076_vm4, %v3237_v29, %v3265_v48  ;;  %v12792_v15 = vsel %vm2076_vm4, %v3238_v20, %v3266_v34 }
 0x3ad   : > { %17616 = vst [vmem:[#allocation89_spill] sm:$0xff] %v12792_v15  ;;  %v12796_v22 = vsel %vm2076_vm4, %v3239_v3, %v3267_v6  ;;  %v12800_v26 = vsel %vm2076_vm4, %v3240_v63, %v3268_v30  ;;  %v12804_v55 = vsel %vm2076_vm4, %v3241_v12, %v3269_v42  ;;  %v12808_v48 = vsel %vm2076_vm4, %v3242_v57, %v3270_v38  ;;  %v17675_v15 = vld [vmem:[#allocation92_spill] sm:$0xff] }
 0x3ae   : > { %17617 = vst [vmem:[#allocation78_spill] sm:$0xff] %v12796_v22  ;;  %17618 = vst [vmem:[#allocation20_spill] sm:$0xff] %v12800_v26  ;;  %v12812_v34 = vsel %vm2076_vm4, %v3243_v9, %v3271_v61  ;;  %v12816_v6 = vsel %vm2076_vm4, %v3244_v28, %v3272_v14  ;;  %v12820_v30 = vsel %vm2076_vm4, %v3245_v58, %v3273_v46  ;;  %v17663_v26 = vld [vmem:[#allocation19_spill] sm:$0xff]  ;;  %v17669_v22 = vld [vmem:[#allocation138_spill] sm:$0xff] }
 0x3af   : > { %17619 = vst [vmem:[#allocation99_spill] sm:$0xff] %v12804_v55  ;;  %17620 = vst [vmem:[#allocation64_spill] sm:$0xff] %v12808_v48  ;;  %v12824_v42 = vsel %vm2076_vm4, %v3246_v5, %v3274_v40  ;;  %v12828_v38 = vsel %vm2076_vm4, %v3206_v11, %v3234_v1  ;;  %v12832_v61 = vsel %vm2076_vm4, %v3207_v0, %v3235_v62  ;;  %v3350_v62 = vrot.slane %v17594_v44, 2  ;;  %v17635_v44 = vld [vmem:[#allocation86_spill] sm:$0xff]  ;;  %v17657_v55 = vld [vmem:[#allocation87_spill] sm:$0xff] }
 0x3b0   : > { %17621 = vst [vmem:[#allocation66_spill] sm:$0xff] %v12812_v34  ;;  %17622 = vst [vmem:[#allocation69_spill] sm:$0xff] %v12816_v6  ;;  %v12836_v14 = vsel %vm2076_vm4, %v3208_v13, %v3236_v60  ;;  %v12840_v46 = vsel %vm2076_vm4, %v3209_v52, %v3237_v29  ;;  %v12844_v40 = vsel %vm2076_vm4, %v3210_v41, %v3238_v20  ;;  %v3376_v20 = vrot.slane %v17635_v44, 2  ;;  %v17641_v44 = vld [vmem:[#allocation41_spill] sm:$0xff] }
 0x3b1   : > { %17623 = vst [vmem:[#allocation48_spill] sm:$0xff] %v12820_v30  ;;  %17624 = vst [vmem:[#allocation104_spill] sm:$0xff] %v12824_v42  ;;  %v12848_v1 = vsel %vm2076_vm4, %v3211_v47, %v3239_v3  ;;  %v12852_v11 = vsel %vm2076_vm4, %v3212_v27, %v3240_v63  ;;  %v12856_v60 = vsel %vm2076_vm4, %v3213_v7, %v3241_v12  ;;  %v3346_v27 = vrot.slane %v17590_v31, 2  ;;  %v17637_v63 = vld [vmem:[#allocation100_spill] sm:$0xff] }
 0x3b2   : > { %17625 = vst [vmem:[#allocation53_spill] sm:$0xff] %v12844_v40  ;;  %17626 = vst [vmem:[#allocation54_spill] sm:$0xff] %v12848_v1  ;;  %v12860_v0 = vsel %vm2076_vm4, %v3214_v56, %v3242_v57  ;;  %v12864_v13 = vsel %vm2076_vm4, %v3215_v33, %v3243_v9  ;;  %v12868_v47 = vsel %vm2076_vm4, %v3216_v32, %v3244_v28  ;;  %v3347_v56 = vrot.slane %v17591_v50, 2  ;;  %v17639_v57 = vld [vmem:[#allocation115_spill] sm:$0xff]  ;;  %v17678_v40 = vld [vmem:[#allocation60_spill] sm:$0xff] }
 0x3b3   : > { %17627 = vst [vmem:[#allocation25_spill] sm:$0xff] %v12852_v11  ;;  %17628 = vst [vmem:[#allocation119_spill] sm:$0xff] %v12856_v60  ;;  %v12872_v52 = vsel %vm2076_vm4, %v3217_v16, %v3245_v58  ;;  %v12876_v41 = vsel %vm2076_vm4, %v3218_v54, %v3246_v5  ;;  %v3348_v7 = vrot.slane %v17592_v8, 2  ;;  %v3349_v33 = vrot.slane %v17593_v45, 2  ;;  %v17634_v8 = vld [vmem:[#allocation8_spill] sm:$0xff]  ;;  %v17660_v60 = vld [vmem:[#allocation74_spill] sm:$0xff] }
 0x3b4   : > { %17629 = vst [vmem:[#allocation79_spill] sm:$0xff] %v12860_v0  ;;  %17630 = vst [vmem:[#allocation50_spill] sm:$0xff] %v12864_v13  ;;  %v3351_v28 = vrot.slane %v17595_v25, 2  ;;  %v3352_v32 = vrot.slane %v17596_v39, 2  ;;  %v3353_v58 = vrot.slane %v17597_v2, 2  ;;  %v3354_v16 = vrot.slane %v17598_v4, 2 }
 0x3b5   : > { %17631 = vst [vmem:[#allocation61_spill] sm:$0xff] %v12868_v47  ;;  %17632 = vst [vmem:[#allocation110_spill] sm:$0xff] %v12872_v52  ;;  %v3355_v5 = vrot.slane %v17599_v53, 2  ;;  %v3356_v31 = vrot.slane %v17600_v35, 2  ;;  %v3357_v50 = vrot.slane %v17601_v51, 2  ;;  %v3358_v54 = vrot.slane %v17602_v36, 2 }
 0x3b6   : > { %17633 = vst [vmem:[#allocation83_spill] sm:$0xff] %v12876_v41  ;;  %v3374_v45 = vrot.slane %v17603_v23, 2  ;;  %v3375_v29 = vrot.slane %v17634_v8, 2  ;;  %v17636_v25 = vld [vmem:[#allocation31_spill] sm:$0xff]  ;;  %v3378_v39 = vrot.slane %v17607_v19, 2  ;;  %v3379_v2 = vrot.slane %v17637_v63, 2 }
 0x3b7   : > { %v3377_v3 = vrot.slane %v17636_v25, 2  ;;  %v3380_v12 = vrot.slane %v17609_v10, 2  ;;  %v17638_v4 = vld [vmem:[#allocation105_spill] sm:$0xff]  ;;  %v3382_v51 = vrot.slane %v17611_v17, 2  ;;  %v3383_v36 = vrot.slane %v17639_v57, 2  ;;  %v17640_v53 = vld [vmem:[#allocation4_spill] sm:$0xff] }
 0x3b8   : > { %v3381_v35 = vrot.slane %v17638_v4, 2  ;;  %v3384_v23 = vrot.slane %v17613_v49, 2  ;;  %v3385_v9 = vrot.slane %v17640_v53, 2  ;;  %v3386_v8 = vrot.slane %v17615_v24, 2  ;;  %v17642_v25 = vld [vmem:[#allocation120_spill] sm:$0xff]  ;;  %v17644_v41 = vld [vmem:[#allocation42_spill] sm:$0xff] }
 0x3b9   : > { %v17643_v42 = vmax.f32 %v17641_v44, %v17642_v25  ;;  %v17645_v63 = vld [vmem:[#allocation57_spill] sm:$0xff]  ;;  %v17647_v52 = vld [vmem:[#allocation27_spill] sm:$0xff]  ;;  %v17648_v4 = vld [vmem:[#allocation58_spill] sm:$0xff] }
 0x3ba   : > { %v17646_v30 = vmax.f32 %v17644_v41, %v17645_v63  ;;  %v17649_v6 = vmax.f32 %v17647_v52, %v17648_v4  ;;  %v17650_v47 = vld [vmem:[#allocation122_spill] sm:$0xff]  ;;  %v17651_v57 = vld [vmem:[#allocation23_spill] sm:$0xff]  ;;  %v17653_v13 = vld [vmem:[#allocation77_spill] sm:$0xff] }
 0x3bb   : > { %v3402_v19 = vrot.slane %v17643_v42, 2  ;;  %v17652_v34 = vmax.f32 %v17650_v47, %v17651_v57  ;;  %v17654_v53 = vld [vmem:[#allocation121_spill] sm:$0xff]  ;;  %v17656_v0 = vld [vmem:[#allocation123_spill] sm:$0xff]  ;;  %v17659_v25 = vld [vmem:[#allocation124_spill] sm:$0xff] }
 0x3bc   : > { %v3403_v10 = vrot.slane %v17646_v30, 2  ;;  %v3404_v17 = vrot.slane %v17649_v6, 2  ;;  %v17655_v48 = vmax.f32 %v17653_v13, %v17654_v53  ;;  %v17658_v44 = vmax.f32 %v17656_v0, %v17657_v55  ;;  %v17662_v63 = vld [vmem:[#allocation125_spill] sm:$0xff]  ;;  %v17665_v4 = vld [vmem:[#allocation135_spill] sm:$0xff]  ;;  %v17668_v57 = vld [vmem:[#allocation136_spill] sm:$0xff] }
 0x3bd   : > { %v3405_v49 = vrot.slane %v17652_v34, 2  ;;  %v17661_v41 = vmax.f32 %v17659_v25, %v17660_v60  ;;  %v17664_v52 = vmax.f32 %v17662_v63, %v17663_v26  ;;  %v17666_v11 = vld [vmem:[#allocation137_spill] sm:$0xff]  ;;  %v17670_v13 = vmax.f32 %v17668_v57, %v17669_v22  ;;  %v17671_v53 = vld [vmem:[#allocation75_spill] sm:$0xff] }
 0x3be   : > { %v3406_v24 = vrot.slane %v17655_v48, 2  ;;  %v3407_v42 = vrot.slane %v17658_v44, 2  ;;  %v17667_v47 = vmax.f32 %v17665_v4, %v17666_v11  ;;  %v17672_v1 = vld [vmem:[#allocation111_spill] sm:$0xff]  ;;  %v17674_v44 = vld [vmem:[#allocation32_spill] sm:$0xff]  ;;  %v3430_v11 = vsel %vm2301_vm5, %v3374_v45, %v3402_v19 }
 0x3bf   : > { %v3408_v30 = vrot.slane %v17661_v41, 2  ;;  %v3409_v6 = vrot.slane %v17664_v52, 2  ;;  %v3411_v48 = vrot.slane %v17670_v13, 2  ;;  %v17673_v55 = vmax.f32 %v17671_v53, %v17672_v1  ;;  %v17677_v41 = vld [vmem:[#allocation63_spill] sm:$0xff]  ;;  %v17699_v53 = vld [vmem:[#allocation50_spill] sm:$0xff] }
 0x3c0   : > { %v3410_v34 = vrot.slane %v17667_v47, 2  ;;  %v17676_v60 = vmax.f32 %v17674_v44, %v17675_v15  ;;  %v17679_v26 = vmax.f32 %v17677_v41, %v17678_v40  ;;  %v3431_v52 = vsel %vm2301_vm5, %v3375_v29, %v3403_v10  ;;  %v17704_v41 = vld [vmem:[#allocation69_spill] sm:$0xff] }
 0x3c1   : > { %v3412_v0 = vrot.slane %v17673_v55, 2  ;;  %v3432_v22 = vsel %vm2301_vm5, %v3376_v20, %v3404_v17  ;;  %v3433_v1 = vsel %vm2301_vm5, %v3377_v3, %v3405_v49  ;;  %v3434_v15 = vsel %vm2301_vm5, %v3378_v39, %v3406_v24 }
 0x3c2   : > { %v3413_v25 = vrot.slane %v17676_v60, 2  ;;  %v3414_v63 = vrot.slane %v17679_v26, 2  ;;  %v3435_v4 = vsel %vm2301_vm5, %v3379_v2, %v3407_v42  ;;  %v3436_v40 = vsel %vm2301_vm5, %v3380_v12, %v3408_v30  ;;  %v17703_v60 = vld [vmem:[#allocation61_spill] sm:$0xff] }
 0x3c3   : > { %v3437_v19 = vsel %vm2301_vm5, %v3381_v35, %v3409_v6  ;;  %v3438_v10 = vsel %vm2301_vm5, %v3382_v51, %v3410_v34  ;;  %v3439_v17 = vsel %vm2301_vm5, %v3383_v36, %v3411_v48  ;;  %v3440_v49 = vsel %vm2301_vm5, %v3384_v23, %v3412_v0  ;;  %v17701_v0 = vld [vmem:[#allocation66_spill] sm:$0xff] }
 0x3c4   : > { %v3441_v24 = vsel %vm2301_vm5, %v3385_v9, %v3413_v25  ;;  %v3442_v42 = vsel %vm2301_vm5, %v3386_v8, %v3414_v63  ;;  %v3458_v30 = vsel %vm2301_vm5, %v3346_v27, %v3374_v45  ;;  %v3459_v6 = vsel %vm2301_vm5, %v3347_v56, %v3375_v29  ;;  %v17706_v63 = vld [vmem:[#allocation110_spill] sm:$0xff] }
 0x3c5   : > { %v3460_v47 = vsel %vm2301_vm5, %v3348_v7, %v3376_v20  ;;  %v3461_v34 = vsel %vm2301_vm5, %v3349_v33, %v3377_v3  ;;  %v3462_v57 = vsel %vm2301_vm5, %v3350_v62, %v3378_v39  ;;  %v3463_v13 = vsel %vm2301_vm5, %v3351_v28, %v3379_v2 }
 0x3c6   : > { %v3464_v48 = vsel %vm2301_vm5, %v3352_v32, %v3380_v12  ;;  %v3465_v27 = vsel %vm2301_vm5, %v3353_v58, %v3381_v35  ;;  %v3466_v56 = vsel %vm2301_vm5, %v3354_v16, %v3382_v51  ;;  %v3467_v7 = vsel %vm2301_vm5, %v3355_v5, %v3383_v36  ;;  %v17693_v35 = vld [vmem:[#allocation99_spill] sm:$0xff] }
 0x3c7   : > { %v3468_v33 = vsel %vm2301_vm5, %v3356_v31, %v3384_v23  ;;  %v3469_v62 = vsel %vm2301_vm5, %v3357_v50, %v3385_v9  ;;  %v3470_v28 = vsel %vm2301_vm5, %v3358_v54, %v3386_v8  ;;  %v12996_v32 = vmax.f32 %v12828_v38, %v3458_v30  ;;  %v17695_v36 = vld [vmem:[#allocation79_spill] sm:$0xff]  ;;  %v17697_v9 = vld [vmem:[#allocation64_spill] sm:$0xff] }
 0x3c8   : > { %v12999_v58 = vmax.f32 %v12776_v18, %v3430_v11  ;;  %v13002_v16 = vmax.f32 %v12832_v61, %v3459_v6  ;;  %v13005_v5 = vmax.f32 %v12780_v43, %v3431_v52  ;;  %v13008_v31 = vmax.f32 %v12836_v14, %v3460_v47  ;;  %v17683_v18 = vld [vmem:[#allocation53_spill] sm:$0xff]  ;;  %v17687_v43 = vld [vmem:[#allocation54_spill] sm:$0xff]  ;;  %v17708_v52 = vld [vmem:[#allocation48_spill] sm:$0xff] }
 0x3c9   : > { %17680 = vst [vmem:[#allocation59_spill] sm:$0xff] %v12996_v32  ;;  %v13011_v50 = vmax.f32 %v12784_v21, %v3432_v22  ;;  %v13014_v54 = vmax.f32 %v12840_v46, %v3461_v34  ;;  %v13017_v38 = vmax.f32 %v12788_v59, %v3433_v1  ;;  %v13020_v45 = vmax.f32 %v17683_v18, %v3462_v57  ;;  %v17685_v61 = vld [vmem:[#allocation89_spill] sm:$0xff]  ;;  %v17688_v14 = vld [vmem:[#allocation78_spill] sm:$0xff]  ;;  %v17690_v46 = vld [vmem:[#allocation20_spill] sm:$0xff] }
 0x3ca   : > { %v13023_v29 = vmax.f32 %v17685_v61, %v3434_v15  ;;  %v13026_v20 = vmax.f32 %v17687_v43, %v3463_v13  ;;  %v13029_v3 = vmax.f32 %v17688_v14, %v3435_v4  ;;  %v17689_v21 = vld [vmem:[#allocation25_spill] sm:$0xff]  ;;  %v13035_v2 = vmax.f32 %v17690_v46, %v3436_v40  ;;  %v17691_v59 = vld [vmem:[#allocation119_spill] sm:$0xff]  ;;  %v13067_v1 = vld [vmem:[#allocation2] sm:$0xff] }
 0x3cb   : > { %17681 = vst [vmem:[#allocation117_spill] sm:$0xff] %v13014_v54  ;;  %17682 = vst [vmem:[#allocation101_spill] sm:$0xff] %v13017_v38  ;;  %v13032_v39 = vmax.f32 %v17689_v21, %v3464_v48  ;;  %v13038_v12 = vmax.f32 %v17691_v59, %v3465_v27  ;;  %v13041_v51 = vmax.f32 %v17693_v35, %v3437_v19  ;;  %v13069_v15 = vld [vmem:[#allocation2 + $0x20] sm:$0xff]  ;;  %v17710_v4 = vld [vmem:[#allocation83_spill] sm:$0xff]  ;;  %v1288_v48 = vrot.slane %v13067_v1, 7 }
 0x3cc   : > { %17684 = vst [vmem:[#allocation65_spill] sm:$0xff] %v13020_v45  ;;  %17686 = vst [vmem:[#allocation68_spill] sm:$0xff] %v13023_v29  ;;  %v13044_v23 = vmax.f32 %v17695_v36, %v3466_v56  ;;  %v13047_v8 = vmax.f32 %v17697_v9, %v3438_v10  ;;  %v13050_v55 = vmax.f32 %v17699_v53, %v3467_v7  ;;  %v17712_v19 = vld [vmem:[#allocation104_spill] sm:$0xff]  ;;  %v13091_v34 = vld [vmem:[#allocation2 + $0x28] sm:$0xff]  ;;  %v1289_v27 = vrot.slane %v13069_v15, 7 }
 0x3cd   : > { %17692 = vst [vmem:[#allocation56_spill] sm:$0xff] %v13038_v12  ;;  %17694 = vst [vmem:[#allocation103_spill] sm:$0xff] %v13041_v51  ;;  %v13053_v44 = vmax.f32 %v17701_v0, %v3439_v17  ;;  %v13056_v25 = vmax.f32 %v17703_v60, %v3468_v33  ;;  %v13059_v26 = vmax.f32 %v17704_v41, %v3440_v49  ;;  %v13103_v18 = vld [vmem:[#allocation2 + $0x30] sm:$0xff]  ;;  %v1317_v21 = vrot.slane %v13091_v34, 7  ;;  %v13113_v9 = vld [vmem:[#allocation2 + $0x18] sm:$0xff] }
 0x3ce   : > { %17696 = vst [vmem:[#allocation34_spill] sm:$0xff] %v13044_v23  ;;  %17698 = vst [vmem:[#allocation84_spill] sm:$0xff] %v13047_v8  ;;  %v13062_v11 = vmax.f32 %v17706_v63, %v3469_v62  ;;  %v13065_v22 = vmax.f32 %v17708_v52, %v3441_v24  ;;  %v13072_v40 = vmax.f32 %v17710_v4, %v3470_v28  ;;  %v13101_v28 = vld [vmem:[#allocation2 + $0x10] sm:$0xff]  ;;  %v13115_v53 = vld [vmem:[#allocation2 + $0x38] sm:$0xff]  ;;  %v1345_v63 = vrot.slane %v13103_v18, 7 }
 0x3cf   : > { %17700 = vst [vmem:[#allocation9_spill] sm:$0xff] %v13050_v55  ;;  %17702 = vst [vmem:[#allocation85_spill] sm:$0xff] %v13053_v44  ;;  %v13075_v10 = vmax.f32 %v17712_v19, %v3442_v42  ;;  %v3870_v17 = vmax.f32 %v12996_v32, %v13002_v16  ;;  %v3871_v49 = vmax.f32 %v12999_v58, %v13005_v5  ;;  %v13089_v42 = vld [vmem:[#allocation2 + $0x8] sm:$0xff]  ;;  %v1344_v41 = vrot.slane %v13101_v28, 7 }
 0x3d0   : > { %17705 = vst [vmem:[#allocation30_spill] sm:$0xff] %v13059_v26  ;;  %17707 = vst [vmem:[#allocation102_spill] sm:$0xff] %v13062_v11  ;;  %v3878_v24 = vmax.f32 %v13020_v45, %v13026_v20  ;;  %v3879_v30 = vmax.f32 %v13023_v29, %v13029_v3  ;;  %v3886_v6 = vmax.f32 %v13044_v23, %v13050_v55  ;;  %v1316_v14 = vrot.slane %v13089_v42, 7  ;;  %v17777_v55 = vld [vmem:[#allocation73_spill] sm:$0xff] }
 0x3d1   : > { %17709 = vst [vmem:[#allocation15_spill] sm:$0xff] %v13065_v22  ;;  %17711 = vst [vmem:[#allocation106_spill] sm:$0xff] %v13072_v40  ;;  %v3887_v47 = vmax.f32 %v13047_v8, %v13053_v44  ;;  %v3918_v57 = vmax.f32 %v3870_v17, %v13008_v31  ;;  %v3919_v13 = vmax.f32 %v3871_v49, %v13011_v50  ;;  %v1372_v49 = vrot.slane %v13113_v9, 7 }
 0x3d2   : > { %17713 = vst [vmem:[#allocation18_spill] sm:$0xff] %v13075_v10  ;;  %v3926_v56 = vmax.f32 %v3878_v24, %v13032_v39  ;;  %v3927_v7 = vmax.f32 %v3879_v30, %v13035_v2  ;;  %v3934_v33 = vmax.f32 %v3886_v6, %v13056_v25  ;;  %v1373_v24 = vrot.slane %v13115_v53, 7 }
 0x3d3   : > { %v3935_v62 = vmax.f32 %v3887_v47, %v13059_v26  ;;  %v3966_v61 = vmax.f32 %v3918_v57, %v13014_v54  ;;  %v3967_v43 = vmax.f32 %v3919_v13, %v13017_v38  ;;  %v1431_v30 = vsel %vm1402_vm2, %v1316_v14, %v1344_v41 }
 0x3d4   : > { %v3974_v46 = vmax.f32 %v3926_v56, %v13038_v12  ;;  %v3975_v59 = vmax.f32 %v3927_v7, %v13041_v51  ;;  %v3982_v35 = vmax.f32 %v3934_v33, %v13062_v11  ;;  %v1432_v6 = vsel %vm1402_vm2, %v1317_v21, %v1345_v63 }
 0x3d5   : > { %v3983_v36 = vmax.f32 %v3935_v62, %v13065_v22  ;;  %v13118_v0 = vmax.f32 %v3966_v61, %v13020_v45  ;;  %v13121_v60 = vmax.f32 %v3967_v43, %v13023_v29  ;;  %v1459_v13 = vsel %vm1402_vm2, %v1288_v48, %v1316_v14 }
 0x3d6   : > { %v13126_v52 = vmax.f32 %v3974_v46, %v13044_v23  ;;  %v13129_v4 = vmax.f32 %v3975_v59, %v13047_v8  ;;  %v13132_v19 = vmax.f32 %v3982_v35, %v13072_v40  ;;  %v1460_v56 = vsel %vm1402_vm2, %v1289_v27, %v1317_v21 }
 0x3d7   : > { %17714 = vst [vmem:[#allocation116_spill] sm:$0xff] %v13118_v0  ;;  %17715 = vst [vmem:[#allocation24_spill] sm:$0xff] %v13121_v60  ;;  %v13135_v17 = vmax.f32 %v3983_v36, %v13075_v10  ;;  %v1403_v7 = vsel %vm1402_vm2, %v1344_v41, %v1372_v49  ;;  %v1404_v33 = vsel %vm1402_vm2, %v1345_v63, %v1373_v24  ;;  %v1515_v14 = vrot.slane %v13067_v1, 1 }
 0x3d8   : > { %17716 = vst [vmem:[#allocation67_spill] sm:$0xff] %v13126_v52  ;;  %17717 = vst [vmem:[#allocation98_spill] sm:$0xff] %v13129_v4  ;;  %v4062_v47 = vmax.f32 %v13118_v0, %v13126_v52  ;;  %v4063_v57 = vmax.f32 %v13121_v60, %v13129_v4  ;;  %v1487_v62 = vsel %vm1402_vm2, %v1372_v49, %v1288_v48  ;;  %v1516_v21 = vrot.slane %v13069_v15, 1 }
 0x3d9   : > { %17718 = vst [vmem:[#allocation80_spill] sm:$0xff] %v13132_v19  ;;  %17719 = vst [vmem:[#allocation14_spill] sm:$0xff] %v13135_v17  ;;  %v1488_v61 = vsel %vm1402_vm2, %v1373_v24, %v1289_v27  ;;  %v1543_v59 = vrot.slane %v13089_v42, 1  ;;  %v1544_v35 = vrot.slane %v13091_v34, 1  ;;  %v1571_v36 = vrot.slane %v13101_v28, 1 }
 0x3da   : > { %v4094_v43 = vmax.f32 %v4062_v47, %v13132_v19  ;;  %v4095_v46 = vmax.f32 %v4063_v57, %v13135_v17  ;;  %v1572_v41 = vrot.slane %v13103_v18, 1  ;;  %v1599_v63 = vrot.slane %v13113_v9, 1 }
 0x3db   : > { %v1600_v27 = vrot.slane %v13115_v53, 1  ;;  %v1964_v49 = vrot.slane %v13067_v1, 6  ;;  %v1656_v24 = vsel %vm1627_vm3, %v1543_v59, %v1571_v36  ;;  %v1684_v57 = vsel %vm1627_vm3, %v1515_v14, %v1543_v59 }
 0x3dc   : > { %v7503_v48 = vpack.c.bf16 %v4095_v46, %v4094_v43  ;;  %v1657_v47 = vsel %vm1627_vm3, %v1544_v35, %v1572_v41  ;;  %v1685_v4 = vsel %vm1627_vm3, %v1516_v21, %v1544_v35  ;;  %v1628_v43 = vsel %vm1627_vm3, %v1571_v36, %v1599_v63 }
 0x3dd   : > { %v1629_v46 = vsel %vm1627_vm3, %v1572_v41, %v1600_v27  ;;  %v1712_v52 = vsel %vm1627_vm3, %v1599_v63, %v1515_v14  ;;  %v1713_v19 = vsel %vm1627_vm3, %v1600_v27, %v1516_v21  ;;  %v1740_v10 = vmax.f32 %v1487_v62, %v1684_v57 }
 0x3de   : > { %7505 = vmatprep.subr.msk.bf16.mxu1 %vm9487_vm6, %v7503_v48  ;;  %v1741_v59 = vmax.f32 %v1459_v13, %v1656_v24  ;;  %v1742_v40 = vmax.f32 %v1431_v30, %v1628_v43  ;;  %v1743_v8 = vmax.f32 %v1403_v7, %v1712_v52  ;;  %v1744_v35 = vmax.f32 %v1488_v61, %v1685_v4 }
 0x3df   : > { %v1745_v23 = vmax.f32 %v1460_v56, %v1657_v47  ;;  %v1746_v17 = vmax.f32 %v1432_v6, %v1629_v46  ;;  %v1747_v48 = vmax.f32 %v1404_v33, %v1713_v19  ;;  %v1852_v29 = vmax.f32 %v13067_v1, %v1740_v10 }
 0x3e0   : > { %v1853_v36 = vmax.f32 %v13089_v42, %v1741_v59  ;;  %v1854_v41 = vmax.f32 %v13101_v28, %v1742_v40  ;;  %v1855_v45 = vmax.f32 %v13113_v9, %v1743_v8  ;;  %v1856_v14 = vmax.f32 %v13069_v15, %v1744_v35  ;;  %v17721_v59 = vld [vmem:[#allocation35_spill] sm:$0xff] }
 0x3e1   : > { %v1857_v21 = vmax.f32 %v13091_v34, %v1745_v23  ;;  %v1858_v13 = vmax.f32 %v13103_v18, %v1746_v17  ;;  %v1859_v52 = vmax.f32 %v13115_v53, %v1747_v48  ;;  %v1965_v4 = vrot.slane %v13069_v15, 6 }
 0x3e2   : > { %v1992_v19 = vrot.slane %v13089_v42, 6  ;;  %v1993_v10 = vrot.slane %v13091_v34, 6  ;;  %v2020_v30 = vrot.slane %v13101_v28, 6  ;;  %v2021_v40 = vrot.slane %v13103_v18, 6 }
 0x3e3   : > { %v2048_v8 = vrot.slane %v13113_v9, 6  ;;  %v2049_v6 = vrot.slane %v13115_v53, 6  ;;  %v2189_v23 = vrot.slane %v13067_v1, 2  ;;  %v2190_v33 = vrot.slane %v13069_v15, 2 }
 0x3e4   : > { %v2105_v17 = vsel %vm2076_vm4, %v1992_v19, %v2020_v30  ;;  %v2133_v56 = vsel %vm2076_vm4, %v1964_v49, %v1992_v19  ;;  %v2134_v7 = vsel %vm2076_vm4, %v1965_v4, %v1993_v10  ;;  %v2106_v1 = vsel %vm2076_vm4, %v1993_v10, %v2021_v40 }
 0x3e5   : > { %v2077_v62 = vsel %vm2076_vm4, %v2020_v30, %v2048_v8  ;;  %v2078_v61 = vsel %vm2076_vm4, %v2021_v40, %v2049_v6  ;;  %v2161_v63 = vsel %vm2076_vm4, %v2048_v8, %v1964_v49  ;;  %v2162_v27 = vsel %vm2076_vm4, %v2049_v6, %v1965_v4 }
 0x3e6   : > { %v2217_v24 = vrot.slane %v13089_v42, 2  ;;  %v2218_v47 = vrot.slane %v13091_v34, 2  ;;  %v2245_v15 = vrot.slane %v13101_v28, 2  ;;  %v2246_v57 = vrot.slane %v13103_v18, 2  ;;  %v17722_v34 = vld [vmem:[#allocation109_spill] sm:$0xff]  ;;  %v17724_v28 = vld [vmem:[#allocation114_spill] sm:$0xff] }
 0x3e7   : > { %v2273_v43 = vrot.slane %v13113_v9, 2  ;;  %v2274_v46 = vrot.slane %v13115_v53, 2  ;;  %v2725_v35 = vrot.slane %v17721_v59, 6  ;;  %v17723_v4 = vrot.slane %v17722_v34, 6 }
 0x3e8   : > { %v2330_v49 = vsel %vm2301_vm5, %v2217_v24, %v2245_v15  ;;  %v2358_v48 = vsel %vm2301_vm5, %v2189_v23, %v2217_v24  ;;  %v2359_v42 = vsel %vm2301_vm5, %v2190_v33, %v2218_v47  ;;  %v17725_v19 = vrot.slane %v17724_v28, 6 }
 0x3e9   : > { %v2302_v9 = vsel %vm2301_vm5, %v2245_v15, %v2273_v43  ;;  %v2303_v53 = vsel %vm2301_vm5, %v2246_v57, %v2274_v46  ;;  %v2331_v10 = vsel %vm2301_vm5, %v2218_v47, %v2246_v57  ;;  %v2386_v30 = vsel %vm2301_vm5, %v2273_v43, %v2189_v23 }
 0x3ea   : > { %v13240_v18 = vsel %vm2076_vm4, %v17725_v19, %v17723_v4  ;;  %v2387_v40 = vsel %vm2301_vm5, %v2274_v46, %v2190_v33  ;;  %v2414_v8 = vmax.f32 %v2161_v63, %v2358_v48  ;;  %v2415_v6 = vmax.f32 %v2133_v56, %v2330_v49  ;;  %v17732_v48 = vld [vmem:[#allocation40_spill] sm:$0xff] }
 0x3eb   : > { %v2416_v24 = vmax.f32 %v2105_v17, %v2302_v9  ;;  %v2417_v4 = vmax.f32 %v2077_v62, %v2386_v30  ;;  %v2418_v28 = vmax.f32 %v2162_v27, %v2359_v42  ;;  %v2419_v19 = vmax.f32 %v2134_v7, %v2331_v10  ;;  %v17726_v27 = vld [vmem:[#allocation118_spill] sm:$0xff]  ;;  %v17735_v10 = vld [vmem:[#allocation45_spill] sm:$0xff] }
 0x3ec   : > { %v2420_v22 = vmax.f32 %v2106_v1, %v2303_v53  ;;  %v2421_v15 = vmax.f32 %v2078_v61, %v2387_v40  ;;  %v2526_v11 = vmax.f32 %v1852_v29, %v2414_v8  ;;  %v2527_v51 = vmax.f32 %v1853_v36, %v2415_v6  ;;  %v17728_v36 = vld [vmem:[#allocation26_spill] sm:$0xff]  ;;  %v17737_v8 = vld [vmem:[#allocation91_spill] sm:$0xff] }
 0x3ed   : > { %v2528_v12 = vmax.f32 %v1854_v41, %v2416_v24  ;;  %v2529_v38 = vmax.f32 %v1855_v45, %v2417_v4  ;;  %v2530_v54 = vmax.f32 %v1856_v14, %v2418_v28  ;;  %v2531_v47 = vmax.f32 %v1857_v21, %v2419_v19  ;;  %v17730_v41 = vld [vmem:[#allocation95_spill] sm:$0xff]  ;;  %v17739_v24 = vld [vmem:[#allocation94_spill] sm:$0xff] }
 0x3ee   : > { %v2532_v57 = vmax.f32 %v1858_v13, %v2420_v22  ;;  %v2533_v44 = vmax.f32 %v1859_v52, %v2421_v15  ;;  %v2638_v23 = vrot.slane %v2526_v11, 6  ;;  %v2666_v43 = vrot.slane %v2527_v51, 6  ;;  %v17741_v19 = vld [vmem:[#allocation62_spill] sm:$0xff] }
 0x3ef   : > { %v2694_v26 = vrot.slane %v2528_v12, 6  ;;  %v2639_v33 = vrot.slane %v2530_v54, 6  ;;  %v2667_v63 = vrot.slane %v2531_v47, 6  ;;  %v2722_v17 = vrot.slane %v2529_v38, 6 }
 0x3f0   : > { %v2695_v56 = vrot.slane %v2532_v57, 6  ;;  %v2723_v62 = vrot.slane %v2533_v44, 6  ;;  %v17727_v7 = vrot.slane %v17726_v27, 6  ;;  %v17729_v45 = vrot.slane %v17728_v36, 6 }
 0x3f1   : > { %v17731_v14 = vrot.slane %v17730_v41, 6  ;;  %v2778_v21 = vsel %vm2076_vm4, %v2666_v43, %v2694_v26  ;;  %v13270_v13 = vsel %vm2076_vm4, %v2694_v26, %v2722_v17  ;;  %v2806_v61 = vsel %vm2076_vm4, %v2638_v23, %v2666_v43 }
 0x3f2   : > { %v13256_v29 = vsel %vm2076_vm4, %v17727_v7, %v2725_v35  ;;  %v2779_v52 = vsel %vm2076_vm4, %v2667_v63, %v2695_v56  ;;  %v2807_v1 = vsel %vm2076_vm4, %v2639_v33, %v2667_v63  ;;  %v13280_v46 = vsel %vm2076_vm4, %v2695_v56, %v2723_v62 }
 0x3f3   : > { %v13264_v22 = vsel %vm2076_vm4, %v17731_v14, %v17729_v45  ;;  %v2834_v49 = vsel %vm2076_vm4, %v2722_v17, %v2638_v23  ;;  %v2835_v26 = vsel %vm2076_vm4, %v2723_v62, %v2639_v33  ;;  %v17733_v42 = vrot.slane %v17732_v48, 6 }
 0x3f4   : > { %v17734_v9 = vrot.slane %v17722_v34, 6  ;;  %v17736_v30 = vrot.slane %v17735_v10, 6  ;;  %v17738_v6 = vrot.slane %v17737_v8, 6  ;;  %v17740_v4 = vrot.slane %v17739_v24, 6 }
 0x3f5   : > { %v17742_v15 = vrot.slane %v17741_v19, 6  ;;  %v17743_v23 = vmov %v17729_v45  ;;  %v2862_v33 = vrot.slane %v2526_v11, 2  ;;  %v2863_v63 = vrot.slane %v2530_v54, 2  ;;  %v17747_v11 = vld [vmem:[#allocation38_spill] sm:$0xff] }
 0x3f6   : > { %v2836_v53 = vsel %vm2076_vm4, %v17734_v9, %v17733_v42  ;;  %v2837_v40 = vsel %vm2076_vm4, %v2725_v35, %v17736_v30  ;;  %v2840_v28 = vsel %vm2076_vm4, %v17740_v4, %v17738_v6  ;;  %v2865_v56 = vrot.slane %v17735_v10, 2  ;;  %v17744_v42 = vld [vmem:[#allocation36_spill] sm:$0xff]  ;;  %v17749_v10 = vld [vmem:[#allocation17_spill] sm:$0xff] }
 0x3f7   : > { %v2841_v43 = vsel %vm2076_vm4, %v17743_v23, %v17742_v15  ;;  %v2890_v17 = vrot.slane %v2527_v51, 2  ;;  %v2891_v35 = vrot.slane %v2531_v47, 2  ;;  %v2918_v62 = vrot.slane %v2528_v12, 2 }
 0x3f8   : > { %v2919_v27 = vrot.slane %v2532_v57, 2  ;;  %v2946_v7 = vrot.slane %v2529_v38, 2  ;;  %v2947_v45 = vrot.slane %v2533_v44, 2  ;;  %v17745_v9 = vrot.slane %v17744_v42, 2 }
 0x3f9   : > { %v3030_v41 = vsel %vm2301_vm5, %v2862_v33, %v2890_v17  ;;  %v3031_v14 = vsel %vm2301_vm5, %v2863_v63, %v2891_v35  ;;  %v17746_v30 = vrot.slane %v17732_v48, 2  ;;  %v17748_v51 = vrot.slane %v17747_v11, 2 }
 0x3fa   : > { %v2974_v38 = vsel %vm2301_vm5, %v2918_v62, %v2946_v7  ;;  %v2975_v44 = vsel %vm2301_vm5, %v2919_v27, %v2947_v45  ;;  %v3002_v47 = vsel %vm2301_vm5, %v2890_v17, %v2918_v62  ;;  %v3003_v57 = vsel %vm2301_vm5, %v2891_v35, %v2919_v27 }
 0x3fb   : > { %v3032_v54 = vsel %vm2301_vm5, %v17746_v30, %v17745_v9  ;;  %v3033_v12 = vsel %vm2301_vm5, %v2865_v56, %v17748_v51  ;;  %v17750_v6 = vrot.slane %v17749_v10, 2  ;;  %v17751_v4 = vrot.slane %v17741_v19, 2 }
 0x3fc   : > { %v13339_v23 = vsel %vm2301_vm5, %v2946_v7, %v2862_v33  ;;  %v13343_v42 = vsel %vm2301_vm5, %v2947_v45, %v2863_v63  ;;  %v17752_v17 = vmov %v17746_v30  ;;  %v17753_v62 = vrot.slane %v17722_v34, 2 }
 0x3fd   : > { %v3037_v15 = vsel %vm2301_vm5, %v17751_v4, %v17750_v6  ;;  %v17754_v27 = vrot.slane %v17721_v59, 2  ;;  %v17755_v33 = vrot.slane %v17737_v8, 2  ;;  %v17756_v7 = vrot.slane %v17739_v24, 2 }
 0x3fe   : > { %v13351_v35 = vsel %vm2301_vm5, %v17753_v62, %v17752_v17  ;;  %v17757_v34 = vmov %v17751_v4  ;;  %v17758_v48 = vrot.slane %v17728_v36, 2  ;;  %v3086_v59 = vmax.f32 %v2834_v49, %v3030_v41  ;;  %v17766_v17 = vld [vmem:[#allocation55_spill] sm:$0xff] }
 0x3ff   : > { %v13357_v9 = vsel %vm2301_vm5, %v17754_v27, %v2865_v56  ;;  %v13365_v63 = vsel %vm2301_vm5, %v17756_v7, %v17755_v33  ;;  %v13375_v30 = vmax.f32 %v2806_v61, %v3002_v47  ;;  %v13377_v56 = vmax.f32 %v2778_v21, %v2974_v38  ;;  %v17759_v61 = vld [vmem:[#allocation72_spill] sm:$0xff] }
 0x400   : > { %v13373_v45 = vsel %vm2301_vm5, %v17758_v48, %v17757_v34  ;;  %v3089_v8 = vmax.f32 %v13270_v13, %v13339_v23  ;;  %v3090_v24 = vmax.f32 %v2835_v26, %v3031_v14  ;;  %v13381_v11 = vmax.f32 %v2807_v1, %v3003_v57  ;;  %v17760_v13 = vld [vmem:[#allocation39_spill] sm:$0xff]  ;;  %v17763_v57 = vld [vmem:[#allocation90_spill] sm:$0xff]  ;;  %v17769_v7 = vld [vmem:[#allocation76_spill] sm:$0xff] }
 0x401   : > { %v13383_v51 = vmax.f32 %v2779_v52, %v2975_v44  ;;  %v3093_v36 = vmax.f32 %v13280_v46, %v13343_v42  ;;  %v3094_v19 = vmax.f32 %v2836_v53, %v3032_v54  ;;  %v3097_v10 = vmax.f32 %v13240_v18, %v13351_v35  ;;  %v17767_v35 = vld [vmem:[#allocation28_spill] sm:$0xff]  ;;  %v17770_v34 = vld [vmem:[#allocation33_spill] sm:$0xff] }
 0x402   : > { %v3098_v49 = vmax.f32 %v2837_v40, %v3033_v12  ;;  %v3101_v21 = vmax.f32 %v13256_v29, %v13357_v9  ;;  %v3110_v41 = vmax.f32 %v2840_v28, %v17759_v61  ;;  %v3113_v26 = vmax.f32 %v17760_v13, %v13365_v63  ;;  %v17761_v29 = vld [vmem:[#allocation51_spill] sm:$0xff]  ;;  %v17762_v28 = vld [vmem:[#allocation96_spill] sm:$0xff]  ;;  %v17768_v9 = vld [vmem:[#allocation82_spill] sm:$0xff] }
 0x403   : > { %v3114_v1 = vmax.f32 %v2841_v43, %v3037_v15  ;;  %v3117_v52 = vmax.f32 %v13264_v22, %v13373_v45  ;;  %v3198_v14 = vrot.slane %v3086_v59, 6  ;;  %v3199_v38 = vrot.slane %v3090_v24, 6  ;;  %v17764_v43 = vld [vmem:[#allocation88_spill] sm:$0xff]  ;;  %v17765_v15 = vld [vmem:[#allocation70_spill] sm:$0xff]  ;;  %v17773_v24 = vld [vmem:[#allocation47_spill] sm:$0xff] }
 0x404   : > { %v3200_v46 = vrot.slane %v3094_v19, 6  ;;  %v3201_v53 = vrot.slane %v3098_v49, 6  ;;  %v3204_v54 = vrot.slane %v3110_v41, 6  ;;  %v3226_v18 = vrot.slane %v13375_v30, 6  ;;  %v17771_v45 = vld [vmem:[#allocation52_spill] sm:$0xff] }
 0x405   : > { %v3205_v44 = vrot.slane %v3114_v1, 6  ;;  %v3227_v40 = vrot.slane %v13381_v11, 6  ;;  %v3229_v12 = vrot.slane %v17761_v29, 6  ;;  %v3230_v47 = vrot.slane %v17762_v28, 6 }
 0x406   : > { %v3231_v6 = vrot.slane %v17763_v57, 6  ;;  %v3232_v4 = vrot.slane %v17764_v43, 6  ;;  %v3233_v22 = vrot.slane %v17765_v15, 6  ;;  %v3254_v23 = vrot.slane %v13377_v56, 6 }
 0x407   : > { %v3255_v42 = vrot.slane %v13383_v51, 6  ;;  %v3257_v62 = vrot.slane %v17766_v17, 6  ;;  %v3258_v27 = vrot.slane %v17767_v35, 6  ;;  %v3259_v33 = vrot.slane %v17768_v9, 6 }
 0x408   : > { %v3260_v63 = vrot.slane %v17769_v7, 6  ;;  %v3261_v48 = vrot.slane %v17770_v34, 6  ;;  %v17772_v59 = vrot.slane %v17771_v45, 6  ;;  %v17774_v19 = vrot.slane %v17773_v24, 6 }
 0x409   : > { %v13418_v61 = vsel %vm2076_vm4, %v3226_v18, %v3254_v23  ;;  %v3283_v41 = vsel %vm2076_vm4, %v3227_v40, %v3255_v42  ;;  %v3285_v13 = vsel %vm2076_vm4, %v3229_v12, %v3257_v62  ;;  %v3286_v1 = vsel %vm2076_vm4, %v3230_v47, %v3258_v27 }
 0x40a   : > { %v3284_v49 = vsel %vm2076_vm4, %v17774_v19, %v17772_v59  ;;  %v3287_v60 = vsel %vm2076_vm4, %v3231_v6, %v3259_v33  ;;  %v3288_v0 = vsel %vm2076_vm4, %v3232_v4, %v3260_v63  ;;  %v3289_v59 = vsel %vm2076_vm4, %v3233_v22, %v3261_v48 }
 0x40b   : > { %v3310_v23 = vsel %vm2076_vm4, %v3198_v14, %v3226_v18  ;;  %v3311_v42 = vsel %vm2076_vm4, %v3199_v38, %v3227_v40  ;;  %v17775_v62 = vmov %v17774_v19  ;;  %v3313_v33 = vsel %vm2076_vm4, %v3201_v53, %v3229_v12  ;;  %v17776_v19 = vld [vmem:[#allocation46_spill] sm:$0xff] }
 0x40c   : > { %v3312_v27 = vsel %vm2076_vm4, %v3200_v46, %v17775_v62  ;;  %v3314_v63 = vsel %vm2076_vm4, %v17776_v19, %v3230_v47  ;;  %v3315_v48 = vsel %vm2076_vm4, %v17777_v55, %v3231_v6  ;;  %v3316_v14 = vsel %vm2076_vm4, %v3204_v54, %v3232_v4  ;;  %v17778_v19 = vld [vmem:[#allocation29_spill] sm:$0xff] }
 0x40d   : > { %v3317_v38 = vsel %vm2076_vm4, %v3205_v44, %v3233_v22  ;;  %v3338_v18 = vrot.slane %v13375_v30, 2  ;;  %v3339_v46 = vrot.slane %v13381_v11, 2  ;;  %v3341_v53 = vrot.slane %v17761_v29, 2 }
 0x40e   : > { %v3342_v40 = vrot.slane %v17762_v28, 2  ;;  %v3343_v12 = vrot.slane %v17763_v57, 2  ;;  %v3344_v47 = vrot.slane %v17764_v43, 2  ;;  %v3345_v55 = vrot.slane %v17765_v15, 2 }
 0x40f   : > { %v3366_v6 = vrot.slane %v13377_v56, 2  ;;  %v3367_v54 = vrot.slane %v13383_v51, 2  ;;  %v3369_v44 = vrot.slane %v17766_v17, 2  ;;  %v3370_v30 = vrot.slane %v17767_v35, 2 }
 0x410   : > { %v3371_v11 = vrot.slane %v17768_v9, 2  ;;  %v3372_v29 = vrot.slane %v17769_v7, 2  ;;  %v3373_v28 = vrot.slane %v17770_v34, 2  ;;  %v3394_v4 = vrot.slane %v3089_v8, 2 }
 0x411   : > { %v3395_v57 = vrot.slane %v3093_v36, 2  ;;  %v3396_v22 = vrot.slane %v3097_v10, 2  ;;  %v3397_v43 = vrot.slane %v3101_v21, 2  ;;  %v3400_v62 = vrot.slane %v3113_v26, 2  ;;  %v17780_v36 = vld [vmem:[#allocation93_spill] sm:$0xff] }
 0x412   : > { %v3401_v15 = vrot.slane %v3117_v52, 2  ;;  %v3426_v56 = vsel %vm2301_vm5, %v3370_v30, %v17778_v19  ;;  %v3422_v51 = vsel %vm2301_vm5, %v3366_v6, %v3394_v4  ;;  %v17779_v35 = vrot.slane %v17771_v45, 2 }
 0x413   : > { %v3423_v17 = vsel %vm2301_vm5, %v3367_v54, %v3395_v57  ;;  %v3427_v10 = vsel %vm2301_vm5, %v3371_v11, %v17780_v36  ;;  %v3425_v21 = vsel %vm2301_vm5, %v3369_v44, %v3397_v43  ;;  %v3428_v26 = vsel %vm2301_vm5, %v3372_v29, %v3400_v62 }
 0x414   : > { %v3424_v8 = vsel %vm2301_vm5, %v17779_v35, %v3396_v22  ;;  %v3429_v52 = vsel %vm2301_vm5, %v3373_v28, %v3401_v15  ;;  %v3450_v9 = vsel %vm2301_vm5, %v3338_v18, %v3366_v6  ;;  %v3451_v7 = vsel %vm2301_vm5, %v3339_v46, %v3367_v54 }
 0x415   : > { %v17781_v34 = vmov %v17779_v35  ;;  %v17782_v4 = vrot.slane %v17773_v24, 2  ;;  %v3453_v22 = vsel %vm2301_vm5, %v3341_v53, %v3369_v44  ;;  %v3454_v43 = vsel %vm2301_vm5, %v3342_v40, %v3370_v30  ;;  %v4111_v35 = vld [vmem:[%s15943_s4] sm:$0xff] }
 0x416   : > { %v3455_v62 = vsel %vm2301_vm5, %v3343_v12, %v3371_v11  ;;  %v3456_v18 = vsel %vm2301_vm5, %v3344_v47, %v3372_v29  ;;  %v3457_v45 = vsel %vm2301_vm5, %v3345_v55, %v3373_v28  ;;  %v3478_v46 = vmax.f32 %v3310_v23, %v3450_v9  ;;  %7039 = vmatprep.mubr.msk.f32.mxu0 %vm1061_vm1, %v4111_v35 }
 0x417   : > { %v3452_v57 = vsel %vm2301_vm5, %v17782_v4, %v17781_v34  ;;  %v3479_v24 = vmax.f32 %v13418_v61, %v3422_v51  ;;  %v13507_v6 = vmax.f32 %v3311_v42, %v3451_v7  ;;  %v13509_v54 = vmax.f32 %v3283_v41, %v3423_v17  ;;  %7040 = vmatmul.mubr.msk.f32.vlgmr.msra.gmra.mrb[0].mxu0 %vm1061_vm1, %v4111_v35  ;;  %v17802_v35 = vld [vmem:[#allocation24_spill] sm:$0xff] }
 0x418   : > { %v13511_v53 = vmax.f32 %v3312_v27, %v3452_v57  ;;  %v13513_v44 = vmax.f32 %v3284_v49, %v3424_v8  ;;  %v13515_v40 = vmax.f32 %v3313_v33, %v3453_v22  ;;  %v13517_v12 = vmax.f32 %v3285_v13, %v3425_v21  ;;  %v13559_v8 = vld [vmem:[%s15945_s6] sm:$0xff] }
 0x419   : > { %v13519_v30 = vmax.f32 %v3314_v63, %v3454_v43  ;;  %v13521_v47 = vmax.f32 %v3286_v1, %v3426_v56  ;;  %v13523_v55 = vmax.f32 %v3315_v48, %v3455_v62  ;;  %v13525_v23 = vmax.f32 %v3287_v60, %v3427_v10  ;;  %v17787_v60 = vld [vmem:[#allocation129_spill] sm:$0xff]  ;;  %v17791_v56 = vld [vmem:[#allocation128_spill] sm:$0xff]  ;;  %17793 = vst [vmem:[#allocation8_spill] sm:$0xff] %v13559_v8 }
 0x41a   : > { %v13527_v61 = vmax.f32 %v3316_v14, %v3456_v18  ;;  %v13529_v41 = vmax.f32 %v3288_v0, %v3428_v26  ;;  %v13531_v42 = vmax.f32 %v3317_v38, %v3457_v45  ;;  %v13533_v49 = vmax.f32 %v3289_v59, %v3429_v52  ;;  %v17788_v0 = vld [vmem:[#allocation126_spill] sm:$0xff]  ;;  %v17790_v59 = vld [vmem:[#allocation133_spill] sm:$0xff]  ;;  %v17795_v26 = vld [vmem:[#allocation127_spill] sm:$0xff]  ;;  %7141 = vmatprep.mubr.msk.f32.mxu1 %vm1061_vm1, %v13559_v8 }
 0x41b   : > { %17783 = vst [vmem:[#allocation16_spill] sm:$0xff] %v13519_v30  ;;  %17784 = vst [vmem:[#allocation21_spill] sm:$0xff] %v13523_v55  ;;  %v3854_v27 = vmax.f32 %v3478_v46, %v13507_v6  ;;  %v3855_v13 = vmax.f32 %v3479_v24, %v13509_v54  ;;  %v3862_v1 = vmax.f32 %v13519_v30, %v13523_v55  ;;  %v2743_v63 = vrot.slane %v17787_v60, 6  ;;  %v17789_v38 = vld [vmem:[#allocation134_spill] sm:$0xff] }
 0x41c   : > { %17785 = vst [vmem:[#allocation13_spill] sm:$0xff] %v13525_v23  ;;  %17786 = vst [vmem:[#allocation97_spill] sm:$0xff] %v13529_v41  ;;  %v3863_v33 = vmax.f32 %v13521_v47, %v13525_v23  ;;  %v2883_v14 = vrot.slane %v17788_v0, 2  ;;  %v3247_v11 = vrot.slane %v17789_v38, 6  ;;  %v3275_v29 = vrot.slane %v17790_v59, 6 }
 0x41d   : > { %v3902_v48 = vmax.f32 %v3854_v27, %v13511_v53  ;;  %v3903_v28 = vmax.f32 %v3855_v13, %v13513_v44  ;;  %v3910_v15 = vmax.f32 %v3862_v1, %v13527_v61  ;;  %v17792_v51 = vrot.slane %v17791_v56, 6 }
 0x41e   : > { %v3911_v19 = vmax.f32 %v3863_v33, %v13529_v41  ;;  %v17794_v10 = vrot.slane %v17788_v0, 6  ;;  %v17796_v52 = vrot.slane %v17795_v26, 2  ;;  %v17797_v7 = vrot.slane %v17787_v60, 2  ;;  %v17804_v26 = vld [vmem:[#allocation85_spill] sm:$0xff] }
 0x41f   : > { %v2771_v17 = vsel %vm2076_vm4, %v17792_v51, %v2743_v63  ;;  %v3950_v36 = vmax.f32 %v3902_v48, %v13515_v40  ;;  %v3951_v4 = vmax.f32 %v3903_v28, %v13517_v12  ;;  %v3958_v57 = vmax.f32 %v3910_v15, %v13531_v42  ;;  %v17801_v51 = vld [vmem:[#allocation116_spill] sm:$0xff] }
 0x420   : > { %v2855_v21 = vsel %vm2076_vm4, %v2743_v63, %v17794_v10  ;;  %v3051_v9 = vsel %vm2301_vm5, %v2883_v14, %v17796_v52  ;;  %v3079_v34 = vsel %vm2301_vm5, %v17797_v7, %v2883_v14  ;;  %v3959_v22 = vmax.f32 %v3911_v19, %v13533_v49  ;;  %v17800_v19 = vld [vmem:[#allocation9_spill] sm:$0xff] }
 0x421   : > { %v3170_v43 = vmax.f32 %v2855_v21, %v3051_v9  ;;  %v3998_v62 = vmax.f32 %v3950_v36, %v13519_v30  ;;  %v3173_v18 = vmax.f32 %v2771_v17, %v3079_v34  ;;  %v3303_v45 = vsel %vm2076_vm4, %v3247_v11, %v3275_v29  ;;  %v17803_v21 = vld [vmem:[#allocation30_spill] sm:$0xff]  ;;  %v17805_v9 = vld [vmem:[#allocation117_spill] sm:$0xff] }
 0x422   : > { %v3359_v46 = vrot.slane %v17789_v38, 2  ;;  %v3999_v24 = vmax.f32 %v3951_v4, %v13521_v47  ;;  %v13587_v27 = vmax.f32 %v3958_v57, %v12996_v32  ;;  %v13590_v13 = vmax.f32 %v3959_v22, %v12999_v58  ;;  %v17806_v34 = vld [vmem:[#allocation101_spill] sm:$0xff]  ;;  %v17807_v57 = vld [vmem:[#allocation56_spill] sm:$0xff] }
 0x423   : > { %v3219_v1 = vrot.slane %v3170_v43, 6  ;;  %v3387_v33 = vrot.slane %v17790_v59, 2  ;;  %v3415_v60 = vrot.slane %v3173_v18, 2  ;;  %v3872_v63 = vmax.f32 %v13002_v16, %v13008_v31 }
 0x424   : > { %17798 = vst [vmem:[#allocation86_spill] sm:$0xff] %v13587_v27  ;;  %17799 = vst [vmem:[#allocation31_spill] sm:$0xff] %v13590_v13  ;;  %v3873_v48 = vmax.f32 %v13005_v5, %v13011_v50  ;;  %v4046_v0 = vmax.f32 %v3998_v62, %v13587_v27  ;;  %v4047_v14 = vmax.f32 %v3999_v24, %v13590_v13  ;;  %v17808_v62 = vld [vmem:[#allocation103_spill] sm:$0xff]  ;;  %v17824_v13 = vld [vmem:[#allocation81_spill] sm:$0xff] }
 0x425   : > { %v3331_v38 = vsel %vm2076_vm4, %v3219_v1, %v3247_v11  ;;  %v3880_v29 = vmax.f32 %v13026_v20, %v13032_v39  ;;  %v3443_v59 = vsel %vm2301_vm5, %v3387_v33, %v3415_v60  ;;  %v3471_v28 = vsel %vm2301_vm5, %v3359_v46, %v3387_v33  ;;  %v17809_v46 = vld [vmem:[#allocation102_spill] sm:$0xff]  ;;  %v17810_v33 = vld [vmem:[#allocation15_spill] sm:$0xff]  ;;  %v17811_v60 = vld [vmem:[#allocation65_spill] sm:$0xff] }
 0x426   : > { %v3881_v15 = vmax.f32 %v13029_v3, %v13035_v2  ;;  %v3888_v56 = vmax.f32 %v17800_v19, %v13056_v25  ;;  %v4078_v17 = vmax.f32 %v4046_v0, %v17801_v51  ;;  %v4079_v36 = vmax.f32 %v4047_v14, %v17802_v35  ;;  %v17812_v14 = vld [vmem:[#allocation68_spill] sm:$0xff] }
 0x427   : > { %v13613_v11 = vmax.f32 %v3331_v38, %v3471_v28  ;;  %v13615_v10 = vmax.f32 %v3303_v45, %v3443_v59  ;;  %v3889_v52 = vmax.f32 %v17804_v26, %v17803_v21  ;;  %v3920_v7 = vmax.f32 %v3872_v63, %v17805_v9  ;;  %v17813_v59 = vld [vmem:[#allocation34_spill] sm:$0xff]  ;;  %v4820_v28 = vld [vmem:[%s15947_s8] sm:$0xff] }
 0x428   : > { %v3921_v4 = vmax.f32 %v3873_v48, %v17806_v34  ;;  %v3928_v22 = vmax.f32 %v3880_v29, %v17807_v57  ;;  %v7506_v43 = vpack.c.bf16 %v4079_v36, %v4078_v17  ;;  %v3929_v18 = vmax.f32 %v3881_v15, %v17808_v62  ;;  %v17815_v48 = vld [vmem:[#allocation84_spill] sm:$0xff]  ;;  %v17816_v17 = vld [vmem:[#allocation106_spill] sm:$0xff]  ;;  %7299 = vmatprep.subr.mxu0 %v4820_v28 }
 0x429   : > { %v3936_v24 = vmax.f32 %v3888_v56, %v17809_v46  ;;  %v3856_v1 = vmax.f32 %v13507_v6, %v13511_v53  ;;  %v3937_v45 = vmax.f32 %v3889_v52, %v17810_v33  ;;  %v3968_v0 = vmax.f32 %v3920_v7, %v17811_v60  ;;  %v17817_v36 = vld [vmem:[#allocation18_spill] sm:$0xff]  ;;  %7300 = vmatpush3.msra.mxu0 %v4820_v28 }
 0x42a   : > { %v3969_v38 = vmax.f32 %v3921_v4, %v17812_v14  ;;  %v3976_v63 = vmax.f32 %v3928_v22, %v17813_v59  ;;  %7508 = vmatpush3.bf16.xpose.msk.msra.mxu1 %vm9487_vm6, %v7506_v43  ;;  %v3977_v29 = vmax.f32 %v3929_v18, %v17815_v48  ;;  %v3857_v56 = vmax.f32 %v13509_v54, %v13513_v44 }
 0x42b   : > { %v3984_v15 = vmax.f32 %v3936_v24, %v17816_v17  ;;  %v3864_v6 = vmax.f32 %v13523_v55, %v13527_v61  ;;  %v3985_v52 = vmax.f32 %v3937_v45, %v17817_v36  ;;  %v13640_v7 = vmax.f32 %v3968_v0, %v13026_v20 }
 0x42c   : > { %v13643_v4 = vmax.f32 %v3969_v38, %v13029_v3  ;;  %v13646_v22 = vmax.f32 %v3976_v63, %v17800_v19  ;;  %v13649_v43 = vmax.f32 %v3977_v29, %v17804_v26  ;;  %v3865_v54 = vmax.f32 %v13525_v23, %v13529_v41 }
 0x42d   : > { %17818 = vst [vmem:[#allocation100_spill] sm:$0xff] %v13640_v7  ;;  %v13652_v18 = vmax.f32 %v3984_v15, %v13613_v11  ;;  %v3904_v24 = vmax.f32 %v3856_v1, %v13515_v40  ;;  %v13658_v45 = vmax.f32 %v3985_v52, %v13615_v10  ;;  %v3905_v38 = vmax.f32 %v3857_v56, %v13517_v12  ;;  %v17826_v1 = vld [vmem:[#allocation130_spill] sm:$0xff] }
 0x42e   : > { %17819 = vst [vmem:[#allocation105_spill] sm:$0xff] %v13643_v4  ;;  %17820 = vst [vmem:[#allocation115_spill] sm:$0xff] %v13646_v22  ;;  %v4064_v0 = vmax.f32 %v13640_v7, %v13646_v22  ;;  %v3912_v63 = vmax.f32 %v3864_v6, %v13531_v42  ;;  %v4065_v29 = vmax.f32 %v13643_v4, %v13649_v43  ;;  %v17825_v35 = vrot.slane %v17824_v13, 6 }
 0x42f   : > { %17821 = vst [vmem:[#allocation4_spill] sm:$0xff] %v13649_v43  ;;  %17822 = vst [vmem:[#allocation41_spill] sm:$0xff] %v13652_v18  ;;  %v3913_v15 = vmax.f32 %v3865_v54, %v13533_v49  ;;  %v3952_v8 = vmax.f32 %v3904_v24, %v13519_v30  ;;  %v17827_v27 = vrot.slane %v17826_v1, 6  ;;  %v3953_v56 = vmax.f32 %v3905_v38, %v13521_v47 }
 0x430   : > { %17823 = vst [vmem:[#allocation120_spill] sm:$0xff] %v13658_v45  ;;  %v4096_v22 = vmax.f32 %v4064_v0, %v13652_v18  ;;  %v3960_v6 = vmax.f32 %v3912_v63, %v12996_v32  ;;  %v17828_v51 = vrot.slane %v17824_v13, 2  ;;  %v17829_v43 = vrot.slane %v17826_v1, 2  ;;  %v17832_v63 = vld [vmem:[#allocation131_spill] sm:$0xff]  ;;  %v17833_v18 = vld [vmem:[#allocation113_spill] sm:$0xff] }
 0x431   : > { %v2856_v52 = vsel %vm2076_vm4, %v17827_v27, %v17825_v35  ;;  %v4097_v24 = vmax.f32 %v4065_v29, %v13658_v45  ;;  %v3961_v30 = vmax.f32 %v3913_v15, %v12999_v58  ;;  %v4000_v41 = vmax.f32 %v3952_v8, %v13523_v55  ;;  %v17830_v27 = vld [vmem:[#allocation132_spill] sm:$0xff]  ;;  %v17835_v29 = vld [vmem:[#allocation139_spill] sm:$0xff] }
 0x432   : > { %v3080_v54 = vsel %vm2301_vm5, %v17829_v43, %v17828_v51  ;;  %v3174_v35 = vmax.f32 %v2856_v52, %v17830_v27  ;;  %v4001_v0 = vmax.f32 %v3953_v56, %v13525_v23  ;;  %v13689_v38 = vmax.f32 %v3960_v6, %v13002_v16 }
 0x433   : > { %v3177_v13 = vmax.f32 %v17832_v63, %v3080_v54  ;;  %v3248_v1 = vrot.slane %v17833_v18, 6  ;;  %v7509_v32 = vpack.c.bf16 %v4097_v24, %v4096_v22  ;;  %v13694_v51 = vmax.f32 %v3961_v30, %v13005_v5 }
 0x434   : > { %17831 = vst [vmem:[#allocation42_spill] sm:$0xff] %v13689_v38  ;;  %v3220_v43 = vrot.slane %v3174_v35, 6  ;;  %v3276_v15 = vrot.slane %v17835_v29, 6  ;;  %v4048_v8 = vmax.f32 %v4000_v41, %v13689_v38  ;;  %v3360_v52 = vrot.slane %v17833_v18, 2 }
 0x435   : > { %17834 = vst [vmem:[#allocation57_spill] sm:$0xff] %v13694_v51  ;;  %v3388_v56 = vrot.slane %v17835_v29, 2  ;;  %v3416_v27 = vrot.slane %v3177_v13, 2  ;;  %7511 = vmatprep.subr.msk.bf16.mxu1 %vm9487_vm6, %v7509_v32  ;;  %v4049_v6 = vmax.f32 %v4001_v0, %v13694_v51  ;;  %v3874_v54 = vmax.f32 %v13008_v31, %v17805_v9 }
 0x436   : > { %v3304_v22 = vsel %vm2076_vm4, %v3248_v1, %v3276_v15  ;;  %v3332_v30 = vsel %vm2076_vm4, %v3220_v43, %v3248_v1  ;;  %v4080_v41 = vmax.f32 %v4048_v8, %v13640_v7  ;;  %v3875_v32 = vmax.f32 %v13011_v50, %v17806_v34 }
 0x437   : > { %v3444_v18 = vsel %vm2301_vm5, %v3388_v56, %v3416_v27  ;;  %v3472_v24 = vsel %vm2301_vm5, %v3360_v52, %v3388_v56  ;;  %v4081_v35 = vmax.f32 %v4049_v6, %v13643_v4  ;;  %v3882_v13 = vmax.f32 %v13032_v39, %v17807_v57  ;;  %v17841_v4 = vld [vmem:[#allocation5_spill] sm:$0xff] }
 0x438   : > { %v13717_v0 = vmax.f32 %v3332_v30, %v3472_v24  ;;  %v13719_v63 = vmax.f32 %v3304_v22, %v3444_v18  ;;  %v3883_v1 = vmax.f32 %v13035_v2, %v17808_v62  ;;  %v3890_v43 = vmax.f32 %v13056_v25, %v17809_v46 }
 0x439   : > { %v3891_v29 = vmax.f32 %v17803_v21, %v17810_v33  ;;  %v3922_v15 = vmax.f32 %v3874_v54, %v17811_v60  ;;  %v7512_v8 = vpack.c.bf16 %v4081_v35, %v4080_v41  ;;  %v3923_v52 = vmax.f32 %v3875_v32, %v17812_v14 }
 0x43a   : > { %v3930_v56 = vmax.f32 %v3882_v13, %v17813_v59  ;;  %v3858_v27 = vmax.f32 %v13511_v53, %v13515_v40  ;;  %v3931_v6 = vmax.f32 %v3883_v1, %v17815_v48  ;;  %v3938_v22 = vmax.f32 %v3890_v43, %v17816_v17 }
 0x43b   : > { %v3939_v30 = vmax.f32 %v3891_v29, %v17817_v36  ;;  %v3970_v18 = vmax.f32 %v3922_v15, %v13026_v20  ;;  %7514 = vmatpush3.bf16.xpose.msk.msra.mxu1 %vm9487_vm6, %v7512_v8  ;;  %v3971_v54 = vmax.f32 %v3923_v52, %v13029_v3  ;;  %v3859_v24 = vmax.f32 %v13513_v44, %v13517_v12  ;;  %v17837_v44 = vld [vmem:[#allocation97_spill] sm:$0xff]  ;;  %v17838_v8 = vld [vmem:[#allocation16_spill] sm:$0xff] }
 0x43c   : > { %v3978_v41 = vmax.f32 %v3930_v56, %v17800_v19  ;;  %v3866_v53 = vmax.f32 %v13527_v61, %v13531_v42  ;;  %v3979_v32 = vmax.f32 %v3931_v6, %v17804_v26  ;;  %v3986_v35 = vmax.f32 %v3938_v22, %v13613_v11 }
 0x43d   : > { %v3987_v13 = vmax.f32 %v3939_v30, %v13615_v10  ;;  %v13750_v1 = vmax.f32 %v3970_v18, %v13032_v39  ;;  %v13753_v43 = vmax.f32 %v3971_v54, %v13035_v2  ;;  %v3867_v15 = vmax.f32 %v17837_v44, %v13533_v49  ;;  %v17840_v54 = vld [vmem:[#allocation59_spill] sm:$0xff] }
 0x43e   : > { %v13756_v29 = vmax.f32 %v3978_v41, %v13056_v25  ;;  %v3906_v52 = vmax.f32 %v3858_v27, %v17838_v8  ;;  %v13762_v56 = vmax.f32 %v3979_v32, %v17803_v21  ;;  %v13765_v6 = vmax.f32 %v3986_v35, %v13717_v0 }
 0x43f   : > { %v13768_v22 = vmax.f32 %v3987_v13, %v13719_v63  ;;  %v3907_v30 = vmax.f32 %v3859_v24, %v13521_v47  ;;  %v3914_v41 = vmax.f32 %v3866_v53, %v17840_v54  ;;  %v3915_v51 = vmax.f32 %v3867_v15, %v12999_v58  ;;  %v17842_v13 = vld [vmem:[#allocation6_spill] sm:$0xff] }
 0x440   : > { %17836 = vst [vmem:[#allocation27_spill] sm:$0xff] %v13756_v29  ;;  %17839 = vst [vmem:[#allocation58_spill] sm:$0xff] %v13762_v56  ;;  %v4066_v18 = vmax.f32 %v13750_v1, %v13756_v29  ;;  %v3954_v27 = vmax.f32 %v3906_v52, %v13523_v55  ;;  %v4067_v32 = vmax.f32 %v13753_v43, %v13762_v56  ;;  %v3249_v38 = vrot.slane %v17841_v4, 6 }
 0x441   : > { %v3955_v35 = vmax.f32 %v3907_v30, %v13525_v23  ;;  %v3277_v7 = vrot.slane %v17842_v13, 6  ;;  %v3962_v45 = vmax.f32 %v3914_v41, %v13002_v16  ;;  %v3963_v29 = vmax.f32 %v3915_v51, %v13005_v5  ;;  %v17843_v30 = vld [vmem:[#allocation140_spill] sm:$0xff] }
 0x442   : > { %v4098_v24 = vmax.f32 %v4066_v18, %v13765_v6  ;;  %v4002_v53 = vmax.f32 %v3954_v27, %v13527_v61  ;;  %v4099_v15 = vmax.f32 %v4067_v32, %v13768_v22  ;;  %v3333_v23 = vsel %vm2076_vm4, %v17843_v30, %v3249_v38 }
 0x443   : > { %v4003_v52 = vmax.f32 %v3955_v35, %v17837_v44  ;;  %v3305_v56 = vsel %vm2076_vm4, %v3249_v38, %v3277_v7  ;;  %v13793_v55 = vmax.f32 %v3962_v45, %v13008_v31  ;;  %v13796_v18 = vmax.f32 %v3963_v29, %v13011_v50  ;;  %v17844_v29 = vld [vmem:[#allocation141_spill] sm:$0xff] }
 0x444   : > { %v3361_v51 = vrot.slane %v17841_v4, 2  ;;  %v3389_v41 = vrot.slane %v17842_v13, 2  ;;  %v7515_v27 = vpack.c.bf16 %v4099_v15, %v4098_v24  ;;  %v3876_v32 = vmax.f32 %v17805_v9, %v17811_v60 }
 0x445   : > { %v3877_v7 = vmax.f32 %v17806_v34, %v17812_v14  ;;  %v3884_v38 = vmax.f32 %v17807_v57, %v17813_v59  ;;  %v4050_v45 = vmax.f32 %v4002_v53, %v13793_v55  ;;  %v4051_v35 = vmax.f32 %v4003_v52, %v13796_v18 }
 0x446   : > { %v3445_v4 = vsel %vm2301_vm5, %v3389_v41, %v17844_v29  ;;  %v3473_v13 = vsel %vm2301_vm5, %v3361_v51, %v3389_v41  ;;  %7517 = vmatprep.subr.msk.bf16.mxu1 %vm9487_vm6, %v7515_v27  ;;  %v3885_v59 = vmax.f32 %v17808_v62, %v17815_v48  ;;  %v3892_v24 = vmax.f32 %v17809_v46, %v17816_v17 }
 0x447   : > { %v13815_v60 = vmax.f32 %v3333_v23, %v3473_v13  ;;  %v13817_v14 = vmax.f32 %v3305_v56, %v3445_v4  ;;  %v4082_v53 = vmax.f32 %v4050_v45, %v13750_v1  ;;  %v4083_v15 = vmax.f32 %v4051_v35, %v13753_v43  ;;  %v17847_v4 = vld [vmem:[#allocation43_spill] sm:$0xff] }
 0x448   : > { %v3893_v52 = vmax.f32 %v17810_v33, %v17817_v36  ;;  %v3924_v30 = vmax.f32 %v3876_v32, %v13026_v20  ;;  %v3925_v23 = vmax.f32 %v3877_v7, %v13029_v3  ;;  %v3932_v56 = vmax.f32 %v3884_v38, %v17800_v19  ;;  %v17846_v7 = vld [vmem:[#allocation13_spill] sm:$0xff] }
 0x449   : > { %v3933_v51 = vmax.f32 %v3885_v59, %v17804_v26  ;;  %v3940_v48 = vmax.f32 %v3892_v24, %v13613_v11  ;;  %v7518_v41 = vpack.c.bf16 %v4083_v15, %v4082_v53  ;;  %v3860_v35 = vmax.f32 %v13515_v40, %v17838_v8  ;;  %v17849_v59 = vld [vmem:[#allocation112_spill] sm:$0xff] }
 0x44a   : > { %v3941_v27 = vmax.f32 %v3893_v52, %v13615_v10  ;;  %v3972_v45 = vmax.f32 %v3924_v30, %v13032_v39  ;;  %v3973_v29 = vmax.f32 %v3925_v23, %v13035_v2  ;;  %v3980_v20 = vmax.f32 %v3932_v56, %v13056_v25  ;;  %v17851_v30 = vld [vmem:[#allocation12_spill] sm:$0xff] }
 0x44b   : > { %v3981_v3 = vmax.f32 %v3933_v51, %v17803_v21  ;;  %v3988_v19 = vmax.f32 %v3940_v48, %v13717_v0  ;;  %7520 = vmatpush3.bf16.xpose.msk.msra.mxu1 %vm9487_vm6, %v7518_v41  ;;  %v3861_v39 = vmax.f32 %v13517_v12, %v13521_v47  ;;  %v3868_v2 = vmax.f32 %v13531_v42, %v17840_v54  ;;  %v17845_v47 = vld [vmem:[#allocation21_spill] sm:$0xff] }
 0x44c   : > { %v3989_v26 = vmax.f32 %v3941_v27, %v13719_v63  ;;  %v13844_v32 = vmax.f32 %v3972_v45, %v17807_v57  ;;  %v13851_v25 = vmax.f32 %v3973_v29, %v17808_v62  ;;  %v13854_v40 = vmax.f32 %v3980_v20, %v17809_v46  ;;  %v17854_v27 = vld [vmem:[#allocation11_spill] sm:$0xff] }
 0x44d   : > { %v13857_v21 = vmax.f32 %v3981_v3, %v17810_v33  ;;  %v13860_v8 = vmax.f32 %v3988_v19, %v13815_v60  ;;  %v3869_v12 = vmax.f32 %v13533_v49, %v12999_v58  ;;  %v3908_v54 = vmax.f32 %v3860_v35, %v17845_v47  ;;  %v17860_v47 = vld [vmem:[#allocation71_spill] sm:$0xff] }
 0x44e   : > { %v13863_v57 = vmax.f32 %v3989_v26, %v13817_v14  ;;  %v3909_v62 = vmax.f32 %v3861_v39, %v17846_v7  ;;  %v4068_v46 = vmax.f32 %v13844_v32, %v13854_v40  ;;  %v3916_v38 = vmax.f32 %v3868_v2, %v13002_v16 }
 0x44f   : > { %v4069_v33 = vmax.f32 %v13851_v25, %v13857_v21  ;;  %v17848_v13 = vrot.slane %v17847_v4, 6  ;;  %v17850_v24 = vrot.slane %v17849_v59, 6  ;;  %v3917_v58 = vmax.f32 %v3869_v12, %v13005_v5 }
 0x450   : > { %v3956_v15 = vmax.f32 %v3908_v54, %v13527_v61  ;;  %v3957_v52 = vmax.f32 %v3909_v62, %v17837_v44  ;;  %v17852_v23 = vrot.slane %v17851_v30, 6  ;;  %v4100_v51 = vmax.f32 %v4068_v46, %v13860_v8 }
 0x451   : > { %v2774_v53 = vsel %vm2076_vm4, %v17850_v24, %v17848_v13  ;;  %v17853_v56 = vmov %v17848_v13  ;;  %v4101_v48 = vmax.f32 %v4069_v33, %v13863_v57  ;;  %v3964_v41 = vmax.f32 %v3916_v38, %v13008_v31 }
 0x452   : > { %v2858_v16 = vsel %vm2076_vm4, %v17853_v56, %v17852_v23  ;;  %v17855_v45 = vrot.slane %v17854_v27, 2  ;;  %v17856_v5 = vrot.slane %v17851_v30, 2  ;;  %v3965_v44 = vmax.f32 %v3917_v58, %v13011_v50  ;;  %v17859_v50 = vld [vmem:[#allocation44_spill] sm:$0xff]  ;;  %v17862_v23 = vld [vmem:[#allocation67_spill] sm:$0xff]  ;;  %v17866_v27 = vld [vmem:[#allocation86_spill] sm:$0xff] }
 0x453   : > { %v4004_v35 = vmax.f32 %v3956_v15, %v13531_v42  ;;  %v4005_v29 = vmax.f32 %v3957_v52, %v13533_v49  ;;  %v17858_v3 = vrot.slane %v17847_v4, 2  ;;  %v7521_v19 = vpack.c.bf16 %v4101_v48, %v4100_v51  ;;  %v17861_v30 = vld [vmem:[#allocation80_spill] sm:$0xff]  ;;  %v17864_v51 = vld [vmem:[#allocation98_spill] sm:$0xff] }
 0x454   : > { %v3054_v61 = vsel %vm2301_vm5, %v17856_v5, %v17855_v45  ;;  %v17857_v20 = vmov %v17856_v5  ;;  %v13908_v26 = vmax.f32 %v3964_v41, %v17805_v9  ;;  %v13911_v12 = vmax.f32 %v3965_v44, %v17806_v34  ;;  %v17865_v41 = vld [vmem:[#allocation116_spill] sm:$0xff] }
 0x455   : > { %v3082_v31 = vsel %vm2301_vm5, %v17858_v3, %v17857_v20  ;;  %v3182_v39 = vmax.f32 %v2858_v16, %v3054_v61  ;;  %v3250_v42 = vrot.slane %v17859_v50, 6  ;;  %v3278_v49 = vrot.slane %v17860_v47, 6  ;;  %7523 = vmatprep.subr.msk.bf16.mxu1 %vm9487_vm6, %v7521_v19  ;;  %v17863_v16 = vld [vmem:[#allocation14_spill] sm:$0xff]  ;;  %v17867_v44 = vld [vmem:[#allocation24_spill] sm:$0xff]  ;;  %v17869_v20 = vld [vmem:[#allocation49_spill] sm:$0xff] }
 0x456   : > { %v3185_v2 = vmax.f32 %v2774_v53, %v3082_v31  ;;  %v3362_v54 = vrot.slane %v17859_v50, 2  ;;  %v4052_v7 = vmax.f32 %v4004_v35, %v13908_v26  ;;  %v3390_v9 = vrot.slane %v17860_v47, 2  ;;  %v17868_v35 = vld [vmem:[#allocation31_spill] sm:$0xff]  ;;  %v17871_v31 = vld [vmem:[#allocation22_spill] sm:$0xff] }
 0x457   : > { %v3222_v62 = vrot.slane %v3182_v39, 6  ;;  %v4053_v33 = vmax.f32 %v4005_v29, %v13911_v12  ;;  %v3306_v34 = vsel %vm2076_vm4, %v3250_v42, %v3278_v49  ;;  %v3894_v38 = vmax.f32 %v17816_v17, %v13613_v11 }
 0x458   : > { %v3418_v46 = vrot.slane %v3185_v2, 2  ;;  %v3895_v4 = vmax.f32 %v17817_v36, %v13615_v10  ;;  %v4084_v13 = vmax.f32 %v4052_v7, %v13844_v32  ;;  %v3474_v53 = vsel %vm2301_vm5, %v3362_v54, %v3390_v9  ;;  %v17876_v7 = vld [vmem:[#allocation7_spill] sm:$0xff] }
 0x459   : > { %v3334_v59 = vsel %vm2076_vm4, %v3222_v62, %v3250_v42  ;;  %v4085_v58 = vmax.f32 %v4053_v33, %v13851_v25  ;;  %v3942_v17 = vmax.f32 %v3894_v38, %v13717_v0  ;;  %v4070_v56 = vmax.f32 %v17862_v23, %v17861_v30  ;;  %v17873_v42 = vld [vmem:[#allocation37_spill] sm:$0xff] }
 0x45a   : > { %v3446_v24 = vsel %vm2301_vm5, %v3390_v9, %v3418_v46  ;;  %v13935_v15 = vmax.f32 %v3334_v59, %v3474_v53  ;;  %v3943_v36 = vmax.f32 %v3895_v4, %v13719_v63  ;;  %v4071_v48 = vmax.f32 %v17864_v51, %v17863_v16 }
 0x45b   : > { %v13937_v52 = vmax.f32 %v3306_v34, %v3446_v24  ;;  %v4054_v45 = vmax.f32 %v17866_v27, %v17865_v41  ;;  %v7524_v5 = vpack.c.bf16 %v4085_v58, %v4084_v13  ;;  %v3990_v61 = vmax.f32 %v3942_v17, %v13815_v60  ;;  %v17881_v58 = vld [vmem:[#allocation108_spill] sm:$0xff] }
 0x45c   : > { %v4055_v29 = vmax.f32 %v17868_v35, %v17867_v44  ;;  %v17870_v3 = vrot.slane %v17869_v20, 6  ;;  %v17872_v19 = vrot.slane %v17871_v31, 6  ;;  %v3991_v2 = vmax.f32 %v3943_v36, %v13817_v14  ;;  %v17883_v36 = vld [vmem:[#allocation10_spill] sm:$0xff] }
 0x45d   : > { %v4086_v50 = vmax.f32 %v4054_v45, %v17862_v23  ;;  %v17874_v47 = vrot.slane %v17873_v42, 6  ;;  %v17877_v62 = vrot.slane %v17876_v7, 2  ;;  %v17878_v9 = vrot.slane %v17873_v42, 2  ;;  %7526 = vmatpush3.bf16.xpose.msk.msra.mxu1 %vm9487_vm6, %v7524_v5 }
 0x45e   : > { %v2775_v39 = vsel %vm2076_vm4, %v17872_v19, %v17870_v3  ;;  %v17875_v49 = vmov %v17870_v3  ;;  %v4038_v33 = vmax.f32 %v3990_v61, %v13935_v15  ;;  %v4087_v34 = vmax.f32 %v4055_v29, %v17864_v51  ;;  %v17888_v3 = vld [vmem:[#allocation115_spill] sm:$0xff] }
 0x45f   : > { %v2859_v54 = vsel %vm2076_vm4, %v17875_v49, %v17874_v47  ;;  %v3055_v46 = vsel %vm2301_vm5, %v17878_v9, %v17877_v62  ;;  %v17879_v38 = vmov %v17878_v9  ;;  %v17880_v4 = vrot.slane %v17869_v20, 2  ;;  %v17887_v20 = vld [vmem:[#allocation41_spill] sm:$0xff]  ;;  %v17892_v47 = vld [vmem:[#allocation100_spill] sm:$0xff] }
 0x460   : > { %v3186_v59 = vmax.f32 %v2859_v54, %v3055_v46  ;;  %v4039_v24 = vmax.f32 %v3991_v2, %v13937_v52  ;;  %v17882_v17 = vrot.slane %v17881_v58, 6  ;;  %v17884_v30 = vrot.slane %v17883_v36, 6  ;;  %v17890_v2 = vld [vmem:[#allocation120_spill] sm:$0xff]  ;;  %v14010_v54 = vld [vmem:[#allocation2 + $0x348] sm:$0xff] }
 0x461   : > { %v3083_v13 = vsel %vm2301_vm5, %v17880_v4, %v17879_v38  ;;  %v17885_v16 = vrot.slane %v17881_v58, 2  ;;  %v17886_v51 = vrot.slane %v17883_v36, 2  ;;  %v4102_v27 = vmax.f32 %v4070_v56, %v4038_v33  ;;  %v14008_v49 = vld [vmem:[#allocation2 + $0x340] sm:$0xff] }
 0x462   : > { %v3189_v53 = vmax.f32 %v2775_v39, %v3083_v13  ;;  %v3307_v23 = vsel %vm2076_vm4, %v17884_v30, %v17882_v17  ;;  %v7530_v45 = vpack.c.bf16 %v4087_v34, %v4086_v50  ;;  %v3223_v5 = vrot.slane %v3186_v59, 6  ;;  %v17891_v50 = vld [vmem:[#allocation4_spill] sm:$0xff]  ;;  %v1283_v34 = vld [vmem:[#allocation2 + $0x358] sm:$0xff]  ;;  %v17895_v13 = vld [vmem:[#allocation105_spill] sm:$0xff] }
 0x463   : > { %v3475_v41 = vsel %vm2301_vm5, %v17886_v51, %v17885_v16  ;;  %v3896_v61 = vmax.f32 %v13613_v11, %v13717_v0  ;;  %v4103_v44 = vmax.f32 %v4071_v48, %v4039_v24  ;;  %v3897_v29 = vmax.f32 %v13615_v10, %v13719_v63  ;;  %v17893_v11 = vld [vmem:[#allocation42_spill] sm:$0xff]  ;;  %v17896_v59 = vld [vmem:[#allocation57_spill] sm:$0xff] }
 0x464   : > { %v3419_v35 = vrot.slane %v3189_v53, 2  ;;  %v4072_v31 = vmax.f32 %v17888_v3, %v17887_v20  ;;  %v17889_v19 = vmov %v17884_v30  ;;  %v4073_v42 = vmax.f32 %v17891_v50, %v17890_v2  ;;  %v14012_v10 = vld [vmem:[#allocation2 + $0x350] sm:$0xff] }
 0x465   : > { %v3335_v39 = vsel %vm2076_vm4, %v3223_v5, %v17889_v19  ;;  %v3944_v56 = vmax.f32 %v3896_v61, %v13815_v60  ;;  %v4056_v48 = vmax.f32 %v17893_v11, %v17892_v47  ;;  %v7527_v7 = vpack.c.bf16 %v4103_v44, %v4102_v27 }
 0x466   : > { %v17894_v62 = vmov %v17885_v16  ;;  %v14018_v46 = vmax.f32 %v3335_v39, %v3475_v41  ;;  %v3945_v33 = vmax.f32 %v3897_v29, %v13817_v14  ;;  %v4057_v24 = vmax.f32 %v17896_v59, %v17895_v13 }
 0x467   : > { %v3447_v9 = vsel %vm2301_vm5, %v17894_v62, %v3419_v35  ;;  %v3992_v4 = vmax.f32 %v3944_v56, %v13935_v15  ;;  %v4088_v53 = vmax.f32 %v4056_v48, %v17888_v3  ;;  %7529 = vmatprep.subr.msk.bf16.mxu1 %vm9487_vm6, %v7527_v7  ;;  %v1314_v17 = vrot.slane %v14008_v49, 7 }
 0x468   : > { %v14021_v38 = vmax.f32 %v3307_v23, %v3447_v9  ;;  %v3993_v58 = vmax.f32 %v3945_v33, %v13937_v52  ;;  %v1342_v36 = vrot.slane %v14010_v54, 7  ;;  %v1370_v30 = vrot.slane %v14012_v10, 7  ;;  %7532 = vmatpush3.bf16.xpose.msk.msra.mxu1 %vm9487_vm6, %v7530_v45 }
 0x469   : > { %v4040_v23 = vmax.f32 %v3992_v4, %v14018_v46  ;;  %v4089_v16 = vmax.f32 %v4057_v24, %v17891_v50  ;;  %v1398_v51 = vrot.slane %v1283_v34, 7  ;;  %v1541_v41 = vrot.slane %v14008_v49, 1 }
 0x46a   : > { %v4041_v27 = vmax.f32 %v3993_v58, %v14021_v38  ;;  %v1457_v5 = vsel %vm1402_vm2, %v1342_v36, %v1370_v30  ;;  %v1485_v61 = vsel %vm1402_vm2, %v1314_v17, %v1342_v36  ;;  %v1569_v44 = vrot.slane %v14010_v54, 1 }
 0x46b   : > { %v4104_v35 = vmax.f32 %v4072_v31, %v4040_v23  ;;  %v7536_v29 = vpack.c.bf16 %v4089_v16, %v4088_v53  ;;  %v1429_v45 = vsel %vm1402_vm2, %v1370_v30, %v1398_v51  ;;  %v1513_v20 = vsel %vm1402_vm2, %v1398_v51, %v1314_v17 }
 0x46c   : > { %v4105_v3 = vmax.f32 %v4073_v42, %v4041_v27  ;;  %v1597_v19 = vrot.slane %v14012_v10, 1  ;;  %v1625_v39 = vrot.slane %v1283_v34, 1  ;;  %v1710_v56 = vsel %vm1627_vm3, %v1541_v41, %v1569_v44 }
 0x46d   : > { %v1844_v2 = vmax.f32 %v1513_v20, %v1710_v56  ;;  %v1990_v50 = vrot.slane %v14008_v49, 6  ;;  %v2018_v47 = vrot.slane %v14010_v54, 6  ;;  %v2046_v31 = vrot.slane %v14012_v10, 6 }
 0x46e   : > { %v7533_v11 = vpack.c.bf16 %v4105_v3, %v4104_v35  ;;  %v1654_v48 = vsel %vm1627_vm3, %v1597_v19, %v1625_v39  ;;  %v1682_v42 = vsel %vm1627_vm3, %v1569_v44, %v1597_v19  ;;  %v1738_v7 = vsel %vm1627_vm3, %v1625_v39, %v1541_v41  ;;  %v17898_v19 = vld [vmem:[#allocation58_spill] sm:$0xff] }
 0x46f   : > { %v1845_v62 = vmax.f32 %v1485_v61, %v1682_v42  ;;  %v1846_v9 = vmax.f32 %v1457_v5, %v1654_v48  ;;  %v1847_v33 = vmax.f32 %v1429_v45, %v1738_v7  ;;  %v1956_v4 = vmax.f32 %v14008_v49, %v1844_v2 }
 0x470   : > { %7535 = vmatprep.subr.msk.bf16.mxu1 %vm9487_vm6, %v7533_v11  ;;  %v2074_v13 = vrot.slane %v1283_v34, 6  ;;  %v2131_v59 = vsel %vm2076_vm4, %v2018_v47, %v2046_v31  ;;  %v2159_v24 = vsel %vm2076_vm4, %v1990_v50, %v2018_v47  ;;  %v2215_v53 = vrot.slane %v14008_v49, 2 }
 0x471   : > { %7538 = vmatpush3.bf16.xpose.msk.msra.mxu1 %vm9487_vm6, %v7536_v29  ;;  %v1957_v58 = vmax.f32 %v14010_v54, %v1845_v62  ;;  %v1958_v17 = vmax.f32 %v14012_v10, %v1846_v9  ;;  %v1959_v36 = vmax.f32 %v1283_v34, %v1847_v33  ;;  %v2243_v30 = vrot.slane %v14010_v54, 2  ;;  %v17897_v54 = vld [vmem:[#allocation27_spill] sm:$0xff] }
 0x472   : > { %v2103_v23 = vsel %vm2076_vm4, %v2046_v31, %v2074_v13  ;;  %v2187_v16 = vsel %vm2076_vm4, %v2074_v13, %v1990_v50  ;;  %v2271_v51 = vrot.slane %v14012_v10, 2  ;;  %v2299_v41 = vrot.slane %v1283_v34, 2 }
 0x473   : > { %v2384_v49 = vsel %vm2301_vm5, %v2215_v53, %v2243_v30  ;;  %v3898_v27 = vmax.f32 %v13717_v0, %v13815_v60  ;;  %v3899_v5 = vmax.f32 %v13719_v63, %v13817_v14  ;;  %v4074_v61 = vmax.f32 %v17897_v54, %v13765_v6 }
 0x474   : > { %v2328_v44 = vsel %vm2301_vm5, %v2271_v51, %v2299_v41  ;;  %v2356_v35 = vsel %vm2301_vm5, %v2243_v30, %v2271_v51  ;;  %v2412_v10 = vsel %vm2301_vm5, %v2299_v41, %v2215_v53  ;;  %v2518_v34 = vmax.f32 %v2187_v16, %v2384_v49 }
 0x475   : > { %v2519_v29 = vmax.f32 %v2159_v24, %v2356_v35  ;;  %v2520_v45 = vmax.f32 %v2131_v59, %v2328_v44  ;;  %v2521_v20 = vmax.f32 %v2103_v23, %v2412_v10  ;;  %v14093_v0 = vmax.f32 %v3898_v27, %v13935_v15  ;;  %v14136_v44 = vld [vmem:[#allocation2 + $0x378] sm:$0xff] }
 0x476   : > { %v2630_v63 = vmax.f32 %v1956_v4, %v2518_v34  ;;  %v14096_v3 = vmax.f32 %v3899_v5, %v13937_v52  ;;  %v4075_v39 = vmax.f32 %v17898_v19, %v13768_v22  ;;  %v4058_v56 = vmax.f32 %v13793_v55, %v13750_v1 }
 0x477   : > { %v2631_v2 = vmax.f32 %v1957_v58, %v2519_v29  ;;  %v2632_v50 = vmax.f32 %v1958_v17, %v2520_v45  ;;  %v2633_v47 = vmax.f32 %v1959_v36, %v2521_v20  ;;  %v3994_v31 = vmax.f32 %v14093_v0, %v14018_v46  ;;  %v14122_v58 = vld [vmem:[#allocation2 + $0x360] sm:$0xff]  ;;  %v14124_v17 = vld [vmem:[#allocation2 + $0x368] sm:$0xff]  ;;  %v14126_v36 = vld [vmem:[#allocation2 + $0x370] sm:$0xff] }
 0x478   : > { %v2664_v11 = vrot.slane %v2630_v63, 6  ;;  %v2888_v48 = vrot.slane %v2630_v63, 2  ;;  %v3995_v42 = vmax.f32 %v14096_v3, %v14021_v38  ;;  %v4059_v7 = vmax.f32 %v13796_v18, %v13753_v43 }
 0x479   : > { %v2692_v62 = vrot.slane %v2631_v2, 6  ;;  %v2720_v9 = vrot.slane %v2632_v50, 6  ;;  %v2748_v33 = vrot.slane %v2633_v47, 6  ;;  %v2916_v4 = vrot.slane %v2631_v2, 2 }
 0x47a   : > { %v2944_v13 = vrot.slane %v2632_v50, 2  ;;  %v2972_v55 = vrot.slane %v2633_v47, 2  ;;  %v14109_v1 = vmax.f32 %v4058_v56, %v17897_v54  ;;  %v14112_v59 = vmax.f32 %v4059_v7, %v17898_v19 }
 0x47b   : > { %v2776_v24 = vsel %vm2076_vm4, %v2720_v9, %v2748_v33  ;;  %v2804_v53 = vsel %vm2076_vm4, %v2692_v62, %v2720_v9  ;;  %v2832_v43 = vsel %vm2076_vm4, %v2664_v11, %v2692_v62  ;;  %v2860_v18 = vsel %vm2076_vm4, %v2748_v33, %v2664_v11 }
 0x47c   : > { %v3000_v30 = vsel %vm2301_vm5, %v2944_v13, %v2972_v55  ;;  %v3028_v23 = vsel %vm2301_vm5, %v2916_v4, %v2944_v13  ;;  %v3056_v16 = vsel %vm2301_vm5, %v2888_v48, %v2916_v4  ;;  %v3084_v51 = vsel %vm2301_vm5, %v2972_v55, %v2888_v48 }
 0x47d   : > { %v3190_v41 = vmax.f32 %v2860_v18, %v3056_v16  ;;  %v3191_v49 = vmax.f32 %v2832_v43, %v3028_v23  ;;  %v3192_v27 = vmax.f32 %v2804_v53, %v3000_v30  ;;  %v3193_v5 = vmax.f32 %v2776_v24, %v3084_v51 }
 0x47e   : > { %v7542_v35 = vpack.c.bf16 %v14112_v59, %v14109_v1  ;;  %v1315_v10 = vrot.slane %v14122_v58, 7  ;;  %v1343_v34 = vrot.slane %v14124_v17, 7  ;;  %v1371_v29 = vrot.slane %v14126_v36, 7 }
 0x47f   : > { %v3224_v45 = vrot.slane %v3190_v41, 6  ;;  %v3252_v20 = vrot.slane %v3191_v49, 6  ;;  %v3280_v0 = vrot.slane %v3192_v27, 6  ;;  %v3364_v63 = vrot.slane %v3191_v49, 2 }
 0x480   : > { %v3392_v3 = vrot.slane %v3192_v27, 2  ;;  %v3420_v56 = vrot.slane %v3193_v5, 2  ;;  %v1399_v2 = vrot.slane %v14136_v44, 7  ;;  %v1458_v50 = vsel %vm1402_vm2, %v1343_v34, %v1371_v29 }
 0x481   : > { %v3308_v47 = vsel %vm2076_vm4, %v3252_v20, %v3280_v0  ;;  %v3336_v11 = vsel %vm2076_vm4, %v3224_v45, %v3252_v20  ;;  %v1486_v48 = vsel %vm1402_vm2, %v1315_v10, %v1343_v34  ;;  %v1542_v7 = vrot.slane %v14122_v58, 1 }
 0x482   : > { %v3448_v62 = vsel %vm2301_vm5, %v3392_v3, %v3420_v56  ;;  %v3476_v9 = vsel %vm2301_vm5, %v3364_v63, %v3392_v3  ;;  %v1430_v33 = vsel %vm1402_vm2, %v1371_v29, %v1399_v2  ;;  %v1514_v4 = vsel %vm1402_vm2, %v1399_v2, %v1315_v10 }
 0x483   : > { %v14161_v13 = vmax.f32 %v3336_v11, %v3476_v9  ;;  %v14163_v55 = vmax.f32 %v3308_v47, %v3448_v62  ;;  %v1570_v1 = vrot.slane %v14124_v17, 1  ;;  %v1598_v59 = vrot.slane %v14126_v36, 1 }
 0x484   : > { %v1626_v24 = vrot.slane %v14136_v44, 1  ;;  %v1991_v53 = vrot.slane %v14122_v58, 6  ;;  %v2019_v43 = vrot.slane %v14124_v17, 6  ;;  %v2047_v18 = vrot.slane %v14126_v36, 6 }
 0x485   : > { %v4042_v30 = vmax.f32 %v3994_v31, %v14161_v13  ;;  %v4043_v23 = vmax.f32 %v3995_v42, %v14163_v55  ;;  %v1683_v16 = vsel %vm1627_vm3, %v1570_v1, %v1598_v59  ;;  %v1711_v51 = vsel %vm1627_vm3, %v1542_v7, %v1570_v1 }
 0x486   : > { %v1655_v41 = vsel %vm1627_vm3, %v1598_v59, %v1626_v24  ;;  %v1739_v49 = vsel %vm1627_vm3, %v1626_v24, %v1542_v7  ;;  %v1848_v27 = vmax.f32 %v1514_v4, %v1711_v51  ;;  %v1849_v5 = vmax.f32 %v1486_v48, %v1683_v16 }
 0x487   : > { %v4106_v31 = vmax.f32 %v4074_v61, %v4042_v30  ;;  %v4107_v42 = vmax.f32 %v4075_v39, %v4043_v23  ;;  %v1850_v10 = vmax.f32 %v1458_v50, %v1655_v41  ;;  %v1851_v34 = vmax.f32 %v1430_v33, %v1739_v49 }
 0x488   : > { %v1960_v29 = vmax.f32 %v14122_v58, %v1848_v27  ;;  %v1961_v45 = vmax.f32 %v14124_v17, %v1849_v5  ;;  %v2075_v20 = vrot.slane %v14136_v44, 6  ;;  %v2132_v0 = vsel %vm2076_vm4, %v2019_v43, %v2047_v18 }
 0x489   : > { %v7539_v63 = vpack.c.bf16 %v4107_v42, %v4106_v31  ;;  %v1962_v3 = vmax.f32 %v14126_v36, %v1850_v10  ;;  %v1963_v6 = vmax.f32 %v14136_v44, %v1851_v34  ;;  %v2160_v22 = vsel %vm2076_vm4, %v1991_v53, %v2019_v43 }
 0x48a   : > { %v2104_v54 = vsel %vm2076_vm4, %v2047_v18, %v2075_v20  ;;  %v2188_v61 = vsel %vm2076_vm4, %v2075_v20, %v1991_v53  ;;  %v2216_v19 = vrot.slane %v14122_v58, 2  ;;  %v2244_v39 = vrot.slane %v14124_v17, 2 }
 0x48b   : > { %7541 = vmatprep.subr.msk.bf16.mxu1 %vm9487_vm6, %v7539_v63  ;;  %v2272_v56 = vrot.slane %v14126_v36, 2  ;;  %v2300_v2 = vrot.slane %v14136_v44, 2  ;;  %v3900_v50 = vmax.f32 %v13815_v60, %v13935_v15  ;;  %v3901_v47 = vmax.f32 %v13817_v14, %v13937_v52 }
 0x48c   : > { %7544 = vmatpush3.bf16.xpose.msk.msra.mxu1 %vm9487_vm6, %v7542_v35  ;;  %v2385_v58 = vsel %vm2301_vm5, %v2216_v19, %v2244_v39  ;;  %v4076_v17 = vmax.f32 %v13854_v40, %v13860_v8  ;;  %v4077_v36 = vmax.f32 %v13857_v21, %v13863_v57  ;;  %v4060_v44 = vmax.f32 %v13908_v26, %v13844_v32 }
 0x48d   : > { %v2329_v60 = vsel %vm2301_vm5, %v2272_v56, %v2300_v2  ;;  %v2357_v14 = vsel %vm2301_vm5, %v2244_v39, %v2272_v56  ;;  %v2413_v15 = vsel %vm2301_vm5, %v2300_v2, %v2216_v19  ;;  %v2522_v52 = vmax.f32 %v2188_v61, %v2385_v58 }
 0x48e   : > { %v2523_v35 = vmax.f32 %v2160_v22, %v2357_v14  ;;  %v2524_v11 = vmax.f32 %v2132_v0, %v2329_v60  ;;  %v2525_v48 = vmax.f32 %v2104_v54, %v2413_v15  ;;  %v3948_v8 = vmax.f32 %v3900_v50, %v14018_v46  ;;  %v4798_v46 = vld [vmem:[%s15946_s7] sm:$0xff] }
 0x48f   : > { %v2634_v7 = vmax.f32 %v1960_v29, %v2522_v52  ;;  %v3949_v57 = vmax.f32 %v3901_v47, %v14021_v38  ;;  %v4061_v32 = vmax.f32 %v13911_v12, %v13851_v25  ;;  %v4092_v26 = vmax.f32 %v4060_v44, %v13854_v40 }
 0x490   : > { %v2635_v62 = vmax.f32 %v1961_v45, %v2523_v35  ;;  %v2636_v9 = vmax.f32 %v1962_v3, %v2524_v11  ;;  %v2637_v33 = vmax.f32 %v1963_v6, %v2525_v48  ;;  %v7841_v16 = vmov 0  }
 0x491   : > { %v2665_v4 = vrot.slane %v2634_v7, 6  ;;  %v2889_v1 = vrot.slane %v2634_v7, 2  ;;  %v4093_v59 = vmax.f32 %v4061_v32, %v13857_v21  ;;  %7653 = vset.pattern.permute.xlu1 %v7841_v16  ;;  %7654 = vset.pattern.permute.xlu0 %v7841_v16  ;;  %v3996_v22 = vmax.f32 %v3948_v8, %v14161_v13  ;;  %v17899_v13 = vld [vmem:[#allocation8_spill] sm:$0xff] }
 0x492   : > { %v2693_v24 = vrot.slane %v2635_v62, 6  ;;  %v2721_v53 = vrot.slane %v2636_v9, 6  ;;  %v2749_v43 = vrot.slane %v2637_v33, 6  ;;  %v2917_v18 = vrot.slane %v2635_v62, 2  ;;  %4801 = vperm.xlu1 %7653, %v4798_v46  }
 0x493   : > { %v2945_v38 = vrot.slane %v2636_v9, 2  ;;  %v2973_v30 = vrot.slane %v2637_v33, 2  ;;  %v7548_v25 = vpack.c.bf16 %v4093_v59, %v4092_v26  ;;  %v3997_v54 = vmax.f32 %v3949_v57, %v14163_v55 }
 0x494   : > { %v2777_v40 = vsel %vm2076_vm4, %v2721_v53, %v2749_v43  ;;  %v2805_v12 = vsel %vm2076_vm4, %v2693_v24, %v2721_v53  ;;  %v2833_v21 = vsel %vm2076_vm4, %v2665_v4, %v2693_v24  ;;  %v2861_v23 = vsel %vm2076_vm4, %v2749_v43, %v2665_v4 }
 0x495   : > { %v3001_v51 = vsel %vm2301_vm5, %v2945_v38, %v2973_v30  ;;  %v3029_v41 = vsel %vm2301_vm5, %v2917_v18, %v2945_v38  ;;  %v3057_v49 = vsel %vm2301_vm5, %v2889_v1, %v2917_v18  ;;  %v3085_v27 = vsel %vm2301_vm5, %v2973_v30, %v2889_v1 }
 0x496   : > { %v3194_v5 = vmax.f32 %v2861_v23, %v3057_v49  ;;  %v3195_v31 = vmax.f32 %v2833_v21, %v3029_v41  ;;  %v3196_v42 = vmax.f32 %v2805_v12, %v3001_v51  ;;  %v3197_v10 = vmax.f32 %v2777_v40, %v3085_v27 }
 0x498   : > { %v3225_v34 = vrot.slane %v3194_v5, 6  ;;  %v3253_v29 = vrot.slane %v3195_v31, 6  ;;  %v3281_v45 = vrot.slane %v3196_v42, 6  ;;  %v3365_v20 = vrot.slane %v3195_v31, 2 }
 0x499   : > { %v3393_v0 = vrot.slane %v3196_v42, 2  ;;  %v3421_v63 = vrot.slane %v3197_v10, 2 }
 0x49a   : > { %v3309_v3 = vsel %vm2076_vm4, %v3253_v29, %v3281_v45  ;;  %v3337_v6 = vsel %vm2076_vm4, %v3225_v34, %v3253_v29 }
 0x49b   : > { %v3449_v61 = vsel %vm2301_vm5, %v3393_v0, %v3421_v63  ;;  %v3477_v19 = vsel %vm2301_vm5, %v3365_v20, %v3393_v0 }
 0x49c   : > { %v3532_v39 = vmax.f32 %v3337_v6, %v3477_v19  ;;  %v3533_v56 = vmax.f32 %v3309_v3, %v3449_v61  ;;  %v16501_v3 = vmov 0.0  }
 0x49d   : > { %5485 = vst.msk [vmem:[#allocation3 + $0xb8] sm:$0xff] %vm515_vm0, %v16501_v3  ;;  %5453 = vst.msk [vmem:[#allocation3 + $0x28] sm:$0xff] %vm515_vm0, %v16501_v3 }
 0x49e   : > { %v4044_v2 = vmax.f32 %v3996_v22, %v3532_v39  ;;  %v4045_v50 = vmax.f32 %v3997_v54, %v3533_v56  ;;  %5454 = vst.msk [vmem:[#allocation3 + $0x30] sm:$0xff] %vm515_vm0, %v16501_v3  ;;  %5458 = vst.msk [vmem:[#allocation3 + $0x248] sm:$0xff] %vm515_vm0, %v16501_v3 }
 0x49f   : > { %5459 = vst.msk [vmem:[#allocation3 + $0x250] sm:$0xff] %vm515_vm0, %v16501_v3  ;;  %5466 = vst.msk [vmem:[#allocation3 + $0x40] sm:$0xff] %vm515_vm0, %v16501_v3 }
 0x4a0   : > { %v4108_v47 = vmax.f32 %v4076_v17, %v4044_v2  ;;  %v4109_v58 = vmax.f32 %v4077_v36, %v4045_v50  ;;  %5467 = vst.msk [vmem:[#allocation3 + $0x60] sm:$0xff] %vm515_vm0, %v16501_v3  ;;  %5468 = vst.msk [vmem:[#allocation3 + $0x80] sm:$0xff] %vm515_vm0, %v16501_v3 }
 0x4a1   : > { %5469 = vst.msk [vmem:[#allocation3 + $0xa0] sm:$0xff] %vm515_vm0, %v16501_v3  ;;  %5470 = vst.msk [vmem:[#allocation3 + $0xc0] sm:$0xff] %vm515_vm0, %v16501_v3 }
 0x4a2   : > { %v7545_v44 = vpack.c.bf16 %v4109_v58, %v4108_v47  ;;  %5471 = vst.msk [vmem:[#allocation3 + $0xe0] sm:$0xff] %vm515_vm0, %v16501_v3  ;;  %5472 = vst.msk [vmem:[#allocation3 + $0x100] sm:$0xff] %vm515_vm0, %v16501_v3  ;;  %v16500_v47 = vmov 0.00390625  }
 0x4a3   : > { %5473 = vst.msk [vmem:[#allocation3 + $0x120] sm:$0xff] %vm515_vm0, %v16501_v3  ;;  %5474 = vst.msk [vmem:[#allocation3 + $0x140] sm:$0xff] %vm515_vm0, %v16501_v3 }
 0x4a4   : > { %7547 = vmatprep.subr.msk.bf16.mxu1 %vm9487_vm6, %v7545_v44  ;;  %5475 = vst.msk [vmem:[#allocation3 + $0x160] sm:$0xff] %vm515_vm0, %v16501_v3  ;;  %5476 = vst.msk [vmem:[#allocation3 + $0x180] sm:$0xff] %vm515_vm0, %v16501_v3 }
 0x4a5   : > { %7550 = vmatpush3.bf16.xpose.msk.msra.mxu1 %vm9487_vm6, %v7548_v25  ;;  %5477 = vst.msk [vmem:[#allocation3 + $0x1a0] sm:$0xff] %vm515_vm0, %v16501_v3  ;;  %5478 = vst.msk [vmem:[#allocation3 + $0x1c0] sm:$0xff] %vm515_vm0, %v16501_v3 }
 0x4a6   : > { %7631 = vmatprep.subr.mxu1 %v4820_v28  ;;  %5479 = vst.msk [vmem:[#allocation3 + $0x1e0] sm:$0xff] %vm515_vm0, %v16501_v3  ;;  %5480 = vst.msk [vmem:[#allocation3 + $0x200] sm:$0xff] %vm515_vm0, %v16501_v3 }
 0x4a7   : > { %5481 = vst.msk [vmem:[#allocation3 + $0x220] sm:$0xff] %vm515_vm0, %v16501_v3  ;;  %5482 = vst.msk [vmem:[#allocation3 + $0x58] sm:$0xff] %vm515_vm0, %v16501_v3 }
 0x4a8   : > { %5483 = vst.msk [vmem:[#allocation3 + $0x78] sm:$0xff] %vm515_vm0, %v16501_v3  ;;  %5484 = vst.msk [vmem:[#allocation3 + $0x98] sm:$0xff] %vm515_vm0, %v16501_v3 }
 0x4a9   : > { %5486 = vst.msk [vmem:[#allocation3 + $0xd8] sm:$0xff] %vm515_vm0, %v16501_v3  ;;  %5487 = vst.msk [vmem:[#allocation3 + $0xf8] sm:$0xff] %vm515_vm0, %v16501_v3 }
 0x4aa   : > { %5488 = vst.msk [vmem:[#allocation3 + $0x118] sm:$0xff] %vm515_vm0, %v16501_v3  ;;  %5489 = vst.msk [vmem:[#allocation3 + $0x138] sm:$0xff] %vm515_vm0, %v16501_v3 }
 0x4ab   : > { %5490 = vst.msk [vmem:[#allocation3 + $0x158] sm:$0xff] %vm515_vm0, %v16501_v3  ;;  %5491 = vst.msk [vmem:[#allocation3 + $0x178] sm:$0xff] %vm515_vm0, %v16501_v3 }
 0x4ac   : > { %7142 = vmatmul.mubr.msk.f32.vlgmr.msra.gmra.mrb[32].mxu1 %vm1061_vm1, %v17899_v13  ;;  %5492 = vst.msk [vmem:[#allocation3 + $0x198] sm:$0xff] %vm515_vm0, %v16501_v3  ;;  %5493 = vst.msk [vmem:[#allocation3 + $0x1b8] sm:$0xff] %vm515_vm0, %v16501_v3 }
 0x4ad   : > { %7632 = vmatpush3.msra.mxu1 %v4820_v28  ;;  %5494 = vst.msk [vmem:[#allocation3 + $0x1d8] sm:$0xff] %vm515_vm0, %v16501_v3  ;;  %5495 = vst.msk [vmem:[#allocation3 + $0x1f8] sm:$0xff] %vm515_vm0, %v16501_v3 }
 0x4ae   : > { %5496 = vst.msk [vmem:[#allocation3 + $0x218] sm:$0xff] %vm515_vm0, %v16501_v3  ;;  %5497 = vst.msk [vmem:[#allocation3 + $0x238] sm:$0xff] %vm515_vm0, %v16501_v3 }
 0x4af   : > { %v14514_v50 = vld [vmem:[#allocation3 + $0x78] sm:$0xff] }
 0x4b0   : > { %17903 = vst [vmem:[#allocation121_spill] sm:$0xff] %v14514_v50 }
 0x4ea   : > { %v4277_v55 = vpop.f32.mrb[0].mxu0 }
 0x4eb   : > { %v4279_v60 = vpop.f32.mrb[1].mxu0 }
 0x511   : > { %v4802_v15 = vpop.permute.xlu1 %4801 }
 0x57f   : > { %v4791_v14 = vpop.f32.mrb[32].mxu1 }
 0x580   : > { %v7633_v52 = vadd.f32 %v4791_v14, %v4277_v55  ;;  %v4793_v35 = vpop.f32.mrb[33].mxu1 }
 0x581   : > { %v7634_v11 = vadd.f32 %v4793_v35, %v4279_v60 }
 0x582   : > { %v4804_v48 = vadd.f32 %v7633_v52, %v4802_v15 }
 0x583   : > { %v4805_v32 = vadd.f32 %v7634_v11, %v4802_v15  ;;  %v14421_v15 = vld [vmem:[#allocation3 + $0x40] sm:$0xff]  ;;  %v5547_v11 = vld [vmem:[#allocation3 + $0xb8] sm:$0xff] }
 0x584   : > { %v6899_v17 = vmul.f32 -1.442695, %v4804_v48 }
 0x585   : > { %v6900_v26 = vmul.f32 -1.442695, %v4805_v32 }
 0x586   : > { %7783 = vpow2.f32 %v6899_v17  ;;  %v14427_v17 = vld [vmem:[#allocation3 + $0xd8] sm:$0xff] }
 0x590   : > { %v7784_v36 = vpop.eup %7783 }
 0x591   : > { %v4812_v8 = vadd.f32 1.0, %v7784_v36  ;;  %v14429_v36 = vld [vmem:[#allocation3 + $0xc0] sm:$0xff] }
 0x593   : > { %7785 = vrcp.f32 %v4812_v8  ;;  %v14431_v8 = vld [vmem:[#allocation3 + $0xf8] sm:$0xff] }
 0x594   : > { %7787 = vpow2.f32 %v6900_v26  ;;  %v16504_v26 = vrot.slane %v14421_v15, 7 }
 0x59d   : > { %v7786_v7 = vpop.eup %7785 }
 0x59e   : > { %v14267_v57 = vmul.f32 %v7786_v7, %v4804_v48  ;;  %v7788_v62 = vpop.eup %7787  ;;  %v5544_v48 = vld [vmem:[#allocation3 + $0xa0] sm:$0xff]  ;;  %v14433_v7 = vld [vmem:[#allocation3 + $0x58] sm:$0xff] }
 0x59f   : > { %v4813_v9 = vadd.f32 1.0, %v7788_v62 }
 0x5a0   : > { %17900 = vst [vmem:[#allocation122_spill] sm:$0xff] %v14267_v57  ;;  %4821 = vxpose.xlu1.b32.start.end [1/1] (short) %v14267_v57, 128 }
 0x5a1   : > { %7789 = vrcp.f32 %v4813_v9 }
 0x5ab   : > { %v7790_v33 = vpop.eup %7789 }
 0x5ac   : > { %v14273_v4 = vmul.f32 %v7790_v33, %v4805_v32  ;;  %v14437_v32 = vld [vmem:[#allocation3 + $0xe0] sm:$0xff] }
 0x5ae   : > { %17901 = vst [vmem:[#allocation23_spill] sm:$0xff] %v14273_v4 }
 0x5dd   : > { %4853 = vxpose.xlu1.b32.start.end [1/1] (short) %v14273_v4, 128 }
 0x620   : > { %v4837_v1 = vpop.trf.xlu1 }
 0x621   : > { %7301 = vmatprep.mubr.msk.f32.mxu0 %vm515_vm0, %v4837_v1  ;;  %v5745_v1 = vrot.slane %v5547_v11, 1  ;;  %v14498_v11 = vld [vmem:[#allocation3 + $0x60] sm:$0xff] }
 0x622   : > { %17902 = vst [vmem:[#allocation77_spill] sm:$0xff] %v14498_v11 }
 0x624   : > { %v4838_v59 = vpop.trf.xlu1 }
 0x625   : > { %7302 = vmatmul.mubr.msk.f32.vlgmr.msra.gmra.mrb[2].mxu0 %vm515_vm0, %v4838_v59  ;;  %v5633_v59 = vrot.slane %v5544_v48, 7 }
 0x628   : > { %v4839_v24 = vpop.trf.xlu1 }
 0x629   : > { %7304 = vmatprep.mubr.msk.f32.mxu0 %vm515_vm0, %v4839_v24  ;;  %v5746_v24 = vrot.slane %v14427_v17, 1 }
 0x62c   : > { %v4840_v53 = vpop.trf.xlu1 }
 0x62d   : > { %7305 = vmatmul.mubr.msk.f32.gmra.mrb[4].mxu0 %vm515_vm0, %v4840_v53  ;;  %v14558_v53 = vld [vmem:[#allocation3 + $0x98] sm:$0xff] }
 0x630   : > { %v4841_v43 = vpop.trf.xlu1 }
 0x631   : > { %7307 = vmatprep.mubr.msk.f32.mxu0 %vm515_vm0, %v4841_v43 }
 0x634   : > { %v4842_v18 = vpop.trf.xlu1 }
 0x635   : > { %7308 = vmatmul.mubr.msk.f32.gmra.mrb[6].mxu0 %vm515_vm0, %v4842_v18 }
 0x638   : > { %v4843_v46 = vpop.trf.xlu1 }
 0x639   : > { %7310 = vmatprep.mubr.msk.f32.mxu0 %vm515_vm0, %v4843_v46  ;;  %v16503_v46 = vrot.slane %v14433_v7, 1 }
 0x63c   : > { %v4844_v38 = vpop.trf.xlu1 }
 0x63d   : > { %7311 = vmatmul.mubr.msk.f32.gmra.mrb[8].mxu0 %vm515_vm0, %v4844_v38 }
 0x640   : > { %v4845_v30 = vpop.trf.xlu1 }
 0x641   : > { %7313 = vmatprep.mubr.msk.f32.mxu0 %vm515_vm0, %v4845_v30 }
 0x644   : > { %v4846_v25 = vpop.trf.xlu1 }
 0x645   : > { %7314 = vmatmul.mubr.msk.f32.gmra.mrb[10].mxu0 %vm515_vm0, %v4846_v25 }
 0x648   : > { %v4847_v40 = vpop.trf.xlu1 }
 0x649   : > { %7316 = vmatprep.mubr.msk.f32.mxu0 %vm515_vm0, %v4847_v40 }
 0x64c   : > { %v4848_v12 = vpop.trf.xlu1 }
 0x64d   : > { %7317 = vmatmul.mubr.msk.f32.gmra.mrb[12].mxu0 %vm515_vm0, %v4848_v12 }
 0x650   : > { %v4849_v21 = vpop.trf.xlu1 }
 0x651   : > { %7319 = vmatprep.mubr.msk.f32.mxu0 %vm515_vm0, %v4849_v21 }
 0x654   : > { %v4850_v23 = vpop.trf.xlu1 }
 0x655   : > { %7320 = vmatmul.mubr.msk.f32.gmra.mrb[14].mxu0 %vm515_vm0, %v4850_v23 }
 0x658   : > { %v4851_v16 = vpop.trf.xlu1 }
 0x659   : > { %7322 = vmatprep.mubr.msk.f32.mxu0 %vm515_vm0, %v4851_v16 }
 0x65c   : > { %v4852_v51 = vpop.trf.xlu1 }
 0x65d   : > { %7323 = vmatmul.mubr.msk.f32.gmra.mrb[16].mxu0 %vm515_vm0, %v4852_v51 }
 0x660   : > { %v4869_v41 = vpop.trf.xlu1 }
 0x661   : > { %7325 = vmatprep.mubr.msk.f32.mxu0 %vm515_vm0, %v4869_v41 }
 0x664   : > { %v4870_v49 = vpop.trf.xlu1 }
 0x665   : > { %7326 = vmatmul.mubr.msk.f32.gmra.mrb[18].mxu0 %vm515_vm0, %v4870_v49  ;;  %v14465_v49 = vld [vmem:[#allocation3 + $0x28] sm:$0xff] }
 0x668   : > { %v4871_v27 = vpop.trf.xlu1 }
 0x669   : > { %7328 = vmatprep.mubr.msk.f32.mxu0 %vm515_vm0, %v4871_v27 }
 0x66c   : > { %v4872_v5 = vpop.trf.xlu1 }
 0x66d   : > { %7329 = vmatmul.mubr.msk.f32.gmra.mrb[20].mxu0 %vm515_vm0, %v4872_v5 }
 0x670   : > { %v4873_v31 = vpop.trf.xlu1 }
 0x671   : > { %7331 = vmatprep.mubr.msk.f32.mxu0 %vm515_vm0, %v4873_v31 }
 0x674   : > { %v4874_v42 = vpop.trf.xlu1 }
 0x675   : > { %7332 = vmatmul.mubr.msk.f32.gmra.mrb[22].mxu0 %vm515_vm0, %v4874_v42 }
 0x678   : > { %v4875_v10 = vpop.trf.xlu1 }
 0x679   : > { %7334 = vmatprep.mubr.msk.f32.mxu0 %vm515_vm0, %v4875_v10 }
 0x67c   : > { %v4876_v34 = vpop.trf.xlu1 }
 0x67d   : > { %7335 = vmatmul.mubr.msk.f32.gmra.mrb[24].mxu0 %vm515_vm0, %v4876_v34 }
 0x680   : > { %v4877_v29 = vpop.trf.xlu1 }
 0x681   : > { %7337 = vmatprep.mubr.msk.f32.mxu0 %vm515_vm0, %v4877_v29 }
 0x684   : > { %v4878_v45 = vpop.trf.xlu1 }
 0x685   : > { %7338 = vmatmul.mubr.msk.f32.gmra.mrb[26].mxu0 %vm515_vm0, %v4878_v45 }
 0x688   : > { %v4879_v20 = vpop.trf.xlu1 }
 0x689   : > { %7340 = vmatprep.mubr.msk.f32.mxu0 %vm515_vm0, %v4879_v20  ;;  %v14485_v20 = vld [vmem:[#allocation3 + $0x30] sm:$0xff] }
 0x68c   : > { %v4880_v0 = vpop.trf.xlu1 }
 0x68d   : > { %7341 = vmatmul.mubr.msk.f32.gmra.mrb[28].mxu0 %vm515_vm0, %v4880_v0 }
 0x690   : > { %v4881_v63 = vpop.trf.xlu1 }
 0x691   : > { %7343 = vmatprep.mubr.msk.f32.mxu0 %vm515_vm0, %v4881_v63 }
 0x694   : > { %v4882_v6 = vpop.trf.xlu1 }
 0x695   : > { %7344 = vmatmul.mubr.msk.f32.gmra.mrb[30].mxu0 %vm515_vm0, %v4882_v6 }
 0x696   : > { %5270 = vmatprep.mubr.f32.mxu0 %v16500_v47 }
 0x698   : > { %v4883_v22 = vpop.trf.xlu1 }
 0x699   : > { %7346 = vmatprep.mubr.msk.f32.mxu1 %vm515_vm0, %v4883_v22 }
 0x69c   : > { %v4884_v54 = vpop.trf.xlu1 }
 0x69d   : > { %7347 = vmatmul.mubr.msk.f32.vlgmr.msra.gmra.mrb[34].mxu1 %vm515_vm0, %v4884_v54  ;;  %v14548_v54 = vld [vmem:[#allocation3 + $0x80] sm:$0xff] }
 0x69e   : > { %17905 = vst [vmem:[#allocation87_spill] sm:$0xff] %v14548_v54 }
 0x6f8   : > { %v14380_v61 = vpop.f32.mrb[2].mxu0 }
 0x6f9   : > { %5499 = vst.msk [vmem:[#allocation3 + $0x50] sm:$0xff] %vm515_vm0, %v14380_v61  ;;  %v14384_v19 = vpop.f32.mrb[3].mxu0 }
 0x6fa   : > { %5498 = vst.msk [vmem:[#allocation3 + $0x48] sm:$0xff] %vm515_vm0, %v14384_v19 }
 0x700   : > { %v14390_v56 = vpop.f32.mrb[4].mxu0  ;;  %v14425_v35 = vld [vmem:[#allocation3 + $0x50] sm:$0xff] }
 0x701   : > { %5501 = vst.msk [vmem:[#allocation3 + $0x70] sm:$0xff] %vm515_vm0, %v14390_v56  ;;  %v14394_v2 = vpop.f32.mrb[5].mxu0  ;;  %v14423_v52 = vld [vmem:[#allocation3 + $0x48] sm:$0xff]  ;;  %v5726_v33 = vrot.slane %v14425_v35, 1  ;;  %v5662_v18 = vrot.slane %v14425_v35, 7  ;;  %v5855_v47 = vmul.f32 4.0, %v14425_v35 }
 0x702   : > { %5500 = vst.msk [vmem:[#allocation3 + $0x68] sm:$0xff] %vm515_vm0, %v14394_v2  ;;  %v5646_v62 = vrot.slane %v14423_v52, 7  ;;  %v5710_v9 = vrot.slane %v14423_v52, 1 }
 0x703   : > { %v5758_v22 = vsel %vm1627_vm3, %v5726_v33, %v16503_v46 }
 0x704   : > { %v5694_v27 = vsel %vm1402_vm2, %v16504_v26, %v5646_v62  ;;  %v5774_v5 = vsel %vm1627_vm3, %v5710_v9, %v5726_v33  ;;  %v5678_v6 = vsel %vm1402_vm2, %v5646_v62, %v5662_v18  ;;  %v5854_v9 = vmul.f32 4.0, %v14423_v52 }
 0x705   : > { %v5790_v48 = vadd.f32 %v5774_v5, %v5694_v27  ;;  %v5791_v5 = vadd.f32 %v5758_v22, %v5678_v6 }
 0x708   : > { %v14401_v58 = vpop.f32.mrb[6].mxu0  ;;  %v14487_v0 = vld [vmem:[#allocation3 + $0x70] sm:$0xff] }
 0x709   : > { %5503 = vst.msk [vmem:[#allocation3 + $0x90] sm:$0xff] %vm515_vm0, %v14401_v58  ;;  %v14405_v44 = vpop.f32.mrb[7].mxu0  ;;  %v14482_v29 = vld [vmem:[#allocation3 + $0x68] sm:$0xff]  ;;  %v5599_v27 = vadd.f32 %v14487_v0, %v14485_v20 }
 0x70a   : > { %5502 = vst.msk [vmem:[#allocation3 + $0x88] sm:$0xff] %vm515_vm0, %v14405_v44  ;;  %v5598_v63 = vadd.f32 %v14482_v29, %v14465_v49  ;;  %v5711_v46 = vrot.slane %v14482_v29, 1 }
 0x70b   : > { %v5823_v45 = vadd.f32 %v5791_v5, %v5599_v27  ;;  %v17907_v27 = vrot.slane %v14429_v36, 7 }
 0x70c   : > { %v5822_v14 = vadd.f32 %v5790_v48, %v5598_v63 }
 0x70e   : > { %v14524_v6 = vsub.f32 %v5822_v14, %v5854_v9 }
 0x710   : > { %v14411_v55 = vpop.f32.mrb[8].mxu0  ;;  %v14435_v28 = vld [vmem:[#allocation3 + $0x90] sm:$0xff]  ;;  %17904 = vst [vmem:[#allocation123_spill] sm:$0xff] %v14524_v6  ;;  %5918 = vst.msk [vmem:[#allocation3 + $0x48] sm:$0xff] %vm515_vm0, %v14524_v6 }
 0x711   : > { %5505 = vst.msk [vmem:[#allocation3 + $0xb0] sm:$0xff] %vm515_vm0, %v14411_v55  ;;  %v14415_v60 = vpop.f32.mrb[9].mxu0  ;;  %v14450_v25 = vld [vmem:[#allocation3 + $0x88] sm:$0xff]  ;;  %v14474_v31 = vmul.f32 4.0, %v14435_v28 }
 0x712   : > { %5504 = vst.msk [vmem:[#allocation3 + $0xa8] sm:$0xff] %vm515_vm0, %v14415_v60 }
 0x718   : > { %v14452_v40 = vld [vmem:[#allocation3 + $0xb0] sm:$0xff]  ;;  %v14454_v12 = vpop.f32.mrb[10].mxu0 }
 0x719   : > { %v5665_v23 = vrot.slane %v14452_v40, 7  ;;  %v5729_v16 = vrot.slane %v14452_v40, 1  ;;  %v14459_v51 = vld [vmem:[#allocation3 + $0xa8] sm:$0xff]  ;;  %5507 = vst.msk [vmem:[#allocation3 + $0xd0] sm:$0xff] %vm515_vm0, %v14454_v12  ;;  %v14463_v41 = vpop.f32.mrb[11].mxu0  ;;  %v5861_v34 = vmul.f32 4.0, %v14452_v40 }
 0x71a   : > { %v5649_v42 = vrot.slane %v14459_v51, 7  ;;  %v5713_v10 = vrot.slane %v14459_v51, 1  ;;  %5506 = vst.msk [vmem:[#allocation3 + $0xc8] sm:$0xff] %vm515_vm0, %v14463_v41  ;;  %v5860_v13 = vmul.f32 4.0, %v14459_v51 }
 0x71b   : > { %v5761_v3 = vsel %vm1627_vm3, %v5729_v16, %v5745_v1  ;;  %v16506_v1 = vrot.slane %v14498_v11, 7 }
 0x71c   : > { %v5681_v62 = vsel %vm1402_vm2, %v5649_v42, %v5665_v23  ;;  %v5697_v18 = vsel %vm1402_vm2, %v5633_v59, %v5649_v42  ;;  %v5777_v33 = vsel %vm1627_vm3, %v5713_v10, %v5729_v16  ;;  %v5647_v23 = vrot.slane %v14482_v29, 7 }
 0x71d   : > { %v5663_v59 = vrot.slane %v14487_v0, 7  ;;  %v5797_v16 = vadd.f32 %v5761_v3, %v5681_v62  ;;  %v5796_v10 = vadd.f32 %v5777_v33, %v5697_v18  ;;  %v5727_v62 = vrot.slane %v14487_v0, 1 }
 0x71e   : > { %v5695_v30 = vsel %vm1402_vm2, %v16506_v1, %v5647_v23 }
 0x720   : > { %v14519_v42 = vld [vmem:[#allocation3 + $0xd0] sm:$0xff]  ;;  %v14521_v39 = vpop.f32.mrb[12].mxu0 }
 0x721   : > { %v5605_v63 = vadd.f32 %v14519_v42, %v14435_v28  ;;  %v5666_v22 = vrot.slane %v14519_v42, 7  ;;  %v5730_v48 = vrot.slane %v14519_v42, 1  ;;  %v14530_v26 = vld [vmem:[#allocation3 + $0xc8] sm:$0xff]  ;;  %5509 = vst.msk [vmem:[#allocation3 + $0xf0] sm:$0xff] %vm515_vm0, %v14521_v39  ;;  %v14534_v3 = vpop.f32.mrb[13].mxu0  ;;  %v5863_v36 = vmul.f32 4.0, %v14519_v42 }
 0x722   : > { %v5604_v14 = vadd.f32 %v14530_v26, %v14450_v25  ;;  %v5650_v9 = vrot.slane %v14530_v26, 7  ;;  %v5714_v18 = vrot.slane %v14530_v26, 1  ;;  %5508 = vst.msk [vmem:[#allocation3 + $0xe8] sm:$0xff] %vm515_vm0, %v14534_v3 }
 0x723   : > { %v5829_v21 = vadd.f32 %v5797_v16, %v5605_v63  ;;  %v5762_v38 = vsel %vm1627_vm3, %v5730_v48, %v5746_v24  ;;  %v5679_v16 = vsel %vm1402_vm2, %v5647_v23, %v5663_v59  ;;  %v5856_v63 = vmul.f32 4.0, %v14482_v29 }
 0x724   : > { %v5828_v33 = vadd.f32 %v5796_v10, %v5604_v14  ;;  %v5682_v4 = vsel %vm1402_vm2, %v5650_v9, %v5666_v22  ;;  %v5698_v17 = vsel %vm1402_vm2, %v17907_v27, %v5650_v9  ;;  %v5778_v24 = vsel %vm1627_vm3, %v5714_v18, %v5730_v48 }
 0x725   : > { %v14563_v43 = vsub.f32 %v5829_v21, %v5861_v34  ;;  %v16512_v10 = vrot.slane %v14548_v54, 7  ;;  %v17909_v23 = vrot.slane %v14514_v50, 1  ;;  %v5775_v34 = vsel %vm1627_vm3, %v5711_v46, %v5727_v62 }
 0x726   : > { %v14573_v5 = vsub.f32 %v5828_v33, %v5860_v13  ;;  %v5862_v59 = vmul.f32 4.0, %v14530_v26  ;;  %v14587_v22 = vsub.f32 %v5823_v45, %v5855_v47  ;;  %v5799_v14 = vadd.f32 %v5762_v38, %v5682_v4 }
 0x727   : > { %17906 = vst [vmem:[#allocation124_spill] sm:$0xff] %v14563_v43  ;;  %v5759_v21 = vsel %vm1627_vm3, %v5727_v62, %v17909_v23  ;;  %5925 = vst.msk [vmem:[#allocation3 + $0xb0] sm:$0xff] %vm515_vm0, %v14563_v43  ;;  %v5798_v9 = vadd.f32 %v5778_v24, %v5698_v17  ;;  %v5600_v46 = vadd.f32 %v14450_v25, %v14423_v52  ;;  %v17911_v38 = vrot.slane %v14435_v28, 7 }
 0x728   : > { %17908 = vst [vmem:[#allocation74_spill] sm:$0xff] %v14573_v5  ;;  %17910 = vst [vmem:[#allocation125_spill] sm:$0xff] %v14587_v22  ;;  %v14591_v48 = vld [vmem:[#allocation3 + $0xf0] sm:$0xff]  ;;  %v14593_v18 = vpop.f32.mrb[14].mxu0  ;;  %v5601_v62 = vadd.f32 %v14435_v28, %v14425_v35  ;;  %v17912_v52 = vrot.slane %v14450_v25, 7  ;;  %v5602_v54 = vadd.f32 %v14459_v51, %v14482_v29  ;;  %v5792_v50 = vadd.f32 %v5775_v34, %v5695_v30 }
 0x729   : > { %5924 = vst.msk [vmem:[#allocation3 + $0xa8] sm:$0xff] %vm515_vm0, %v14573_v5  ;;  %v5607_v33 = vadd.f32 %v14591_v48, %v14452_v40  ;;  %v5667_v47 = vrot.slane %v14591_v48, 7  ;;  %v5731_v45 = vrot.slane %v14591_v48, 1  ;;  %v14603_v27 = vld [vmem:[#allocation3 + $0xe8] sm:$0xff]  ;;  %5511 = vst.msk [vmem:[#allocation3 + $0x110] sm:$0xff] %vm515_vm0, %v14593_v18  ;;  %v14607_v4 = vpop.f32.mrb[15].mxu0  ;;  %v5793_v11 = vadd.f32 %v5759_v21, %v5679_v16 }
 0x72a   : > { %v5680_v35 = vsel %vm1402_vm2, %v17912_v52, %v17911_v38  ;;  %5919 = vst.msk [vmem:[#allocation3 + $0x50] sm:$0xff] %vm515_vm0, %v14587_v22  ;;  %v5606_v17 = vadd.f32 %v14603_v27, %v14459_v51  ;;  %v5651_v24 = vrot.slane %v14603_v27, 7  ;;  %5510 = vst.msk [vmem:[#allocation3 + $0x108] sm:$0xff] %vm515_vm0, %v14607_v4  ;;  %v17913_v23 = vmov %v17912_v52 }
 0x72b   : > { %v5696_v1 = vsel %vm1402_vm2, %v16512_v10, %v17913_v23  ;;  %v17914_v38 = vrot.slane %v14435_v28, 1  ;;  %v17915_v52 = vrot.slane %v14450_v25, 1  ;;  %v5831_v57 = vadd.f32 %v5799_v14, %v5607_v33 }
 0x72c   : > { %v5715_v43 = vrot.slane %v14603_v27, 1  ;;  %v17916_v22 = vrot.slane %v14558_v53, 1  ;;  %v5830_v10 = vadd.f32 %v5798_v9, %v5606_v17  ;;  %v17918_v14 = vrot.slane %v14431_v8, 1 }
 0x72d   : > { %v5776_v13 = vsel %vm1627_vm3, %v17915_v52, %v17914_v38  ;;  %v17917_v6 = vmov %v17914_v38  ;;  %v14649_v38 = vsub.f32 %v5831_v57, %v5863_v36  ;;  %v5683_v52 = vsel %vm1402_vm2, %v5651_v24, %v5667_v47 }
 0x72e   : > { %v5760_v23 = vsel %vm1627_vm3, %v17917_v6, %v17916_v22  ;;  %v5763_v33 = vsel %vm1627_vm3, %v5731_v45, %v17918_v14  ;;  %v5603_v28 = vadd.f32 %v14452_v40, %v14487_v0  ;;  %v14655_v6 = vsub.f32 %v5830_v10, %v5862_v59  ;;  %v14666_v40 = vld [vmem:[#allocation3 + $0x48] sm:$0xff] }
 0x72f   : > { %17919 = vst [vmem:[#allocation19_spill] sm:$0xff] %v14649_v38  ;;  %v5794_v22 = vadd.f32 %v5776_v13, %v5696_v1  ;;  %v5795_v9 = vadd.f32 %v5760_v23, %v5680_v35  ;;  %v5824_v51 = vadd.f32 %v5792_v50, %v5600_v46  ;;  %5927 = vst.msk [vmem:[#allocation3 + $0xd0] sm:$0xff] %vm515_vm0, %v14649_v38  ;;  %v17921_v8 = vrot.slane %v14437_v32, 7 }
 0x730   : > { %17920 = vst [vmem:[#allocation135_spill] sm:$0xff] %v14655_v6  ;;  %v5779_v30 = vsel %vm1627_vm3, %v5715_v43, %v5731_v45  ;;  %v5825_v29 = vadd.f32 %v5793_v11, %v5601_v62  ;;  %v5857_v16 = vmul.f32 4.0, %v14487_v0  ;;  %v5858_v1 = vmul.f32 4.0, %v14450_v25  ;;  %5926 = vst.msk [vmem:[#allocation3 + $0xc8] sm:$0xff] %vm515_vm0, %v14655_v6  ;;  %v14671_v50 = vld [vmem:[#allocation3 + $0x110] sm:$0xff]  ;;  %v14673_v10 = vpop.f32.mrb[16].mxu0 }
 0x731   : > { %v5699_v57 = vsel %vm1402_vm2, %v17921_v8, %v5651_v24  ;;  %v5826_v32 = vadd.f32 %v5794_v22, %v5602_v54  ;;  %v5827_v21 = vadd.f32 %v5795_v9, %v5603_v28  ;;  %v14675_v34 = vsub.f32 %v5824_v51, %v5856_v63  ;;  %v14680_v36 = vld [vmem:[#allocation3 + $0x108] sm:$0xff]  ;;  %5513 = vst.msk [vmem:[#allocation3 + $0x130] sm:$0xff] %vm515_vm0, %v14673_v10  ;;  %v14684_v25 = vpop.f32.mrb[17].mxu0  ;;  %v14688_v13 = vld [vmem:[#allocation3 + $0x50] sm:$0xff]  ;;  %v14941_v6 = vld [vmem:[#allocation3 + $0x180] sm:$0xff] }
 0x732   : > { %v5865_v43 = vmul.f32 4.0, %v14591_v48  ;;  %v5609_v0 = vadd.f32 %v14671_v50, %v14519_v42  ;;  %v5801_v11 = vadd.f32 %v5763_v33, %v5683_v52  ;;  %v14686_v59 = vsub.f32 %v5825_v29, %v5857_v16  ;;  %5512 = vst.msk [vmem:[#allocation3 + $0x128] sm:$0xff] %vm515_vm0, %v14684_v25 }
 0x733   : > { %v5608_v54 = vadd.f32 %v14680_v36, %v14530_v26  ;;  %v5800_v63 = vadd.f32 %v5779_v30, %v5699_v57  ;;  %5920 = vst.msk [vmem:[#allocation3 + $0x68] sm:$0xff] %vm515_vm0, %v14675_v34  ;;  %v6066_v42 = vrot.slane %v14666_v40, 7  ;;  %v14699_v47 = vsub.f32 %v5826_v32, %v5858_v1 }
 0x734   : > { %17922 = vst [vmem:[#allocation137_spill] sm:$0xff] %v14686_v59  ;;  %v5833_v62 = vadd.f32 %v5801_v11, %v5609_v0  ;;  %v14702_v45 = vsub.f32 %v5827_v21, %v14474_v31  ;;  %5921 = vst.msk [vmem:[#allocation3 + $0x70] sm:$0xff] %vm515_vm0, %v14686_v59  ;;  %v6130_v26 = vrot.slane %v14666_v40, 1  ;;  %v5864_v35 = vmul.f32 4.0, %v14603_v27 }
 0x735   : > { %17923 = vst [vmem:[#allocation136_spill] sm:$0xff] %v14699_v47  ;;  %v5832_v17 = vadd.f32 %v5800_v63, %v5608_v54  ;;  %v6082_v24 = vrot.slane %v14688_v13, 7  ;;  %v6146_v23 = vrot.slane %v14688_v13, 1  ;;  %5922 = vst.msk [vmem:[#allocation3 + $0x88] sm:$0xff] %vm515_vm0, %v14699_v47  ;;  %v17927_v33 = vrot.slane %v14421_v15, 7  ;;  %v5559_v54 = vld [vmem:[#allocation3 + $0x118] sm:$0xff] }
 0x736   : > { %17924 = vst [vmem:[#allocation138_spill] sm:$0xff] %v14702_v45  ;;  %v14710_v14 = vsub.f32 %v5833_v62, %v5865_v43  ;;  %5923 = vst.msk [vmem:[#allocation3 + $0x90] sm:$0xff] %vm515_vm0, %v14702_v45  ;;  %v17928_v51 = vrot.slane %v14433_v7, 1  ;;  %v17929_v43 = vpack.c.bf16 %v14380_v61, %v14384_v19  ;;  %v5668_v63 = vrot.slane %v14671_v50, 7  ;;  %v5556_v62 = vld [vmem:[#allocation3 + $0x100] sm:$0xff]  ;;  %v5591_v45 = vld [vmem:[#allocation3 + $0x218] sm:$0xff] }
 0x737   : > { %v14716_v31 = vsub.f32 %v5832_v17, %v5864_v35  ;;  %v6114_v52 = vsel %vm1402_vm2, %v17927_v33, %v6066_v42  ;;  %v6194_v28 = vsel %vm1627_vm3, %v6130_v26, %v6146_v23  ;;  %v6098_v9 = vsel %vm1402_vm2, %v6066_v42, %v6082_v24 }
 0x738   : > { %17925 = vst [vmem:[#allocation75_spill] sm:$0xff] %v14710_v14  ;;  %5929 = vst.msk [vmem:[#allocation3 + $0xf0] sm:$0xff] %vm515_vm0, %v14710_v14  ;;  %v7327_v22 = vpop.f32.mrb[18].mxu0  ;;  %v6178_v8 = vsel %vm1627_vm3, %v6146_v23, %v17928_v51  ;;  %v6210_v1 = vadd.f32 %v6194_v28, %v6114_v52  ;;  %v5652_v42 = vrot.slane %v14680_v36, 7  ;;  %v5716_v26 = vrot.slane %v14680_v36, 1 }
 0x739   : > { %17926 = vst [vmem:[#allocation111_spill] sm:$0xff] %v14716_v31  ;;  %5928 = vst.msk [vmem:[#allocation3 + $0xe8] sm:$0xff] %vm515_vm0, %v14716_v31  ;;  %v5127_v15 = vpop.f32.mrb[19].mxu0  ;;  %v6211_v32 = vadd.f32 %v6178_v8, %v6098_v9  ;;  %v5636_v61 = vrot.slane %v5556_v62, 7  ;;  %v5748_v19 = vrot.slane %v5559_v54, 1  ;;  %v17930_v17 = vpack.c.bf16 %v14390_v56, %v14394_v2  ;;  %v5563_v9 = vld [vmem:[#allocation3 + $0x138] sm:$0xff] }
 0x73a   : > { %5515 = vst.msk [vmem:[#allocation3 + $0x150] sm:$0xff] %vm515_vm0, %v7327_v22  ;;  %v14735_v57 = vld [vmem:[#allocation3 + $0x68] sm:$0xff]  ;;  %v7551_v30 = vpack.c.bf16 %v7327_v22, %v5127_v15  ;;  %5514 = vst.msk [vmem:[#allocation3 + $0x148] sm:$0xff] %vm515_vm0, %v5127_v15  ;;  %v5684_v24 = vsel %vm1402_vm2, %v5652_v42, %v5668_v63  ;;  %v14768_v22 = vld [vmem:[#allocation3 + $0x130] sm:$0xff]  ;;  %v5867_v51 = vmul.f32 4.0, %v14671_v50  ;;  %v17931_v62 = vpack.c.bf16 %v14401_v58, %v14405_v44 }
 0x73b   : > { %v14738_v29 = vld [vmem:[#allocation3 + $0x70] sm:$0xff]  ;;  %v6018_v16 = vadd.f32 %v14735_v57, %v14465_v49  ;;  %v5732_v49 = vrot.slane %v14671_v50, 1  ;;  %v5700_v23 = vsel %vm1402_vm2, %v5636_v61, %v5652_v42  ;;  %v5560_v2 = vld [vmem:[#allocation3 + $0x120] sm:$0xff]  ;;  %v14772_v8 = vld [vmem:[#allocation3 + $0x128] sm:$0xff]  ;;  %v5611_v15 = vadd.f32 %v14768_v22, %v14591_v48 }
 0x73c   : > { %v6019_v7 = vadd.f32 %v14738_v29, %v14485_v20  ;;  %7552 = vmatprep.subr.bf16.mxu0 %v7551_v30  ;;  %v5669_v30 = vrot.slane %v14768_v22, 7  ;;  %v5637_v54 = vrot.slane %v5560_v2, 7  ;;  %v5653_v63 = vrot.slane %v14772_v8, 7  ;;  %v5579_v2 = vld [vmem:[#allocation3 + $0x1b8] sm:$0xff] }
 0x73d   : > { %v14744_v21 = vadd.f32 %v6210_v1, %v6018_v16  ;;  %7554 = vmatpush3.bf16.msra.mxu0 %v17929_v43  ;;  %v5764_v33 = vsel %vm1627_vm3, %v5732_v49, %v5748_v19  ;;  %v5780_v52 = vsel %vm1627_vm3, %v5716_v26, %v5732_v49  ;;  %v5733_v43 = vrot.slane %v14768_v22, 1 }
 0x73e   : > { %v14749_v0 = vadd.f32 %v6211_v32, %v6019_v7  ;;  %v5802_v16 = vadd.f32 %v5780_v52, %v5700_v23  ;;  %v5803_v1 = vadd.f32 %v5764_v33, %v5684_v24  ;;  %v5610_v32 = vadd.f32 %v14772_v8, %v14603_v27 }
 0x73f   : > { %v5717_v49 = vrot.slane %v14772_v8, 1  ;;  %v5701_v61 = vsel %vm1402_vm2, %v5637_v54, %v5653_v63  ;;  %v17934_v54 = vpack.c.bf16 %v14411_v55, %v14415_v60 }
 0x740   : > { %v7330_v11 = vpop.f32.mrb[20].mxu0  ;;  %v5835_v42 = vadd.f32 %v5803_v1, %v5611_v15  ;;  %v5834_v48 = vadd.f32 %v5802_v16, %v5610_v32  ;;  %v5576_v15 = vld [vmem:[#allocation3 + $0x1a0] sm:$0xff] }
 0x741   : > { %5517 = vst.msk [vmem:[#allocation3 + $0x170] sm:$0xff] %vm515_vm0, %v7330_v11  ;;  %v5137_v20 = vpop.f32.mrb[21].mxu0  ;;  %v14801_v44 = vld [vmem:[#allocation3 + $0x150] sm:$0xff]  ;;  %v14806_v23 = vld [vmem:[#allocation3 + $0x148] sm:$0xff]  ;;  %v14817_v16 = vld [vmem:[#allocation3 + $0x1c0] sm:$0xff] }
 0x742   : > { %v7555_v35 = vpack.c.bf16 %v7330_v11, %v5137_v20  ;;  %5516 = vst.msk [vmem:[#allocation3 + $0x168] sm:$0xff] %vm515_vm0, %v5137_v20  ;;  %v5749_v11 = vrot.slane %v5563_v9, 1  ;;  %v5866_v20 = vmul.f32 4.0, %v14680_v36  ;;  %v14787_v26 = vsub.f32 %v5835_v42, %v5867_v51  ;;  %v14819_v1 = vld [vmem:[#allocation3 + $0x1e0] sm:$0xff] }
 0x743   : > { %v5613_v33 = vadd.f32 %v14801_v44, %v14671_v50  ;;  %v5612_v9 = vadd.f32 %v14806_v23, %v14680_v36  ;;  %v14821_v50 = vld [vmem:[#allocation3 + $0x158] sm:$0xff]  ;;  %v5654_v42 = vrot.slane %v14806_v23, 7  ;;  %v5670_v60 = vrot.slane %v14801_v44, 7 }
 0x744   : > { %7556 = vmatprep.subr.bf16.mxu0 %v7555_v35  ;;  %17932 = vst [vmem:[#allocation32_spill] sm:$0xff] %v14787_v26  ;;  %v14789_v27 = vsub.f32 %v5834_v48, %v5866_v20  ;;  %v5685_v35 = vsel %vm1402_vm2, %v5653_v63, %v5669_v30  ;;  %v5765_v19 = vsel %vm1627_vm3, %v5733_v43, %v5749_v11  ;;  %5931 = vst.msk [vmem:[#allocation3 + $0x110] sm:$0xff] %vm515_vm0, %v14787_v26  ;;  %v14815_v30 = vld [vmem:[#allocation3 + $0x1d8] sm:$0xff] }
 0x745   : > { %7558 = vmatpush3.bf16.msra.mxu0 %v17930_v17  ;;  %v5781_v17 = vsel %vm1627_vm3, %v5717_v49, %v5733_v43  ;;  %v5868_v43 = vmul.f32 4.0, %v14772_v8  ;;  %v5869_v11 = vmul.f32 4.0, %v14768_v22  ;;  %v14830_v63 = vld [vmem:[#allocation3 + $0x1f8] sm:$0xff]  ;;  %v5718_v48 = vrot.slane %v14806_v23, 1 }
 0x746   : > { %17933 = vst [vmem:[#allocation92_spill] sm:$0xff] %v14789_v27  ;;  %5930 = vst.msk [vmem:[#allocation3 + $0x108] sm:$0xff] %vm515_vm0, %v14789_v27  ;;  %v5804_v51 = vadd.f32 %v5781_v17, %v5701_v61  ;;  %v5734_v20 = vrot.slane %v14801_v44, 1  ;;  %v14888_v17 = vld [vmem:[#allocation3 + $0x160] sm:$0xff]  ;;  %v17939_v31 = vrot.slane %v14815_v30, 1  ;;  %v17942_v30 = vrot.slane %v14817_v16, 7 }
 0x748   : > { %v7333_v28 = vpop.f32.mrb[22].mxu0  ;;  %v14873_v55 = vld [vmem:[#allocation3 + $0x170] sm:$0xff] }
 0x749   : > { %5519 = vst.msk [vmem:[#allocation3 + $0x190] sm:$0xff] %vm515_vm0, %v7333_v28  ;;  %v5147_v56 = vpop.f32.mrb[23].mxu0 }
 0x74a   : > { %v7559_v7 = vpack.c.bf16 %v7333_v28, %v5147_v56  ;;  %5518 = vst.msk [vmem:[#allocation3 + $0x188] sm:$0xff] %vm515_vm0, %v5147_v56  ;;  %v14811_v28 = vld [vmem:[#allocation3 + $0x140] sm:$0xff]  ;;  %v5805_v56 = vadd.f32 %v5765_v19, %v5685_v35  ;;  %v5641_v35 = vrot.slane %v5576_v15, 7 }
 0x74b   : > { %v16516_v49 = vrot.slane %v14811_v28, 7 }
 0x74c   : > { %7560 = vmatprep.subr.bf16.mxu0 %v7559_v7  ;;  %v5836_v7 = vadd.f32 %v5804_v51, %v5612_v9  ;;  %v5837_v32 = vadd.f32 %v5805_v56, %v5613_v33  ;;  %v14870_v56 = vld [vmem:[#allocation3 + $0x168] sm:$0xff] }
 0x74d   : > { %7562 = vmatpush3.bf16.msra.mxu0 %v17931_v62  ;;  %v5753_v62 = vrot.slane %v5579_v2, 1 }
 0x74e   : > { %v14836_v61 = vsub.f32 %v5836_v7, %v5868_v43  ;;  %v14838_v19 = vsub.f32 %v5837_v32, %v5869_v11  ;;  %v5702_v43 = vsel %vm1402_vm2, %v16516_v49, %v5654_v42  ;;  %v5782_v11 = vsel %vm1627_vm3, %v5718_v48, %v5734_v20 }
 0x74f   : > { %v5614_v49 = vadd.f32 %v14870_v56, %v14772_v8  ;;  %v5686_v48 = vsel %vm1402_vm2, %v5654_v42, %v5670_v60  ;;  %v5806_v8 = vadd.f32 %v5782_v11, %v5702_v43  ;;  %v5615_v43 = vadd.f32 %v14873_v55, %v14768_v22 }
 0x750   : > { %v7336_v58 = vpop.f32.mrb[24].mxu0  ;;  %v14825_v36 = vld [vmem:[#allocation3 + $0x190] sm:$0xff]  ;;  %17935 = vst [vmem:[#allocation63_spill] sm:$0xff] %v14836_v61  ;;  %17936 = vst [vmem:[#allocation60_spill] sm:$0xff] %v14838_v19 }
 0x751   : > { %5521 = vst.msk [vmem:[#allocation3 + $0x1b0] sm:$0xff] %vm515_vm0, %v7336_v58  ;;  %v5157_v24 = vpop.f32.mrb[25].mxu0  ;;  %v14845_v33 = vld [vmem:[#allocation3 + $0x188] sm:$0xff]  ;;  %5932 = vst.msk [vmem:[#allocation3 + $0x128] sm:$0xff] %vm515_vm0, %v14836_v61  ;;  %v5735_v61 = vrot.slane %v14873_v55, 1 }
 0x752   : > { %v7563_v52 = vpack.c.bf16 %v7336_v58, %v5157_v24  ;;  %5520 = vst.msk [vmem:[#allocation3 + $0x1a8] sm:$0xff] %vm515_vm0, %v5157_v24  ;;  %v16517_v58 = vrot.slane %v14821_v50, 1  ;;  %5933 = vst.msk [vmem:[#allocation3 + $0x130] sm:$0xff] %vm515_vm0, %v14838_v19  ;;  %v5719_v19 = vrot.slane %v14870_v56, 1 }
 0x754   : > { %7564 = vmatprep.subr.bf16.mxu0 %v7563_v52 }
 0x755   : > { %7566 = vmatpush3.bf16.msra.mxu0 %v17934_v54  ;;  %v5766_v54 = vsel %vm1627_vm3, %v5734_v20, %v16517_v58  ;;  %v17937_v20 = vpack.c.bf16 %v14454_v12, %v14463_v41  ;;  %v5870_v58 = vmul.f32 4.0, %v14806_v23  ;;  %v5671_v12 = vrot.slane %v14873_v55, 7 }
 0x756   : > { %v5807_v11 = vadd.f32 %v5766_v54, %v5686_v48 }
 0x758   : > { %v14847_v52 = vld [vmem:[#allocation3 + $0x1b0] sm:$0xff]  ;;  %v7339_v9 = vpop.f32.mrb[26].mxu0 }
 0x759   : > { %v5673_v2 = vrot.slane %v14847_v52, 7  ;;  %v5737_v15 = vrot.slane %v14847_v52, 1  ;;  %v14857_v7 = vld [vmem:[#allocation3 + $0x1a8] sm:$0xff]  ;;  %5523 = vst.msk [vmem:[#allocation3 + $0x1d0] sm:$0xff] %vm515_vm0, %v7339_v9  ;;  %v5167_v32 = vpop.f32.mrb[27].mxu0 }
 0x75a   : > { %v5657_v46 = vrot.slane %v14857_v7, 7  ;;  %v5721_v51 = vrot.slane %v14857_v7, 1  ;;  %v7567_v5 = vpack.c.bf16 %v7339_v9, %v5167_v32  ;;  %5522 = vst.msk [vmem:[#allocation3 + $0x1c8] sm:$0xff] %vm515_vm0, %v5167_v32  ;;  %v5618_v47 = vadd.f32 %v14857_v7, %v14870_v56 }
 0x75b   : > { %v5769_v32 = vsel %vm1627_vm3, %v5737_v15, %v5753_v62  ;;  %v5871_v62 = vmul.f32 4.0, %v14801_v44 }
 0x75c   : > { %v5689_v24 = vsel %vm1402_vm2, %v5657_v46, %v5673_v2  ;;  %7568 = vmatprep.subr.bf16.mxu0 %v7567_v5  ;;  %v5705_v42 = vsel %vm1402_vm2, %v5641_v35, %v5657_v46  ;;  %v5785_v60 = vsel %vm1627_vm3, %v5721_v51, %v5737_v15  ;;  %v5877_v2 = vmul.f32 4.0, %v14847_v52  ;;  %v14900_v5 = vld [vmem:[#allocation3 + $0x178] sm:$0xff] }
 0x75d   : > { %7570 = vmatpush3.bf16.msra.mxu0 %v17937_v20  ;;  %v5838_v46 = vadd.f32 %v5806_v8, %v5614_v49  ;;  %v5813_v35 = vadd.f32 %v5769_v32, %v5689_v24  ;;  %v5655_v15 = vrot.slane %v14870_v56, 7  ;;  %v5812_v20 = vadd.f32 %v5785_v60, %v5705_v42 }
 0x75e   : > { %v17938_v32 = vrot.slane %v14888_v17, 7 }
 0x75f   : > { %v14911_v26 = vsub.f32 %v5838_v46, %v5870_v58  ;;  %v5876_v46 = vmul.f32 4.0, %v14857_v7  ;;  %v5687_v27 = vsel %vm1402_vm2, %v5655_v15, %v5671_v12  ;;  %v5839_v12 = vadd.f32 %v5807_v11, %v5615_v43 }
 0x760   : > { %v14907_v41 = vld [vmem:[#allocation3 + $0x1d0] sm:$0xff]  ;;  %v7342_v9 = vpop.f32.mrb[28].mxu0  ;;  %v5703_v14 = vsel %vm1402_vm2, %v17938_v32, %v5655_v15  ;;  %v17941_v15 = vpack.c.bf16 %v14521_v39, %v14534_v3  ;;  %v5783_v3 = vsel %vm1627_vm3, %v5719_v19, %v5735_v61  ;;  %v5616_v11 = vadd.f32 %v14845_v33, %v14806_v23 }
 0x761   : > { %v5621_v22 = vadd.f32 %v14907_v41, %v14825_v36  ;;  %v5674_v49 = vrot.slane %v14907_v41, 7  ;;  %v5738_v24 = vrot.slane %v14907_v41, 1  ;;  %v14917_v54 = vld [vmem:[#allocation3 + $0x1c8] sm:$0xff]  ;;  %5525 = vst.msk [vmem:[#allocation3 + $0x1f0] sm:$0xff] %vm515_vm0, %v7342_v9  ;;  %v5177_v48 = vpop.f32.mrb[29].mxu0  ;;  %5934 = vst.msk [vmem:[#allocation3 + $0x148] sm:$0xff] %vm515_vm0, %v14911_v26 }
 0x762   : > { %v5620_v8 = vadd.f32 %v14917_v54, %v14845_v33  ;;  %v5658_v58 = vrot.slane %v14917_v54, 7  ;;  %v5722_v42 = vrot.slane %v14917_v54, 1  ;;  %v7571_v60 = vpack.c.bf16 %v7342_v9, %v5177_v48  ;;  %5524 = vst.msk [vmem:[#allocation3 + $0x1e8] sm:$0xff] %vm515_vm0, %v5177_v48 }
 0x763   : > { %v5845_v51 = vadd.f32 %v5813_v35, %v5621_v22  ;;  %v5770_v9 = vsel %vm1627_vm3, %v5738_v24, %v17939_v31  ;;  %v14943_v35 = vld [vmem:[#allocation3 + $0x198] sm:$0xff]  ;;  %v5878_v39 = vmul.f32 4.0, %v14917_v54  ;;  %v17945_v19 = vrot.slane %v14825_v36, 7 }
 0x764   : > { %v5690_v48 = vsel %vm1402_vm2, %v5658_v58, %v5674_v49  ;;  %v5844_v38 = vadd.f32 %v5812_v20, %v5620_v8  ;;  %7572 = vmatprep.subr.bf16.mxu0 %v7571_v60  ;;  %v5706_v31 = vsel %vm1402_vm2, %v17942_v30, %v5658_v58  ;;  %v5786_v20 = vsel %vm1627_vm3, %v5722_v42, %v5738_v24 }
 0x765   : > { %v14945_v22 = vsub.f32 %v5845_v51, %v5877_v2  ;;  %7574 = vmatpush3.bf16.msra.mxu0 %v17941_v15  ;;  %v17943_v49 = vrot.slane %v14900_v5, 1  ;;  %v5879_v2 = vmul.f32 4.0, %v14907_v41  ;;  %v5815_v16 = vadd.f32 %v5770_v9, %v5690_v48 }
 0x766   : > { %v14961_v43 = vsub.f32 %v5844_v38, %v5876_v46  ;;  %v16529_v51 = vrot.slane %v14941_v6, 7  ;;  %v5814_v58 = vadd.f32 %v5786_v20, %v5706_v31  ;;  %v17946_v42 = vrot.slane %v14845_v33, 7 }
 0x767   : > { %17940 = vst [vmem:[#allocation53_spill] sm:$0xff] %v14945_v22  ;;  %v5767_v32 = vsel %vm1627_vm3, %v5735_v61, %v17943_v49  ;;  %5941 = vst.msk [vmem:[#allocation3 + $0x1b0] sm:$0xff] %vm515_vm0, %v14945_v22  ;;  %v5617_v61 = vadd.f32 %v14825_v36, %v14801_v44  ;;  %v14984_v60 = vsub.f32 %v5839_v12, %v5871_v62  ;;  %v17947_v30 = vrot.slane %v14825_v36, 1 }
 0x768   : > { %17944 = vst [vmem:[#allocation89_spill] sm:$0xff] %v14961_v43  ;;  %5940 = vst.msk [vmem:[#allocation3 + $0x1a8] sm:$0xff] %vm515_vm0, %v14961_v43  ;;  %v14974_v38 = vld [vmem:[#allocation3 + $0x1f0] sm:$0xff]  ;;  %v7345_v8 = vpop.f32.mrb[30].mxu0  ;;  %v5688_v23 = vsel %vm1402_vm2, %v17946_v42, %v17945_v19  ;;  %v17948_v31 = vrot.slane %v14845_v33, 1  ;;  %v17949_v24 = vrot.slane %v14845_v33, 7  ;;  %v5808_v22 = vadd.f32 %v5783_v3, %v5703_v14 }
 0x769   : > { %v5623_v46 = vadd.f32 %v14974_v38, %v14847_v52  ;;  %v5675_v9 = vrot.slane %v14974_v38, 7  ;;  %v5739_v48 = vrot.slane %v14974_v38, 1  ;;  %5527 = vst.msk [vmem:[#allocation3 + $0x210] sm:$0xff] %vm515_vm0, %v7345_v8  ;;  %v5187_v15 = vpop.f32.mrb[31].mxu0  ;;  %v14991_v44 = vld [vmem:[#allocation3 + $0x1e8] sm:$0xff]  ;;  %5935 = vst.msk [vmem:[#allocation3 + $0x150] sm:$0xff] %vm515_vm0, %v14984_v60  ;;  %v17953_v14 = vpack.c.bf16 %v14593_v18, %v14607_v4 }
 0x76a   : > { %v5784_v62 = vsel %vm1627_vm3, %v17948_v31, %v17947_v30  ;;  %v7575_v12 = vpack.c.bf16 %v7345_v8, %v5187_v15  ;;  %5526 = vst.msk [vmem:[#allocation3 + $0x208] sm:$0xff] %vm515_vm0, %v5187_v15  ;;  %v5622_v20 = vadd.f32 %v14991_v44, %v14857_v7  ;;  %v5659_v49 = vrot.slane %v14991_v44, 7  ;;  %v15018_v43 = vld [vmem:[#allocation3 + $0x200] sm:$0xff] }
 0x76b   : > { %v5723_v19 = vrot.slane %v14991_v44, 1  ;;  %v5847_v42 = vadd.f32 %v5815_v16, %v5623_v46  ;;  %v5704_v8 = vsel %vm1402_vm2, %v16529_v51, %v17949_v24  ;;  %v17950_v15 = vrot.slane %v14943_v35, 1 }
 0x76c   : > { %7576 = vmatprep.subr.bf16.mxu0 %v7575_v12  ;;  %v5691_v16 = vsel %vm1402_vm2, %v5659_v49, %v5675_v9  ;;  %v17951_v46 = vrot.slane %v14830_v63, 1  ;;  %v5846_v51 = vadd.f32 %v5814_v58, %v5622_v20  ;;  %v17954_v3 = vrot.slane %v14819_v1, 7 }
 0x76d   : > { %v5768_v31 = vsel %vm1627_vm3, %v17947_v30, %v17950_v15  ;;  %v15028_v59 = vsub.f32 %v5847_v42, %v5879_v2  ;;  %7578 = vmatpush3.bf16.msra.mxu0 %v17953_v14  ;;  %v5787_v63 = vsel %vm1627_vm3, %v5723_v19, %v5739_v48  ;;  %v5619_v58 = vadd.f32 %v14847_v52, %v14873_v55  ;;  %v5597_v14 = vld [vmem:[#allocation3 + $0x250] sm:$0xff] }
 0x76e   : > { %v5771_v24 = vsel %vm1627_vm3, %v5739_v48, %v17951_v46  ;;  %v5707_v9 = vsel %vm1402_vm2, %v17954_v3, %v5659_v49  ;;  %v15041_v12 = vsub.f32 %v5846_v51, %v5878_v39  ;;  %v5809_v7 = vadd.f32 %v5767_v32, %v5687_v27 }
 0x76f   : > { %17952 = vst [vmem:[#allocation54_spill] sm:$0xff] %v15028_v59  ;;  %v5840_v2 = vadd.f32 %v5808_v22, %v5616_v11  ;;  %v5872_v20 = vmul.f32 4.0, %v14870_v56  ;;  %5943 = vst.msk [vmem:[#allocation3 + $0x1d0] sm:$0xff] %vm515_vm0, %v15028_v59  ;;  %v5644_v18 = vrot.slane %v15018_v43, 7  ;;  %v5756_v4 = vrot.slane %v5591_v45, 1 }
 0x770   : > { %17955 = vst [vmem:[#allocation78_spill] sm:$0xff] %v15041_v12  ;;  %v5810_v1 = vadd.f32 %v5784_v62, %v5704_v8  ;;  %v5811_v49 = vadd.f32 %v5768_v31, %v5688_v23  ;;  %v15047_v42 = vld [vmem:[#allocation3 + $0x210] sm:$0xff]  ;;  %v7348_v48 = vpop.f32.mrb[34].mxu1  ;;  %v5816_v19 = vadd.f32 %v5787_v63, %v5707_v9  ;;  %v5817_v15 = vadd.f32 %v5771_v24, %v5691_v16  ;;  %v5595_v31 = vld [vmem:[#allocation3 + $0x238] sm:$0xff]  ;;  %v5592_v24 = vld [vmem:[#allocation3 + $0x220] sm:$0xff] }
 0x771   : > { %5942 = vst.msk [vmem:[#allocation3 + $0x1c8] sm:$0xff] %vm515_vm0, %v15041_v12  ;;  %v5841_v27 = vadd.f32 %v5809_v7, %v5617_v61  ;;  %v15051_v52 = vsub.f32 %v5840_v2, %v5872_v20  ;;  %v5625_v56 = vadd.f32 %v15047_v42, %v14907_v41  ;;  %5529 = vst.msk [vmem:[#allocation3 + $0x230] sm:$0xff] %vm515_vm0, %v7348_v48  ;;  %v5197_v22 = vpop.f32.mrb[35].mxu1  ;;  %v5589_v45 = vld [vmem:[#allocation3 + $0x208] sm:$0xff]  ;;  %v5740_v32 = vrot.slane %v15047_v42, 1 }
 0x772   : > { %v5842_v43 = vadd.f32 %v5810_v1, %v5618_v47  ;;  %v5843_v39 = vadd.f32 %v5811_v49, %v5619_v58  ;;  %v7579_v11 = vpack.c.bf16 %v7348_v48, %v5197_v22  ;;  %5528 = vst.msk [vmem:[#allocation3 + $0x228] sm:$0xff] %vm515_vm0, %v5197_v22  ;;  %v5624_v51 = vadd.f32 %v5589_v45, %v14917_v54  ;;  %v5596_v22 = vld [vmem:[#allocation3 + $0x248] sm:$0xff] }
 0x773   : > { %v5660_v23 = vrot.slane %v5589_v45, 7  ;;  %v5676_v61 = vrot.slane %v15047_v42, 7  ;;  %5936 = vst.msk [vmem:[#allocation3 + $0x168] sm:$0xff] %vm515_vm0, %v15051_v52  ;;  %v5881_v41 = vmul.f32 4.0, %v14974_v38  ;;  %v5724_v62 = vrot.slane %v5589_v45, 1 }
 0x774   : > { %v5849_v8 = vadd.f32 %v5817_v15, %v5625_v56  ;;  %v5873_v30 = vmul.f32 4.0, %v14873_v55  ;;  %v5848_v47 = vadd.f32 %v5816_v19, %v5624_v51  ;;  %v5880_v16 = vmul.f32 4.0, %v14991_v44  ;;  %7580 = vmatprep.subr.bf16.mxu0 %v7579_v11 }
 0x775   : > { %v5874_v46 = vmul.f32 4.0, %v14845_v33  ;;  %v5875_v54 = vmul.f32 4.0, %v14825_v36  ;;  %v5772_v3 = vsel %vm1627_vm3, %v5740_v32, %v5756_v4  ;;  %v17957_v63 = vpack.c.bf16 %v14673_v10, %v14684_v25 }
 0x776   : > { %v15069_v9 = vsub.f32 %v5849_v8, %v5881_v41  ;;  %v15074_v55 = vsub.f32 %v5841_v27, %v5873_v30  ;;  %v5692_v58 = vsel %vm1402_vm2, %v5660_v23, %v5676_v61  ;;  %v15078_v7 = vsub.f32 %v5848_v47, %v5880_v16 }
 0x777   : > { %7582 = vmatpush3.bf16.msra.mxu0 %v17957_v63  ;;  %v17959_v33 = vmov 0.0   ;;  %v15081_v36 = vsub.f32 %v5842_v43, %v5874_v46  ;;  %v15083_v2 = vsub.f32 %v5843_v39, %v5875_v54  ;;  %v5708_v20 = vsel %vm1402_vm2, %v5644_v18, %v5660_v23 }
 0x778   : > { %17956 = vst [vmem:[#allocation25_spill] sm:$0xff] %v15069_v9  ;;  %17958 = vst [vmem:[#allocation20_spill] sm:$0xff] %v15078_v7  ;;  %7349 = vmatprep.subr.mxu0 %v17959_v33  ;;  %v5757_v4 = vrot.slane %v5595_v31, 1  ;;  %v5788_v10 = vsel %vm1627_vm3, %v5724_v62, %v5740_v32  ;;  %v5594_v25 = vld [vmem:[#allocation3 + $0x230] sm:$0xff]  ;;  %v5629_v1 = vadd.f32 %v5597_v14, %v15047_v42  ;;  %v5645_v49 = vrot.slane %v5592_v24, 7 }
 0x779   : > { %5945 = vst.msk [vmem:[#allocation3 + $0x1f0] sm:$0xff] %vm515_vm0, %v15069_v9  ;;  %5937 = vst.msk [vmem:[#allocation3 + $0x170] sm:$0xff] %vm515_vm0, %v15074_v55  ;;  %v17960_v48 = vmov 0.00390625   ;;  %v5593_v18 = vld [vmem:[#allocation3 + $0x228] sm:$0xff]  ;;  %v5627_v19 = vadd.f32 %v5594_v25, %v14974_v38  ;;  %v5677_v15 = vrot.slane %v5594_v25, 7  ;;  %v5741_v27 = vrot.slane %v5594_v25, 1 }
 0x77a   : > { %5944 = vst.msk [vmem:[#allocation3 + $0x1e8] sm:$0xff] %vm515_vm0, %v15078_v7  ;;  %5271 = vmatmul.mubr.f32.vlgmr.msra.gmra.mrb[32].mxu0 %v17960_v48  ;;  %5938 = vst.msk [vmem:[#allocation3 + $0x188] sm:$0xff] %vm515_vm0, %v15081_v36  ;;  %v5819_v56 = vadd.f32 %v5772_v3, %v5692_v58  ;;  %v5626_v32 = vadd.f32 %v5593_v18, %v14991_v44  ;;  %v5661_v43 = vrot.slane %v5593_v18, 7  ;;  %v5725_v39 = vrot.slane %v5593_v18, 1 }
 0x77b   : > { %5939 = vst.msk [vmem:[#allocation3 + $0x190] sm:$0xff] %vm515_vm0, %v15083_v2  ;;  %v5818_v11 = vadd.f32 %v5788_v10, %v5708_v20  ;;  %v5773_v51 = vsel %vm1627_vm3, %v5741_v27, %v5757_v4  ;;  %v5882_v61 = vmul.f32 4.0, %v5589_v45  ;;  %v5883_v41 = vmul.f32 4.0, %v15047_v42  ;;  %7351 = vmatprep.mubr.msk.f32.mxu0 %vm7844_vm7, %v17959_v33  ;;  %v5351_v10 = vld [vmem:[%s15949_s10] sm:$0xff] }
 0x77c   : > { %v5851_v23 = vadd.f32 %v5819_v56, %v5627_v19  ;;  %v5693_v62 = vsel %vm1402_vm2, %v5661_v43, %v5677_v15  ;;  %v5709_v38 = vsel %vm1402_vm2, %v5645_v49, %v5661_v43  ;;  %v5789_v8 = vsel %vm1627_vm3, %v5725_v39, %v5741_v27  ;;  %v5437_v39 = vld [vmem:[%s15950_s11] sm:$0x1] }
 0x77d   : > { %v5850_v44 = vadd.f32 %v5818_v11, %v5626_v32  ;;  %v5628_v30 = vadd.f32 %v5596_v22, %v5589_v45  ;;  %v5820_v31 = vadd.f32 %v5789_v8, %v5709_v38  ;;  %v5821_v47 = vadd.f32 %v5773_v51, %v5693_v62  ;;  %v5276_v45 = vld [vmem:[%s15948_s9] sm:$0xff]  ;;  %v5961_v8 = vld [vmem:[#allocation3 + $0x88] sm:$0xff] }
 0x77e   : > { %v15112_v16 = vsub.f32 %v5851_v23, %v5883_v41  ;;  %v5884_v42 = vmul.f32 4.0, %v5593_v18  ;;  %v5885_v14 = vmul.f32 4.0, %v5594_v25  ;;  %7350 = vmatpush3.msra.mxu0 %v5276_v45  ;;  %v5443_v51 = vld [vmem:[%s15951_s12] sm:$0x1]  ;;  %v16532_v38 = vmov 0.125   ;;  %v17965_v45 = vld [vmem:[#allocation77_spill] sm:$0xff] }
 0x77f   : > { %v15114_v46 = vsub.f32 %v5850_v44, %v5882_v61  ;;  %v5852_v54 = vadd.f32 %v5820_v31, %v5628_v30  ;;  %v5853_v24 = vadd.f32 %v5821_v47, %v5629_v1  ;;  %7354 = vmatprep.subr.mxu0 %v17959_v33  ;;  %v5962_v44 = vld [vmem:[#allocation3 + $0x90] sm:$0xff]  ;;  %v6067_v30 = vrot.slane %v14735_v57, 7 }
 0x780   : > { %17961 = vst [vmem:[#allocation119_spill] sm:$0xff] %v15112_v16  ;;  %5947 = vst.msk [vmem:[#allocation3 + $0x210] sm:$0xff] %vm515_vm0, %v15112_v16  ;;  %v6083_v31 = vrot.slane %v14738_v29, 7  ;;  %v6131_v47 = vrot.slane %v14735_v57, 1 }
 0x781   : > { %17962 = vst [vmem:[#allocation99_spill] sm:$0xff] %v15114_v46  ;;  %5946 = vst.msk [vmem:[#allocation3 + $0x208] sm:$0xff] %vm515_vm0, %v15114_v46  ;;  %v15120_v3 = vsub.f32 %v5852_v54, %v5884_v42  ;;  %v15122_v63 = vsub.f32 %v5853_v24, %v5885_v14  ;;  %v6147_v54 = vrot.slane %v14738_v29, 1  ;;  %v6068_v24 = vrot.slane %v5961_v8, 7  ;;  %v15309_v46 = vld [vmem:[#allocation3 + $0x188] sm:$0xff] }
 0x782   : > { %v6084_v42 = vrot.slane %v5962_v44, 7  ;;  %v6099_v14 = vsel %vm1402_vm2, %v6067_v30, %v6083_v31 }
 0x783   : > { %17963 = vst [vmem:[#allocation79_spill] sm:$0xff] %v15120_v3  ;;  %17964 = vst [vmem:[#allocation64_spill] sm:$0xff] %v15122_v63 }
 0x784   : > { %5948 = vst.msk [vmem:[#allocation3 + $0x228] sm:$0xff] %vm515_vm0, %v15120_v3  ;;  %5949 = vst.msk [vmem:[#allocation3 + $0x230] sm:$0xff] %vm515_vm0, %v15122_v63  ;;  %v17988_v63 = vrot.slane %v14821_v50, 1  ;;  %v15315_v50 = vld [vmem:[#allocation3 + $0x130] sm:$0xff] }
 0x785   : > { %17989 = vst [vmem:[#allocation45_spill] sm:$0xff] %v15315_v50 }
 0x84d   : > { %v7208_v58 = vpop.f32.mrb[32].mxu0 }
 0x84e   : > { %v7209_v20 = vpop.f32.mrb[33].mxu0 }
 0x84f   : > { %v7210_v4 = vadd.f32 %v7209_v20, %v7208_v58  ;;  %v17966_v58 = vrot.slane %v17965_v45, 7  ;;  %v15189_v45 = vld [vmem:[#allocation3 + $0xc8] sm:$0xff] }
 0x850   : > { %v17990_v7 = vrot.slane %v15189_v45, 7 }
 0x851   : > { %7352 = vmatmul.mubr.msk.f32.vlgmr.msra.gmra.mrb[34].mxu0 %vm515_vm0, %v7210_v4  ;;  %v6115_v20 = vsel %vm1402_vm2, %v17966_v58, %v6067_v30  ;;  %v17967_v4 = vld [vmem:[#allocation121_spill] sm:$0xff]  ;;  %v17971_v30 = vrot.slane %v14558_v53, 1  ;;  %v15192_v58 = vmul.f32 4.0, %v14666_v40  ;;  %v15195_v53 = vmul.f32 4.0, %v14688_v13 }
 0x852   : > { %7356 = vmatprep.mubr.msk.f32.mxu0 %vm7844_vm7, %v17959_v33  ;;  %7355 = vmatpush3.msra.mxu0 %v5351_v10  ;;  %v17968_v10 = vrot.slane %v17967_v4, 1 }
 0x924   : > { %v5346_v25 = vpop.f32.mrb[34].mxu0 }
 0x925   : > { %v5350_v1 = vmax.f32 %v5346_v25, 0.0  ;;  %v7353_v49 = vpop.f32.mrb[35].mxu0  ;;  %v6179_v25 = vsel %vm1627_vm3, %v6147_v54, %v17968_v10 }
 0x926   : > { %v15163_v49 = vld [vmem:[#allocation3 + $0xa8] sm:$0xff] }
 0x927   : > { %7357 = vmatmul.mubr.msk.f32.vlgmr.msra.gmra.mrb[36].mxu0 %vm515_vm0, %v5350_v1  ;;  %v6195_v1 = vsel %vm1627_vm3, %v6131_v47, %v6147_v54 }
 0x928   : > { %7247 = vmatprep.mubr.msk.f32.mxu0 %vm515_vm0, %v16532_v38 }
 0x9fa   : > { %v5421_v48 = vpop.f32.mrb[36].mxu0 }
 0x9fb   : > { %v5426_v18 = vsel %vm5425_vm8, %v5421_v48, -inf  ;;  %v7358_v19 = vpop.f32.mrb[37].mxu0 }
 0x9fc   : > { %5427 = vmax.xlane.f32.xlu0 %v5426_v18  ;;  %v6132_v18 = vrot.slane %v5961_v8, 1  ;;  %v6148_v19 = vrot.slane %v5962_v44, 1 }
 0x9fe   : > { %v6180_v31 = vsel %vm1627_vm3, %v6148_v19, %v17971_v30  ;;  %v6196_v47 = vsel %vm1627_vm3, %v6132_v18, %v6148_v19  ;;  %v15239_v30 = vld [vmem:[#allocation3 + $0xe8] sm:$0xff] }
 0x9ff   : > { %v15271_v38 = vadd.f32 %v15239_v30, %v15163_v49 }
 0xa89   : > { %v5428_v15 = vpop.xlane.xlu0 %5427 }
 0xa8a   : > { %v5429_v27 = vsub.f32 %v5421_v48, %v5428_v15  ;;  %v15165_v48 = vld [vmem:[#allocation3 + $0xb0] sm:$0xff]  ;;  %v5964_v15 = vld [vmem:[#allocation3 + $0xa0] sm:$0xff] }
 0xa8b   : > { %v6085_v54 = vrot.slane %v15165_v48, 7 }
 0xa8c   : > { %v5430_v56 = vmul.f32 1.442695, %v5429_v27  ;;  %v6020_v27 = vadd.f32 %v5961_v8, %v14666_v40  ;;  %v15208_v40 = vmul.f32 4.0, %v14735_v57 }
 0xa8e   : > { %7791 = vpow2.f32 %v5430_v56  ;;  %v6021_v56 = vadd.f32 %v5962_v44, %v14688_v13  ;;  %v6024_v13 = vadd.f32 %v15189_v45, %v5961_v8 }
 0xa98   : > { %v7792_v33 = vpop.eup %7791 }
 0xa99   : > { %v5432_v22 = vsel %vm5425_vm8, %v7792_v33, 0.0 }
 0xa9a   : > { %5433 = vadd.xlane.f32.xlu1 %v5432_v22  ;;  %v6212_v22 = vadd.f32 %v6195_v1, %v6115_v20  ;;  %v15201_v1 = vld [vmem:[#allocation3 + $0xd0] sm:$0xff] }
 0xa9c   : > { %v15197_v20 = vadd.f32 %v6212_v22, %v6020_v27 }
 0xb27   : > { %v5434_v32 = vpop.xlane.xlu1 %5433 }
 0xb28   : > { %7793 = vrcp.f32 %v5434_v32  ;;  %v6213_v32 = vadd.f32 %v6179_v25, %v6099_v14  ;;  %v6023_v14 = vadd.f32 %v15165_v48, %v14738_v29 }
 0xb2a   : > { %v15199_v4 = vadd.f32 %v6213_v32, %v6021_v56  ;;  %v15215_v56 = vld [vmem:[#allocation3 + $0x148] sm:$0xff]  ;;  %v15222_v32 = vmul.f32 4.0, %v14738_v29  ;;  %v15237_v29 = vmul.f32 4.0, %v5962_v44 }
 0xb2b   : > { %17972 = vst [vmem:[#allocation50_spill] sm:$0xff] %v15215_v56  ;;  %v6036_v9 = vadd.f32 %v15309_v46, %v15215_v56 }
 0xb2c   : > { %17976 = vst [vmem:[#allocation110_spill] sm:$0xff] %v15237_v29 }
 0xb32   : > { %v7794_v43 = vpop.eup %7793 }
 0xb33   : > { %v5436_v11 = vmul.f32 %v7794_v43, %v7792_v33  ;;  %v5967_v33 = vld [vmem:[#allocation3 + $0xb8] sm:$0xff]  ;;  %v6100_v43 = vsel %vm1402_vm2, %v6068_v24, %v6084_v42 }
 0xb34   : > { %v6165_v42 = vrot.slane %v5967_v33, 1  ;;  %v6215_v25 = vadd.f32 %v6180_v31, %v6100_v43  ;;  %v15217_v33 = vld [vmem:[#allocation3 + $0x150] sm:$0xff] }
 0xb35   : > { %v5438_v23 = vmul.f32 %v5437_v39, %v5436_v11  ;;  %v5444_v41 = vmul.f32 %v5443_v51, %v5436_v11  ;;  %v17969_v39 = vld [vmem:[#allocation87_spill] sm:$0xff]  ;;  %17973 = vst [vmem:[#allocation66_spill] sm:$0xff] %v15217_v33  ;;  %v15241_v31 = vld [vmem:[#allocation3 + $0xf0] sm:$0xff] }
 0xb36   : > { %v17970_v11 = vrot.slane %v17969_v39, 7  ;;  %v15226_v43 = vadd.f32 %v6215_v25, %v6023_v14  ;;  %v5968_v14 = vld [vmem:[#allocation3 + $0xc0] sm:$0xff]  ;;  %v6090_v25 = vrot.slane %v15217_v33, 7  ;;  %v17987_v39 = vrot.slane %v14811_v28, 7 }
 0xb37   : > { %v5440_v61 = vsel %vm5439_vm9, %v5438_v23, 0.0  ;;  %v5445_v62 = vsel %vm5439_vm9, %v5444_v41, 0.0  ;;  %v6053_v23 = vrot.slane %v5964_v15, 7  ;;  %v6133_v41 = vrot.slane %v15163_v49, 1 }
 0xb38   : > { %5441 = vadd.xlane.f32.xlu0 %v5440_v61  ;;  %v6116_v51 = vsel %vm1402_vm2, %v17970_v11, %v6068_v24  ;;  %v6069_v61 = vrot.slane %v15163_v49, 7  ;;  %v6022_v24 = vadd.f32 %v15163_v49, %v14735_v57  ;;  %17974 = vst [vmem:[#allocation61_spill] sm:$0xff] %v15226_v43 }
 0xb39   : > { %v6214_v10 = vadd.f32 %v6196_v47, %v6116_v51  ;;  %v6025_v51 = vadd.f32 %v15201_v1, %v5962_v44  ;;  %v6074_v47 = vrot.slane %v15215_v56, 7  ;;  %v15252_v44 = vld [vmem:[#allocation3 + $0x168] sm:$0xff] }
 0xb3a   : > { %v6117_v18 = vsel %vm1402_vm2, %v6053_v23, %v6069_v61  ;;  %v6101_v15 = vsel %vm1402_vm2, %v6069_v61, %v6085_v54  ;;  %v6138_v54 = vrot.slane %v15215_v56, 1  ;;  %v15277_v61 = vld [vmem:[#allocation3 + $0x128] sm:$0xff]  ;;  %v6075_v16 = vrot.slane %v15252_v44, 7 }
 0xb3b   : > { %v15224_v57 = vadd.f32 %v6214_v10, %v6022_v24  ;;  %v15248_v10 = vld [vmem:[#allocation3 + $0x108] sm:$0xff]  ;;  %17984 = vst [vmem:[#allocation26_spill] sm:$0xff] %v15277_v61  ;;  %v6106_v11 = vsel %vm1402_vm2, %v6074_v47, %v6090_v25 }
 0xb3c   : > { %5446 = vadd.xlane.f32.xlu0 %v5445_v62  ;;  %v6149_v62 = vrot.slane %v15165_v48, 1  ;;  %17978 = vst [vmem:[#allocation83_spill] sm:$0xff] %v15248_v10 }
 0xb3e   : > { %v6197_v19 = vsel %vm1627_vm3, %v6133_v41, %v6149_v62  ;;  %v6181_v27 = vsel %vm1627_vm3, %v6149_v62, %v6165_v42  ;;  %v15235_v41 = vmul.f32 4.0, %v5961_v8  ;;  %v6154_v42 = vrot.slane %v15217_v33, 1  ;;  %v15250_v8 = vld [vmem:[#allocation3 + $0x110] sm:$0xff] }
 0xb3f   : > { %v6216_v23 = vadd.f32 %v6197_v19, %v6117_v18  ;;  %v6217_v62 = vadd.f32 %v6181_v27, %v6101_v15  ;;  %17979 = vst [vmem:[#allocation104_spill] sm:$0xff] %v15250_v8  ;;  %v15260_v15 = vmul.f32 4.0, %v15163_v49  ;;  %v15275_v18 = vadd.f32 %v15241_v31, %v15165_v48 }
 0xb40   : > { %17975 = vst [vmem:[#allocation69_spill] sm:$0xff] %v15235_v41  ;;  %v6054_v19 = vrot.slane %v5968_v14, 7  ;;  %v6034_v49 = vadd.f32 %v15252_v44, %v15277_v61  ;;  %v6202_v14 = vsel %vm1627_vm3, %v6138_v54, %v6154_v42  ;;  %v6186_v3 = vsel %vm1627_vm3, %v6154_v42, %v17988_v63  ;;  %v15320_v42 = vld [vmem:[#allocation3 + $0x190] sm:$0xff] }
 0xb41   : > { %v15246_v24 = vadd.f32 %v6216_v23, %v6024_v13  ;;  %17980 = vst [vmem:[#allocation35_spill] sm:$0xff] %v15260_v15  ;;  %v15262_v13 = vld [vmem:[#allocation3 + $0x170] sm:$0xff]  ;;  %v15264_v27 = vadd.f32 %v6217_v62, %v6025_v51  ;;  %v15267_v23 = vmul.f32 4.0, %v15165_v48  ;;  %17983 = vst [vmem:[#allocation118_spill] sm:$0xff] %v15275_v18  ;;  %v15282_v51 = vadd.f32 %v15248_v10, %v15189_v45 }
 0xb42   : > { %v15286_v62 = vadd.f32 %v15250_v8, %v15201_v1  ;;  %v6122_v48 = vsel %vm1402_vm2, %v17987_v39, %v6074_v47  ;;  %v6091_v28 = vrot.slane %v15262_v13, 7  ;;  %v15307_v39 = vmul.f32 4.0, %v15215_v56  ;;  %v15331_v8 = vld [vmem:[#allocation3 + $0x1a8] sm:$0xff] }
 0xb43   : > { %17977 = vst [vmem:[#allocation48_spill] sm:$0xff] %v15246_v24  ;;  %17981 = vst [vmem:[#allocation109_spill] sm:$0xff] %v15264_v27  ;;  %v6139_v54 = vrot.slane %v15252_v44, 1  ;;  %v6155_v22 = vrot.slane %v15262_v13, 1  ;;  %v6226_v25 = vadd.f32 %v6202_v14, %v6122_v48  ;;  %v15318_v63 = vmul.f32 4.0, %v15217_v33  ;;  %v5996_v48 = vld [vmem:[#allocation3 + $0x1a0] sm:$0xff] }
 0xb44   : > { %17982 = vst [vmem:[#allocation114_spill] sm:$0xff] %v15267_v23  ;;  %17985 = vst [vmem:[#allocation95_spill] sm:$0xff] %v15282_v51  ;;  %v15327_v59 = vsel %vm1402_vm2, %v6054_v19, %v17990_v7  ;;  %v6035_v12 = vadd.f32 %v15262_v13, %v15315_v50  ;;  %v6227_v47 = vadd.f32 %v6186_v3, %v6106_v11  ;;  %v17991_v19 = vrot.slane %v14888_v17, 7  ;;  %v15345_v11 = vld [vmem:[#allocation3 + $0x1b0] sm:$0xff]  ;;  %v5999_v27 = vld [vmem:[#allocation3 + $0x1b8] sm:$0xff] }
 0xb45   : > { %17986 = vst [vmem:[#allocation40_spill] sm:$0xff] %v15286_v62  ;;  %v15335_v23 = vadd.f32 %v6226_v25, %v6034_v49  ;;  %v6107_v7 = vsel %vm1402_vm2, %v6075_v16, %v6091_v28  ;;  %v17992_v14 = vrot.slane %v14900_v5, 1  ;;  %v6203_v25 = vsel %vm1627_vm3, %v6139_v54, %v6155_v22 }
 0xb46   : > { %v6123_v3 = vsel %vm1402_vm2, %v17991_v19, %v6075_v16  ;;  %v6076_v10 = vrot.slane %v15309_v46, 7  ;;  %v6092_v28 = vrot.slane %v15320_v42, 7  ;;  %v6140_v17 = vrot.slane %v15309_v46, 1 }
 0xb47   : > { %v6187_v49 = vsel %vm1627_vm3, %v6155_v22, %v17992_v14  ;;  %v6156_v56 = vrot.slane %v15320_v42, 1  ;;  %v6061_v16 = vrot.slane %v5996_v48, 7  ;;  %v6077_v19 = vrot.slane %v15331_v8, 7 }
 0xb48   : > { %v6093_v15 = vrot.slane %v15345_v11, 7  ;;  %v6141_v5 = vrot.slane %v15331_v8, 1  ;;  %v6157_v14 = vrot.slane %v15345_v11, 1  ;;  %v6173_v24 = vrot.slane %v5999_v27, 1  ;;  %v15374_v27 = vld [vmem:[#allocation3 + $0x1c8] sm:$0xff] }
 0xb49   : > { %v15361_v50 = vadd.f32 %v6227_v47, %v6035_v12  ;;  %v6037_v54 = vadd.f32 %v15320_v42, %v15217_v33  ;;  %v15368_v61 = vmul.f32 4.0, %v15252_v44  ;;  %v6228_v48 = vadd.f32 %v6203_v25, %v6123_v3  ;;  %v15376_v12 = vld [vmem:[#allocation3 + $0x1d0] sm:$0xff]  ;;  %v6000_v47 = vld [vmem:[#allocation3 + $0x1c0] sm:$0xff] }
 0xb4a   : > { %v6229_v62 = vadd.f32 %v6187_v49, %v6107_v7  ;;  %v6038_v51 = vadd.f32 %v15331_v8, %v15252_v44  ;;  %v6039_v18 = vadd.f32 %v15345_v11, %v15262_v13  ;;  %v6108_v22 = vsel %vm1402_vm2, %v6076_v10, %v6092_v28 }
 0xb4b   : > { %v17993_v33 = vrot.slane %v14941_v6, 7  ;;  %v17994_v7 = vrot.slane %v14943_v35, 1  ;;  %v6204_v49 = vsel %vm1627_vm3, %v6140_v17, %v6156_v56  ;;  %v6109_v25 = vsel %vm1402_vm2, %v6077_v19, %v6093_v15 }
 0xb4c   : > { %v6125_v29 = vsel %vm1402_vm2, %v6061_v16, %v6077_v19  ;;  %v6189_v6 = vsel %vm1627_vm3, %v6157_v14, %v6173_v24  ;;  %v6078_v35 = vrot.slane %v15374_v27, 7  ;;  %v6142_v28 = vrot.slane %v15374_v27, 1  ;;  %v6003_v19 = vld [vmem:[#allocation3 + $0x1d8] sm:$0xff] }
 0xb4d   : > { %v6124_v3 = vsel %vm1402_vm2, %v17993_v33, %v6076_v10  ;;  %v6188_v44 = vsel %vm1627_vm3, %v6156_v56, %v17994_v7  ;;  %v6205_v33 = vsel %vm1627_vm3, %v6141_v5, %v6157_v14  ;;  %v6062_v10 = vrot.slane %v6000_v47, 7  ;;  %v15414_v47 = vld [vmem:[#allocation3 + $0x1e8] sm:$0xff] }
 0xb4e   : > { %v6158_v7 = vrot.slane %v15376_v12, 1  ;;  %v6230_v15 = vadd.f32 %v6204_v49, %v6124_v3  ;;  %v6231_v17 = vadd.f32 %v6188_v44, %v6108_v22  ;;  %v6040_v16 = vadd.f32 %v15374_v27, %v15309_v46 }
 0xb4f   : > { %v15405_v24 = vadd.f32 %v6228_v48, %v6036_v9  ;;  %v15407_v43 = vadd.f32 %v6229_v62, %v6037_v54  ;;  %v15410_v5 = vmul.f32 4.0, %v15262_v13  ;;  %v6041_v14 = vadd.f32 %v15376_v12, %v15320_v42  ;;  %v5971_v54 = vld [vmem:[#allocation3 + $0xd8] sm:$0xff] }
 0xb50   : > { %v15416_v41 = vadd.f32 %v6230_v15, %v6038_v51  ;;  %v15418_v3 = vadd.f32 %v6231_v17, %v6039_v18  ;;  %v6232_v22 = vadd.f32 %v6205_v33, %v6125_v29  ;;  %v6233_v44 = vadd.f32 %v6189_v6, %v6109_v25  ;;  %v15433_v29 = vld [vmem:[#allocation3 + $0x1f0] sm:$0xff] }
 0xb51   : > { %v6094_v49 = vrot.slane %v15376_v12, 7  ;;  %v6126_v9 = vsel %vm1402_vm2, %v6062_v10, %v6078_v35  ;;  %v6174_v62 = vrot.slane %v6003_v19, 1  ;;  %v6206_v13 = vsel %vm1627_vm3, %v6142_v28, %v6158_v7 }
 0xb52   : > { %v15426_v48 = vmul.f32 4.0, %v15309_v46  ;;  %v15429_v51 = vmul.f32 4.0, %v15320_v42  ;;  %v15431_v18 = vadd.f32 %v6232_v22, %v6040_v16  ;;  %v6042_v25 = vadd.f32 %v15414_v47, %v15331_v8  ;;  %v6004_v22 = vld [vmem:[#allocation3 + $0x1e0] sm:$0xff] }
 0xb53   : > { %v15441_v10 = vadd.f32 %v6233_v44, %v6041_v14  ;;  %v15444_v46 = vmul.f32 4.0, %v15331_v8  ;;  %v15449_v28 = vmul.f32 4.0, %v15345_v11  ;;  %v6234_v15 = vadd.f32 %v6206_v13, %v6126_v9 }
 0xb54   : > { %v6166_v17 = vrot.slane %v5971_v54, 1  ;;  %v6043_v19 = vadd.f32 %v15433_v29, %v15345_v11  ;;  %v6110_v14 = vsel %vm1402_vm2, %v6078_v35, %v6094_v49  ;;  %v6190_v8 = vsel %vm1627_vm3, %v6158_v7, %v6174_v62 }
 0xb55   : > { %17995 = vst [vmem:[#allocation91_spill] sm:$0xff] %v15449_v28  ;;  %v15461_v42 = vadd.f32 %v6234_v15, %v6042_v25  ;;  %v15464_v9 = vmul.f32 4.0, %v15374_v27  ;;  %v17998_v13 = vrot.slane %v15201_v1, 1  ;;  %v17999_v54 = vrot.slane %v15189_v45, 1  ;;  %v15497_v28 = vld [vmem:[#allocation3 + $0x1f8] sm:$0xff] }
 0xb56   : > { %v15473_v35 = vsub.s32 0, %v8127_v37  ;;  %v15478_v49 = vmul.f32 4.0, %v15376_v12  ;;  %v18001_v62 = vrot.slane %v15201_v1, 7  ;;  %v18002_v25 = vrot.slane %v15189_v45, 7 }
 0xb57   : > { %17996 = vst [vmem:[#allocation94_spill] sm:$0xff] %v15461_v42  ;;  %17997 = vst [vmem:[#allocation62_spill] sm:$0xff] %v15464_v9  ;;  %v6198_v11 = vsel %vm1627_vm3, %v17999_v54, %v17998_v13  ;;  %v6235_v44 = vadd.f32 %v6190_v8, %v6110_v14  ;;  %v18003_v16 = vmov %v17998_v13  ;;  %v15490_v54 = vld [vmem:[#allocation3 + $0x210] sm:$0xff]  ;;  %v6063_v33 = vrot.slane %v6004_v22, 7  ;;  %v15501_v8 = vld [vmem:[#allocation3 + $0xe0] sm:$0xff] }
 0xb58   : > { %18000 = vst [vmem:[#allocation36_spill] sm:$0xff] %v15473_v35  ;;  %v6102_v15 = vsel %vm1402_vm2, %v18002_v25, %v18001_v62  ;;  %v6182_v13 = vsel %vm1627_vm3, %v18003_v16, %v6166_v17  ;;  %v16559_v7 = vrot.slane %v15414_v47, 7  ;;  %v6218_v6 = vadd.f32 %v6198_v11, %v15327_v59  ;;  %v18007_v16 = vld [vmem:[#allocation137_spill] sm:$0xff] }
 0xb59   : > { %v15495_v56 = vmul.f32 4.0, %v15189_v45  ;;  %v6143_v62 = vrot.slane %v15414_v47, 1  ;;  %v15503_v17 = vadd.f32 %v6235_v44, %v6043_v19  ;;  %v15508_v22 = vmul.f32 4.0, %v15201_v1 }
 0xb5a   : > { %v15514_v11 = vadd.f32 %v6182_v13, %v6102_v15  ;;  %v15517_v14 = vadd.f32 %v6218_v6, %v15271_v38  ;;  %v15521_v19 = vadd.f32 %v15490_v54, %v15376_v12  ;;  %v15527_v1 = vsel %vm1402_vm2, %v6063_v33, %v16559_v7  ;;  %v18005_v7 = vld [vmem:[#allocation123_spill] sm:$0xff]  ;;  %v18006_v15 = vld [vmem:[#allocation125_spill] sm:$0xff]  ;;  %v18008_v13 = vld [vmem:[#allocation136_spill] sm:$0xff] }
 0xb5b   : > { %v18004_v6 = vrot.slane %v15433_v29, 1 }
 0xb5d   : > { %v6207_v12 = vsel %vm1627_vm3, %v6143_v62, %v18004_v6 }
 0xbc5   : > { %v5442_v25 = vpop.xlane.xlu0 %5441 }
 0xbc6   : > { %v15512_v45 = vrot.slane %v5442_v25, %v15473_v35 }
 0xbc8   : > { %v6358_v38 = vmul.f32 %v15512_v45, %v14911_v26  ;;  %v6359_v44 = vmul.f32 %v15512_v45, %v14984_v60  ;;  %v6342_v25 = vmul.f32 %v15512_v45, %v18005_v7  ;;  %v6343_v59 = vmul.f32 %v15512_v45, %v18006_v15 }
 0xbc9   : > { %v5447_v33 = vpop.xlane.xlu0 %5446  ;;  %v6360_v26 = vmul.f32 %v15512_v45, %v15051_v52  ;;  %v6361_v62 = vmul.f32 %v15512_v45, %v15074_v55  ;;  %v6344_v6 = vmul.f32 %v15512_v45, %v14675_v34  ;;  %v6345_v60 = vmul.f32 %v15512_v45, %v18007_v16 }
 0xbca   : > { %v15549_v9 = vrot.slane %v5447_v33, %v15473_v35  ;;  %v6362_v7 = vmul.f32 %v15512_v45, %v15081_v36  ;;  %v6363_v15 = vmul.f32 %v15512_v45, %v15083_v2  ;;  %v6346_v52 = vmul.f32 %v15512_v45, %v18008_v13  ;;  %v18009_v33 = vld [vmem:[#allocation138_spill] sm:$0xff] }
 0xbcb   : > { %v6347_v35 = vmul.f32 %v15512_v45, %v18009_v33  ;;  %v18010_v55 = vsub.f32 %v15335_v23, %v15307_v39  ;;  %v18011_v16 = vsub.f32 %v15361_v50, %v15318_v63  ;;  %v18012_v36 = vsub.f32 %v14744_v21, %v15192_v58 }
 0xbcc   : > { %v18013_v13 = vsub.f32 %v14749_v0, %v15195_v53  ;;  %v18014_v23 = vsub.f32 %v15405_v24, %v15368_v61  ;;  %v18015_v50 = vsub.f32 %v15407_v43, %v15410_v5  ;;  %v18016_v21 = vsub.f32 %v15197_v20, %v15208_v40 }
 0xbcd   : > { %v6394_v34 = vmul.f32 %v15549_v9, %v18010_v55  ;;  %v6395_v42 = vmul.f32 %v15549_v9, %v18011_v16  ;;  %v6378_v2 = vmul.f32 %v15549_v9, %v18012_v36  ;;  %v18017_v0 = vsub.f32 %v15199_v4, %v15222_v32 }
 0xbce   : > { %v6379_v33 = vmul.f32 %v15549_v9, %v18013_v13  ;;  %v6396_v39 = vmul.f32 %v15549_v9, %v18014_v23  ;;  %v6397_v63 = vmul.f32 %v15549_v9, %v18015_v50  ;;  %v6380_v58 = vmul.f32 %v15549_v9, %v18016_v21  ;;  %v5975_v13 = vld [vmem:[#allocation3 + $0xf8] sm:$0xff] }
 0xbcf   : > { %v6381_v53 = vmul.f32 %v15549_v9, %v18017_v0  ;;  %v6426_v55 = vadd.f32 %v6394_v34, %v6358_v38  ;;  %v6427_v16 = vadd.f32 %v6395_v42, %v6359_v44  ;;  %v6410_v61 = vadd.f32 %v6378_v2, %v6342_v25  ;;  %v18022_v38 = vld [vmem:[#allocation69_spill] sm:$0xff]  ;;  %v18029_v0 = vld [vmem:[#allocation118_spill] sm:$0xff] }
 0xbd0   : > { %v6411_v24 = vadd.f32 %v6379_v33, %v6343_v59  ;;  %v6428_v5 = vadd.f32 %v6396_v39, %v6360_v26  ;;  %v6429_v36 = vadd.f32 %v6397_v63, %v6361_v62  ;;  %v6412_v20 = vadd.f32 %v6380_v58, %v6344_v6  ;;  %v18024_v6 = vld [vmem:[#allocation61_spill] sm:$0xff] }
 0xbd1   : > { %v6413_v40 = vadd.f32 %v6381_v53, %v6345_v60  ;;  %v7583_v23 = vpack.c.bf16 %v6427_v16, %v6426_v55  ;;  %v18020_v4 = vsub.f32 %v15416_v41, %v15426_v48  ;;  %v18021_v42 = vsub.f32 %v15418_v3, %v15429_v51  ;;  %v18025_v60 = vld [vmem:[#allocation110_spill] sm:$0xff]  ;;  %v15619_v41 = vld [vmem:[#allocation3 + $0x208] sm:$0xff]  ;;  %v6008_v55 = vld [vmem:[#allocation3 + $0x200] sm:$0xff] }
 0xbd2   : > { %v7586_v50 = vpack.c.bf16 %v6411_v24, %v6410_v61  ;;  %v7589_v44 = vpack.c.bf16 %v6429_v36, %v6428_v5  ;;  %v18023_v26 = vsub.f32 %v15224_v57, %v18022_v38  ;;  %v18026_v34 = vsub.f32 %v18024_v6, %v18025_v60 }
 0xbd3   : > { %v6398_v32 = vmul.f32 %v15549_v9, %v18020_v4  ;;  %v6399_v59 = vmul.f32 %v15549_v9, %v18021_v42  ;;  %v7592_v25 = vpack.c.bf16 %v6413_v40, %v6412_v20  ;;  %7585 = vmatprep.subr.msk.bf16.mxu0 %vm15599_vm10, %v7583_v23  ;;  %v6151_v51 = vrot.slane %v15241_v31, 1  ;;  %v6011_v4 = vld [vmem:[#allocation3 + $0x218] sm:$0xff] }
 0xbd4   : > { %v6382_v62 = vmul.f32 %v15549_v9, %v18023_v26  ;;  %v6383_v2 = vmul.f32 %v15549_v9, %v18026_v34  ;;  %v6167_v33 = vrot.slane %v5975_v13, 1  ;;  %7588 = vmatpush3.bf16.xpose.msk.msra.mxu0 %vm15599_vm10, %v7586_v50  ;;  %v6331_v63 = vsub.f32 %v15503_v17, %v15478_v49  ;;  %v15691_v34 = vld [vmem:[#allocation3 + $0x228] sm:$0xff]  ;;  %v18059_v49 = vld [vmem:[#allocation78_spill] sm:$0xff] }
 0xbd5   : > { %v6430_v3 = vadd.f32 %v6398_v32, %v6362_v7  ;;  %v6431_v48 = vadd.f32 %v6399_v59, %v6363_v15  ;;  %v18027_v21 = vrot.slane %v15433_v29, 7  ;;  %v18028_v58 = vrot.slane %v15414_v47, 7  ;;  %7591 = vmatprep.subr.msk.bf16.mxu0 %vm15599_vm10, %v7589_v44 }
 0xbd6   : > { %v15626_v57 = vadd.f32 %v6382_v62, %v6346_v52  ;;  %v15628_v39 = vadd.f32 %v6383_v2, %v6347_v35  ;;  %v15642_v52 = vadd.f32 %v15514_v11, %v18029_v0  ;;  %v6314_v35 = vsub.f32 %v15517_v14, %v15495_v56  ;;  %v18061_v56 = vld [vmem:[#allocation135_spill] sm:$0xff] }
 0xbd7   : > { %v6111_v7 = vsel %vm1402_vm2, %v18028_v58, %v18027_v21  ;;  %v7595_v15 = vpack.c.bf16 %v6431_v48, %v6430_v3  ;;  %v6044_v53 = vadd.f32 %v15619_v41, %v15374_v27  ;;  %v18030_v61 = vrot.slane %v15497_v28, 1 }
 0xbd8   : > { %v7598_v16 = vpack.c.bf16 %v15628_v39, %v15626_v57  ;;  %v18031_v24 = vrot.slane %v15433_v29, 1  ;;  %v6236_v11 = vadd.f32 %v6207_v12, %v15527_v1  ;;  %v15658_v36 = vmul.f32 4.0, %v15414_v47 }
 0xbd9   : > { %v18032_v20 = vrot.slane %v15241_v31, 7  ;;  %v18033_v27 = vrot.slane %v15239_v30, 7  ;;  %v18035_v28 = vrot.slane %v15501_v8, 7  ;;  %v6183_v1 = vsel %vm1627_vm3, %v6151_v51, %v6167_v33  ;;  %v18038_v33 = vld [vmem:[#allocation91_spill] sm:$0xff] }
 0xbda   : > { %v6191_v5 = vsel %vm1627_vm3, %v18031_v24, %v18030_v61  ;;  %v18036_v12 = vrot.slane %v15239_v30, 1  ;;  %v6064_v32 = vrot.slane %v6008_v55, 7  ;;  %v6080_v42 = vrot.slane %v15619_v41, 7  ;;  %v18040_v55 = vld [vmem:[#allocation95_spill] sm:$0xff] }
 0xbdb   : > { %v6103_v40 = vsel %vm1402_vm2, %v18033_v27, %v18032_v20  ;;  %v18034_v13 = vmov %v18033_v27  ;;  %v6144_v59 = vrot.slane %v15619_v41, 1  ;;  %v6160_v44 = vrot.slane %v15490_v54, 1 }
 0xbdc   : > { %v6119_v23 = vsel %vm1402_vm2, %v18035_v28, %v18034_v13  ;;  %v6199_v50 = vsel %vm1627_vm3, %v18036_v12, %v6151_v51  ;;  %v6315_v8 = vsub.f32 %v15642_v52, %v15508_v22  ;;  %v6237_v38 = vadd.f32 %v6191_v5, %v6111_v7  ;;  %7594 = vmatpush3.bf16.xpose.msk.msra.mxu0 %vm15599_vm10, %v7592_v25  ;;  %v18042_v5 = vld [vmem:[#allocation53_spill] sm:$0xff]  ;;  %v18062_v22 = vld [vmem:[#allocation19_spill] sm:$0xff] }
 0xbdd   : > { %v15684_v26 = vmul.f32 4.0, %v15433_v29  ;;  %v15687_v62 = vmul.f32 4.0, %v15239_v30  ;;  %v15689_v6 = vadd.f32 %v6236_v11, %v6044_v53  ;;  %v6220_v60 = vadd.f32 %v6199_v50, %v6119_v23  ;;  %v15705_v53 = vld [vmem:[#allocation3 + $0x230] sm:$0xff]  ;;  %7597 = vmatprep.subr.msk.bf16.mxu0 %vm15599_vm10, %v7595_v15  ;;  %v18043_v11 = vld [vmem:[#allocation40_spill] sm:$0xff] }
 0xbde   : > { %v6096_v2 = vrot.slane %v15490_v54, 7  ;;  %v6176_v3 = vrot.slane %v6011_v4, 1  ;;  %v18037_v48 = vsub.f32 %v15431_v18, %v15444_v46  ;;  %v18039_v21 = vsub.f32 %v15441_v10, %v18038_v33  ;;  %v5976_v23 = vld [vmem:[#allocation3 + $0x100] sm:$0xff]  ;;  %v18049_v33 = vld [vmem:[#allocation109_spill] sm:$0xff] }
 0xbdf   : > { %v15703_v7 = vadd.f32 %v6237_v38, %v15521_v19  ;;  %v6221_v0 = vadd.f32 %v6183_v1, %v6103_v40  ;;  %v15710_v61 = vadd.f32 %v6220_v60, %v18040_v55  ;;  %v15713_v18 = vmul.f32 4.0, %v15241_v31  ;;  %v18041_v19 = vld [vmem:[#allocation89_spill] sm:$0xff]  ;;  %v5979_v38 = vld [vmem:[#allocation3 + $0x118] sm:$0xff]  ;;  %v18053_v55 = vld [vmem:[#allocation104_spill] sm:$0xff] }
 0xbe0   : > { %v6400_v51 = vmul.f32 %v15549_v9, %v18037_v48  ;;  %v6401_v58 = vmul.f32 %v15549_v9, %v18039_v21  ;;  %v6128_v10 = vsel %vm1402_vm2, %v6064_v32, %v6080_v42  ;;  %v6208_v46 = vsel %vm1627_vm3, %v6144_v59, %v6160_v44  ;;  %v18044_v32 = vld [vmem:[#allocation26_spill] sm:$0xff] }
 0xbe1   : > { %v6364_v24 = vmul.f32 %v15512_v45, %v18041_v19  ;;  %v6365_v25 = vmul.f32 %v15512_v45, %v18042_v5  ;;  %v15726_v20 = vadd.f32 %v6221_v0, %v18043_v11  ;;  %v6046_v27 = vadd.f32 %v15691_v34, %v15414_v47  ;;  %v18050_v21 = vld [vmem:[#allocation114_spill] sm:$0xff] }
 0xbe2   : > { %v6332_v40 = vsub.f32 %v15689_v6, %v15658_v36  ;;  %v6047_v13 = vadd.f32 %v15705_v53, %v15433_v29  ;;  %v6112_v15 = vsel %vm1402_vm2, %v6080_v42, %v6096_v2  ;;  %v6192_v28 = vsel %vm1627_vm3, %v6160_v44, %v6176_v3  ;;  %v18046_v2 = vld [vmem:[#allocation48_spill] sm:$0xff]  ;;  %v18047_v3 = vld [vmem:[#allocation35_spill] sm:$0xff]  ;;  %v18054_v19 = vld [vmem:[#allocation94_spill] sm:$0xff] }
 0xbe3   : > { %v6432_v1 = vadd.f32 %v6400_v51, %v6364_v24  ;;  %v6433_v12 = vadd.f32 %v6401_v58, %v6365_v25  ;;  %v6333_v50 = vsub.f32 %v15703_v7, %v15684_v26  ;;  %v6238_v4 = vadd.f32 %v6208_v46, %v6128_v10  ;;  %v18045_v26 = vld [vmem:[#allocation45_spill] sm:$0xff]  ;;  %v18052_v7 = vld [vmem:[#allocation83_spill] sm:$0xff]  ;;  %v18055_v24 = vld [vmem:[#allocation62_spill] sm:$0xff] }
 0xbe4   : > { %v6316_v47 = vsub.f32 %v15710_v61, %v15687_v62  ;;  %v15743_v36 = vmul.f32 4.0, %v15619_v41  ;;  %v15746_v29 = vmul.f32 4.0, %v15490_v54  ;;  %v15750_v42 = vadd.f32 %v18044_v32, %v15239_v30  ;;  %7600 = vmatpush3.bf16.xpose.msk.msra.mxu0 %vm15599_vm10, %v7598_v16  ;;  %v18066_v61 = vld [vmem:[#allocation75_spill] sm:$0xff] }
 0xbe5   : > { %v6317_v59 = vsub.f32 %v15726_v20, %v15713_v18  ;;  %v6239_v44 = vadd.f32 %v6192_v28, %v6112_v15  ;;  %v15756_v6 = vadd.f32 %v18045_v26, %v15241_v31  ;;  %v6056_v60 = vrot.slane %v5976_v23, 7  ;;  %v18057_v15 = vld [vmem:[#allocation74_spill] sm:$0xff]  ;;  %v18058_v23 = vld [vmem:[#allocation124_spill] sm:$0xff] }
 0xbe6   : > { %v18048_v48 = vsub.f32 %v18046_v2, %v18047_v3  ;;  %v18051_v58 = vsub.f32 %v18049_v33, %v18050_v21  ;;  %v6072_v0 = vrot.slane %v18052_v7, 7  ;;  %v6088_v10 = vrot.slane %v18053_v55, 7  ;;  %v6015_v33 = vld [vmem:[#allocation3 + $0x238] sm:$0xff] }
 0xbe7   : > { %v7601_v46 = vpack.c.bf16 %v6433_v12, %v6432_v1  ;;  %v18056_v31 = vsub.f32 %v18054_v19, %v18055_v24  ;;  %v6403_v25 = vmul.f32 %v15549_v9, %v6331_v63  ;;  %v15776_v11 = vadd.f32 %v6238_v4, %v6046_v27  ;;  %v18060_v63 = vld [vmem:[#allocation54_spill] sm:$0xff]  ;;  %v6012_v27 = vld [vmem:[#allocation3 + $0x220] sm:$0xff] }
 0xbe8   : > { %v6384_v51 = vmul.f32 %v15549_v9, %v18048_v48  ;;  %v6385_v30 = vmul.f32 %v15549_v9, %v18051_v58  ;;  %v6348_v28 = vmul.f32 %v15512_v45, %v18057_v15  ;;  %v6349_v1 = vmul.f32 %v15512_v45, %v18058_v23 }
 0xbe9   : > { %v6402_v5 = vmul.f32 %v15549_v9, %v18056_v31  ;;  %v6152_v12 = vrot.slane %v18053_v55, 1  ;;  %v6168_v2 = vrot.slane %v5979_v38, 1  ;;  %7603 = vmatprep.subr.msk.bf16.mxu0 %vm15599_vm10, %v7601_v46  ;;  %v6366_v17 = vmul.f32 %v15512_v45, %v18059_v49 }
 0xbea   : > { %v6367_v57 = vmul.f32 %v15512_v45, %v18060_v63  ;;  %v15794_v39 = vadd.f32 %v6239_v44, %v6047_v13  ;;  %v6136_v16 = vrot.slane %v18052_v7, 1  ;;  %v6416_v4 = vadd.f32 %v6384_v51, %v6348_v28 }
 0xbeb   : > { %v6417_v3 = vadd.f32 %v6385_v30, %v6349_v1  ;;  %v6104_v48 = vsel %vm1402_vm2, %v6072_v0, %v6088_v10  ;;  %v6120_v38 = vsel %vm1402_vm2, %v6056_v60, %v6072_v0  ;;  %v6434_v21 = vadd.f32 %v6402_v5, %v6366_v17 }
 0xbec   : > { %v6435_v58 = vadd.f32 %v6403_v25, %v6367_v57  ;;  %v6334_v46 = vsub.f32 %v15776_v11, %v15743_v36  ;;  %v15804_v13 = vmul.f32 4.0, %v18052_v7  ;;  %v6184_v44 = vsel %vm1627_vm3, %v6152_v12, %v6168_v2 }
 0xbed   : > { %v6065_v51 = vrot.slane %v6012_v27, 7  ;;  %v6081_v30 = vrot.slane %v15691_v34, 7  ;;  %v6097_v10 = vrot.slane %v15705_v53, 7  ;;  %v6200_v60 = vsel %vm1627_vm3, %v6136_v16, %v6152_v12  ;;  %v18064_v12 = vld [vmem:[#allocation25_spill] sm:$0xff]  ;;  %v5980_v27 = vld [vmem:[#allocation3 + $0x120] sm:$0xff] }
 0xbee   : > { %v6145_v0 = vrot.slane %v15691_v34, 1  ;;  %v6161_v19 = vrot.slane %v15705_v53, 1  ;;  %v6177_v24 = vrot.slane %v6015_v33, 1  ;;  %v7604_v36 = vpack.c.bf16 %v6417_v3, %v6416_v4 }
 0xbef   : > { %v6386_v31 = vmul.f32 %v15549_v9, %v6314_v35  ;;  %v6387_v5 = vmul.f32 %v15549_v9, %v6315_v8  ;;  %v15823_v25 = vmul.f32 4.0, %v18053_v55  ;;  %v7607_v11 = vpack.c.bf16 %v6435_v58, %v6434_v21  ;;  %v6016_v35 = vld [vmem:[#allocation3 + $0x248] sm:$0xff]  ;;  %v6017_v8 = vld [vmem:[#allocation3 + $0x250] sm:$0xff] }
 0xbf0   : > { %v6404_v15 = vmul.f32 %v15549_v9, %v6332_v40  ;;  %v6405_v28 = vmul.f32 %v15549_v9, %v6333_v50  ;;  %v6335_v23 = vsub.f32 %v15794_v39, %v15746_v29  ;;  %7606 = vmatpush3.bf16.xpose.msk.msra.mxu0 %vm15599_vm10, %v7604_v36  ;;  %v6350_v14 = vmul.f32 %v15512_v45, %v18061_v56  ;;  %v18063_v50 = vld [vmem:[#allocation20_spill] sm:$0xff] }
 0xbf1   : > { %v6351_v52 = vmul.f32 %v15512_v45, %v18062_v22  ;;  %v6113_v1 = vsel %vm1402_vm2, %v6081_v30, %v6097_v10  ;;  %v6129_v40 = vsel %vm1402_vm2, %v6065_v51, %v6081_v30  ;;  %7609 = vmatprep.subr.msk.bf16.mxu0 %vm15599_vm10, %v7607_v11  ;;  %v6368_v29 = vmul.f32 %v15512_v45, %v18063_v50  ;;  %v18068_v11 = vld [vmem:[#allocation119_spill] sm:$0xff]  ;;  %v18069_v50 = vld [vmem:[#allocation50_spill] sm:$0xff] }
 0xbf2   : > { %v6369_v2 = vmul.f32 %v15512_v45, %v18064_v12  ;;  %v6193_v49 = vsel %vm1627_vm3, %v6161_v19, %v6177_v24  ;;  %v6209_v17 = vsel %vm1627_vm3, %v6145_v0, %v6161_v19  ;;  %v6418_v63 = vadd.f32 %v6386_v31, %v6350_v14  ;;  %v5983_v24 = vld [vmem:[#allocation3 + $0x138] sm:$0xff]  ;;  %v18070_v12 = vld [vmem:[#allocation66_spill] sm:$0xff] }
 0xbf3   : > { %v6419_v57 = vadd.f32 %v6387_v5, %v6351_v52  ;;  %v6222_v39 = vadd.f32 %v6200_v60, %v6120_v38  ;;  %v6223_v16 = vadd.f32 %v6184_v44, %v6104_v48  ;;  %v6436_v4 = vadd.f32 %v6404_v15, %v6368_v29  ;;  %v18065_v5 = vld [vmem:[#allocation111_spill] sm:$0xff] }
 0xbf4   : > { %v6437_v3 = vadd.f32 %v6405_v28, %v6369_v2  ;;  %v6048_v33 = vadd.f32 %v6016_v35, %v15619_v41  ;;  %v6049_v21 = vadd.f32 %v6017_v8, %v15490_v54  ;;  %v6240_v30 = vadd.f32 %v6209_v17, %v6129_v40 }
 0xbf5   : > { %v6254_v58 = vadd.f32 %v6222_v39, %v15750_v42  ;;  %v6255_v51 = vadd.f32 %v6223_v16, %v15756_v6  ;;  %v6241_v10 = vadd.f32 %v6193_v49, %v6113_v1  ;;  %v6057_v36 = vrot.slane %v5980_v27, 7 }
 0xbf6   : > { %v6073_v0 = vrot.slane %v18044_v32, 7  ;;  %v6089_v38 = vrot.slane %v18045_v26, 7  ;;  %v6137_v48 = vrot.slane %v18044_v32, 1  ;;  %v7610_v44 = vpack.c.bf16 %v6419_v57, %v6418_v63 }
 0xbf7   : > { %v6388_v54 = vmul.f32 %v15549_v9, %v6316_v47  ;;  %v6389_v41 = vmul.f32 %v15549_v9, %v6317_v59  ;;  %v6153_v42 = vrot.slane %v18045_v26, 1  ;;  %v7613_v6 = vpack.c.bf16 %v6437_v3, %v6436_v4  ;;  %v18067_v59 = vld [vmem:[#allocation99_spill] sm:$0xff]  ;;  %v18072_v4 = vld [vmem:[#allocation32_spill] sm:$0xff] }
 0xbf8   : > { %v6406_v60 = vmul.f32 %v15549_v9, %v6334_v46  ;;  %v6407_v19 = vmul.f32 %v15549_v9, %v6335_v23  ;;  %v6169_v31 = vrot.slane %v5983_v24, 1  ;;  %7612 = vmatpush3.bf16.xpose.msk.msra.mxu0 %vm15599_vm10, %v7610_v44  ;;  %v6352_v62 = vmul.f32 %v15512_v45, %v18065_v5 }
 0xbf9   : > { %v6353_v47 = vmul.f32 %v15512_v45, %v18066_v61  ;;  %v6304_v18 = vmul.f32 4.0, %v15691_v34  ;;  %v6305_v20 = vmul.f32 4.0, %v15705_v53  ;;  %7615 = vmatprep.subr.msk.bf16.mxu0 %vm15599_vm10, %v7613_v6  ;;  %v6370_v46 = vmul.f32 %v15512_v45, %v18067_v59 }
 0xbfa   : > { %v6371_v15 = vmul.f32 %v15512_v45, %v18068_v11  ;;  %v6272_v28 = vadd.f32 %v6240_v30, %v6048_v33  ;;  %v6273_v23 = vadd.f32 %v6241_v10, %v6049_v21  ;;  %v6420_v56 = vadd.f32 %v6388_v54, %v6352_v62  ;;  %v18074_v30 = vld [vmem:[#allocation64_spill] sm:$0xff] }
 0xbfb   : > { %v6421_v14 = vadd.f32 %v6389_v41, %v6353_v47  ;;  %v6121_v22 = vsel %vm1402_vm2, %v6057_v36, %v6073_v0  ;;  %v6201_v34 = vsel %vm1627_vm3, %v6137_v48, %v6153_v42  ;;  %v6438_v53 = vadd.f32 %v6406_v60, %v6370_v46  ;;  %v18076_v62 = vld [vmem:[#allocation60_spill] sm:$0xff] }
 0xbfc   : > { %v6439_v52 = vadd.f32 %v6407_v19, %v6371_v15  ;;  %v6105_v35 = vsel %vm1402_vm2, %v6073_v0, %v6089_v38  ;;  %v6185_v8 = vsel %vm1627_vm3, %v6153_v42, %v6169_v31  ;;  %v6318_v1 = vsub.f32 %v6254_v58, %v15804_v13  ;;  %v18073_v58 = vld [vmem:[#allocation79_spill] sm:$0xff] }
 0xbfd   : > { %v6319_v40 = vsub.f32 %v6255_v51, %v15823_v25  ;;  %v6032_v29 = vadd.f32 %v18069_v50, %v18052_v7  ;;  %v6033_v2 = vadd.f32 %v18070_v12, %v18053_v55  ;;  %v6336_v49 = vsub.f32 %v6272_v28, %v6304_v18  ;;  %v18071_v7 = vld [vmem:[#allocation92_spill] sm:$0xff]  ;;  %v18075_v31 = vld [vmem:[#allocation63_spill] sm:$0xff] }
 0xbfe   : > { %v6337_v17 = vsub.f32 %v6273_v23, %v6305_v20  ;;  %v6224_v63 = vadd.f32 %v6201_v34, %v6121_v22  ;;  %v7616_v57 = vpack.c.bf16 %v6421_v14, %v6420_v56  ;;  %v6390_v39 = vmul.f32 %v15549_v9, %v6318_v1  ;;  %v18078_v22 = vld [vmem:[#allocation36_spill] sm:$0xff] }
 0xbff   : > { %v6391_v16 = vmul.f32 %v15549_v9, %v6319_v40  ;;  %v6225_v37 = vadd.f32 %v6185_v8, %v6105_v35  ;;  %v7619_v27 = vpack.c.bf16 %v6439_v52, %v6438_v53  ;;  %v6408_v13 = vmul.f32 %v15549_v9, %v6336_v49  ;;  %v18079_v52 = vld [vmem:[#allocation122_spill] sm:$0xff]  ;;  %v18080_v8 = vld [vmem:[#allocation23_spill] sm:$0xff] }
 0xc00   : > { %v6409_v25 = vmul.f32 %v15549_v9, %v6337_v17  ;;  %7618 = vmatpush3.bf16.xpose.msk.msra.mxu0 %vm15599_vm10, %v7616_v57  ;;  %v6354_v55 = vmul.f32 %v15512_v45, %v18071_v7  ;;  %v6355_v3 = vmul.f32 %v15512_v45, %v18072_v4  ;;  %v6256_v33 = vadd.f32 %v6224_v63, %v6032_v29 }
 0xc01   : > { %v6257_v21 = vadd.f32 %v6225_v37, %v6033_v2  ;;  %7621 = vmatprep.subr.msk.bf16.mxu0 %vm15599_vm10, %v7619_v27  ;;  %v6372_v51 = vmul.f32 %v15512_v45, %v18073_v58  ;;  %v6373_v10 = vmul.f32 %v15512_v45, %v18074_v30  ;;  %v6288_v0 = vmul.f32 4.0, %v18044_v32 }
 0xc02   : > { %v6422_v24 = vadd.f32 %v6390_v39, %v6354_v55  ;;  %v6423_v36 = vadd.f32 %v6391_v16, %v6355_v3  ;;  %v6289_v38 = vmul.f32 4.0, %v18045_v26  ;;  %v6356_v5 = vmul.f32 %v15512_v45, %v18075_v31 }
 0xc03   : > { %v6440_v48 = vadd.f32 %v6408_v13, %v6372_v51  ;;  %v6441_v44 = vadd.f32 %v6409_v25, %v6373_v10  ;;  %v6320_v54 = vsub.f32 %v6256_v33, %v6288_v0  ;;  %v6357_v32 = vmul.f32 %v15512_v45, %v18076_v62 }
 0xc04   : > { %v6321_v41 = vsub.f32 %v6257_v21, %v6289_v38  ;;  %v7622_v42 = vpack.c.bf16 %v6423_v36, %v6422_v24 }
 0xc05   : > { %v6392_v6 = vmul.f32 %v15549_v9, %v6320_v54  ;;  %v7625_v19 = vpack.c.bf16 %v6441_v44, %v6440_v48 }
 0xc06   : > { %v6393_v60 = vmul.f32 %v15549_v9, %v6321_v41  ;;  %v18077_v9 = vmov 0.125  }
 0xc07   : > { %v6424_v26 = vadd.f32 %v6392_v6, %v6356_v5 }
 0xc08   : > { %7624 = vmatpush3.bf16.xpose.msk.msra.mxu0 %vm15599_vm10, %v7622_v42  ;;  %v6425_v61 = vadd.f32 %v6393_v60, %v6357_v32 }
 0xc09   : > { %7627 = vmatprep.subr.msk.bf16.mxu0 %vm15599_vm10, %v7625_v19 }
 0xc0a   : > { %v7628_v47 = vpack.c.bf16 %v6425_v61, %v6424_v26 }
 0xc10   : > { %7630 = vmatpush3.bf16.xpose.msk.msra.mxu0 %vm15599_vm10, %v7628_v47 }
 0xc17   : > { %7248 = vmatmul.mubr.msk.f32.vlgmr.msra.gmra.mrb[38].mxu0 %vm515_vm0, %v18077_v9 }
 0xcea   : > { %v6607_v18 = vpop.f32.mrb[38].mxu0 }
 0xceb   : > { %v6968_v20 = vmul.f32 -1.442695, %v6607_v18  ;;  %v6609_v59 = vpop.f32.mrb[39].mxu0 }
 0xcec   : > { %v6969_v46 = vmul.f32 -1.442695, %v6609_v59 }
 0xced   : > { %7795 = vpow2.f32 %v6968_v20 }
 0xcee   : > { %7797 = vpow2.f32 %v6969_v46 }
 0xcf7   : > { %v7796_v45 = vpop.eup %7795 }
 0xcf8   : > { %v7798_v11 = vpop.eup %7797  ;;  %v6618_v15 = vadd.f32 1.0, %v7796_v45 }
 0xcf9   : > { %v6619_v28 = vadd.f32 1.0, %v7798_v11 }
 0xcfa   : > { %7799 = vrcp.f32 %v6618_v15 }
 0xcfb   : > { %7801 = vrcp.f32 %v6619_v28 }
 0xd04   : > { %v7800_v23 = vpop.eup %7799 }
 0xd05   : > { %v7802_v56 = vpop.eup %7801  ;;  %v6624_v43 = vadd.f32 1.0, %v7800_v23 }
 0xd06   : > { %v6625_v14 = vadd.f32 1.0, %v7802_v56 }
 0xd07   : > { %v6629_v34 = vrot.slane %v6624_v43, %v18078_v22 }
 0xd08   : > { %v6633_v53 = vrot.slane %v6625_v14, %v18078_v22 }
 0xd09   : > { %v6634_v35 = vmul.f32 %v6629_v34, %v18079_v52 }
 0xd0a   : > { %v6635_v1 = vmul.f32 %v6633_v53, %v18080_v8 }
 0xd0b   : > { %6636 = vst [vmem:[%s440_s14] sm:$0xff] %v6634_v35 }
 0xd0c   : > { %6637 = vst [vmem:[%s440_s14 + $0x8] sm:$0xff] %v6635_v1 }
 0xd0d PF: > { %s23_s25 = sadd.s32 1, %s7838_s25  }
 0xd0e   : > { %p20_p4 = scmp.ge.s32.totalorder %s23_s25, 4  }
 0xd10   :  { %22 = sbr.rel (!%p20_p4) target bundleno = 1 (0x1), region = 106 }

</bundles_post_ra>
